<compile_context>
chip_gen: v6e
topology: v6e:2x2x1
jax: 0.10.0
libtpu: 0.0.40
codegen_flags: <defaults>
</compile_context>

<pallas_src>
import functools

import jax
import jax.numpy as jnp
from jax.experimental import pallas as pl
from jax.experimental.pallas import tpu as pltpu


def _round_up(x, m):
    return (x + m - 1) // m * m


def _round_down_min(x, m):
    return max(m, x // m * m)


def _vmem_capacity_bytes():
    try:
        return int(pltpu.get_tpu_info().vmem_capacity_bytes)
    except Exception:
        return 64 * 1024 * 1024  # conservative fallback (v7x per-core VMEM)


# ----------------------------------------------------------------------------
# Fast path: whole (B, C, S) activation resident in VMEM, single fused kernel.
# ----------------------------------------------------------------------------
def _se_fused_kernel(x_ref, w1_ref, b1_ref, w2_ref, b2_ref, o_ref, *, inv_s):
    x = x_ref[...].astype(jnp.float32)                          # (B, C, S)
    pooled = jnp.sum(x, axis=-1) * inv_s                        # (B, C) f32
    h = jnp.dot(pooled, w1_ref[...],
                preferred_element_type=jnp.float32) + b1_ref[...]
    h = jnp.maximum(h, 0.0)
    # TODO(synk): nn.Dropout is identity in eval mode; training dropout not implemented.
    y = jnp.dot(h, w2_ref[...],
                preferred_element_type=jnp.float32) + b2_ref[...]
    scale = jax.nn.sigmoid(y)                                   # (B, C) f32
    o_ref[...] = (x * scale[:, :, None]).astype(o_ref.dtype)


# ----------------------------------------------------------------------------
# Tiled pass 1: masked partial spatial sums, grid = (groups, tiles_per_group).
# Leading "parallel" axis lets both v7x TensorCores share the reduction.
# ----------------------------------------------------------------------------
def _se_partial_sum_kernel(x_ref, psum_ref, *, ts, s_total, tiles_per_group):
    g = pl.program_id(0)
    j = pl.program_id(1)

    @pl.when(j == 0)
    def _():
        psum_ref[...] = jnp.zeros_like(psum_ref)

    t = g * tiles_per_group + j                 # global (unclamped) tile index
    start = t * ts
    lane = jax.lax.broadcasted_iota(jnp.int32, x_ref.shape, 2)
    valid = (start + lane) < s_total            # masks ragged tile AND extra tiles
    xv = jnp.where(valid, x_ref[...].astype(jnp.float32), 0.0)
    psum_ref[...] += jnp.sum(xv, axis=-1)[None]


# ----------------------------------------------------------------------------
# Tiled pass 2: broadcast multiply x * scale (scale kept in f32).
# ----------------------------------------------------------------------------
def _se_apply_kernel(x_ref, s_ref, o_ref):
    o_ref[...] = (x_ref[...].astype(jnp.float32) * s_ref[...]).astype(o_ref.dtype)


# ----------------------------------------------------------------------------
# Forward wrapper
# ----------------------------------------------------------------------------
def se_block_forward(x, w1, b1, w2, b2, *, tile_s=2048, force_two_pass=False):
    """SEBlock forward (eval mode).

    x : (B, C, D, H, W)  (PyTorch NCDHW)
    w1: (C, Cr)  b1: (Cr,)   -- fc[0].weight.T / fc[0].bias   (Cr = C // reduction)
    w2: (Cr, C)  b2: (C,)    -- fc[3].weight.T / fc[3].bias
    Returns (B, C, D, H, W).
    """
    B, C, D, H, W = x.shape
    S = D * H * W
    Cr = w1.shape[1]
    itemsize = x.dtype.itemsize
    inv_s = 1.0 / float(S)

    x_flat = x.reshape(B, C, S)

    w1f = w1.astype(jnp.float32)
    w2f = w2.astype(jnp.float32)
    b1_2d = b1.reshape(1, Cr).astype(jnp.float32)
    b2_2d = b2.reshape(1, C).astype(jnp.float32)

    vmem_cap = _vmem_capacity_bytes()
    x_bytes = B * C * S * itemsize

    # ---- fast path: whole activation resident in VMEM (one fused kernel) ----
    if (not force_two_pass) and x_bytes <= vmem_cap // 16:
        vmem_limit = int(min(vmem_cap // 2, max(32 << 20, 8 * x_bytes)))
        out = pl.pallas_call(
            functools.partial(_se_fused_kernel, inv_s=inv_s),
            out_shape=jax.ShapeDtypeStruct((B, C, S), x.dtype),
            grid_spec=pltpu.PrefetchScalarGridSpec(
                num_scalar_prefetch=0,
                grid=(1,),
                in_specs=[
                    pl.BlockSpec((B, C, S), lambda i: (0, 0, 0)),
                    pl.BlockSpec((C, Cr), lambda i: (0, 0)),
                    pl.BlockSpec((1, Cr), lambda i: (0, 0)),
                    pl.BlockSpec((Cr, C), lambda i: (0, 0)),
                    pl.BlockSpec((1, C), lambda i: (0, 0)),
                ],
                out_specs=pl.BlockSpec((B, C, S), lambda i: (0, 0, 0)),
            ),
            compiler_params=pltpu.CompilerParams(
                dimension_semantics=("arbitrary",),
                vmem_limit_bytes=vmem_limit),
        )(x_flat, w1f, b1_2d, w2f, b2_2d)
        return out.reshape(B, C, D, H, W)

    # ---- tiled two-pass path --------------------------------------------------
    # Spatial tile: multiple of 128 lanes, sized so double-buffered in/out blocks
    # (plus f32 temporaries) stay well inside the device's VMEM.
    bytes_per_pos = B * C * itemsize
    block_budget = max(128 * bytes_per_pos, vmem_cap // 24)
    max_ts = _round_down_min(block_budget // bytes_per_pos, 128)
    ts = max(128, min(int(tile_s), max_ts, _round_up(S, 128)))
    n_tiles = pl.cdiv(S, ts)
    block_bytes = B * C * ts * itemsize
    vmem_limit = int(min(int(0.7 * vmem_cap), max(32 << 20, 10 * block_bytes)))

    # ---- pass 1: masked partial spatial sums (no padding of x) -------------
    n_groups = 2 if n_tiles >= 2 else 1
    tiles_per_group = pl.cdiv(n_tiles, n_groups)
    last_tile = n_tiles - 1

    def x_map(g, j):
        # Clamp so an extra (fully masked) step never indexes past the array.
        return (0, 0, jnp.minimum(g * tiles_per_group + j, last_tile))

    partial = pl.pallas_call(
        functools.partial(_se_partial_sum_kernel, ts=ts, s_total=S,
                          tiles_per_group=tiles_per_group),
        out_shape=jax.ShapeDtypeStruct((n_groups, B, C), jnp.float32),
        grid_spec=pltpu.PrefetchScalarGridSpec(
            num_scalar_prefetch=0,
            grid=(n_groups, tiles_per_group),
            in_specs=[pl.BlockSpec((B, C, ts), x_map)],
            out_specs=pl.BlockSpec((1, B, C), lambda g, j: (g, 0, 0)),
        ),
        compiler_params=pltpu.CompilerParams(
            dimension_semantics=("parallel", "arbitrary"),
            vmem_limit_bytes=vmem_limit),
    )(x_flat)

    # Tiny SE FC stack on the combined sum in plain JAX (negligible cost,
    # avoids serializing pass 1 on a single core just to fuse ~1 KiB of work).
    pooled = jnp.sum(partial, axis=0) * inv_s                    # (B, C) f32
    h = jnp.maximum(pooled @ w1f + b1_2d, 0.0)
    # TODO(synk): nn.Dropout is identity in eval mode; training dropout not implemented.
    scale = jax.nn.sigmoid(h @ w2f + b2_2d)                      # (B, C) f32
    scale3 = scale.reshape(B, C, 1)                              # keep f32

    # ---- pass 2: x * scale, tiled over S (partial last block clipped) -------
    out = pl.pallas_call(
        _se_apply_kernel,
        out_shape=jax.ShapeDtypeStruct((B, C, S), x.dtype),
        grid_spec=pltpu.PrefetchScalarGridSpec(
            num_scalar_prefetch=0,
            grid=(n_tiles,),
            in_specs=[
                pl.BlockSpec((B, C, ts), lambda i: (0, 0, i)),
                pl.BlockSpec((B, C, 1), lambda i: (0, 0, 0)),
            ],
            out_specs=pl.BlockSpec((B, C, ts), lambda i: (0, 0, i)),
        ),
        compiler_params=pltpu.CompilerParams(
            dimension_semantics=("parallel",),     # shardable across v7x TCs
            vmem_limit_bytes=vmem_limit),
    )(x_flat, scale3)

    return out.reshape(B, C, D, H, W)


# ----------------------------------------------------------------------------
def _reference(x, w1, b1, w2, b2):
    pooled = jnp.mean(x, axis=(2, 3, 4))
    h = jnp.maximum(pooled @ w1 + b1, 0.0)
    y = jax.nn.sigmoid(h @ w2 + b2)
    return x * y[:, :, None, None, None]


if __name__ == "__main__":
    key = jax.random.PRNGKey(0)

    # ---- test 1: typical shape (exercises the fused fast path on most gens) ----
    B, C, D, H, W = 2, 128, 16, 16, 16
    Cr = C // 16
    kx, k1, k2, k3, k4, key = jax.random.split(key, 6)
    x = jax.random.normal(kx, (B, C, D, H, W), dtype=jnp.float32)
    w1 = 0.1 * jax.random.normal(k1, (C, Cr), dtype=jnp.float32)
    b1 = 0.1 * jax.random.normal(k2, (Cr,), dtype=jnp.float32)
    w2 = 0.1 * jax.random.normal(k3, (Cr, C), dtype=jnp.float32)
    b2 = 0.1 * jax.random.normal(k4, (C,), dtype=jnp.float32)

    out = jax.jit(se_block_forward)(x, w1, b1, w2, b2)
    jax.block_until_ready(out)
    ref = _reference(x, w1, b1, w2, b2)
    assert out.shape == x.shape
    assert bool(jnp.allclose(out, ref, atol=1e-4, rtol=1e-4))

    # ---- test 2: ragged spatial size, small tiles, forced tiled two-pass path ----
    B2, C2, D2, H2, W2 = 2, 32, 5, 9, 13        # S = 585 (not a multiple of 128)
    Cr2 = C2 // 16
    kx, k1, k2, k3, k4, key = jax.random.split(key, 6)
    x2 = jax.random.normal(kx, (B2, C2, D2, H2, W2), dtype=jnp.float32)
    w1b = 0.1 * jax.random.normal(k1, (C2, Cr2), dtype=jnp.float32)
    b1b = 0.1 * jax.random.normal(k2, (Cr2,), dtype=jnp.float32)
    w2b = 0.1 * jax.random.normal(k3, (Cr2, C2), dtype=jnp.float32)
    b2b = 0.1 * jax.random.normal(k4, (C2,), dtype=jnp.float32)

    fwd2 = jax.jit(functools.partial(se_block_forward, tile_s=128,
                                     force_two_pass=True))
    out2 = fwd2(x2, w1b, b1b, w2b, b2b)
    jax.block_until_ready(out2)
    ref2 = _reference(x2, w1b, b1b, w2b, b2b)
    assert out2.shape == x2.shape
    assert bool(jnp.allclose(out2, ref2, atol=1e-4, rtol=1e-4))

    print("KERNEL_OK")
</pallas_src>

<mosaic_0001>
module attributes {stable_mosaic.version = 11 : i64} {
  func.func @_se_fused_kernel(%arg0: i32, %arg1: memref<2x128x4096xf32, #tpu.memory_space<vmem>>, %arg2: memref<128x8xf32, #tpu.memory_space<vmem>>, %arg3: memref<1x8xf32, #tpu.memory_space<vmem>>, %arg4: memref<8x128xf32, #tpu.memory_space<vmem>>, %arg5: memref<1x128xf32, #tpu.memory_space<vmem>>, %arg6: memref<2x128x4096xf32, #tpu.memory_space<vmem>>) attributes {dimension_semantics = [#tpu.dimension_semantics<arbitrary>], iteration_bounds = array<i64: 1>, scalar_prefetch = 0 : i64, scratch_operands = 0 : i64, tpu.core_type = #tpu.core_type<tc>, window_params = [{pipeline_mode = #tpu.pipeline_mode<synchronous>, transform_indices = @transform_0, window_bounds = array<i64: 2, 128, 4096>}, {pipeline_mode = #tpu.pipeline_mode<synchronous>, transform_indices = @transform_1, window_bounds = array<i64: 128, 8>}, {pipeline_mode = #tpu.pipeline_mode<synchronous>, transform_indices = @transform_2, window_bounds = array<i64: 1, 8>}, {pipeline_mode = #tpu.pipeline_mode<synchronous>, transform_indices = @transform_3, window_bounds = array<i64: 8, 128>}, {pipeline_mode = #tpu.pipeline_mode<synchronous>, transform_indices = @transform_4, window_bounds = array<i64: 1, 128>}, {pipeline_mode = #tpu.pipeline_mode<synchronous>, transform_indices = @transform_5, window_bounds = array<i64: 2, 128, 4096>}]} {
    %c0 = arith.constant 0 : index
    %c0_0 = arith.constant 0 : index
    %c0_1 = arith.constant 0 : index
    %0 = vector.load %arg1[%c0, %c0_0, %c0_1] : memref<2x128x4096xf32, #tpu.memory_space<vmem>>, vector<2x128x4096xf32>
    %cst = arith.constant dense<0.000000e+00> : vector<2x128xf32>
    %1 = vector.multi_reduction <add>, %0, %cst [2] : vector<2x128x4096xf32> to vector<2x128xf32>
    %cst_2 = arith.constant 2.44140625E-4 : f32
    %2 = vector.broadcast %cst_2 : f32 to vector<2x128xf32>
    %3 = arith.mulf %1, %2 : vector<2x128xf32>
    %c0_3 = arith.constant 0 : index
    %c0_4 = arith.constant 0 : index
    %4 = vector.load %arg2[%c0_3, %c0_4] : memref<128x8xf32, #tpu.memory_space<vmem>>, vector<128x8xf32>
    %cst_5 = arith.constant dense<0.000000e+00> : vector<2x8xf32>
    %5 = tpu.matmul %3, %4, %cst_5 {dimension_numbers = #tpu.dot_dimension_numbers<[1], [0], [0], [1], [0, 0, 1, 1], [], []>} : vector<2x128xf32>, vector<128x8xf32>, vector<2x8xf32> -> vector<2x8xf32>
    %c0_6 = arith.constant 0 : index
    %c0_7 = arith.constant 0 : index
    %6 = vector.load %arg3[%c0_6, %c0_7] : memref<1x8xf32, #tpu.memory_space<vmem>>, vector<1x8xf32>
    %7 = vector.broadcast %6 : vector<1x8xf32> to vector<2x8xf32>
    %8 = arith.addf %5, %7 : vector<2x8xf32>
    %cst_8 = arith.constant 0.000000e+00 : f32
    %9 = vector.broadcast %cst_8 : f32 to vector<2x8xf32>
    %10 = arith.maximumf %8, %9 : vector<2x8xf32>
    %c0_9 = arith.constant 0 : index
    %c0_10 = arith.constant 0 : index
    %11 = vector.load %arg4[%c0_9, %c0_10] : memref<8x128xf32, #tpu.memory_space<vmem>>, vector<8x128xf32>
    %cst_11 = arith.constant dense<0.000000e+00> : vector<2x128xf32>
    %12 = tpu.matmul %10, %11, %cst_11 {dimension_numbers = #tpu.dot_dimension_numbers<[1], [0], [0], [1], [0, 0, 1, 1], [], []>} : vector<2x8xf32>, vector<8x128xf32>, vector<2x128xf32> -> vector<2x128xf32>
    %c0_12 = arith.constant 0 : index
    %c0_13 = arith.constant 0 : index
    %13 = vector.load %arg5[%c0_12, %c0_13] : memref<1x128xf32, #tpu.memory_space<vmem>>, vector<1x128xf32>
    %14 = vector.broadcast %13 : vector<1x128xf32> to vector<2x128xf32>
    %15 = arith.addf %12, %14 : vector<2x128xf32>
    %16 = arith.negf %15 : vector<2x128xf32>
    %17 = math.exp %16 : vector<2x128xf32>
    %cst_14 = arith.constant 1.000000e+00 : f32
    %18 = vector.broadcast %cst_14 : f32 to vector<2x128xf32>
    %19 = arith.addf %18, %17 : vector<2x128xf32>
    %20 = arith.divf %18, %19 : vector<2x128xf32>
    %21 = vector.shape_cast %20 : vector<2x128xf32> to vector<2x128x1xf32>
    %22 = vector.broadcast %21 : vector<2x128x1xf32> to vector<2x128x4096xf32>
    %23 = arith.mulf %0, %22 : vector<2x128x4096xf32>
    %c0_15 = arith.constant 0 : index
    %c0_16 = arith.constant 0 : index
    %c0_17 = arith.constant 0 : index
    %24 = vector.load %arg6[%c0_15, %c0_16, %c0_17] : memref<2x128x4096xf32, #tpu.memory_space<vmem>>, vector<2x128x4096xf32>
    tpu.vector_store %arg6[%c0_15, %c0_16, %c0_17], %23 {strides = array<i32>} : memref<2x128x4096xf32, #tpu.memory_space<vmem>>, vector<2x128x4096xf32>,
    return
  }
  func.func @transform_0(%arg0: i32) -> (i32, i32, i32) {
    %c0_i32 = arith.constant 0 : i32
    %c0_i32_0 = arith.constant 0 : i32
    %c0_i32_1 = arith.constant 0 : i32
    %c0_i32_2 = arith.constant 0 : i32
    return %c0_i32, %c0_i32_0, %c0_i32_1 : i32, i32, i32
  }
  func.func @transform_1(%arg0: i32) -> (i32, i32) {
    %c0_i32 = arith.constant 0 : i32
    %c0_i32_0 = arith.constant 0 : i32
    %c0_i32_1 = arith.constant 0 : i32
    return %c0_i32, %c0_i32_0 : i32, i32
  }
  func.func @transform_2(%arg0: i32) -> (i32, i32) {
    %c0_i32 = arith.constant 0 : i32
    %c0_i32_0 = arith.constant 0 : i32
    %c0_i32_1 = arith.constant 0 : i32
    return %c0_i32, %c0_i32_0 : i32, i32
  }
  func.func @transform_3(%arg0: i32) -> (i32, i32) {
    %c0_i32 = arith.constant 0 : i32
    %c0_i32_0 = arith.constant 0 : i32
    %c0_i32_1 = arith.constant 0 : i32
    return %c0_i32, %c0_i32_0 : i32, i32
  }
  func.func @transform_4(%arg0: i32) -> (i32, i32) {
    %c0_i32 = arith.constant 0 : i32
    %c0_i32_0 = arith.constant 0 : i32
    %c0_i32_1 = arith.constant 0 : i32
    return %c0_i32, %c0_i32_0 : i32, i32
  }
  func.func @transform_5(%arg0: i32) -> (i32, i32, i32) {
    %c0_i32 = arith.constant 0 : i32
    %c0_i32_0 = arith.constant 0 : i32
    %c0_i32_1 = arith.constant 0 : i32
    %c0_i32_2 = arith.constant 0 : i32
    return %c0_i32, %c0_i32_0, %c0_i32_1 : i32, i32, i32
  }
}

</mosaic_0001>

<bundles_post_ra>
// kernel: se_block_forward.1
= control target key start
LH: loop header
LB: loop body
LE: loop exit
PB: predicated region body
PF: predicated region fallthrough
CT: control target
= control target key end

     0   :  { %vm5819_vm0 = vmmov 0   ;;  %vm2198_vm1 = vcmask 130112   ;;  %vm2205_vm2 = vcmask 195712   ;;  %vm2212_vm3 = vcmask 261312   ;;  %s16335_s0 = inlined_call_operand.vmem [shape: f32[2,128,4096], index: 0, kind: input, shape index: {}]   ;;  %s16336_s1 = inlined_call_operand.vmem [shape: f32[128,8], index: 1, kind: input, shape index: {}]   ;;  %s16337_s3 = inlined_call_operand.vmem [shape: f32[8,128], index: 3, kind: input, shape index: {}]   ;;  %s16338_s2 = inlined_call_operand.vmem [shape: f32[1,8], index: 2, kind: input, shape index: {}]   ;;  %s16339_s4 = inlined_call_operand.vmem [shape: f32[1,128], index: 4, kind: input, shape index: {}]   ;;  %s16340_s5 = inlined_call_operand.vmem [shape: f32[2,128,4096], index: 5, kind: output, shape index: {}]  }
   0x1   :  { %v532_v0 = vld [vmem:[%s16335_s0 + $0x1000] sm:$0xff]  ;;  %v533_v1 = vld [vmem:[%s16335_s0 + $0x1008] sm:$0xff]  ;;  %v534_v2 = vld [vmem:[%s16335_s0 + $0x1010] sm:$0xff]  ;;  %vm2219_vm4 = vcmask 326912   ;;  %vm2226_vm5 = vcmask 392512   ;;  %vm2233_vm6 = vcmask 458112  }
   0x2   :  { %v1572_v3 = vadd.f32 %v533_v1, %v532_v0  ;;  %v535_v4 = vld [vmem:[%s16335_s0 + $0x1018] sm:$0xff]  ;;  %v536_v6 = vld [vmem:[%s16335_s0 + $0x1020] sm:$0xff]  ;;  %v537_v8 = vld [vmem:[%s16335_s0 + $0x1028] sm:$0xff]  ;;  %vm2240_vm7 = vcmask 523712   ;;  %vm2247_vm8 = vcmask 589312   ;;  %vm2254_vm9 = vcmask 654912  }
   0x3   :  { %v538_v10 = vld [vmem:[%s16335_s0 + $0x1030] sm:$0xff]  ;;  %v539_v12 = vld [vmem:[%s16335_s0 + $0x1038] sm:$0xff]  ;;  %v20_v13 = vld [vmem:[%s16335_s0] sm:$0xff]  ;;  %vm2261_vm10 = vcmask 720512   ;;  %vm2268_vm11 = vcmask 786112   ;;  %vm2275_vm12 = vcmask 851712  }
   0x4   :  { %v1573_v5 = vadd.f32 %v1572_v3, %v534_v2  ;;  %v21_v15 = vld [vmem:[%s16335_s0 + $0x8] sm:$0xff]  ;;  %v22_v16 = vld [vmem:[%s16335_s0 + $0x10] sm:$0xff]  ;;  %v540_v17 = vld [vmem:[%s16335_s0 + $0x1040] sm:$0xff]  ;;  %vm2282_vm13 = vcmask 917312   ;;  %vm2289_vm14 = vcmask 982912   ;;  %vm2296_vm15 = vcmask 1048512  }
   0x5   :  { %v1044_v18 = vadd.f32 %v21_v15, %v20_v13  ;;  %v23_v20 = vld [vmem:[%s16335_s0 + $0x18] sm:$0xff]  ;;  %v541_v21 = vld [vmem:[%s16335_s0 + $0x1048] sm:$0xff]  ;;  %v24_v24 = vld [vmem:[%s16335_s0 + $0x20] sm:$0xff] }
   0x6   :  { %v1574_v7 = vadd.f32 %v1573_v5, %v535_v4  ;;  %v542_v25 = vld [vmem:[%s16335_s0 + $0x1050] sm:$0xff]  ;;  %v25_v28 = vld [vmem:[%s16335_s0 + $0x28] sm:$0xff]  ;;  %v543_v29 = vld [vmem:[%s16335_s0 + $0x1058] sm:$0xff] }
   0x7   :  { %v1045_v22 = vadd.f32 %v1044_v18, %v22_v16  ;;  %v26_v32 = vld [vmem:[%s16335_s0 + $0x30] sm:$0xff]  ;;  %v544_v33 = vld [vmem:[%s16335_s0 + $0x1060] sm:$0xff]  ;;  %v27_v36 = vld [vmem:[%s16335_s0 + $0x38] sm:$0xff] }
   0x8   :  { %v1575_v9 = vadd.f32 %v1574_v7, %v536_v6  ;;  %v564_v37 = vld [vmem:[%s16335_s0 + $0x1100] sm:$0xff]  ;;  %v565_v38 = vld [vmem:[%s16335_s0 + $0x1108] sm:$0xff]  ;;  %v566_v41 = vld [vmem:[%s16335_s0 + $0x1110] sm:$0xff] }
   0x9   :  { %v1046_v26 = vadd.f32 %v1045_v22, %v23_v20  ;;  %v545_v39 = vld [vmem:[%s16335_s0 + $0x1068] sm:$0xff]  ;;  %v1605_v42 = vadd.f32 %v565_v38, %v564_v37  ;;  %v28_v44 = vld [vmem:[%s16335_s0 + $0x40] sm:$0xff]  ;;  %v567_v45 = vld [vmem:[%s16335_s0 + $0x1118] sm:$0xff] }
   0xa   :  { %v1576_v11 = vadd.f32 %v1575_v9, %v537_v8  ;;  %v546_v46 = vld [vmem:[%s16335_s0 + $0x1070] sm:$0xff]  ;;  %v29_v50 = vld [vmem:[%s16335_s0 + $0x48] sm:$0xff]  ;;  %v568_v51 = vld [vmem:[%s16335_s0 + $0x1120] sm:$0xff] }
   0xb   :  { %v1047_v30 = vadd.f32 %v1046_v26, %v24_v24  ;;  %v1606_v48 = vadd.f32 %v1605_v42, %v566_v41  ;;  %v547_v52 = vld [vmem:[%s16335_s0 + $0x1078] sm:$0xff]  ;;  %v30_v56 = vld [vmem:[%s16335_s0 + $0x50] sm:$0xff]  ;;  %v569_v57 = vld [vmem:[%s16335_s0 + $0x1128] sm:$0xff] }
   0xc   :  { %v1577_v14 = vadd.f32 %v1576_v11, %v538_v10  ;;  %v548_v58 = vld [vmem:[%s16335_s0 + $0x1080] sm:$0xff]  ;;  %v31_v62 = vld [vmem:[%s16335_s0 + $0x58] sm:$0xff]  ;;  %v570_v63 = vld [vmem:[%s16335_s0 + $0x1130] sm:$0xff] }
   0xd   :  { %v1048_v34 = vadd.f32 %v1047_v30, %v25_v28  ;;  %v1607_v54 = vadd.f32 %v1606_v48, %v567_v45  ;;  %v549_v0 = vld [vmem:[%s16335_s0 + $0x1088] sm:$0xff]  ;;  %v550_v3 = vld [vmem:[%s16335_s0 + $0x1090] sm:$0xff]  ;;  %v32_v5 = vld [vmem:[%s16335_s0 + $0x60] sm:$0xff] }
   0xe   :  { %v1578_v19 = vadd.f32 %v1577_v14, %v539_v12  ;;  %v571_v6 = vld [vmem:[%s16335_s0 + $0x1138] sm:$0xff]  ;;  %v52_v9 = vld [vmem:[%s16335_s0 + $0x100] sm:$0xff]  ;;  %v53_v10 = vld [vmem:[%s16335_s0 + $0x108] sm:$0xff] }
   0xf   :  { %v1049_v40 = vadd.f32 %v1048_v34, %v26_v32  ;;  %v1608_v60 = vadd.f32 %v1607_v54, %v568_v51  ;;  %v54_v11 = vld [vmem:[%s16335_s0 + $0x110] sm:$0xff]  ;;  %v33_v13 = vld [vmem:[%s16335_s0 + $0x68] sm:$0xff]  ;;  %v572_v14 = vld [vmem:[%s16335_s0 + $0x1140] sm:$0xff]  ;;  %v1077_v15 = vadd.f32 %v53_v10, %v52_v9 }
  0x10   :  { %v1579_v23 = vadd.f32 %v1578_v19, %v540_v17  ;;  %v551_v16 = vld [vmem:[%s16335_s0 + $0x1098] sm:$0xff]  ;;  %v573_v22 = vld [vmem:[%s16335_s0 + $0x1148] sm:$0xff]  ;;  %v552_v24 = vld [vmem:[%s16335_s0 + $0x10a0] sm:$0xff] }
  0x11   :  { %v1050_v47 = vadd.f32 %v1049_v40, %v27_v36  ;;  %v1609_v2 = vadd.f32 %v1608_v60, %v569_v57  ;;  %v55_v19 = vld [vmem:[%s16335_s0 + $0x118] sm:$0xff]  ;;  %v574_v30 = vld [vmem:[%s16335_s0 + $0x1150] sm:$0xff]  ;;  %v553_v32 = vld [vmem:[%s16335_s0 + $0x10a8] sm:$0xff] }
  0x12   :  { %v1580_v27 = vadd.f32 %v1579_v23, %v541_v21  ;;  %v34_v21 = vld [vmem:[%s16335_s0 + $0x70] sm:$0xff]  ;;  %v1078_v23 = vadd.f32 %v1077_v15, %v54_v11  ;;  %v36_v37 = vld [vmem:[%s16335_s0 + $0x80] sm:$0xff]  ;;  %v575_v38 = vld [vmem:[%s16335_s0 + $0x1158] sm:$0xff] }
  0x13   :  { %v1051_v53 = vadd.f32 %v1050_v47, %v28_v44  ;;  %v1610_v8 = vadd.f32 %v1609_v2, %v570_v63  ;;  %v554_v40 = vld [vmem:[%s16335_s0 + $0x10b0] sm:$0xff]  ;;  %v555_v44 = vld [vmem:[%s16335_s0 + $0x10b8] sm:$0xff]  ;;  %v576_v47 = vld [vmem:[%s16335_s0 + $0x1160] sm:$0xff] }
  0x14   :  { %v1581_v31 = vadd.f32 %v1580_v27, %v542_v25  ;;  %v56_v27 = vld [vmem:[%s16335_s0 + $0x120] sm:$0xff]  ;;  %v597_v57 = vld [vmem:[%s16335_s0 + $0x1208] sm:$0xff]  ;;  %v578_v2 = vld [vmem:[%s16335_s0 + $0x1170] sm:$0xff] }
  0x15   :  { %v1052_v59 = vadd.f32 %v1051_v53, %v29_v50  ;;  %v1611_v18 = vadd.f32 %v1610_v8, %v571_v6  ;;  %v596_v53 = vld [vmem:[%s16335_s0 + $0x1200] sm:$0xff]  ;;  %v61_v8 = vld [vmem:[%s16335_s0 + $0x148] sm:$0xff]  ;;  %v558_v15 = vld [vmem:[%s16335_s0 + $0x10d0] sm:$0xff] }
  0x16   :  { %v1582_v35 = vadd.f32 %v1581_v31, %v543_v29  ;;  %v35_v29 = vld [vmem:[%s16335_s0 + $0x78] sm:$0xff]  ;;  %v1079_v31 = vadd.f32 %v1078_v23, %v55_v19  ;;  %v1638_v63 = vadd.f32 %v597_v57, %v596_v53  ;;  %v40_v11 = vld [vmem:[%s16335_s0 + $0xa0] sm:$0xff]  ;;  %v86_v53 = vld [vmem:[%s16335_s0 + $0x210] sm:$0xff] }
  0x17   :  { %v1053_v1 = vadd.f32 %v1052_v59, %v30_v56  ;;  %v1612_v26 = vadd.f32 %v1611_v18, %v572_v14  ;;  %v556_v59 = vld [vmem:[%s16335_s0 + $0x10c0] sm:$0xff]  ;;  %v62_v18 = vld [vmem:[%s16335_s0 + $0x150] sm:$0xff] }
  0x18   :  { %v1583_v43 = vadd.f32 %v1582_v35, %v544_v33  ;;  %v57_v35 = vld [vmem:[%s16335_s0 + $0x128] sm:$0xff]  ;;  %v600_v14 = vld [vmem:[%s16335_s0 + $0x1220] sm:$0xff] }
  0x19   :  { %v1054_v7 = vadd.f32 %v1053_v1, %v31_v62  ;;  %v1613_v34 = vadd.f32 %v1612_v26, %v573_v22  ;;  %v60_v62 = vld [vmem:[%s16335_s0 + $0x140] sm:$0xff]  ;;  %v39_v1 = vld [vmem:[%s16335_s0 + $0x98] sm:$0xff] }
  0x1a   :  { %v1584_v49 = vadd.f32 %v1583_v43, %v545_v39  ;;  %v1080_v39 = vadd.f32 %v1079_v31, %v56_v27  ;;  %v58_v43 = vld [vmem:[%s16335_s0 + $0x130] sm:$0xff]  ;;  %v580_v22 = vld [vmem:[%s16335_s0 + $0x1180] sm:$0xff] }
  0x1b   :  { %v1055_v17 = vadd.f32 %v1054_v7, %v32_v5  ;;  %v1614_v42 = vadd.f32 %v1613_v34, %v574_v30  ;;  %v557_v5 = vld [vmem:[%s16335_s0 + $0x10c8] sm:$0xff]  ;;  %v560_v26 = vld [vmem:[%s16335_s0 + $0x10e0] sm:$0xff] }
  0x1c   :  { %v1585_v55 = vadd.f32 %v1584_v49, %v546_v46  ;;  %v37_v46 = vld [vmem:[%s16335_s0 + $0x88] sm:$0xff]  ;;  %v1081_v48 = vadd.f32 %v1080_v39, %v57_v35  ;;  %v38_v49 = vld [vmem:[%s16335_s0 + $0x90] sm:$0xff] }
  0x1d   :  { %v1056_v25 = vadd.f32 %v1055_v17, %v33_v13  ;;  %v1615_v51 = vadd.f32 %v1614_v42, %v575_v38  ;;  %v602_v35 = vld [vmem:[%s16335_s0 + $0x1230] sm:$0xff] }
  0x1e   :  { %v1586_v61 = vadd.f32 %v1585_v55, %v547_v52  ;;  %v59_v52 = vld [vmem:[%s16335_s0 + $0x138] sm:$0xff]  ;;  %v577_v55 = vld [vmem:[%s16335_s0 + $0x1168] sm:$0xff]  ;;  %v1082_v56 = vadd.f32 %v1081_v48, %v58_v43  ;;  %v582_v39 = vld [vmem:[%s16335_s0 + $0x1190] sm:$0xff] }
  0x1f   :  { %v1057_v33 = vadd.f32 %v1056_v25, %v34_v21  ;;  %v41_v21 = vld [vmem:[%s16335_s0 + $0xa8] sm:$0xff]  ;;  %v559_v25 = vld [vmem:[%s16335_s0 + $0x10d8] sm:$0xff]  ;;  %v44_v48 = vld [vmem:[%s16335_s0 + $0xc0] sm:$0xff] }
  0x20   :  { %v1587_v4 = vadd.f32 %v1586_v61, %v548_v58  ;;  %v598_v58 = vld [vmem:[%s16335_s0 + $0x1210] sm:$0xff]  ;;  %v1616_v61 = vadd.f32 %v1615_v51, %v576_v47  ;;  %v85_v47 = vld [vmem:[%s16335_s0 + $0x208] sm:$0xff] }
  0x21   :  { %v1058_v41 = vadd.f32 %v1057_v33, %v35_v29  ;;  %v1639_v9 = vadd.f32 %v1638_v63, %v598_v58  ;;  %v63_v29 = vld [vmem:[%s16335_s0 + $0x158] sm:$0xff]  ;;  %v581_v33 = vld [vmem:[%s16335_s0 + $0x1188] sm:$0xff]  ;;  %v604_v58 = vld [vmem:[%s16335_s0 + $0x1240] sm:$0xff] }
  0x22   :  { %v1588_v12 = vadd.f32 %v1587_v4, %v549_v0  ;;  %v599_v4 = vld [vmem:[%s16335_s0 + $0x1218] sm:$0xff]  ;;  %v1617_v7 = vadd.f32 %v1616_v61, %v577_v55  ;;  %v65_v51 = vld [vmem:[%s16335_s0 + $0x168] sm:$0xff] }
  0x23   :  { %v1059_v50 = vadd.f32 %v1058_v41, %v36_v37  ;;  %v1640_v19 = vadd.f32 %v1639_v9, %v599_v4  ;;  %v43_v37 = vld [vmem:[%s16335_s0 + $0xb8] sm:$0xff]  ;;  %v64_v41 = vld [vmem:[%s16335_s0 + $0x160] sm:$0xff]  ;;  %v45_v61 = vld [vmem:[%s16335_s0 + $0xc8] sm:$0xff] }
  0x24   :  { %v1589_v20 = vadd.f32 %v1588_v12, %v550_v3  ;;  %v1083_v3 = vadd.f32 %v1082_v56, %v59_v52  ;;  %v579_v12 = vld [vmem:[%s16335_s0 + $0x1178] sm:$0xff]  ;;  %v1618_v17 = vadd.f32 %v1617_v7, %v578_v2  ;;  %v584_v4 = vld [vmem:[%s16335_s0 + $0x11a0] sm:$0xff]  ;;  %v46_v9 = vld [vmem:[%s16335_s0 + $0xd0] sm:$0xff] }
  0x25   :  { %v1060_v60 = vadd.f32 %v1059_v50, %v37_v46  ;;  %v1641_v30 = vadd.f32 %v1640_v19, %v600_v14  ;;  %v84_v46 = vld [vmem:[%s16335_s0 + $0x200] sm:$0xff]  ;;  %v583_v56 = vld [vmem:[%s16335_s0 + $0x1198] sm:$0xff]  ;;  %v89_v19 = vld [vmem:[%s16335_s0 + $0x228] sm:$0xff] }
  0x26   :  { %v1590_v28 = vadd.f32 %v1589_v20, %v551_v16  ;;  %v1084_v13 = vadd.f32 %v1083_v3, %v60_v62  ;;  %v88_v7 = vld [vmem:[%s16335_s0 + $0x220] sm:$0xff] }
  0x27   :  { %v1061_v6 = vadd.f32 %v1060_v60, %v38_v49  ;;  %v562_v60 = vld [vmem:[%s16335_s0 + $0x10f0] sm:$0xff] }
  0x28   :  { %v1591_v36 = vadd.f32 %v1590_v28, %v552_v24  ;;  %v1085_v23 = vadd.f32 %v1084_v13, %v61_v8  ;;  %v601_v24 = vld [vmem:[%s16335_s0 + $0x1228] sm:$0xff]  ;;  %v1619_v28 = vadd.f32 %v1618_v17, %v579_v12  ;;  %v563_v8 = vld [vmem:[%s16335_s0 + $0x10f8] sm:$0xff] }
  0x29   :  { %v1062_v16 = vadd.f32 %v1061_v6, %v39_v1  ;;  %v1642_v42 = vadd.f32 %v1641_v30, %v601_v24  ;;  %v605_v6 = vld [vmem:[%s16335_s0 + $0x1248] sm:$0xff]  ;;  %v67_v12 = vld [vmem:[%s16335_s0 + $0x178] sm:$0xff]  ;;  %v90_v30 = vld [vmem:[%s16335_s0 + $0x230] sm:$0xff] }
  0x2a   :  { %v1592_v45 = vadd.f32 %v1591_v36, %v553_v32  ;;  %v42_v32 = vld [vmem:[%s16335_s0 + $0xb0] sm:$0xff]  ;;  %v1086_v34 = vadd.f32 %v1085_v23, %v62_v18  ;;  %v561_v36 = vld [vmem:[%s16335_s0 + $0x10e8] sm:$0xff]  ;;  %v68_v23 = vld [vmem:[%s16335_s0 + $0x180] sm:$0xff] }
  0x2b   :  { %v1063_v27 = vadd.f32 %v1062_v16, %v40_v11  ;;  %v1643_v52 = vadd.f32 %v1642_v42, %v602_v35  ;;  %v585_v16 = vld [vmem:[%s16335_s0 + $0x11a8] sm:$0xff]  ;;  %v606_v18 = vld [vmem:[%s16335_s0 + $0x1250] sm:$0xff]  ;;  %v91_v42 = vld [vmem:[%s16335_s0 + $0x238] sm:$0xff] }
  0x2c   :  { %v1593_v54 = vadd.f32 %v1592_v45, %v554_v40  ;;  %v1620_v40 = vadd.f32 %v1619_v28, %v580_v22  ;;  %v603_v45 = vld [vmem:[%s16335_s0 + $0x1238] sm:$0xff]  ;;  %v69_v35 = vld [vmem:[%s16335_s0 + $0x188] sm:$0xff] }
  0x2d   :  { %v1064_v38 = vadd.f32 %v1063_v27, %v41_v21  ;;  %v1644_v1 = vadd.f32 %v1643_v52, %v603_v45  ;;  %v586_v27 = vld [vmem:[%s16335_s0 + $0x11b0] sm:$0xff]  ;;  %v609_v52 = vld [vmem:[%s16335_s0 + $0x1268] sm:$0xff] }
  0x2e   :  { %v1594_v0 = vadd.f32 %v1593_v54, %v555_v44  ;;  %v1087_v44 = vadd.f32 %v1086_v34, %v63_v29  ;;  %v1621_v50 = vadd.f32 %v1620_v40, %v581_v33  ;;  %v1110_v54 = vadd.f32 %v85_v47, %v84_v46  ;;  %v607_v29 = vld [vmem:[%s16335_s0 + $0x1258] sm:$0xff]  ;;  %v628_v47 = vld [vmem:[%s16335_s0 + $0x1300] sm:$0xff] }
  0x2f   :  { %v1065_v49 = vadd.f32 %v1064_v38, %v42_v32  ;;  %v1645_v13 = vadd.f32 %v1644_v1, %v604_v58  ;;  %v587_v33 = vld [vmem:[%s16335_s0 + $0x11b8] sm:$0xff]  ;;  %v49_v38 = vld [vmem:[%s16335_s0 + $0xe8] sm:$0xff] }
  0x30   :  { %v1595_v10 = vadd.f32 %v1594_v0, %v556_v59  ;;  %v1088_v57 = vadd.f32 %v1087_v44, %v64_v41  ;;  %v87_v59 = vld [vmem:[%s16335_s0 + $0x218] sm:$0xff]  ;;  %v1622_v63 = vadd.f32 %v1621_v50, %v582_v39  ;;  %v66_v0 = vld [vmem:[%s16335_s0 + $0x170] sm:$0xff]  ;;  %v1111_v2 = vadd.f32 %v1110_v54, %v86_v53  ;;  %v608_v41 = vld [vmem:[%s16335_s0 + $0x1260] sm:$0xff] }
  0x31   :  { %v1066_v62 = vadd.f32 %v1065_v49, %v43_v37  ;;  %v1646_v24 = vadd.f32 %v1645_v13, %v605_v6  ;;  %v70_v39 = vld [vmem:[%s16335_s0 + $0x190] sm:$0xff]  ;;  %v588_v50 = vld [vmem:[%s16335_s0 + $0x11c0] sm:$0xff]  ;;  %v71_v58 = vld [vmem:[%s16335_s0 + $0x198] sm:$0xff] }
  0x32   :  { %v1596_v20 = vadd.f32 %v1595_v10, %v557_v5  ;;  %v1089_v5 = vadd.f32 %v1088_v57, %v65_v51  ;;  %v1623_v11 = vadd.f32 %v1622_v63, %v583_v56  ;;  %v1112_v14 = vadd.f32 %v1111_v2, %v87_v59  ;;  %v630_v49 = vld [vmem:[%s16335_s0 + $0x1310] sm:$0xff]  ;;  %v92_v53 = vld [vmem:[%s16335_s0 + $0x240] sm:$0xff]  ;;  %v93_v1 = vld [vmem:[%s16335_s0 + $0x248] sm:$0xff] }
  0x33   :  { %v1067_v10 = vadd.f32 %v1066_v62, %v44_v48  ;;  %v629_v48 = vld [vmem:[%s16335_s0 + $0x1308] sm:$0xff]  ;;  %v72_v6 = vld [vmem:[%s16335_s0 + $0x1a0] sm:$0xff]  ;;  %v94_v13 = vld [vmem:[%s16335_s0 + $0x250] sm:$0xff] }
  0x34   :  { %v1597_v31 = vadd.f32 %v1596_v20, %v558_v15  ;;  %v1090_v17 = vadd.f32 %v1089_v5, %v66_v0  ;;  %v47_v20 = vld [vmem:[%s16335_s0 + $0xd8] sm:$0xff]  ;;  %v1624_v22 = vadd.f32 %v1623_v11, %v584_v4  ;;  %v1671_v54 = vadd.f32 %v629_v48, %v628_v47  ;;  %v589_v62 = vld [vmem:[%s16335_s0 + $0x11c8] sm:$0xff]  ;;  %v610_v0 = vld [vmem:[%s16335_s0 + $0x1270] sm:$0xff] }
  0x35   :  { %v1068_v21 = vadd.f32 %v1067_v10, %v45_v61  ;;  %v631_v61 = vld [vmem:[%s16335_s0 + $0x1318] sm:$0xff]  ;;  %v590_v10 = vld [vmem:[%s16335_s0 + $0x11d0] sm:$0xff]  ;;  %v117_v48 = vld [vmem:[%s16335_s0 + $0x308] sm:$0xff] }
  0x36   :  { %v1598_v43 = vadd.f32 %v1597_v31, %v559_v25  ;;  %v1113_v25 = vadd.f32 %v1112_v14, %v88_v7  ;;  %v1091_v28 = vadd.f32 %v1090_v17, %v67_v12  ;;  %v48_v31 = vld [vmem:[%s16335_s0 + $0xe0] sm:$0xff]  ;;  %v1625_v34 = vadd.f32 %v1624_v22, %v585_v16  ;;  %v611_v12 = vld [vmem:[%s16335_s0 + $0x1278] sm:$0xff]  ;;  %v73_v17 = vld [vmem:[%s16335_s0 + $0x1a8] sm:$0xff] }
  0x37   :  { %v1069_v32 = vadd.f32 %v1068_v21, %v46_v9  ;;  %v1672_v2 = vadd.f32 %v1671_v54, %v630_v49  ;;  %v632_v9 = vld [vmem:[%s16335_s0 + $0x1320] sm:$0xff]  ;;  %v591_v21 = vld [vmem:[%s16335_s0 + $0x11d8] sm:$0xff]  ;;  %v118_v49 = vld [vmem:[%s16335_s0 + $0x310] sm:$0xff] }
  0x38   :  { %v1599_v55 = vadd.f32 %v1598_v43, %v560_v26  ;;  %v1114_v37 = vadd.f32 %v1113_v25, %v89_v19  ;;  %v1092_v40 = vadd.f32 %v1091_v28, %v68_v23  ;;  %v1626_v44 = vadd.f32 %v1625_v34, %v586_v27  ;;  %v612_v23 = vld [vmem:[%s16335_s0 + $0x1280] sm:$0xff]  ;;  %v75_v34 = vld [vmem:[%s16335_s0 + $0x1b8] sm:$0xff] }
  0x39   :  { %v1070_v43 = vadd.f32 %v1069_v32, %v47_v20  ;;  %v1673_v14 = vadd.f32 %v1672_v2, %v631_v61  ;;  %v633_v20 = vld [vmem:[%s16335_s0 + $0x1328] sm:$0xff]  ;;  %v592_v27 = vld [vmem:[%s16335_s0 + $0x11e0] sm:$0xff]  ;;  %v634_v32 = vld [vmem:[%s16335_s0 + $0x1330] sm:$0xff] }
  0x3a   :  { %v1600_v3 = vadd.f32 %v1599_v55, %v561_v36  ;;  %v1647_v36 = vadd.f32 %v1646_v24, %v606_v18  ;;  %v1115_v46 = vadd.f32 %v1114_v37, %v90_v30  ;;  %v1093_v51 = vadd.f32 %v1092_v40, %v69_v35  ;;  %v50_v55 = vld [vmem:[%s16335_s0 + $0xf0] sm:$0xff]  ;;  %v95_v24 = vld [vmem:[%s16335_s0 + $0x258] sm:$0xff]  ;;  %v96_v37 = vld [vmem:[%s16335_s0 + $0x260] sm:$0xff] }
  0x3b   :  { %v1071_v56 = vadd.f32 %v1070_v43, %v48_v31  ;;  %v1627_v57 = vadd.f32 %v1626_v44, %v587_v33  ;;  %v1674_v25 = vadd.f32 %v1673_v14, %v632_v9  ;;  %v593_v33 = vld [vmem:[%s16335_s0 + $0x11e8] sm:$0xff]  ;;  %v614_v40 = vld [vmem:[%s16335_s0 + $0x1290] sm:$0xff]  ;;  %v635_v43 = vld [vmem:[%s16335_s0 + $0x1338] sm:$0xff] }
  0x3c   :  { %v1601_v15 = vadd.f32 %v1600_v3, %v562_v60  ;;  %v1648_v45 = vadd.f32 %v1647_v36, %v607_v29  ;;  %v1116_v60 = vadd.f32 %v1115_v46, %v91_v42  ;;  %v1094_v63 = vadd.f32 %v1093_v51, %v70_v39  ;;  %v51_v3 = vld [vmem:[%s16335_s0 + $0xf8] sm:$0xff]  ;;  %v74_v29 = vld [vmem:[%s16335_s0 + $0x1b0] sm:$0xff]  ;;  %v613_v36 = vld [vmem:[%s16335_s0 + $0x1288] sm:$0xff] }
  0x3d   :  { %v1072_v4 = vadd.f32 %v1071_v56, %v49_v38  ;;  %v1628_v5 = vadd.f32 %v1627_v57, %v588_v50  ;;  %v1675_v38 = vadd.f32 %v1674_v25, %v633_v20  ;;  %v116_v44 = vld [vmem:[%s16335_s0 + $0x300] sm:$0xff]  ;;  %v97_v46 = vld [vmem:[%s16335_s0 + $0x268] sm:$0xff]  ;;  %v594_v50 = vld [vmem:[%s16335_s0 + $0x11f0] sm:$0xff] }
  0x3e   :  { %v1602_v26 = vadd.f32 %v1601_v15, %v563_v8  ;;  %v1649_v59 = vadd.f32 %v1648_v45, %v608_v41  ;;  %v1117_v8 = vadd.f32 %v1116_v60, %v92_v53  ;;  %v1095_v11 = vadd.f32 %v1094_v63, %v71_v58  ;;  %v615_v58 = vld [vmem:[%s16335_s0 + $0x1298] sm:$0xff]  ;;  %v120_v9 = vld [vmem:[%s16335_s0 + $0x320] sm:$0xff]  ;;  %v638_v14 = vld [vmem:[%s16335_s0 + $0x1350] sm:$0xff] }
  0x3f   :  { %v1073_v15 = vadd.f32 %v1072_v4, %v50_v55  ;;  %v1629_v16 = vadd.f32 %v1628_v5, %v589_v62  ;;  %v1676_v47 = vadd.f32 %v1675_v38, %v634_v32  ;;  %v636_v55 = vld [vmem:[%s16335_s0 + $0x1340] sm:$0xff]  ;;  %v1143_v56 = vadd.f32 %v117_v48, %v116_v44  ;;  %v119_v61 = vld [vmem:[%s16335_s0 + $0x318] sm:$0xff]  ;;  %v121_v20 = vld [vmem:[%s16335_s0 + $0x328] sm:$0xff] }
  0x40   :  { %1603 = vadd.xlane.f32.xlu1 %v1602_v26  ;;  %v1650_v7 = vadd.f32 %v1649_v59, %v609_v52  ;;  %v1118_v19 = vadd.f32 %v1117_v8, %v93_v1  ;;  %v1096_v22 = vadd.f32 %v1095_v11, %v72_v6  ;;  %v76_v52 = vld [vmem:[%s16335_s0 + $0x1c0] sm:$0xff]  ;;  %v98_v59 = vld [vmem:[%s16335_s0 + $0x270] sm:$0xff]  ;;  %v595_v62 = vld [vmem:[%s16335_s0 + $0x11f8] sm:$0xff] }
  0x41   :  { %v1074_v26 = vadd.f32 %v1073_v15, %v51_v3  ;;  %v1630_v28 = vadd.f32 %v1629_v16, %v590_v10  ;;  %v1677_v60 = vadd.f32 %v1676_v47, %v635_v43  ;;  %v637_v3 = vld [vmem:[%s16335_s0 + $0x1348] sm:$0xff]  ;;  %v1144_v4 = vadd.f32 %v1143_v56, %v118_v49  ;;  %v616_v6 = vld [vmem:[%s16335_s0 + $0x12a0] sm:$0xff]  ;;  %v78_v11 = vld [vmem:[%s16335_s0 + $0x1d0] sm:$0xff] }
  0x42   :  { %v1651_v18 = vadd.f32 %v1650_v7, %v610_v0  ;;  %v1119_v31 = vadd.f32 %v1118_v19, %v94_v13  ;;  %v1097_v35 = vadd.f32 %v1096_v22, %v73_v17  ;;  %v77_v0 = vld [vmem:[%s16335_s0 + $0x1c8] sm:$0xff]  ;;  %v99_v7 = vld [vmem:[%s16335_s0 + $0x278] sm:$0xff]  ;;  %v122_v32 = vld [vmem:[%s16335_s0 + $0x330] sm:$0xff] }
  0x43   :  { %1075 = vadd.xlane.f32.xlu0 %v1074_v26  ;;  %v1631_v39 = vadd.f32 %v1630_v28, %v591_v21  ;;  %v1678_v8 = vadd.f32 %v1677_v60, %v636_v55  ;;  %v1145_v15 = vadd.f32 %v1144_v4, %v119_v61  ;;  %v617_v17 = vld [vmem:[%s16335_s0 + $0x12a8] sm:$0xff]  ;;  %v79_v22 = vld [vmem:[%s16335_s0 + $0x1d8] sm:$0xff]  ;;  %v640_v38 = vld [vmem:[%s16335_s0 + $0x1360] sm:$0xff] }
  0x44   :  { %v1652_v30 = vadd.f32 %v1651_v18, %v611_v12  ;;  %v1120_v42 = vadd.f32 %v1119_v31, %v95_v24  ;;  %v1098_v45 = vadd.f32 %v1097_v35, %v74_v29  ;;  %v100_v18 = vld [vmem:[%s16335_s0 + $0x280] sm:$0xff]  ;;  %v639_v26 = vld [vmem:[%s16335_s0 + $0x1358] sm:$0xff]  ;;  %v618_v29 = vld [vmem:[%s16335_s0 + $0x12b0] sm:$0xff] }
  0x45   :  { %v1632_v51 = vadd.f32 %v1631_v39, %v592_v27  ;;  %v1679_v19 = vadd.f32 %v1678_v8, %v637_v3  ;;  %v1146_v27 = vadd.f32 %v1145_v15, %v120_v9  ;;  %v660_v43 = vld [vmem:[%s16335_s0 + $0x1400] sm:$0xff]  ;;  %v661_v44 = vld [vmem:[%s16335_s0 + $0x1408] sm:$0xff]  ;;  %v663_v56 = vld [vmem:[%s16335_s0 + $0x1418] sm:$0xff] }
  0x46   :  { %v1653_v41 = vadd.f32 %v1652_v30, %v612_v23  ;;  %v1121_v54 = vadd.f32 %v1120_v42, %v96_v37  ;;  %v1099_v57 = vadd.f32 %v1098_v45, %v75_v34  ;;  %v80_v23 = vld [vmem:[%s16335_s0 + $0x1e0] sm:$0xff]  ;;  %v101_v30 = vld [vmem:[%s16335_s0 + $0x288] sm:$0xff]  ;;  %v619_v34 = vld [vmem:[%s16335_s0 + $0x12b8] sm:$0xff] }
  0x47   :  { %v1633_v63 = vadd.f32 %v1632_v51, %v593_v33  ;;  %v1680_v31 = vadd.f32 %v1679_v19, %v638_v14  ;;  %v81_v33 = vld [vmem:[%s16335_s0 + $0x1e8] sm:$0xff]  ;;  %v1147_v39 = vadd.f32 %v1146_v27, %v121_v20  ;;  %v123_v42 = vld [vmem:[%s16335_s0 + $0x338] sm:$0xff]  ;;  %v620_v45 = vld [vmem:[%s16335_s0 + $0x12c0] sm:$0xff]  ;;  %v1704_v51 = vadd.f32 %v661_v44, %v660_v43 }
  0x48   :  { %v1654_v53 = vadd.f32 %v1653_v41, %v613_v36  ;;  %v1122_v2 = vadd.f32 %v1121_v54, %v97_v46  ;;  %v1100_v5 = vadd.f32 %v1099_v57, %v76_v52  ;;  %v102_v36 = vld [vmem:[%s16335_s0 + $0x290] sm:$0xff]  ;;  %v641_v48 = vld [vmem:[%s16335_s0 + $0x1368] sm:$0xff]  ;;  %v124_v55 = vld [vmem:[%s16335_s0 + $0x340] sm:$0xff] }
  0x49   :  { %v1634_v10 = vadd.f32 %v1633_v63, %v594_v50  ;;  %v1681_v41 = vadd.f32 %v1680_v31, %v639_v26  ;;  %v1148_v49 = vadd.f32 %v1147_v39, %v122_v32  ;;  %v662_v50 = vld [vmem:[%s16335_s0 + $0x1410] sm:$0xff]  ;;  %v125_v3 = vld [vmem:[%s16335_s0 + $0x348] sm:$0xff]  ;;  %v664_v4 = vld [vmem:[%s16335_s0 + $0x1420] sm:$0xff] }
  0x4a   :  { %v1655_v1 = vadd.f32 %v1654_v53, %v614_v40  ;;  %v1123_v13 = vadd.f32 %v1122_v2, %v98_v59  ;;  %v1101_v16 = vadd.f32 %v1100_v5, %v77_v0  ;;  %v103_v53 = vld [vmem:[%s16335_s0 + $0x298] sm:$0xff]  ;;  %v82_v57 = vld [vmem:[%s16335_s0 + $0x1f0] sm:$0xff]  ;;  %v1705_v63 = vadd.f32 %v1704_v51, %v662_v50  ;;  %v644_v20 = vld [vmem:[%s16335_s0 + $0x1380] sm:$0xff] }
  0x4b   :  { %v1635_v21 = vadd.f32 %v1634_v10, %v595_v62  ;;  %v1682_v54 = vadd.f32 %v1681_v41, %v640_v38  ;;  %v642_v61 = vld [vmem:[%s16335_s0 + $0x1370] sm:$0xff]  ;;  %v1149_v62 = vadd.f32 %v1148_v49, %v123_v42  ;;  %v83_v5 = vld [vmem:[%s16335_s0 + $0x1f8] sm:$0xff]  ;;  %v645_v32 = vld [vmem:[%s16335_s0 + $0x1388] sm:$0xff] }
  0x4c   :  { %v1656_v12 = vadd.f32 %v1655_v1, %v615_v58  ;;  %v1124_v25 = vadd.f32 %v1123_v13, %v99_v7  ;;  %v1102_v28 = vadd.f32 %v1101_v16, %v78_v11  ;;  %v621_v58 = vld [vmem:[%s16335_s0 + $0x12c8] sm:$0xff]  ;;  %v104_v1 = vld [vmem:[%s16335_s0 + $0x2a0] sm:$0xff]  ;;  %v643_v9 = vld [vmem:[%s16335_s0 + $0x1378] sm:$0xff]  ;;  %v1706_v11 = vadd.f32 %v1705_v63, %v663_v56 }
  0x4d   :  { %1636 = vadd.xlane.f32.xlu1 %v1635_v21  ;;  %v1683_v2 = vadd.f32 %v1682_v54, %v641_v48  ;;  %v1150_v10 = vadd.f32 %v1149_v62, %v124_v55  ;;  %v105_v13 = vld [vmem:[%s16335_s0 + $0x2a8] sm:$0xff]  ;;  %v126_v15 = vld [vmem:[%s16335_s0 + $0x350] sm:$0xff]  ;;  %v127_v26 = vld [vmem:[%s16335_s0 + $0x358] sm:$0xff] }
  0x4e   :  { %v1657_v24 = vadd.f32 %v1656_v12, %v616_v6  ;;  %v1125_v37 = vadd.f32 %v1124_v25, %v100_v18  ;;  %v1103_v40 = vadd.f32 %v1102_v28, %v79_v22  ;;  %v622_v6 = vld [vmem:[%s16335_s0 + $0x12d0] sm:$0xff]  ;;  %v665_v16 = vld [vmem:[%s16335_s0 + $0x1428] sm:$0xff]  ;;  %v1707_v22 = vadd.f32 %v1706_v11, %v664_v4  ;;  %v624_v28 = vld [vmem:[%s16335_s0 + $0x12e0] sm:$0xff] }
  0x4f   :  { %v1684_v14 = vadd.f32 %v1683_v2, %v642_v61  ;;  %v1151_v21 = vadd.f32 %v1150_v10, %v125_v3  ;;  %v666_v27 = vld [vmem:[%s16335_s0 + $0x1430] sm:$0xff]  ;;  %v128_v38 = vld [vmem:[%s16335_s0 + $0x360] sm:$0xff]  ;;  %v667_v39 = vld [vmem:[%s16335_s0 + $0x1438] sm:$0xff] }
  0x50   :  { %v1658_v35 = vadd.f32 %v1657_v24, %v617_v17  ;;  %v1126_v47 = vadd.f32 %v1125_v37, %v101_v30  ;;  %v1104_v52 = vadd.f32 %v1103_v40, %v80_v23  ;;  %v623_v17 = vld [vmem:[%s16335_s0 + $0x12d8] sm:$0xff]  ;;  %v106_v24 = vld [vmem:[%s16335_s0 + $0x2b0] sm:$0xff]  ;;  %v148_v44 = vld [vmem:[%s16335_s0 + $0x400] sm:$0xff] }
  0x51   :  { %v1685_v25 = vadd.f32 %v1684_v14, %v643_v9  ;;  %v107_v30 = vld [vmem:[%s16335_s0 + $0x2b8] sm:$0xff]  ;;  %v129_v49 = vld [vmem:[%s16335_s0 + $0x368] sm:$0xff]  ;;  %v668_v50 = vld [vmem:[%s16335_s0 + $0x1440] sm:$0xff] }
  0x52   :  { %v1659_v46 = vadd.f32 %v1658_v35, %v618_v29  ;;  %v1127_v60 = vadd.f32 %v1126_v47, %v102_v36  ;;  %v1105_v0 = vadd.f32 %v1104_v52, %v81_v33  ;;  %v1152_v33 = vadd.f32 %v1151_v21, %v126_v15  ;;  %v625_v35 = vld [vmem:[%s16335_s0 + $0x12e8] sm:$0xff]  ;;  %v646_v36 = vld [vmem:[%s16335_s0 + $0x1390] sm:$0xff]  ;;  %v108_v47 = vld [vmem:[%s16335_s0 + $0x2c0] sm:$0xff] }
  0x53   :  { %v1686_v37 = vadd.f32 %v1685_v25, %v644_v20  ;;  %v626_v52 = vld [vmem:[%s16335_s0 + $0x12f0] sm:$0xff]  ;;  %v647_v55 = vld [vmem:[%s16335_s0 + $0x1398] sm:$0xff]  ;;  %v669_v62 = vld [vmem:[%s16335_s0 + $0x1448] sm:$0xff] }
  0x54   :  { %v1660_v59 = vadd.f32 %v1659_v46, %v619_v34  ;;  %v1128_v8 = vadd.f32 %v1127_v60, %v103_v53  ;;  %v1106_v12 = vadd.f32 %v1105_v0, %v82_v57  ;;  %v1708_v34 = vadd.f32 %v1707_v22, %v665_v16  ;;  %v150_v46 = vld [vmem:[%s16335_s0 + $0x410] sm:$0xff]  ;;  %v627_v0 = vld [vmem:[%s16335_s0 + $0x12f8] sm:$0xff]  ;;  %v648_v3 = vld [vmem:[%s16335_s0 + $0x13a0] sm:$0xff] }
  0x55   :  { %v1153_v42 = vadd.f32 %v1152_v33, %v127_v26  ;;  %v1687_v48 = vadd.f32 %v1686_v37, %v645_v32  ;;  %v130_v61 = vld [vmem:[%s16335_s0 + $0x370] sm:$0xff]  ;;  %v131_v9 = vld [vmem:[%s16335_s0 + $0x378] sm:$0xff]  ;;  %v649_v14 = vld [vmem:[%s16335_s0 + $0x13a8] sm:$0xff] }
  0x56   :  { %v1661_v7 = vadd.f32 %v1660_v59, %v620_v45  ;;  %v1129_v19 = vadd.f32 %v1128_v8, %v104_v1  ;;  %v1107_v23 = vadd.f32 %v1106_v12, %v83_v5  ;;  %v1709_v43 = vadd.f32 %v1708_v34, %v666_v27  ;;  %v149_v45 = vld [vmem:[%s16335_s0 + $0x408] sm:$0xff]  ;;  %v670_v10 = vld [vmem:[%s16335_s0 + $0x1450] sm:$0xff]  ;;  %v132_v20 = vld [vmem:[%s16335_s0 + $0x380] sm:$0xff] }
  0x57   :  { %v1176_v51 = vadd.f32 %v149_v45, %v148_v44  ;;  %v1154_v56 = vadd.f32 %v1153_v42, %v128_v38  ;;  %v109_v59 = vld [vmem:[%s16335_s0 + $0x2c8] sm:$0xff]  ;;  %v1688_v60 = vadd.f32 %v1687_v48, %v646_v36  ;;  %v671_v21 = vld [vmem:[%s16335_s0 + $0x1458] sm:$0xff]  ;;  %v650_v26 = vld [vmem:[%s16335_s0 + $0x13b0] sm:$0xff] }
  0x58   :  { %v1662_v18 = vadd.f32 %v1661_v7, %v621_v58  ;;  %v1130_v31 = vadd.f32 %v1129_v19, %v105_v13  ;;  %1108 = vadd.xlane.f32.xlu0 %v1107_v23  ;;  %v1710_v57 = vadd.f32 %v1709_v43, %v667_v39  ;;  %v151_v58 = vld [vmem:[%s16335_s0 + $0x418] sm:$0xff]  ;;  %v110_v7 = vld [vmem:[%s16335_s0 + $0x2d0] sm:$0xff]  ;;  %v133_v33 = vld [vmem:[%s16335_s0 + $0x388] sm:$0xff] }
  0x59   :  { %v1177_v63 = vadd.f32 %v1176_v51, %v150_v46  ;;  %v1155_v4 = vadd.f32 %v1154_v56, %v129_v49  ;;  %v1689_v8 = vadd.f32 %v1688_v60, %v647_v55  ;;  %v672_v34 = vld [vmem:[%s16335_s0 + $0x1460] sm:$0xff]  ;;  %v134_v37 = vld [vmem:[%s16335_s0 + $0x390] sm:$0xff]  ;;  %v673_v43 = vld [vmem:[%s16335_s0 + $0x1468] sm:$0xff] }
  0x5a   :  { %v1663_v29 = vadd.f32 %v1662_v18, %v622_v6  ;;  %v1131_v41 = vadd.f32 %v1130_v31, %v106_v24  ;;  %v1711_v5 = vadd.f32 %v1710_v57, %v668_v50  ;;  %v152_v6 = vld [vmem:[%s16335_s0 + $0x420] sm:$0xff]  ;;  %v111_v18 = vld [vmem:[%s16335_s0 + $0x2d8] sm:$0xff]  ;;  %v693_v45 = vld [vmem:[%s16335_s0 + $0x1508] sm:$0xff] }
  0x5b   :  { %v1178_v11 = vadd.f32 %v1177_v63, %v151_v58  ;;  %v1156_v15 = vadd.f32 %v1155_v4, %v130_v61  ;;  %v1690_v19 = vadd.f32 %v1689_v8, %v648_v3  ;;  %v112_v24 = vld [vmem:[%s16335_s0 + $0x2e0] sm:$0xff]  ;;  %v651_v31 = vld [vmem:[%s16335_s0 + $0x13b8] sm:$0xff]  ;;  %v694_v46 = vld [vmem:[%s16335_s0 + $0x1510] sm:$0xff] }
  0x5c   :  { %v1664_v40 = vadd.f32 %v1663_v29, %v623_v17  ;;  %v1132_v54 = vadd.f32 %v1131_v41, %v107_v30  ;;  %v1712_v16 = vadd.f32 %v1711_v5, %v669_v62  ;;  %v153_v17 = vld [vmem:[%s16335_s0 + $0x428] sm:$0xff]  ;;  %v154_v29 = vld [vmem:[%s16335_s0 + $0x430] sm:$0xff]  ;;  %v692_v41 = vld [vmem:[%s16335_s0 + $0x1500] sm:$0xff] }
  0x5d   :  { %v1179_v22 = vadd.f32 %v1178_v11, %v152_v6  ;;  %v1157_v27 = vadd.f32 %v1156_v15, %v131_v9  ;;  %v113_v30 = vld [vmem:[%s16335_s0 + $0x2e8] sm:$0xff]  ;;  %v1691_v32 = vadd.f32 %v1690_v19, %v649_v14  ;;  %v652_v49 = vld [vmem:[%s16335_s0 + $0x13c0] sm:$0xff]  ;;  %v135_v55 = vld [vmem:[%s16335_s0 + $0x398] sm:$0xff] }
  0x5e   :  { %v1665_v53 = vadd.f32 %v1664_v40, %v624_v28  ;;  %v1133_v2 = vadd.f32 %v1132_v54, %v108_v47  ;;  %v1713_v28 = vadd.f32 %v1712_v16, %v670_v10  ;;  %v155_v40 = vld [vmem:[%s16335_s0 + $0x438] sm:$0xff]  ;;  %v114_v47 = vld [vmem:[%s16335_s0 + $0x2f0] sm:$0xff]  ;;  %v653_v61 = vld [vmem:[%s16335_s0 + $0x13c8] sm:$0xff] }
  0x5f   :  { %v1158_v38 = vadd.f32 %v1157_v27, %v132_v20  ;;  %v1692_v42 = vadd.f32 %v1691_v32, %v650_v26  ;;  %v674_v56 = vld [vmem:[%s16335_s0 + $0x1470] sm:$0xff]  ;;  %v695_v58 = vld [vmem:[%s16335_s0 + $0x1518] sm:$0xff]  ;;  %v136_v3 = vld [vmem:[%s16335_s0 + $0x3a0] sm:$0xff] }
  0x60   :  { %v1666_v1 = vadd.f32 %v1665_v53, %v625_v35  ;;  %v1134_v13 = vadd.f32 %v1133_v2, %v109_v59  ;;  %v1180_v35 = vadd.f32 %v1179_v22, %v153_v17  ;;  %v1714_v39 = vadd.f32 %v1713_v28, %v671_v21  ;;  %v115_v59 = vld [vmem:[%s16335_s0 + $0x2f8] sm:$0xff]  ;;  %v696_v6 = vld [vmem:[%s16335_s0 + $0x1520] sm:$0xff]  ;;  %v654_v8 = vld [vmem:[%s16335_s0 + $0x13d0] sm:$0xff] }
  0x61   :  { %v1159_v50 = vadd.f32 %v1158_v38, %v133_v33  ;;  %v1737_v53 = vadd.f32 %v693_v45, %v692_v41  ;;  %v1693_v54 = vadd.f32 %v1692_v42, %v651_v31  ;;  %v675_v4 = vld [vmem:[%s16335_s0 + $0x1478] sm:$0xff]  ;;  %v158_v11 = vld [vmem:[%s16335_s0 + $0x450] sm:$0xff]  ;;  %v137_v14 = vld [vmem:[%s16335_s0 + $0x3a8] sm:$0xff] }
  0x62   :  { %v1667_v12 = vadd.f32 %v1666_v1, %v626_v52  ;;  %v1135_v25 = vadd.f32 %v1134_v13, %v110_v7  ;;  %v1181_v44 = vadd.f32 %v1180_v35, %v154_v29  ;;  %v1715_v51 = vadd.f32 %v1714_v39, %v672_v34  ;;  %v156_v52 = vld [vmem:[%s16335_s0 + $0x440] sm:$0xff]  ;;  %v697_v17 = vld [vmem:[%s16335_s0 + $0x1528] sm:$0xff]  ;;  %v655_v19 = vld [vmem:[%s16335_s0 + $0x13d8] sm:$0xff] }
  0x63   :  { %v1160_v62 = vadd.f32 %v1159_v50, %v134_v37  ;;  %v1738_v1 = vadd.f32 %v1737_v53, %v694_v46  ;;  %v1694_v2 = vadd.f32 %v1693_v54, %v652_v49  ;;  %v676_v15 = vld [vmem:[%s16335_s0 + $0x1480] sm:$0xff]  ;;  %v138_v26 = vld [vmem:[%s16335_s0 + $0x3b0] sm:$0xff]  ;;  %v677_v27 = vld [vmem:[%s16335_s0 + $0x1488] sm:$0xff] }
  0x64   :  { %v1668_v23 = vadd.f32 %v1667_v12, %v627_v0  ;;  %v1136_v36 = vadd.f32 %v1135_v25, %v111_v18  ;;  %v1182_v57 = vadd.f32 %v1181_v44, %v155_v40  ;;  %v1716_v63 = vadd.f32 %v1715_v51, %v673_v43  ;;  %v157_v0 = vld [vmem:[%s16335_s0 + $0x448] sm:$0xff]  ;;  %v656_v20 = vld [vmem:[%s16335_s0 + $0x13e0] sm:$0xff]  ;;  %v698_v29 = vld [vmem:[%s16335_s0 + $0x1530] sm:$0xff] }
  0x65   :  { %v1161_v9 = vadd.f32 %v1160_v62, %v135_v55  ;;  %v1739_v12 = vadd.f32 %v1738_v1, %v695_v58  ;;  %v1695_v13 = vadd.f32 %v1694_v2, %v653_v61  ;;  %v139_v31 = vld [vmem:[%s16335_s0 + $0x3b8] sm:$0xff]  ;;  %v678_v33 = vld [vmem:[%s16335_s0 + $0x1490] sm:$0xff]  ;;  %v160_v35 = vld [vmem:[%s16335_s0 + $0x460] sm:$0xff] }
  0x66   :  { %1669 = vadd.xlane.f32.xlu1 %v1668_v23  ;;  %v1137_v48 = vadd.f32 %v1136_v36, %v112_v24  ;;  %v1183_v5 = vadd.f32 %v1182_v57, %v156_v52  ;;  %v1717_v10 = vadd.f32 %v1716_v63, %v674_v56  ;;  %v159_v23 = vld [vmem:[%s16335_s0 + $0x458] sm:$0xff]  ;;  %v180_v40 = vld [vmem:[%s16335_s0 + $0x500] sm:$0xff]  ;;  %v181_v41 = vld [vmem:[%s16335_s0 + $0x508] sm:$0xff] }
  0x67   :  { %v1162_v21 = vadd.f32 %v1161_v9, %v136_v3  ;;  %v1740_v24 = vadd.f32 %v1739_v12, %v696_v6  ;;  %v1696_v25 = vadd.f32 %v1695_v13, %v654_v8  ;;  %v699_v39 = vld [vmem:[%s16335_s0 + $0x1538] sm:$0xff]  ;;  %v140_v42 = vld [vmem:[%s16335_s0 + $0x3c0] sm:$0xff]  ;;  %v161_v45 = vld [vmem:[%s16335_s0 + $0x468] sm:$0xff] }
  0x68   :  { %v1138_v60 = vadd.f32 %v1137_v48, %v113_v30  ;;  %v1184_v16 = vadd.f32 %v1183_v5, %v157_v0  ;;  %v1718_v22 = vadd.f32 %v1717_v10, %v675_v4  ;;  %v657_v30 = vld [vmem:[%s16335_s0 + $0x13e8] sm:$0xff]  ;;  %v1209_v48 = vadd.f32 %v181_v41, %v180_v40  ;;  %v679_v50 = vld [vmem:[%s16335_s0 + $0x1498] sm:$0xff]  ;;  %v700_v52 = vld [vmem:[%s16335_s0 + $0x1540] sm:$0xff] }
  0x69   :  { %v1163_v32 = vadd.f32 %v1162_v21, %v137_v14  ;;  %v1741_v36 = vadd.f32 %v1740_v24, %v697_v17  ;;  %v1697_v37 = vadd.f32 %v1696_v25, %v655_v19  ;;  %v183_v53 = vld [vmem:[%s16335_s0 + $0x518] sm:$0xff]  ;;  %v658_v54 = vld [vmem:[%s16335_s0 + $0x13f0] sm:$0xff]  ;;  %v141_v55 = vld [vmem:[%s16335_s0 + $0x3c8] sm:$0xff] }
  0x6a   :  { %v1139_v7 = vadd.f32 %v1138_v60, %v114_v47  ;;  %v1185_v28 = vadd.f32 %v1184_v16, %v158_v11  ;;  %v1719_v34 = vadd.f32 %v1718_v22, %v676_v15  ;;  %v182_v47 = vld [vmem:[%s16335_s0 + $0x510] sm:$0xff]  ;;  %v680_v62 = vld [vmem:[%s16335_s0 + $0x14a0] sm:$0xff]  ;;  %v701_v0 = vld [vmem:[%s16335_s0 + $0x1548] sm:$0xff] }
  0x6b   :  { %v1164_v43 = vadd.f32 %v1163_v32, %v138_v26  ;;  %v1742_v46 = vadd.f32 %v1741_v36, %v698_v29  ;;  %v1698_v49 = vadd.f32 %v1697_v37, %v656_v20  ;;  %v162_v58 = vld [vmem:[%s16335_s0 + $0x470] sm:$0xff]  ;;  %v1210_v60 = vadd.f32 %v1209_v48, %v182_v47  ;;  %v184_v1 = vld [vmem:[%s16335_s0 + $0x520] sm:$0xff]  ;;  %v659_v2 = vld [vmem:[%s16335_s0 + $0x13f8] sm:$0xff] }
  0x6c   :  { %v1140_v18 = vadd.f32 %v1139_v7, %v115_v59  ;;  %v1186_v38 = vadd.f32 %v1185_v28, %v159_v23  ;;  %v1720_v44 = vadd.f32 %v1719_v34, %v677_v27  ;;  %v142_v3 = vld [vmem:[%s16335_s0 + $0x3d0] sm:$0xff]  ;;  %v163_v6 = vld [vmem:[%s16335_s0 + $0x478] sm:$0xff]  ;;  %v681_v10 = vld [vmem:[%s16335_s0 + $0x14a8] sm:$0xff] }
  0x6d   :  { %v1165_v56 = vadd.f32 %v1164_v43, %v139_v31  ;;  %v1743_v59 = vadd.f32 %v1742_v46, %v699_v39  ;;  %v1699_v61 = vadd.f32 %v1698_v49, %v657_v30  ;;  %v1211_v8 = vadd.f32 %v1210_v60, %v183_v53  ;;  %v702_v12 = vld [vmem:[%s16335_s0 + $0x1550] sm:$0xff]  ;;  %v185_v13 = vld [vmem:[%s16335_s0 + $0x528] sm:$0xff]  ;;  %v143_v14 = vld [vmem:[%s16335_s0 + $0x3d8] sm:$0xff] }
  0x6e   :  { %1141 = vadd.xlane.f32.xlu0 %v1140_v18  ;;  %v1187_v51 = vadd.f32 %v1186_v38, %v160_v35  ;;  %v1721_v57 = vadd.f32 %v1720_v44, %v678_v33  ;;  %v164_v17 = vld [vmem:[%s16335_s0 + $0x480] sm:$0xff]  ;;  %v682_v21 = vld [vmem:[%s16335_s0 + $0x14b0] sm:$0xff]  ;;  %v703_v23 = vld [vmem:[%s16335_s0 + $0x1558] sm:$0xff] }
  0x6f   :  { %v1166_v4 = vadd.f32 %v1165_v56, %v140_v42  ;;  %v1744_v7 = vadd.f32 %v1743_v59, %v700_v52  ;;  %v1700_v9 = vadd.f32 %v1699_v61, %v658_v54  ;;  %v1212_v19 = vadd.f32 %v1211_v8, %v184_v1  ;;  %v186_v24 = vld [vmem:[%s16335_s0 + $0x530] sm:$0xff]  ;;  %v144_v25 = vld [vmem:[%s16335_s0 + $0x3e0] sm:$0xff]  ;;  %v683_v27 = vld [vmem:[%s16335_s0 + $0x14b8] sm:$0xff] }
  0x70   :  { %v1188_v63 = vadd.f32 %v1187_v51, %v161_v45  ;;  %v1722_v5 = vadd.f32 %v1721_v57, %v679_v50  ;;  %v165_v29 = vld [vmem:[%s16335_s0 + $0x488] sm:$0xff]  ;;  %v166_v33 = vld [vmem:[%s16335_s0 + $0x490] sm:$0xff]  ;;  %v704_v35 = vld [vmem:[%s16335_s0 + $0x1560] sm:$0xff] }
  0x71   :  { %v1167_v15 = vadd.f32 %v1166_v4, %v141_v55  ;;  %v1745_v18 = vadd.f32 %v1744_v7, %v701_v0  ;;  %v1701_v20 = vadd.f32 %v1700_v9, %v659_v2  ;;  %v1213_v31 = vadd.f32 %v1212_v19, %v185_v13  ;;  %v145_v32 = vld [vmem:[%s16335_s0 + $0x3e8] sm:$0xff]  ;;  %v187_v36 = vld [vmem:[%s16335_s0 + $0x538] sm:$0xff]  ;;  %v724_v41 = vld [vmem:[%s16335_s0 + $0x1600] sm:$0xff] }
  0x72   :  { %v1189_v11 = vadd.f32 %v1188_v63, %v162_v58  ;;  %v1723_v16 = vadd.f32 %v1722_v5, %v680_v62  ;;  %v725_v42 = vld [vmem:[%s16335_s0 + $0x1608] sm:$0xff]  ;;  %v726_v43 = vld [vmem:[%s16335_s0 + $0x1610] sm:$0xff]  ;;  %v684_v44 = vld [vmem:[%s16335_s0 + $0x14c0] sm:$0xff] }
  0x73   :  { %v1168_v26 = vadd.f32 %v1167_v15, %v142_v3  ;;  %v1746_v30 = vadd.f32 %v1745_v18, %v702_v12  ;;  %1702 = vadd.xlane.f32.xlu1 %v1701_v20  ;;  %v1214_v40 = vadd.f32 %v1213_v31, %v186_v24  ;;  %v705_v46 = vld [vmem:[%s16335_s0 + $0x1568] sm:$0xff]  ;;  %v188_v47 = vld [vmem:[%s16335_s0 + $0x540] sm:$0xff]  ;;  %v1770_v48 = vadd.f32 %v725_v42, %v724_v41  ;;  %v146_v49 = vld [vmem:[%s16335_s0 + $0x3f0] sm:$0xff] }
  0x74   :  { %v1190_v22 = vadd.f32 %v1189_v11, %v163_v6  ;;  %v1724_v28 = vadd.f32 %v1723_v16, %v681_v10  ;;  %v167_v52 = vld [vmem:[%s16335_s0 + $0x498] sm:$0xff]  ;;  %v685_v56 = vld [vmem:[%s16335_s0 + $0x14c8] sm:$0xff]  ;;  %v706_v58 = vld [vmem:[%s16335_s0 + $0x1570] sm:$0xff] }
  0x75   :  { %v1169_v37 = vadd.f32 %v1168_v26, %v143_v14  ;;  %v1747_v39 = vadd.f32 %v1746_v30, %v703_v23  ;;  %v1215_v54 = vadd.f32 %v1214_v40, %v187_v36  ;;  %v727_v55 = vld [vmem:[%s16335_s0 + $0x1618] sm:$0xff]  ;;  %v189_v59 = vld [vmem:[%s16335_s0 + $0x548] sm:$0xff]  ;;  %v1771_v60 = vadd.f32 %v1770_v48, %v726_v43  ;;  %v168_v0 = vld [vmem:[%s16335_s0 + $0x4a0] sm:$0xff] }
  0x76   :  { %v1191_v34 = vadd.f32 %v1190_v22, %v164_v17  ;;  %v1725_v38 = vadd.f32 %v1724_v28, %v682_v21  ;;  %v147_v61 = vld [vmem:[%s16335_s0 + $0x3f8] sm:$0xff]  ;;  %v728_v3 = vld [vmem:[%s16335_s0 + $0x1620] sm:$0xff]  ;;  %v686_v4 = vld [vmem:[%s16335_s0 + $0x14d0] sm:$0xff] }
  0x77   :  { %v1170_v50 = vadd.f32 %v1169_v37, %v144_v25  ;;  %v1748_v53 = vadd.f32 %v1747_v39, %v704_v35  ;;  %v1216_v2 = vadd.f32 %v1215_v54, %v188_v47  ;;  %v707_v6 = vld [vmem:[%s16335_s0 + $0x1578] sm:$0xff]  ;;  %v190_v7 = vld [vmem:[%s16335_s0 + $0x550] sm:$0xff]  ;;  %v1772_v8 = vadd.f32 %v1771_v60, %v727_v55  ;;  %v169_v11 = vld [vmem:[%s16335_s0 + $0x4a8] sm:$0xff] }
  0x78   :  { %v1192_v45 = vadd.f32 %v1191_v34, %v165_v29  ;;  %v1726_v51 = vadd.f32 %v1725_v38, %v683_v27  ;;  %v729_v14 = vld [vmem:[%s16335_s0 + $0x1628] sm:$0xff]  ;;  %v687_v15 = vld [vmem:[%s16335_s0 + $0x14d8] sm:$0xff]  ;;  %v708_v17 = vld [vmem:[%s16335_s0 + $0x1580] sm:$0xff] }
  0x79   :  { %v1171_v62 = vadd.f32 %v1170_v50, %v145_v32  ;;  %v1749_v1 = vadd.f32 %v1748_v53, %v705_v46  ;;  %v1217_v13 = vadd.f32 %v1216_v2, %v189_v59  ;;  %v191_v18 = vld [vmem:[%s16335_s0 + $0x558] sm:$0xff]  ;;  %v1773_v19 = vadd.f32 %v1772_v8, %v728_v3  ;;  %v688_v21 = vld [vmem:[%s16335_s0 + $0x14e0] sm:$0xff]  ;;  %v170_v23 = vld [vmem:[%s16335_s0 + $0x4b0] sm:$0xff] }
  0x7a   :  { %v1193_v57 = vadd.f32 %v1192_v45, %v166_v33  ;;  %v1727_v63 = vadd.f32 %v1726_v51, %v684_v44  ;;  %v730_v26 = vld [vmem:[%s16335_s0 + $0x1630] sm:$0xff]  ;;  %v689_v27 = vld [vmem:[%s16335_s0 + $0x14e8] sm:$0xff]  ;;  %v171_v28 = vld [vmem:[%s16335_s0 + $0x4b8] sm:$0xff] }
  0x7b   :  { %v1172_v9 = vadd.f32 %v1171_v62, %v146_v49  ;;  %v1750_v12 = vadd.f32 %v1749_v1, %v706_v58  ;;  %v1218_v25 = vadd.f32 %v1217_v13, %v190_v7  ;;  %v709_v30 = vld [vmem:[%s16335_s0 + $0x1588] sm:$0xff]  ;;  %v192_v31 = vld [vmem:[%s16335_s0 + $0x560] sm:$0xff]  ;;  %v1774_v32 = vadd.f32 %v1773_v19, %v729_v14  ;;  %v710_v34 = vld [vmem:[%s16335_s0 + $0x1590] sm:$0xff] }
  0x7c   :  { %v1194_v5 = vadd.f32 %v1193_v57, %v167_v52  ;;  %v1728_v10 = vadd.f32 %v1727_v63, %v685_v56  ;;  %v731_v37 = vld [vmem:[%s16335_s0 + $0x1638] sm:$0xff]  ;;  %v212_v38 = vld [vmem:[%s16335_s0 + $0x600] sm:$0xff]  ;;  %v193_v40 = vld [vmem:[%s16335_s0 + $0x568] sm:$0xff] }
  0x7d   :  { %v1173_v20 = vadd.f32 %v1172_v9, %v147_v61  ;;  %v1751_v24 = vadd.f32 %v1750_v12, %v707_v6  ;;  %v1219_v36 = vadd.f32 %v1218_v25, %v191_v18  ;;  %v1775_v41 = vadd.f32 %v1774_v32, %v730_v26  ;;  %v213_v42 = vld [vmem:[%s16335_s0 + $0x608] sm:$0xff]  ;;  %v214_v43 = vld [vmem:[%s16335_s0 + $0x610] sm:$0xff]  ;;  %v172_v46 = vld [vmem:[%s16335_s0 + $0x4c0] sm:$0xff] }
  0x7e   :  { %v1195_v16 = vadd.f32 %v1194_v5, %v168_v0  ;;  %v1729_v22 = vadd.f32 %v1728_v10, %v686_v4  ;;  %v690_v44 = vld [vmem:[%s16335_s0 + $0x14f0] sm:$0xff]  ;;  %v732_v49 = vld [vmem:[%s16335_s0 + $0x1640] sm:$0xff]  ;;  %v1242_v50 = vadd.f32 %v213_v42, %v212_v38  ;;  %v711_v52 = vld [vmem:[%s16335_s0 + $0x1598] sm:$0xff] }
  0x7f   :  { %1174 = vadd.xlane.f32.xlu0 %v1173_v20  ;;  %v1752_v35 = vadd.f32 %v1751_v24, %v708_v17  ;;  %v1220_v48 = vadd.f32 %v1219_v36, %v192_v31  ;;  %v194_v53 = vld [vmem:[%s16335_s0 + $0x570] sm:$0xff]  ;;  %v1776_v54 = vadd.f32 %v1775_v41, %v731_v37  ;;  %v215_v55 = vld [vmem:[%s16335_s0 + $0x618] sm:$0xff]  ;;  %v173_v58 = vld [vmem:[%s16335_s0 + $0x4c8] sm:$0xff] }
  0x80   :  { %v1196_v29 = vadd.f32 %v1195_v16, %v169_v11  ;;  %v1730_v33 = vadd.f32 %v1729_v22, %v687_v15  ;;  %v691_v56 = vld [vmem:[%s16335_s0 + $0x14f8] sm:$0xff]  ;;  %v733_v61 = vld [vmem:[%s16335_s0 + $0x1648] sm:$0xff]  ;;  %v1243_v62 = vadd.f32 %v1242_v50, %v214_v43  ;;  %v712_v0 = vld [vmem:[%s16335_s0 + $0x15a0] sm:$0xff] }
  0x81   :  { %v1753_v47 = vadd.f32 %v1752_v35, %v709_v30  ;;  %v1221_v60 = vadd.f32 %v1220_v48, %v193_v40  ;;  %v195_v1 = vld [vmem:[%s16335_s0 + $0x578] sm:$0xff]  ;;  %v1777_v2 = vadd.f32 %v1776_v54, %v732_v49  ;;  %v216_v3 = vld [vmem:[%s16335_s0 + $0x620] sm:$0xff]  ;;  %v174_v5 = vld [vmem:[%s16335_s0 + $0x4d0] sm:$0xff] }
  0x82   :  { %v1197_v39 = vadd.f32 %v1196_v29, %v170_v23  ;;  %v1731_v45 = vadd.f32 %v1730_v33, %v688_v21  ;;  %v734_v8 = vld [vmem:[%s16335_s0 + $0x1650] sm:$0xff]  ;;  %v1244_v9 = vadd.f32 %v1243_v62, %v215_v55  ;;  %v713_v11 = vld [vmem:[%s16335_s0 + $0x15a8] sm:$0xff]  ;;  %v196_v12 = vld [vmem:[%s16335_s0 + $0x580] sm:$0xff] }
  0x83   :  { %v1754_v59 = vadd.f32 %v1753_v47, %v710_v34  ;;  %v1222_v7 = vadd.f32 %v1221_v60, %v194_v53  ;;  %v1778_v13 = vadd.f32 %v1777_v2, %v733_v61  ;;  %v217_v14 = vld [vmem:[%s16335_s0 + $0x628] sm:$0xff]  ;;  %v175_v16 = vld [vmem:[%s16335_s0 + $0x4d8] sm:$0xff]  ;;  %v176_v17 = vld [vmem:[%s16335_s0 + $0x4e0] sm:$0xff] }
  0x84   :  { %v1198_v51 = vadd.f32 %v1197_v39, %v171_v28  ;;  %v1732_v57 = vadd.f32 %v1731_v45, %v689_v27  ;;  %v735_v20 = vld [vmem:[%s16335_s0 + $0x1658] sm:$0xff]  ;;  %v1245_v21 = vadd.f32 %v1244_v9, %v216_v3  ;;  %v714_v23 = vld [vmem:[%s16335_s0 + $0x15b0] sm:$0xff]  ;;  %v197_v24 = vld [vmem:[%s16335_s0 + $0x588] sm:$0xff] }
  0x85   :  { %v1755_v6 = vadd.f32 %v1754_v59, %v711_v52  ;;  %v1223_v19 = vadd.f32 %v1222_v7, %v195_v1  ;;  %v1779_v25 = vadd.f32 %v1778_v13, %v734_v8  ;;  %v218_v26 = vld [vmem:[%s16335_s0 + $0x630] sm:$0xff]  ;;  %v177_v27 = vld [vmem:[%s16335_s0 + $0x4e8] sm:$0xff]  ;;  %v715_v28 = vld [vmem:[%s16335_s0 + $0x15b8] sm:$0xff] }
  0x86   :  { %v1199_v63 = vadd.f32 %v1198_v51, %v172_v46  ;;  %v1733_v4 = vadd.f32 %v1732_v57, %v690_v44  ;;  %v198_v30 = vld [vmem:[%s16335_s0 + $0x590] sm:$0xff]  ;;  %v736_v32 = vld [vmem:[%s16335_s0 + $0x1660] sm:$0xff]  ;;  %v1246_v33 = vadd.f32 %v1245_v21, %v217_v14  ;;  %v219_v36 = vld [vmem:[%s16335_s0 + $0x638] sm:$0xff] }
  0x87   :  { %v1756_v18 = vadd.f32 %v1755_v6, %v712_v0  ;;  %v1224_v31 = vadd.f32 %v1223_v19, %v196_v12  ;;  %v1780_v35 = vadd.f32 %v1779_v25, %v735_v20  ;;  %v756_v37 = vld [vmem:[%s16335_s0 + $0x1700] sm:$0xff]  ;;  %v757_v38 = vld [vmem:[%s16335_s0 + $0x1708] sm:$0xff]  ;;  %v758_v44 = vld [vmem:[%s16335_s0 + $0x1710] sm:$0xff] }
  0x88   :  { %v1200_v10 = vadd.f32 %v1199_v63, %v173_v58  ;;  %v1734_v15 = vadd.f32 %v1733_v4, %v691_v56  ;;  %v716_v39 = vld [vmem:[%s16335_s0 + $0x15c0] sm:$0xff]  ;;  %v737_v42 = vld [vmem:[%s16335_s0 + $0x1668] sm:$0xff]  ;;  %v1247_v43 = vadd.f32 %v1246_v33, %v218_v26  ;;  %v1803_v45 = vadd.f32 %v757_v38, %v756_v37  ;;  %v199_v47 = vld [vmem:[%s16335_s0 + $0x598] sm:$0xff] }
  0x89   :  { %v1757_v29 = vadd.f32 %v1756_v18, %v713_v11  ;;  %v1225_v41 = vadd.f32 %v1224_v31, %v197_v24  ;;  %v1781_v48 = vadd.f32 %v1780_v35, %v736_v32  ;;  %v220_v49 = vld [vmem:[%s16335_s0 + $0x640] sm:$0xff]  ;;  %v759_v50 = vld [vmem:[%s16335_s0 + $0x1718] sm:$0xff]  ;;  %v178_v51 = vld [vmem:[%s16335_s0 + $0x4f0] sm:$0xff] }
  0x8a   :  { %v1201_v22 = vadd.f32 %v1200_v10, %v174_v5  ;;  %1735 = vadd.xlane.f32.xlu1 %v1734_v15  ;;  %v717_v52 = vld [vmem:[%s16335_s0 + $0x15c8] sm:$0xff]  ;;  %v738_v55 = vld [vmem:[%s16335_s0 + $0x1670] sm:$0xff]  ;;  %v1248_v56 = vadd.f32 %v1247_v43, %v219_v36  ;;  %v1804_v57 = vadd.f32 %v1803_v45, %v758_v44  ;;  %v200_v59 = vld [vmem:[%s16335_s0 + $0x5a0] sm:$0xff] }
  0x8b   :  { %v1758_v40 = vadd.f32 %v1757_v29, %v714_v23  ;;  %v1226_v54 = vadd.f32 %v1225_v41, %v198_v30  ;;  %v1782_v60 = vadd.f32 %v1781_v48, %v737_v42  ;;  %v221_v61 = vld [vmem:[%s16335_s0 + $0x648] sm:$0xff]  ;;  %v760_v62 = vld [vmem:[%s16335_s0 + $0x1720] sm:$0xff]  ;;  %v179_v63 = vld [vmem:[%s16335_s0 + $0x4f8] sm:$0xff] }
  0x8c   :  { %v1202_v34 = vadd.f32 %v1201_v22, %v175_v16  ;;  %v718_v0 = vld [vmem:[%s16335_s0 + $0x15d0] sm:$0xff]  ;;  %v739_v3 = vld [vmem:[%s16335_s0 + $0x1678] sm:$0xff]  ;;  %v1249_v4 = vadd.f32 %v1248_v56, %v220_v49  ;;  %v1805_v5 = vadd.f32 %v1804_v57, %v759_v50  ;;  %v201_v7 = vld [vmem:[%s16335_s0 + $0x5a8] sm:$0xff] }
  0x8d   :  { %v1759_v53 = vadd.f32 %v1758_v40, %v715_v28  ;;  %v1227_v2 = vadd.f32 %v1226_v54, %v199_v47  ;;  %v1783_v8 = vadd.f32 %v1782_v60, %v738_v55  ;;  %v222_v9 = vld [vmem:[%s16335_s0 + $0x650] sm:$0xff]  ;;  %v761_v10 = vld [vmem:[%s16335_s0 + $0x1728] sm:$0xff]  ;;  %v719_v11 = vld [vmem:[%s16335_s0 + $0x15d8] sm:$0xff] }
  0x8e   :  { %v1203_v46 = vadd.f32 %v1202_v34, %v176_v17  ;;  %v740_v14 = vld [vmem:[%s16335_s0 + $0x1680] sm:$0xff]  ;;  %v1250_v15 = vadd.f32 %v1249_v4, %v221_v61  ;;  %v1806_v16 = vadd.f32 %v1805_v5, %v760_v62  ;;  %v202_v18 = vld [vmem:[%s16335_s0 + $0x5b0] sm:$0xff]  ;;  %v223_v20 = vld [vmem:[%s16335_s0 + $0x658] sm:$0xff] }
  0x8f   :  { %v1760_v1 = vadd.f32 %v1759_v53, %v716_v39  ;;  %v1228_v13 = vadd.f32 %v1227_v2, %v200_v59  ;;  %v1784_v19 = vadd.f32 %v1783_v8, %v739_v3  ;;  %v762_v21 = vld [vmem:[%s16335_s0 + $0x1730] sm:$0xff]  ;;  %v720_v22 = vld [vmem:[%s16335_s0 + $0x15e0] sm:$0xff]  ;;  %v203_v24 = vld [vmem:[%s16335_s0 + $0x5b8] sm:$0xff] }
  0x90   :  { %v1204_v58 = vadd.f32 %v1203_v46, %v177_v27  ;;  %v741_v26 = vld [vmem:[%s16335_s0 + $0x1688] sm:$0xff]  ;;  %v1251_v27 = vadd.f32 %v1250_v15, %v222_v9  ;;  %v1807_v28 = vadd.f32 %v1806_v16, %v761_v10  ;;  %v742_v30 = vld [vmem:[%s16335_s0 + $0x1690] sm:$0xff]  ;;  %v224_v32 = vld [vmem:[%s16335_s0 + $0x660] sm:$0xff] }
  0x91   :  { %v1761_v12 = vadd.f32 %v1760_v1, %v717_v52  ;;  %v1229_v25 = vadd.f32 %v1228_v13, %v201_v7  ;;  %v721_v29 = vld [vmem:[%s16335_s0 + $0x15e8] sm:$0xff]  ;;  %v1785_v31 = vadd.f32 %v1784_v19, %v740_v14  ;;  %v763_v33 = vld [vmem:[%s16335_s0 + $0x1738] sm:$0xff]  ;;  %v244_v38 = vld [vmem:[%s16335_s0 + $0x700] sm:$0xff] }
  0x92   :  { %v1205_v6 = vadd.f32 %v1204_v58, %v178_v51  ;;  %v1252_v36 = vadd.f32 %v1251_v27, %v223_v20  ;;  %v1808_v37 = vadd.f32 %v1807_v28, %v762_v21  ;;  %v245_v39 = vld [vmem:[%s16335_s0 + $0x708] sm:$0xff]  ;;  %v246_v40 = vld [vmem:[%s16335_s0 + $0x710] sm:$0xff]  ;;  %v204_v41 = vld [vmem:[%s16335_s0 + $0x5c0] sm:$0xff] }
  0x93   :  { %v1762_v23 = vadd.f32 %v1761_v12, %v718_v0  ;;  %v1230_v35 = vadd.f32 %v1229_v25, %v202_v18  ;;  %v1786_v42 = vadd.f32 %v1785_v31, %v741_v26  ;;  %v225_v43 = vld [vmem:[%s16335_s0 + $0x668] sm:$0xff]  ;;  %v764_v44 = vld [vmem:[%s16335_s0 + $0x1740] sm:$0xff]  ;;  %v1275_v45 = vadd.f32 %v245_v39, %v244_v38  ;;  %v722_v46 = vld [vmem:[%s16335_s0 + $0x15f0] sm:$0xff] }
  0x94   :  { %v1206_v17 = vadd.f32 %v1205_v6, %v179_v63  ;;  %v743_v49 = vld [vmem:[%s16335_s0 + $0x1698] sm:$0xff]  ;;  %v1253_v50 = vadd.f32 %v1252_v36, %v224_v32  ;;  %v1809_v51 = vadd.f32 %v1808_v37, %v763_v33  ;;  %v205_v53 = vld [vmem:[%s16335_s0 + $0x5c8] sm:$0xff]  ;;  %v226_v55 = vld [vmem:[%s16335_s0 + $0x670] sm:$0xff] }
  0x95   :  { %v1763_v34 = vadd.f32 %v1762_v23, %v719_v11  ;;  %v1231_v48 = vadd.f32 %v1230_v35, %v203_v24  ;;  %v247_v52 = vld [vmem:[%s16335_s0 + $0x718] sm:$0xff]  ;;  %v1787_v54 = vadd.f32 %v1786_v42, %v742_v30  ;;  %v765_v56 = vld [vmem:[%s16335_s0 + $0x1748] sm:$0xff]  ;;  %v1276_v57 = vadd.f32 %v1275_v45, %v246_v40  ;;  %v744_v61 = vld [vmem:[%s16335_s0 + $0x16a0] sm:$0xff] }
  0x96   :  { %1207 = vadd.xlane.f32.xlu0 %v1206_v17  ;;  %v723_v58 = vld [vmem:[%s16335_s0 + $0x15f8] sm:$0xff]  ;;  %v1254_v62 = vadd.f32 %v1253_v50, %v225_v43  ;;  %v1810_v63 = vadd.f32 %v1809_v51, %v764_v44  ;;  %v248_v0 = vld [vmem:[%s16335_s0 + $0x720] sm:$0xff]  ;;  %v206_v1 = vld [vmem:[%s16335_s0 + $0x5d0] sm:$0xff] }
  0x97   :  { %v1764_v47 = vadd.f32 %v1763_v34, %v720_v22  ;;  %v1232_v60 = vadd.f32 %v1231_v48, %v204_v41  ;;  %v1788_v2 = vadd.f32 %v1787_v54, %v743_v49  ;;  %v227_v3 = vld [vmem:[%s16335_s0 + $0x678] sm:$0xff]  ;;  %v766_v4 = vld [vmem:[%s16335_s0 + $0x1750] sm:$0xff]  ;;  %v1277_v5 = vadd.f32 %v1276_v57, %v247_v52  ;;  %v745_v8 = vld [vmem:[%s16335_s0 + $0x16a8] sm:$0xff] }
  0x98   :  { %v1255_v9 = vadd.f32 %v1254_v62, %v226_v55  ;;  %v1811_v10 = vadd.f32 %v1810_v63, %v765_v56  ;;  %v249_v11 = vld [vmem:[%s16335_s0 + $0x728] sm:$0xff]  ;;  %v207_v12 = vld [vmem:[%s16335_s0 + $0x5d8] sm:$0xff]  ;;  %v228_v14 = vld [vmem:[%s16335_s0 + $0x680] sm:$0xff] }
  0x99   :  { %v1765_v59 = vadd.f32 %v1764_v47, %v721_v29  ;;  %v1233_v7 = vadd.f32 %v1232_v60, %v205_v53  ;;  %v1789_v13 = vadd.f32 %v1788_v2, %v744_v61  ;;  %v767_v15 = vld [vmem:[%s16335_s0 + $0x1758] sm:$0xff]  ;;  %v1278_v16 = vadd.f32 %v1277_v5, %v248_v0  ;;  %v208_v18 = vld [vmem:[%s16335_s0 + $0x5e0] sm:$0xff]  ;;  %v746_v20 = vld [vmem:[%s16335_s0 + $0x16b0] sm:$0xff] }
  0x9a   :  { %v1256_v21 = vadd.f32 %v1255_v9, %v227_v3  ;;  %v1812_v22 = vadd.f32 %v1811_v10, %v766_v4  ;;  %v250_v23 = vld [vmem:[%s16335_s0 + $0x730] sm:$0xff]  ;;  %v209_v24 = vld [vmem:[%s16335_s0 + $0x5e8] sm:$0xff]  ;;  %v747_v25 = vld [vmem:[%s16335_s0 + $0x16b8] sm:$0xff] }
  0x9b   :  { %v1766_v6 = vadd.f32 %v1765_v59, %v722_v46  ;;  %v1234_v19 = vadd.f32 %v1233_v7, %v206_v1  ;;  %v1790_v26 = vadd.f32 %v1789_v13, %v745_v8  ;;  %v229_v27 = vld [vmem:[%s16335_s0 + $0x688] sm:$0xff]  ;;  %v768_v28 = vld [vmem:[%s16335_s0 + $0x1760] sm:$0xff]  ;;  %v1279_v29 = vadd.f32 %v1278_v16, %v249_v11  ;;  %v230_v31 = vld [vmem:[%s16335_s0 + $0x690] sm:$0xff] }
  0x9c   :  { %v1257_v32 = vadd.f32 %v1256_v21, %v228_v14  ;;  %v1813_v33 = vadd.f32 %v1812_v22, %v767_v15  ;;  %v251_v34 = vld [vmem:[%s16335_s0 + $0x738] sm:$0xff]  ;;  %v788_v35 = vld [vmem:[%s16335_s0 + $0x1800] sm:$0xff]  ;;  %v769_v37 = vld [vmem:[%s16335_s0 + $0x1768] sm:$0xff] }
  0x9d   :  { %v1767_v17 = vadd.f32 %v1766_v6, %v723_v58  ;;  %v1235_v30 = vadd.f32 %v1234_v19, %v207_v12  ;;  %v1791_v36 = vadd.f32 %v1790_v26, %v746_v20  ;;  %v1280_v38 = vadd.f32 %v1279_v29, %v250_v23  ;;  %v789_v39 = vld [vmem:[%s16335_s0 + $0x1808] sm:$0xff]  ;;  %v790_v40 = vld [vmem:[%s16335_s0 + $0x1810] sm:$0xff]  ;;  %v748_v43 = vld [vmem:[%s16335_s0 + $0x16c0] sm:$0xff] }
  0x9e   :  { %v210_v41 = vld [vmem:[%s16335_s0 + $0x5f0] sm:$0xff]  ;;  %v1258_v44 = vadd.f32 %v1257_v32, %v229_v27  ;;  %v1814_v45 = vadd.f32 %v1813_v33, %v768_v28  ;;  %v252_v46 = vld [vmem:[%s16335_s0 + $0x740] sm:$0xff]  ;;  %v1836_v47 = vadd.f32 %v789_v39, %v788_v35  ;;  %v231_v49 = vld [vmem:[%s16335_s0 + $0x698] sm:$0xff] }
  0x9f   :  { %1768 = vadd.xlane.f32.xlu1 %v1767_v17  ;;  %v1236_v42 = vadd.f32 %v1235_v30, %v208_v18  ;;  %v1792_v48 = vadd.f32 %v1791_v36, %v747_v25  ;;  %v770_v50 = vld [vmem:[%s16335_s0 + $0x1770] sm:$0xff]  ;;  %v1281_v51 = vadd.f32 %v1280_v38, %v251_v34  ;;  %v791_v52 = vld [vmem:[%s16335_s0 + $0x1818] sm:$0xff]  ;;  %v749_v55 = vld [vmem:[%s16335_s0 + $0x16c8] sm:$0xff] }
  0xa0   :  { %v211_v53 = vld [vmem:[%s16335_s0 + $0x5f8] sm:$0xff]  ;;  %v1259_v56 = vadd.f32 %v1258_v44, %v230_v31  ;;  %v1815_v57 = vadd.f32 %v1814_v45, %v769_v37  ;;  %v253_v58 = vld [vmem:[%s16335_s0 + $0x748] sm:$0xff]  ;;  %v1837_v59 = vadd.f32 %v1836_v47, %v790_v40  ;;  %v232_v61 = vld [vmem:[%s16335_s0 + $0x6a0] sm:$0xff] }
  0xa1   :  { %v1237_v54 = vadd.f32 %v1236_v42, %v209_v24  ;;  %v1793_v60 = vadd.f32 %v1792_v48, %v748_v43  ;;  %v771_v62 = vld [vmem:[%s16335_s0 + $0x1778] sm:$0xff]  ;;  %v1282_v63 = vadd.f32 %v1281_v51, %v252_v46  ;;  %v792_v0 = vld [vmem:[%s16335_s0 + $0x1820] sm:$0xff]  ;;  %v750_v2 = vld [vmem:[%s16335_s0 + $0x16d0] sm:$0xff] }
  0xa2   :  { %v1260_v3 = vadd.f32 %v1259_v56, %v231_v49  ;;  %v1816_v4 = vadd.f32 %v1815_v57, %v770_v50  ;;  %v254_v5 = vld [vmem:[%s16335_s0 + $0x750] sm:$0xff]  ;;  %v1838_v6 = vadd.f32 %v1837_v59, %v791_v52  ;;  %v233_v8 = vld [vmem:[%s16335_s0 + $0x6a8] sm:$0xff]  ;;  %v772_v9 = vld [vmem:[%s16335_s0 + $0x1780] sm:$0xff] }
  0xa3   :  { %v1238_v1 = vadd.f32 %v1237_v54, %v210_v41  ;;  %v1794_v7 = vadd.f32 %v1793_v60, %v749_v55  ;;  %v1283_v10 = vadd.f32 %v1282_v63, %v253_v58  ;;  %v793_v11 = vld [vmem:[%s16335_s0 + $0x1828] sm:$0xff]  ;;  %v751_v13 = vld [vmem:[%s16335_s0 + $0x16d8] sm:$0xff]  ;;  %v752_v14 = vld [vmem:[%s16335_s0 + $0x16e0] sm:$0xff] }
  0xa4   :  { %v1261_v15 = vadd.f32 %v1260_v3, %v232_v61  ;;  %v1817_v16 = vadd.f32 %v1816_v4, %v771_v62  ;;  %v255_v17 = vld [vmem:[%s16335_s0 + $0x758] sm:$0xff]  ;;  %v1839_v18 = vadd.f32 %v1838_v6, %v792_v0  ;;  %v234_v20 = vld [vmem:[%s16335_s0 + $0x6b0] sm:$0xff]  ;;  %v773_v21 = vld [vmem:[%s16335_s0 + $0x1788] sm:$0xff] }
  0xa5   :  { %v1239_v12 = vadd.f32 %v1238_v1, %v211_v53  ;;  %v1795_v19 = vadd.f32 %v1794_v7, %v750_v2  ;;  %v1284_v22 = vadd.f32 %v1283_v10, %v254_v5  ;;  %v794_v23 = vld [vmem:[%s16335_s0 + $0x1830] sm:$0xff]  ;;  %v753_v24 = vld [vmem:[%s16335_s0 + $0x16e8] sm:$0xff]  ;;  %v235_v25 = vld [vmem:[%s16335_s0 + $0x6b8] sm:$0xff] }
  0xa6   :  { %v1262_v26 = vadd.f32 %v1261_v15, %v233_v8  ;;  %v774_v27 = vld [vmem:[%s16335_s0 + $0x1790] sm:$0xff]  ;;  %v1818_v28 = vadd.f32 %v1817_v16, %v772_v9  ;;  %v256_v29 = vld [vmem:[%s16335_s0 + $0x760] sm:$0xff]  ;;  %v1840_v30 = vadd.f32 %v1839_v18, %v793_v11  ;;  %v795_v33 = vld [vmem:[%s16335_s0 + $0x1838] sm:$0xff] }
  0xa7   :  { %1240 = vadd.xlane.f32.xlu0 %v1239_v12  ;;  %v1796_v31 = vadd.f32 %v1795_v19, %v751_v13  ;;  %v1285_v32 = vadd.f32 %v1284_v22, %v255_v17  ;;  %v276_v34 = vld [vmem:[%s16335_s0 + $0x800] sm:$0xff]  ;;  %v277_v35 = vld [vmem:[%s16335_s0 + $0x808] sm:$0xff]  ;;  %v278_v41 = vld [vmem:[%s16335_s0 + $0x810] sm:$0xff] }
  0xa8   :  { %v236_v36 = vld [vmem:[%s16335_s0 + $0x6c0] sm:$0xff]  ;;  %v1263_v37 = vadd.f32 %v1262_v26, %v234_v20  ;;  %v1819_v38 = vadd.f32 %v1818_v28, %v773_v21  ;;  %v257_v39 = vld [vmem:[%s16335_s0 + $0x768] sm:$0xff]  ;;  %v1841_v40 = vadd.f32 %v1840_v30, %v794_v23  ;;  %v1308_v42 = vadd.f32 %v277_v35, %v276_v34  ;;  %v775_v44 = vld [vmem:[%s16335_s0 + $0x1798] sm:$0xff] }
  0xa9   :  { %v1797_v43 = vadd.f32 %v1796_v31, %v752_v14  ;;  %v1286_v45 = vadd.f32 %v1285_v32, %v256_v29  ;;  %v796_v46 = vld [vmem:[%s16335_s0 + $0x1840] sm:$0xff]  ;;  %v279_v47 = vld [vmem:[%s16335_s0 + $0x818] sm:$0xff]  ;;  %v754_v48 = vld [vmem:[%s16335_s0 + $0x16f0] sm:$0xff] }
  0xaa   :  { %v237_v49 = vld [vmem:[%s16335_s0 + $0x6c8] sm:$0xff]  ;;  %v1264_v50 = vadd.f32 %v1263_v37, %v235_v25  ;;  %v1820_v51 = vadd.f32 %v1819_v38, %v774_v27  ;;  %v258_v52 = vld [vmem:[%s16335_s0 + $0x770] sm:$0xff]  ;;  %v1842_v53 = vadd.f32 %v1841_v40, %v795_v33  ;;  %v1309_v54 = vadd.f32 %v1308_v42, %v278_v41  ;;  %v776_v56 = vld [vmem:[%s16335_s0 + $0x17a0] sm:$0xff] }
  0xab   :  { %v1798_v55 = vadd.f32 %v1797_v43, %v753_v24  ;;  %v1287_v57 = vadd.f32 %v1286_v45, %v257_v39  ;;  %v797_v58 = vld [vmem:[%s16335_s0 + $0x1848] sm:$0xff]  ;;  %v280_v59 = vld [vmem:[%s16335_s0 + $0x820] sm:$0xff]  ;;  %v755_v60 = vld [vmem:[%s16335_s0 + $0x16f8] sm:$0xff] }
  0xac   :  { %v238_v61 = vld [vmem:[%s16335_s0 + $0x6d0] sm:$0xff]  ;;  %v1265_v62 = vadd.f32 %v1264_v50, %v236_v36  ;;  %v1821_v63 = vadd.f32 %v1820_v51, %v775_v44  ;;  %v259_v0 = vld [vmem:[%s16335_s0 + $0x778] sm:$0xff]  ;;  %v1843_v1 = vadd.f32 %v1842_v53, %v796_v46  ;;  %v1310_v2 = vadd.f32 %v1309_v54, %v279_v47  ;;  %v777_v4 = vld [vmem:[%s16335_s0 + $0x17a8] sm:$0xff] }
  0xad   :  { %v1799_v3 = vadd.f32 %v1798_v55, %v754_v48  ;;  %v1288_v5 = vadd.f32 %v1287_v57, %v258_v52  ;;  %v798_v6 = vld [vmem:[%s16335_s0 + $0x1850] sm:$0xff]  ;;  %v281_v7 = vld [vmem:[%s16335_s0 + $0x828] sm:$0xff]  ;;  %v239_v8 = vld [vmem:[%s16335_s0 + $0x6d8] sm:$0xff] }
  0xae   :  { %v1266_v9 = vadd.f32 %v1265_v62, %v237_v49  ;;  %v1822_v10 = vadd.f32 %v1821_v63, %v776_v56  ;;  %v260_v11 = vld [vmem:[%s16335_s0 + $0x780] sm:$0xff]  ;;  %v1844_v12 = vadd.f32 %v1843_v1, %v797_v58  ;;  %v1311_v13 = vadd.f32 %v1310_v2, %v280_v59  ;;  %v778_v15 = vld [vmem:[%s16335_s0 + $0x17b0] sm:$0xff]  ;;  %v799_v17 = vld [vmem:[%s16335_s0 + $0x1858] sm:$0xff] }
  0xaf   :  { %v1800_v14 = vadd.f32 %v1799_v3, %v755_v60  ;;  %v1289_v16 = vadd.f32 %v1288_v5, %v259_v0  ;;  %v282_v18 = vld [vmem:[%s16335_s0 + $0x830] sm:$0xff]  ;;  %v240_v19 = vld [vmem:[%s16335_s0 + $0x6e0] sm:$0xff]  ;;  %v779_v21 = vld [vmem:[%s16335_s0 + $0x17b8] sm:$0xff] }
  0xb0   :  { %v1267_v20 = vadd.f32 %v1266_v9, %v238_v61  ;;  %v1823_v22 = vadd.f32 %v1822_v10, %v777_v4  ;;  %v261_v23 = vld [vmem:[%s16335_s0 + $0x788] sm:$0xff]  ;;  %v1845_v24 = vadd.f32 %v1844_v12, %v798_v6  ;;  %v1312_v25 = vadd.f32 %v1311_v13, %v281_v7  ;;  %v262_v27 = vld [vmem:[%s16335_s0 + $0x790] sm:$0xff]  ;;  %v800_v29 = vld [vmem:[%s16335_s0 + $0x1860] sm:$0xff] }
  0xb1   :  { %1801 = vadd.xlane.f32.xlu1 %v1800_v14  ;;  %v241_v26 = vld [vmem:[%s16335_s0 + $0x6e8] sm:$0xff]  ;;  %v1290_v28 = vadd.f32 %v1289_v16, %v260_v11  ;;  %v283_v30 = vld [vmem:[%s16335_s0 + $0x838] sm:$0xff]  ;;  %v820_v35 = vld [vmem:[%s16335_s0 + $0x1900] sm:$0xff] }
  0xb2   :  { %v1268_v31 = vadd.f32 %v1267_v20, %v239_v8  ;;  %v1824_v32 = vadd.f32 %v1823_v22, %v778_v15  ;;  %v1846_v33 = vadd.f32 %v1845_v24, %v799_v17  ;;  %v1313_v34 = vadd.f32 %v1312_v25, %v282_v18  ;;  %v821_v36 = vld [vmem:[%s16335_s0 + $0x1908] sm:$0xff]  ;;  %v822_v37 = vld [vmem:[%s16335_s0 + $0x1910] sm:$0xff]  ;;  %v780_v38 = vld [vmem:[%s16335_s0 + $0x17c0] sm:$0xff] }
  0xb3   :  { %v1291_v39 = vadd.f32 %v1290_v28, %v261_v23  ;;  %v801_v40 = vld [vmem:[%s16335_s0 + $0x1868] sm:$0xff]  ;;  %v284_v41 = vld [vmem:[%s16335_s0 + $0x840] sm:$0xff]  ;;  %v1869_v42 = vadd.f32 %v821_v36, %v820_v35  ;;  %v242_v43 = vld [vmem:[%s16335_s0 + $0x6f0] sm:$0xff] }
  0xb4   :  { %v1269_v44 = vadd.f32 %v1268_v31, %v240_v19  ;;  %v1825_v45 = vadd.f32 %v1824_v32, %v779_v21  ;;  %v263_v46 = vld [vmem:[%s16335_s0 + $0x798] sm:$0xff]  ;;  %v1847_v47 = vadd.f32 %v1846_v33, %v800_v29  ;;  %v1314_v48 = vadd.f32 %v1313_v34, %v283_v30  ;;  %v781_v50 = vld [vmem:[%s16335_s0 + $0x17c8] sm:$0xff]  ;;  %v802_v52 = vld [vmem:[%s16335_s0 + $0x1870] sm:$0xff] }
  0xb5   :  { %v823_v49 = vld [vmem:[%s16335_s0 + $0x1918] sm:$0xff]  ;;  %v1292_v51 = vadd.f32 %v1291_v39, %v262_v27  ;;  %v285_v53 = vld [vmem:[%s16335_s0 + $0x848] sm:$0xff]  ;;  %v1870_v54 = vadd.f32 %v1869_v42, %v822_v37  ;;  %v264_v58 = vld [vmem:[%s16335_s0 + $0x7a0] sm:$0xff] }
  0xb6   :  { %v243_v55 = vld [vmem:[%s16335_s0 + $0x6f8] sm:$0xff]  ;;  %v1270_v56 = vadd.f32 %v1269_v44, %v241_v26  ;;  %v1826_v57 = vadd.f32 %v1825_v45, %v780_v38  ;;  %v1848_v59 = vadd.f32 %v1847_v47, %v801_v40  ;;  %v1315_v60 = vadd.f32 %v1314_v48, %v284_v41  ;;  %v824_v61 = vld [vmem:[%s16335_s0 + $0x1920] sm:$0xff]  ;;  %v782_v62 = vld [vmem:[%s16335_s0 + $0x17d0] sm:$0xff] }
  0xb7   :  { %v1293_v63 = vadd.f32 %v1292_v51, %v263_v46  ;;  %v803_v0 = vld [vmem:[%s16335_s0 + $0x1878] sm:$0xff]  ;;  %v286_v1 = vld [vmem:[%s16335_s0 + $0x850] sm:$0xff]  ;;  %v1871_v2 = vadd.f32 %v1870_v54, %v823_v49  ;;  %v265_v5 = vld [vmem:[%s16335_s0 + $0x7a8] sm:$0xff] }
  0xb8   :  { %v1271_v3 = vadd.f32 %v1270_v56, %v242_v43  ;;  %v1827_v4 = vadd.f32 %v1826_v57, %v781_v50  ;;  %v1849_v6 = vadd.f32 %v1848_v59, %v802_v52  ;;  %v1316_v7 = vadd.f32 %v1315_v60, %v285_v53  ;;  %v825_v8 = vld [vmem:[%s16335_s0 + $0x1928] sm:$0xff]  ;;  %v783_v9 = vld [vmem:[%s16335_s0 + $0x17d8] sm:$0xff]  ;;  %v804_v11 = vld [vmem:[%s16335_s0 + $0x1880] sm:$0xff] }
  0xb9   :  { %v1294_v10 = vadd.f32 %v1293_v63, %v264_v58  ;;  %v287_v12 = vld [vmem:[%s16335_s0 + $0x858] sm:$0xff]  ;;  %v1872_v13 = vadd.f32 %v1871_v2, %v824_v61  ;;  %v784_v15 = vld [vmem:[%s16335_s0 + $0x17e0] sm:$0xff]  ;;  %v266_v17 = vld [vmem:[%s16335_s0 + $0x7b0] sm:$0xff] }
  0xba   :  { %v1272_v14 = vadd.f32 %v1271_v3, %v243_v55  ;;  %v1828_v16 = vadd.f32 %v1827_v4, %v782_v62  ;;  %v1850_v18 = vadd.f32 %v1849_v6, %v803_v0  ;;  %v1317_v19 = vadd.f32 %v1316_v7, %v286_v1  ;;  %v826_v20 = vld [vmem:[%s16335_s0 + $0x1930] sm:$0xff]  ;;  %v785_v21 = vld [vmem:[%s16335_s0 + $0x17e8] sm:$0xff]  ;;  %v267_v22 = vld [vmem:[%s16335_s0 + $0x7b8] sm:$0xff] }
  0xbb   :  { %v1295_v23 = vadd.f32 %v1294_v10, %v265_v5  ;;  %v805_v24 = vld [vmem:[%s16335_s0 + $0x1888] sm:$0xff]  ;;  %v288_v25 = vld [vmem:[%s16335_s0 + $0x860] sm:$0xff]  ;;  %v1873_v26 = vadd.f32 %v1872_v13, %v825_v8  ;;  %v806_v28 = vld [vmem:[%s16335_s0 + $0x1890] sm:$0xff] }
  0xbc   :  { %1273 = vadd.xlane.f32.xlu0 %v1272_v14  ;;  %v1829_v27 = vadd.f32 %v1828_v16, %v783_v9  ;;  %v1851_v29 = vadd.f32 %v1850_v18, %v804_v11  ;;  %v1318_v30 = vadd.f32 %v1317_v19, %v287_v12  ;;  %v827_v31 = vld [vmem:[%s16335_s0 + $0x1938] sm:$0xff]  ;;  %v308_v32 = vld [vmem:[%s16335_s0 + $0x900] sm:$0xff]  ;;  %v289_v34 = vld [vmem:[%s16335_s0 + $0x868] sm:$0xff] }
  0xbd   :  { %v1296_v33 = vadd.f32 %v1295_v23, %v266_v17  ;;  %v1874_v35 = vadd.f32 %v1873_v26, %v826_v20  ;;  %v309_v36 = vld [vmem:[%s16335_s0 + $0x908] sm:$0xff]  ;;  %v310_v37 = vld [vmem:[%s16335_s0 + $0x910] sm:$0xff]  ;;  %v268_v40 = vld [vmem:[%s16335_s0 + $0x7c0] sm:$0xff] }
  0xbe   :  { %v786_v38 = vld [vmem:[%s16335_s0 + $0x17f0] sm:$0xff]  ;;  %v1830_v39 = vadd.f32 %v1829_v27, %v784_v15  ;;  %v1852_v41 = vadd.f32 %v1851_v29, %v805_v24  ;;  %v1319_v42 = vadd.f32 %v1318_v30, %v288_v25  ;;  %v828_v43 = vld [vmem:[%s16335_s0 + $0x1940] sm:$0xff]  ;;  %v1341_v44 = vadd.f32 %v309_v36, %v308_v32  ;;  %v807_v46 = vld [vmem:[%s16335_s0 + $0x1898] sm:$0xff] }
  0xbf   :  { %v1297_v45 = vadd.f32 %v1296_v33, %v267_v22  ;;  %v290_v47 = vld [vmem:[%s16335_s0 + $0x870] sm:$0xff]  ;;  %v1875_v48 = vadd.f32 %v1874_v35, %v827_v31  ;;  %v311_v49 = vld [vmem:[%s16335_s0 + $0x918] sm:$0xff]  ;;  %v269_v52 = vld [vmem:[%s16335_s0 + $0x7c8] sm:$0xff] }
  0xc0   :  { %v787_v50 = vld [vmem:[%s16335_s0 + $0x17f8] sm:$0xff]  ;;  %v1831_v51 = vadd.f32 %v1830_v39, %v785_v21  ;;  %v1853_v53 = vadd.f32 %v1852_v41, %v806_v28  ;;  %v1320_v54 = vadd.f32 %v1319_v42, %v289_v34  ;;  %v829_v55 = vld [vmem:[%s16335_s0 + $0x1948] sm:$0xff]  ;;  %v1342_v56 = vadd.f32 %v1341_v44, %v310_v37  ;;  %v808_v58 = vld [vmem:[%s16335_s0 + $0x18a0] sm:$0xff] }
  0xc1   :  { %v1298_v57 = vadd.f32 %v1297_v45, %v268_v40  ;;  %v291_v59 = vld [vmem:[%s16335_s0 + $0x878] sm:$0xff]  ;;  %v1876_v60 = vadd.f32 %v1875_v48, %v828_v43  ;;  %v312_v61 = vld [vmem:[%s16335_s0 + $0x920] sm:$0xff]  ;;  %v270_v63 = vld [vmem:[%s16335_s0 + $0x7d0] sm:$0xff] }
  0xc2   :  { %v1832_v62 = vadd.f32 %v1831_v51, %v786_v38  ;;  %v1854_v0 = vadd.f32 %v1853_v53, %v807_v46  ;;  %v1321_v1 = vadd.f32 %v1320_v54, %v290_v47  ;;  %v830_v2 = vld [vmem:[%s16335_s0 + $0x1950] sm:$0xff]  ;;  %v1343_v3 = vadd.f32 %v1342_v56, %v311_v49  ;;  %v809_v5 = vld [vmem:[%s16335_s0 + $0x18a8] sm:$0xff]  ;;  %v292_v6 = vld [vmem:[%s16335_s0 + $0x880] sm:$0xff] }
  0xc3   :  { %v1299_v4 = vadd.f32 %v1298_v57, %v269_v52  ;;  %v1877_v7 = vadd.f32 %v1876_v60, %v829_v55  ;;  %v313_v8 = vld [vmem:[%s16335_s0 + $0x928] sm:$0xff]  ;;  %v271_v10 = vld [vmem:[%s16335_s0 + $0x7d8] sm:$0xff]  ;;  %v272_v11 = vld [vmem:[%s16335_s0 + $0x7e0] sm:$0xff] }
  0xc4   :  { %v1833_v9 = vadd.f32 %v1832_v62, %v787_v50  ;;  %v1855_v12 = vadd.f32 %v1854_v0, %v808_v58  ;;  %v1322_v13 = vadd.f32 %v1321_v1, %v291_v59  ;;  %v831_v14 = vld [vmem:[%s16335_s0 + $0x1958] sm:$0xff]  ;;  %v1344_v15 = vadd.f32 %v1343_v3, %v312_v61  ;;  %v810_v17 = vld [vmem:[%s16335_s0 + $0x18b0] sm:$0xff]  ;;  %v293_v18 = vld [vmem:[%s16335_s0 + $0x888] sm:$0xff] }
  0xc5   :  { %v1300_v16 = vadd.f32 %v1299_v4, %v270_v63  ;;  %v1878_v19 = vadd.f32 %v1877_v7, %v830_v2  ;;  %v314_v20 = vld [vmem:[%s16335_s0 + $0x930] sm:$0xff]  ;;  %v273_v21 = vld [vmem:[%s16335_s0 + $0x7e8] sm:$0xff]  ;;  %v811_v22 = vld [vmem:[%s16335_s0 + $0x18b8] sm:$0xff] }
  0xc6   :  { %1834 = vadd.xlane.f32.xlu1 %v1833_v9  ;;  %v1856_v23 = vadd.f32 %v1855_v12, %v809_v5  ;;  %v294_v24 = vld [vmem:[%s16335_s0 + $0x890] sm:$0xff]  ;;  %v1323_v25 = vadd.f32 %v1322_v13, %v292_v6  ;;  %v832_v26 = vld [vmem:[%s16335_s0 + $0x1960] sm:$0xff]  ;;  %v1345_v27 = vadd.f32 %v1344_v15, %v313_v8  ;;  %v315_v30 = vld [vmem:[%s16335_s0 + $0x938] sm:$0xff] }
  0xc7   :  { %v1301_v28 = vadd.f32 %v1300_v16, %v271_v10  ;;  %v1879_v29 = vadd.f32 %v1878_v19, %v831_v14  ;;  %v852_v31 = vld [vmem:[%s16335_s0 + $0x1a00] sm:$0xff]  ;;  %v853_v32 = vld [vmem:[%s16335_s0 + $0x1a08] sm:$0xff]  ;;  %v854_v38 = vld [vmem:[%s16335_s0 + $0x1a10] sm:$0xff] }
  0xc8   :  { %v812_v33 = vld [vmem:[%s16335_s0 + $0x18c0] sm:$0xff]  ;;  %v1857_v34 = vadd.f32 %v1856_v23, %v810_v17  ;;  %v1324_v35 = vadd.f32 %v1323_v25, %v293_v18  ;;  %v833_v36 = vld [vmem:[%s16335_s0 + $0x1968] sm:$0xff]  ;;  %v1346_v37 = vadd.f32 %v1345_v27, %v314_v20  ;;  %v1902_v39 = vadd.f32 %v853_v32, %v852_v31  ;;  %v295_v41 = vld [vmem:[%s16335_s0 + $0x898] sm:$0xff] }
  0xc9   :  { %v1302_v40 = vadd.f32 %v1301_v28, %v272_v11  ;;  %v1880_v42 = vadd.f32 %v1879_v29, %v832_v26  ;;  %v316_v43 = vld [vmem:[%s16335_s0 + $0x940] sm:$0xff]  ;;  %v855_v44 = vld [vmem:[%s16335_s0 + $0x1a18] sm:$0xff]  ;;  %v274_v45 = vld [vmem:[%s16335_s0 + $0x7f0] sm:$0xff] }
  0xca   :  { %v813_v46 = vld [vmem:[%s16335_s0 + $0x18c8] sm:$0xff]  ;;  %v1858_v47 = vadd.f32 %v1857_v34, %v811_v22  ;;  %v1325_v48 = vadd.f32 %v1324_v35, %v294_v24  ;;  %v834_v49 = vld [vmem:[%s16335_s0 + $0x1970] sm:$0xff]  ;;  %v1347_v50 = vadd.f32 %v1346_v37, %v315_v30  ;;  %v1903_v51 = vadd.f32 %v1902_v39, %v854_v38  ;;  %v296_v53 = vld [vmem:[%s16335_s0 + $0x8a0] sm:$0xff] }
  0xcb   :  { %v1303_v52 = vadd.f32 %v1302_v40, %v273_v21  ;;  %v1881_v54 = vadd.f32 %v1880_v42, %v833_v36  ;;  %v317_v55 = vld [vmem:[%s16335_s0 + $0x948] sm:$0xff]  ;;  %v856_v56 = vld [vmem:[%s16335_s0 + $0x1a20] sm:$0xff]  ;;  %v275_v57 = vld [vmem:[%s16335_s0 + $0x7f8] sm:$0xff] }
  0xcc   :  { %v814_v58 = vld [vmem:[%s16335_s0 + $0x18d0] sm:$0xff]  ;;  %v1859_v59 = vadd.f32 %v1858_v47, %v812_v33  ;;  %v1326_v60 = vadd.f32 %v1325_v48, %v295_v41  ;;  %v835_v61 = vld [vmem:[%s16335_s0 + $0x1978] sm:$0xff]  ;;  %v1348_v62 = vadd.f32 %v1347_v50, %v316_v43  ;;  %v1904_v63 = vadd.f32 %v1903_v51, %v855_v44  ;;  %v297_v1 = vld [vmem:[%s16335_s0 + $0x8a8] sm:$0xff] }
  0xcd   :  { %v1304_v0 = vadd.f32 %v1303_v52, %v274_v45  ;;  %v1882_v2 = vadd.f32 %v1881_v54, %v834_v49  ;;  %v318_v3 = vld [vmem:[%s16335_s0 + $0x950] sm:$0xff]  ;;  %v857_v4 = vld [vmem:[%s16335_s0 + $0x1a28] sm:$0xff]  ;;  %v815_v5 = vld [vmem:[%s16335_s0 + $0x18d8] sm:$0xff] }
  0xce   :  { %v1860_v6 = vadd.f32 %v1859_v59, %v813_v46  ;;  %v1327_v7 = vadd.f32 %v1326_v60, %v296_v53  ;;  %v836_v8 = vld [vmem:[%s16335_s0 + $0x1980] sm:$0xff]  ;;  %v1349_v9 = vadd.f32 %v1348_v62, %v317_v55  ;;  %v1905_v10 = vadd.f32 %v1904_v63, %v856_v56  ;;  %v298_v12 = vld [vmem:[%s16335_s0 + $0x8b0] sm:$0xff]  ;;  %v319_v14 = vld [vmem:[%s16335_s0 + $0x958] sm:$0xff] }
  0xcf   :  { %v1305_v11 = vadd.f32 %v1304_v0, %v275_v57  ;;  %v1883_v13 = vadd.f32 %v1882_v2, %v835_v61  ;;  %v858_v15 = vld [vmem:[%s16335_s0 + $0x1a30] sm:$0xff]  ;;  %v816_v16 = vld [vmem:[%s16335_s0 + $0x18e0] sm:$0xff]  ;;  %v299_v18 = vld [vmem:[%s16335_s0 + $0x8b8] sm:$0xff] }
  0xd0   :  { %v1861_v17 = vadd.f32 %v1860_v6, %v814_v58  ;;  %v1328_v19 = vadd.f32 %v1327_v7, %v297_v1  ;;  %v837_v20 = vld [vmem:[%s16335_s0 + $0x1988] sm:$0xff]  ;;  %v1350_v21 = vadd.f32 %v1349_v9, %v318_v3  ;;  %v1906_v22 = vadd.f32 %v1905_v10, %v857_v4  ;;  %v838_v24 = vld [vmem:[%s16335_s0 + $0x1990] sm:$0xff]  ;;  %v320_v26 = vld [vmem:[%s16335_s0 + $0x960] sm:$0xff] }
  0xd1   :  { %1306 = vadd.xlane.f32.xlu0 %v1305_v11  ;;  %v817_v23 = vld [vmem:[%s16335_s0 + $0x18e8] sm:$0xff]  ;;  %v1884_v25 = vadd.f32 %v1883_v13, %v836_v8  ;;  %v859_v27 = vld [vmem:[%s16335_s0 + $0x1a38] sm:$0xff]  ;;  %v340_v32 = vld [vmem:[%s16335_s0 + $0xa00] sm:$0xff] }
  0xd2   :  { %v1862_v28 = vadd.f32 %v1861_v17, %v815_v5  ;;  %v1329_v29 = vadd.f32 %v1328_v19, %v298_v12  ;;  %v1351_v30 = vadd.f32 %v1350_v21, %v319_v14  ;;  %v1907_v31 = vadd.f32 %v1906_v22, %v858_v15  ;;  %v341_v33 = vld [vmem:[%s16335_s0 + $0xa08] sm:$0xff]  ;;  %v342_v34 = vld [vmem:[%s16335_s0 + $0xa10] sm:$0xff]  ;;  %v300_v35 = vld [vmem:[%s16335_s0 + $0x8c0] sm:$0xff] }
  0xd3   :  { %v1885_v36 = vadd.f32 %v1884_v25, %v837_v20  ;;  %v321_v37 = vld [vmem:[%s16335_s0 + $0x968] sm:$0xff]  ;;  %v860_v38 = vld [vmem:[%s16335_s0 + $0x1a40] sm:$0xff]  ;;  %v1374_v39 = vadd.f32 %v341_v33, %v340_v32  ;;  %v818_v40 = vld [vmem:[%s16335_s0 + $0x18f0] sm:$0xff] }
  0xd4   :  { %v1863_v41 = vadd.f32 %v1862_v28, %v816_v16  ;;  %v1330_v42 = vadd.f32 %v1329_v29, %v299_v18  ;;  %v839_v43 = vld [vmem:[%s16335_s0 + $0x1998] sm:$0xff]  ;;  %v1352_v44 = vadd.f32 %v1351_v30, %v320_v26  ;;  %v1908_v45 = vadd.f32 %v1907_v31, %v859_v27  ;;  %v301_v47 = vld [vmem:[%s16335_s0 + $0x8c8] sm:$0xff]  ;;  %v322_v49 = vld [vmem:[%s16335_s0 + $0x970] sm:$0xff] }
  0xd5   :  { %v343_v46 = vld [vmem:[%s16335_s0 + $0xa18] sm:$0xff]  ;;  %v1886_v48 = vadd.f32 %v1885_v36, %v838_v24  ;;  %v861_v50 = vld [vmem:[%s16335_s0 + $0x1a48] sm:$0xff]  ;;  %v1375_v51 = vadd.f32 %v1374_v39, %v342_v34  ;;  %v840_v55 = vld [vmem:[%s16335_s0 + $0x19a0] sm:$0xff] }
  0xd6   :  { %v819_v52 = vld [vmem:[%s16335_s0 + $0x18f8] sm:$0xff]  ;;  %v1864_v53 = vadd.f32 %v1863_v41, %v817_v23  ;;  %v1331_v54 = vadd.f32 %v1330_v42, %v300_v35  ;;  %v1353_v56 = vadd.f32 %v1352_v44, %v321_v37  ;;  %v1909_v57 = vadd.f32 %v1908_v45, %v860_v38  ;;  %v344_v58 = vld [vmem:[%s16335_s0 + $0xa20] sm:$0xff]  ;;  %v302_v59 = vld [vmem:[%s16335_s0 + $0x8d0] sm:$0xff] }
  0xd7   :  { %v1887_v60 = vadd.f32 %v1886_v48, %v839_v43  ;;  %v323_v61 = vld [vmem:[%s16335_s0 + $0x978] sm:$0xff]  ;;  %v862_v62 = vld [vmem:[%s16335_s0 + $0x1a50] sm:$0xff]  ;;  %v1376_v63 = vadd.f32 %v1375_v51, %v343_v46  ;;  %v841_v2 = vld [vmem:[%s16335_s0 + $0x19a8] sm:$0xff] }
  0xd8   :  { %v1865_v0 = vadd.f32 %v1864_v53, %v818_v40  ;;  %v1332_v1 = vadd.f32 %v1331_v54, %v301_v47  ;;  %v1354_v3 = vadd.f32 %v1353_v56, %v322_v49  ;;  %v1910_v4 = vadd.f32 %v1909_v57, %v861_v50  ;;  %v345_v5 = vld [vmem:[%s16335_s0 + $0xa28] sm:$0xff]  ;;  %v303_v6 = vld [vmem:[%s16335_s0 + $0x8d8] sm:$0xff]  ;;  %v324_v8 = vld [vmem:[%s16335_s0 + $0x980] sm:$0xff] }
  0xd9   :  { %v1888_v7 = vadd.f32 %v1887_v60, %v840_v55  ;;  %v863_v9 = vld [vmem:[%s16335_s0 + $0x1a58] sm:$0xff]  ;;  %v1377_v10 = vadd.f32 %v1376_v63, %v344_v58  ;;  %v304_v12 = vld [vmem:[%s16335_s0 + $0x8e0] sm:$0xff]  ;;  %v842_v14 = vld [vmem:[%s16335_s0 + $0x19b0] sm:$0xff] }
  0xda   :  { %v1866_v11 = vadd.f32 %v1865_v0, %v819_v52  ;;  %v1333_v13 = vadd.f32 %v1332_v1, %v302_v59  ;;  %v1355_v15 = vadd.f32 %v1354_v3, %v323_v61  ;;  %v1911_v16 = vadd.f32 %v1910_v4, %v862_v62  ;;  %v346_v17 = vld [vmem:[%s16335_s0 + $0xa30] sm:$0xff]  ;;  %v305_v18 = vld [vmem:[%s16335_s0 + $0x8e8] sm:$0xff]  ;;  %v843_v19 = vld [vmem:[%s16335_s0 + $0x19b8] sm:$0xff] }
  0xdb   :  { %v1889_v20 = vadd.f32 %v1888_v7, %v841_v2  ;;  %v325_v21 = vld [vmem:[%s16335_s0 + $0x988] sm:$0xff]  ;;  %v864_v22 = vld [vmem:[%s16335_s0 + $0x1a60] sm:$0xff]  ;;  %v1378_v23 = vadd.f32 %v1377_v10, %v345_v5  ;;  %v326_v25 = vld [vmem:[%s16335_s0 + $0x990] sm:$0xff] }
  0xdc   :  { %1867 = vadd.xlane.f32.xlu1 %v1866_v11  ;;  %v1334_v24 = vadd.f32 %v1333_v13, %v303_v6  ;;  %v1356_v26 = vadd.f32 %v1355_v15, %v324_v8  ;;  %v1912_v27 = vadd.f32 %v1911_v16, %v863_v9  ;;  %v347_v28 = vld [vmem:[%s16335_s0 + $0xa38] sm:$0xff]  ;;  %v884_v29 = vld [vmem:[%s16335_s0 + $0x1b00] sm:$0xff]  ;;  %v865_v31 = vld [vmem:[%s16335_s0 + $0x1a68] sm:$0xff] }
  0xdd   :  { %v1890_v30 = vadd.f32 %v1889_v20, %v842_v14  ;;  %v1379_v32 = vadd.f32 %v1378_v23, %v346_v17  ;;  %v885_v33 = vld [vmem:[%s16335_s0 + $0x1b08] sm:$0xff]  ;;  %v886_v34 = vld [vmem:[%s16335_s0 + $0x1b10] sm:$0xff]  ;;  %v844_v37 = vld [vmem:[%s16335_s0 + $0x19c0] sm:$0xff] }
  0xde   :  { %v306_v35 = vld [vmem:[%s16335_s0 + $0x8f0] sm:$0xff]  ;;  %v1335_v36 = vadd.f32 %v1334_v24, %v304_v12  ;;  %v1357_v38 = vadd.f32 %v1356_v26, %v325_v21  ;;  %v1913_v39 = vadd.f32 %v1912_v27, %v864_v22  ;;  %v348_v40 = vld [vmem:[%s16335_s0 + $0xa40] sm:$0xff]  ;;  %v1935_v41 = vadd.f32 %v885_v33, %v884_v29  ;;  %v327_v43 = vld [vmem:[%s16335_s0 + $0x998] sm:$0xff] }
  0xdf   :  { %v1891_v42 = vadd.f32 %v1890_v30, %v843_v19  ;;  %v866_v44 = vld [vmem:[%s16335_s0 + $0x1a70] sm:$0xff]  ;;  %v1380_v45 = vadd.f32 %v1379_v32, %v347_v28  ;;  %v887_v46 = vld [vmem:[%s16335_s0 + $0x1b18] sm:$0xff]  ;;  %v845_v49 = vld [vmem:[%s16335_s0 + $0x19c8] sm:$0xff] }
  0xe0   :  { %v307_v47 = vld [vmem:[%s16335_s0 + $0x8f8] sm:$0xff]  ;;  %v1336_v48 = vadd.f32 %v1335_v36, %v305_v18  ;;  %v1358_v50 = vadd.f32 %v1357_v38, %v326_v25  ;;  %v1914_v51 = vadd.f32 %v1913_v39, %v865_v31  ;;  %v349_v52 = vld [vmem:[%s16335_s0 + $0xa48] sm:$0xff]  ;;  %v1936_v53 = vadd.f32 %v1935_v41, %v886_v34  ;;  %v328_v55 = vld [vmem:[%s16335_s0 + $0x9a0] sm:$0xff] }
  0xe1   :  { %v1892_v54 = vadd.f32 %v1891_v42, %v844_v37  ;;  %v867_v56 = vld [vmem:[%s16335_s0 + $0x1a78] sm:$0xff]  ;;  %v1381_v57 = vadd.f32 %v1380_v45, %v348_v40  ;;  %v888_v58 = vld [vmem:[%s16335_s0 + $0x1b20] sm:$0xff]  ;;  %v846_v60 = vld [vmem:[%s16335_s0 + $0x19d0] sm:$0xff] }
  0xe2   :  { %v1337_v59 = vadd.f32 %v1336_v48, %v306_v35  ;;  %v1359_v61 = vadd.f32 %v1358_v50, %v327_v43  ;;  %v1915_v62 = vadd.f32 %v1914_v51, %v866_v44  ;;  %v350_v63 = vld [vmem:[%s16335_s0 + $0xa50] sm:$0xff]  ;;  %v1937_v0 = vadd.f32 %v1936_v53, %v887_v46  ;;  %v329_v2 = vld [vmem:[%s16335_s0 + $0x9a8] sm:$0xff]  ;;  %v868_v3 = vld [vmem:[%s16335_s0 + $0x1a80] sm:$0xff] }
  0xe3   :  { %v1893_v1 = vadd.f32 %v1892_v54, %v845_v49  ;;  %v1382_v4 = vadd.f32 %v1381_v57, %v349_v52  ;;  %v889_v5 = vld [vmem:[%s16335_s0 + $0x1b28] sm:$0xff]  ;;  %v847_v7 = vld [vmem:[%s16335_s0 + $0x19d8] sm:$0xff]  ;;  %v848_v8 = vld [vmem:[%s16335_s0 + $0x19e0] sm:$0xff] }
  0xe4   :  { %v1338_v6 = vadd.f32 %v1337_v59, %v307_v47  ;;  %v1360_v9 = vadd.f32 %v1359_v61, %v328_v55  ;;  %v1916_v10 = vadd.f32 %v1915_v62, %v867_v56  ;;  %v351_v11 = vld [vmem:[%s16335_s0 + $0xa58] sm:$0xff]  ;;  %v1938_v12 = vadd.f32 %v1937_v0, %v888_v58  ;;  %v330_v14 = vld [vmem:[%s16335_s0 + $0x9b0] sm:$0xff]  ;;  %v869_v15 = vld [vmem:[%s16335_s0 + $0x1a88] sm:$0xff] }
  0xe5   :  { %v1894_v13 = vadd.f32 %v1893_v1, %v846_v60  ;;  %v1383_v16 = vadd.f32 %v1382_v4, %v350_v63  ;;  %v890_v17 = vld [vmem:[%s16335_s0 + $0x1b30] sm:$0xff]  ;;  %v849_v18 = vld [vmem:[%s16335_s0 + $0x19e8] sm:$0xff]  ;;  %v331_v19 = vld [vmem:[%s16335_s0 + $0x9b8] sm:$0xff] }
  0xe6   :  { %1339 = vadd.xlane.f32.xlu0 %v1338_v6  ;;  %v1361_v20 = vadd.f32 %v1360_v9, %v329_v2  ;;  %v870_v21 = vld [vmem:[%s16335_s0 + $0x1a90] sm:$0xff]  ;;  %v1917_v22 = vadd.f32 %v1916_v10, %v868_v3  ;;  %v352_v23 = vld [vmem:[%s16335_s0 + $0xa60] sm:$0xff]  ;;  %v1939_v24 = vadd.f32 %v1938_v12, %v889_v5  ;;  %v891_v27 = vld [vmem:[%s16335_s0 + $0x1b38] sm:$0xff] }
  0xe7   :  { %v1895_v25 = vadd.f32 %v1894_v13, %v847_v7  ;;  %v1384_v26 = vadd.f32 %v1383_v16, %v351_v11  ;;  %v372_v28 = vld [vmem:[%s16335_s0 + $0xb00] sm:$0xff]  ;;  %v373_v29 = vld [vmem:[%s16335_s0 + $0xb08] sm:$0xff]  ;;  %v374_v35 = vld [vmem:[%s16335_s0 + $0xb10] sm:$0xff] }
  0xe8   :  { %v332_v30 = vld [vmem:[%s16335_s0 + $0x9c0] sm:$0xff]  ;;  %v1362_v31 = vadd.f32 %v1361_v20, %v330_v14  ;;  %v1918_v32 = vadd.f32 %v1917_v22, %v869_v15  ;;  %v353_v33 = vld [vmem:[%s16335_s0 + $0xa68] sm:$0xff]  ;;  %v1940_v34 = vadd.f32 %v1939_v24, %v890_v17  ;;  %v1407_v36 = vadd.f32 %v373_v29, %v372_v28  ;;  %v871_v38 = vld [vmem:[%s16335_s0 + $0x1a98] sm:$0xff] }
  0xe9   :  { %v1896_v37 = vadd.f32 %v1895_v25, %v848_v8  ;;  %v1385_v39 = vadd.f32 %v1384_v26, %v352_v23  ;;  %v892_v40 = vld [vmem:[%s16335_s0 + $0x1b40] sm:$0xff]  ;;  %v375_v41 = vld [vmem:[%s16335_s0 + $0xb18] sm:$0xff]  ;;  %v850_v42 = vld [vmem:[%s16335_s0 + $0x19f0] sm:$0xff] }
  0xea   :  { %v333_v43 = vld [vmem:[%s16335_s0 + $0x9c8] sm:$0xff]  ;;  %v1363_v44 = vadd.f32 %v1362_v31, %v331_v19  ;;  %v1919_v45 = vadd.f32 %v1918_v32, %v870_v21  ;;  %v354_v46 = vld [vmem:[%s16335_s0 + $0xa70] sm:$0xff]  ;;  %v1941_v47 = vadd.f32 %v1940_v34, %v891_v27  ;;  %v1408_v48 = vadd.f32 %v1407_v36, %v374_v35  ;;  %v872_v50 = vld [vmem:[%s16335_s0 + $0x1aa0] sm:$0xff] }
  0xeb   :  { %v1897_v49 = vadd.f32 %v1896_v37, %v849_v18  ;;  %v1386_v51 = vadd.f32 %v1385_v39, %v353_v33  ;;  %v893_v52 = vld [vmem:[%s16335_s0 + $0x1b48] sm:$0xff]  ;;  %v376_v53 = vld [vmem:[%s16335_s0 + $0xb20] sm:$0xff]  ;;  %v851_v54 = vld [vmem:[%s16335_s0 + $0x19f8] sm:$0xff] }
  0xec   :  { %v334_v55 = vld [vmem:[%s16335_s0 + $0x9d0] sm:$0xff]  ;;  %v1364_v56 = vadd.f32 %v1363_v44, %v332_v30  ;;  %v1920_v57 = vadd.f32 %v1919_v45, %v871_v38  ;;  %v355_v58 = vld [vmem:[%s16335_s0 + $0xa78] sm:$0xff]  ;;  %v1942_v59 = vadd.f32 %v1941_v47, %v892_v40  ;;  %v1409_v60 = vadd.f32 %v1408_v48, %v375_v41  ;;  %v873_v62 = vld [vmem:[%s16335_s0 + $0x1aa8] sm:$0xff] }
  0xed   :  { %v1898_v61 = vadd.f32 %v1897_v49, %v850_v42  ;;  %v1387_v63 = vadd.f32 %v1386_v51, %v354_v46  ;;  %v894_v0 = vld [vmem:[%s16335_s0 + $0x1b50] sm:$0xff]  ;;  %v377_v1 = vld [vmem:[%s16335_s0 + $0xb28] sm:$0xff]  ;;  %v335_v2 = vld [vmem:[%s16335_s0 + $0x9d8] sm:$0xff] }
  0xee   :  { %v1365_v3 = vadd.f32 %v1364_v56, %v333_v43  ;;  %v1921_v4 = vadd.f32 %v1920_v57, %v872_v50  ;;  %v356_v5 = vld [vmem:[%s16335_s0 + $0xa80] sm:$0xff]  ;;  %v1943_v6 = vadd.f32 %v1942_v59, %v893_v52  ;;  %v1410_v7 = vadd.f32 %v1409_v60, %v376_v53  ;;  %v874_v9 = vld [vmem:[%s16335_s0 + $0x1ab0] sm:$0xff]  ;;  %v895_v11 = vld [vmem:[%s16335_s0 + $0x1b58] sm:$0xff] }
  0xef   :  { %v1899_v8 = vadd.f32 %v1898_v61, %v851_v54  ;;  %v1388_v10 = vadd.f32 %v1387_v63, %v355_v58  ;;  %v378_v12 = vld [vmem:[%s16335_s0 + $0xb30] sm:$0xff]  ;;  %v336_v13 = vld [vmem:[%s16335_s0 + $0x9e0] sm:$0xff]  ;;  %v875_v15 = vld [vmem:[%s16335_s0 + $0x1ab8] sm:$0xff] }
  0xf0   :  { %v1366_v14 = vadd.f32 %v1365_v3, %v334_v55  ;;  %v1922_v16 = vadd.f32 %v1921_v4, %v873_v62  ;;  %v357_v17 = vld [vmem:[%s16335_s0 + $0xa88] sm:$0xff]  ;;  %v1944_v18 = vadd.f32 %v1943_v6, %v894_v0  ;;  %v1411_v19 = vadd.f32 %v1410_v7, %v377_v1  ;;  %v358_v21 = vld [vmem:[%s16335_s0 + $0xa90] sm:$0xff]  ;;  %v896_v23 = vld [vmem:[%s16335_s0 + $0x1b60] sm:$0xff] }
  0xf1   :  { %1900 = vadd.xlane.f32.xlu1 %v1899_v8  ;;  %v337_v20 = vld [vmem:[%s16335_s0 + $0x9e8] sm:$0xff]  ;;  %v1389_v22 = vadd.f32 %v1388_v10, %v356_v5  ;;  %v379_v24 = vld [vmem:[%s16335_s0 + $0xb38] sm:$0xff]  ;;  %v916_v29 = vld [vmem:[%s16335_s0 + $0x1c00] sm:$0xff] }
  0xf2   :  { %v1367_v25 = vadd.f32 %v1366_v14, %v335_v2  ;;  %v1923_v26 = vadd.f32 %v1922_v16, %v874_v9  ;;  %v1945_v27 = vadd.f32 %v1944_v18, %v895_v11  ;;  %v1412_v28 = vadd.f32 %v1411_v19, %v378_v12  ;;  %v917_v30 = vld [vmem:[%s16335_s0 + $0x1c08] sm:$0xff]  ;;  %v918_v31 = vld [vmem:[%s16335_s0 + $0x1c10] sm:$0xff]  ;;  %v876_v32 = vld [vmem:[%s16335_s0 + $0x1ac0] sm:$0xff] }
  0xf3   :  { %v1390_v33 = vadd.f32 %v1389_v22, %v357_v17  ;;  %v897_v34 = vld [vmem:[%s16335_s0 + $0x1b68] sm:$0xff]  ;;  %v380_v35 = vld [vmem:[%s16335_s0 + $0xb40] sm:$0xff]  ;;  %v1968_v36 = vadd.f32 %v917_v30, %v916_v29  ;;  %v338_v37 = vld [vmem:[%s16335_s0 + $0x9f0] sm:$0xff] }
  0xf4   :  { %v1368_v38 = vadd.f32 %v1367_v25, %v336_v13  ;;  %v1924_v39 = vadd.f32 %v1923_v26, %v875_v15  ;;  %v359_v40 = vld [vmem:[%s16335_s0 + $0xa98] sm:$0xff]  ;;  %v1946_v41 = vadd.f32 %v1945_v27, %v896_v23  ;;  %v1413_v42 = vadd.f32 %v1412_v28, %v379_v24  ;;  %v877_v44 = vld [vmem:[%s16335_s0 + $0x1ac8] sm:$0xff]  ;;  %v898_v46 = vld [vmem:[%s16335_s0 + $0x1b70] sm:$0xff] }
  0xf5   :  { %v919_v43 = vld [vmem:[%s16335_s0 + $0x1c18] sm:$0xff]  ;;  %v1391_v45 = vadd.f32 %v1390_v33, %v358_v21  ;;  %v381_v47 = vld [vmem:[%s16335_s0 + $0xb48] sm:$0xff]  ;;  %v1969_v48 = vadd.f32 %v1968_v36, %v918_v31  ;;  %v360_v52 = vld [vmem:[%s16335_s0 + $0xaa0] sm:$0xff] }
  0xf6   :  { %v339_v49 = vld [vmem:[%s16335_s0 + $0x9f8] sm:$0xff]  ;;  %v1369_v50 = vadd.f32 %v1368_v38, %v337_v20  ;;  %v1925_v51 = vadd.f32 %v1924_v39, %v876_v32  ;;  %v1947_v53 = vadd.f32 %v1946_v41, %v897_v34  ;;  %v1414_v54 = vadd.f32 %v1413_v42, %v380_v35  ;;  %v920_v55 = vld [vmem:[%s16335_s0 + $0x1c20] sm:$0xff]  ;;  %v878_v56 = vld [vmem:[%s16335_s0 + $0x1ad0] sm:$0xff] }
  0xf7   :  { %v1392_v57 = vadd.f32 %v1391_v45, %v359_v40  ;;  %v899_v58 = vld [vmem:[%s16335_s0 + $0x1b78] sm:$0xff]  ;;  %v382_v59 = vld [vmem:[%s16335_s0 + $0xb50] sm:$0xff]  ;;  %v1970_v60 = vadd.f32 %v1969_v48, %v919_v43  ;;  %v361_v63 = vld [vmem:[%s16335_s0 + $0xaa8] sm:$0xff] }
  0xf8   :  { %v1370_v61 = vadd.f32 %v1369_v50, %v338_v37  ;;  %v1926_v62 = vadd.f32 %v1925_v51, %v877_v44  ;;  %v1948_v0 = vadd.f32 %v1947_v53, %v898_v46  ;;  %v1415_v1 = vadd.f32 %v1414_v54, %v381_v47  ;;  %v921_v2 = vld [vmem:[%s16335_s0 + $0x1c28] sm:$0xff]  ;;  %v879_v3 = vld [vmem:[%s16335_s0 + $0x1ad8] sm:$0xff]  ;;  %v900_v5 = vld [vmem:[%s16335_s0 + $0x1b80] sm:$0xff] }
  0xf9   :  { %v1393_v4 = vadd.f32 %v1392_v57, %v360_v52  ;;  %v383_v6 = vld [vmem:[%s16335_s0 + $0xb58] sm:$0xff]  ;;  %v1971_v7 = vadd.f32 %v1970_v60, %v920_v55  ;;  %v880_v9 = vld [vmem:[%s16335_s0 + $0x1ae0] sm:$0xff]  ;;  %v362_v11 = vld [vmem:[%s16335_s0 + $0xab0] sm:$0xff] }
  0xfa   :  { %v1371_v8 = vadd.f32 %v1370_v61, %v339_v49  ;;  %v1927_v10 = vadd.f32 %v1926_v62, %v878_v56  ;;  %v1949_v12 = vadd.f32 %v1948_v0, %v899_v58  ;;  %v1416_v13 = vadd.f32 %v1415_v1, %v382_v59  ;;  %v922_v14 = vld [vmem:[%s16335_s0 + $0x1c30] sm:$0xff]  ;;  %v881_v15 = vld [vmem:[%s16335_s0 + $0x1ae8] sm:$0xff]  ;;  %v363_v16 = vld [vmem:[%s16335_s0 + $0xab8] sm:$0xff] }
  0xfb   :  { %v1394_v17 = vadd.f32 %v1393_v4, %v361_v63  ;;  %v901_v18 = vld [vmem:[%s16335_s0 + $0x1b88] sm:$0xff]  ;;  %v384_v19 = vld [vmem:[%s16335_s0 + $0xb60] sm:$0xff]  ;;  %v1972_v20 = vadd.f32 %v1971_v7, %v921_v2  ;;  %v902_v22 = vld [vmem:[%s16335_s0 + $0x1b90] sm:$0xff] }
  0xfc   :  { %1372 = vadd.xlane.f32.xlu0 %v1371_v8  ;;  %v1928_v21 = vadd.f32 %v1927_v10, %v879_v3  ;;  %v1950_v23 = vadd.f32 %v1949_v12, %v900_v5  ;;  %v1417_v24 = vadd.f32 %v1416_v13, %v383_v6  ;;  %v923_v25 = vld [vmem:[%s16335_s0 + $0x1c38] sm:$0xff]  ;;  %v404_v26 = vld [vmem:[%s16335_s0 + $0xc00] sm:$0xff]  ;;  %v385_v28 = vld [vmem:[%s16335_s0 + $0xb68] sm:$0xff] }
  0xfd   :  { %v1395_v27 = vadd.f32 %v1394_v17, %v362_v11  ;;  %v1973_v29 = vadd.f32 %v1972_v20, %v922_v14  ;;  %v405_v30 = vld [vmem:[%s16335_s0 + $0xc08] sm:$0xff]  ;;  %v406_v31 = vld [vmem:[%s16335_s0 + $0xc10] sm:$0xff]  ;;  %v364_v34 = vld [vmem:[%s16335_s0 + $0xac0] sm:$0xff] }
  0xfe   :  { %v882_v32 = vld [vmem:[%s16335_s0 + $0x1af0] sm:$0xff]  ;;  %v1929_v33 = vadd.f32 %v1928_v21, %v880_v9  ;;  %v1951_v35 = vadd.f32 %v1950_v23, %v901_v18  ;;  %v1418_v36 = vadd.f32 %v1417_v24, %v384_v19  ;;  %v924_v37 = vld [vmem:[%s16335_s0 + $0x1c40] sm:$0xff]  ;;  %v1440_v38 = vadd.f32 %v405_v30, %v404_v26  ;;  %v903_v40 = vld [vmem:[%s16335_s0 + $0x1b98] sm:$0xff] }
  0xff   :  { %v1396_v39 = vadd.f32 %v1395_v27, %v363_v16  ;;  %v386_v41 = vld [vmem:[%s16335_s0 + $0xb70] sm:$0xff]  ;;  %v1974_v42 = vadd.f32 %v1973_v29, %v923_v25  ;;  %v407_v43 = vld [vmem:[%s16335_s0 + $0xc18] sm:$0xff]  ;;  %v365_v46 = vld [vmem:[%s16335_s0 + $0xac8] sm:$0xff] }
 0x100   :  { %v883_v44 = vld [vmem:[%s16335_s0 + $0x1af8] sm:$0xff]  ;;  %v1930_v45 = vadd.f32 %v1929_v33, %v881_v15  ;;  %v1952_v47 = vadd.f32 %v1951_v35, %v902_v22  ;;  %v1419_v48 = vadd.f32 %v1418_v36, %v385_v28  ;;  %v925_v49 = vld [vmem:[%s16335_s0 + $0x1c48] sm:$0xff]  ;;  %v1441_v50 = vadd.f32 %v1440_v38, %v406_v31  ;;  %v904_v52 = vld [vmem:[%s16335_s0 + $0x1ba0] sm:$0xff] }
 0x101   :  { %v1397_v51 = vadd.f32 %v1396_v39, %v364_v34  ;;  %v387_v53 = vld [vmem:[%s16335_s0 + $0xb78] sm:$0xff]  ;;  %v1975_v54 = vadd.f32 %v1974_v42, %v924_v37  ;;  %v408_v55 = vld [vmem:[%s16335_s0 + $0xc20] sm:$0xff]  ;;  %v366_v57 = vld [vmem:[%s16335_s0 + $0xad0] sm:$0xff] }
 0x102   :  { %v1931_v56 = vadd.f32 %v1930_v45, %v882_v32  ;;  %v1953_v58 = vadd.f32 %v1952_v47, %v903_v40  ;;  %v1420_v59 = vadd.f32 %v1419_v48, %v386_v41  ;;  %v926_v60 = vld [vmem:[%s16335_s0 + $0x1c50] sm:$0xff]  ;;  %v1442_v61 = vadd.f32 %v1441_v50, %v407_v43  ;;  %v905_v63 = vld [vmem:[%s16335_s0 + $0x1ba8] sm:$0xff]  ;;  %v388_v0 = vld [vmem:[%s16335_s0 + $0xb80] sm:$0xff] }
 0x103   :  { %v1398_v62 = vadd.f32 %v1397_v51, %v365_v46  ;;  %v1976_v1 = vadd.f32 %v1975_v54, %v925_v49  ;;  %v409_v2 = vld [vmem:[%s16335_s0 + $0xc28] sm:$0xff]  ;;  %v367_v4 = vld [vmem:[%s16335_s0 + $0xad8] sm:$0xff]  ;;  %v368_v5 = vld [vmem:[%s16335_s0 + $0xae0] sm:$0xff] }
 0x104   :  { %v1932_v3 = vadd.f32 %v1931_v56, %v883_v44  ;;  %v1954_v6 = vadd.f32 %v1953_v58, %v904_v52  ;;  %v1421_v7 = vadd.f32 %v1420_v59, %v387_v53  ;;  %v927_v8 = vld [vmem:[%s16335_s0 + $0x1c58] sm:$0xff]  ;;  %v1443_v9 = vadd.f32 %v1442_v61, %v408_v55  ;;  %v906_v11 = vld [vmem:[%s16335_s0 + $0x1bb0] sm:$0xff]  ;;  %v389_v12 = vld [vmem:[%s16335_s0 + $0xb88] sm:$0xff] }
 0x105   :  { %v1399_v10 = vadd.f32 %v1398_v62, %v366_v57  ;;  %v1977_v13 = vadd.f32 %v1976_v1, %v926_v60  ;;  %v410_v14 = vld [vmem:[%s16335_s0 + $0xc30] sm:$0xff]  ;;  %v369_v15 = vld [vmem:[%s16335_s0 + $0xae8] sm:$0xff]  ;;  %v907_v16 = vld [vmem:[%s16335_s0 + $0x1bb8] sm:$0xff] }
 0x106   :  { %1933 = vadd.xlane.f32.xlu1 %v1932_v3  ;;  %v1955_v17 = vadd.f32 %v1954_v6, %v905_v63  ;;  %v390_v18 = vld [vmem:[%s16335_s0 + $0xb90] sm:$0xff]  ;;  %v1422_v19 = vadd.f32 %v1421_v7, %v388_v0  ;;  %v928_v20 = vld [vmem:[%s16335_s0 + $0x1c60] sm:$0xff]  ;;  %v1444_v21 = vadd.f32 %v1443_v9, %v409_v2  ;;  %v411_v24 = vld [vmem:[%s16335_s0 + $0xc38] sm:$0xff] }
 0x107   :  { %v1400_v22 = vadd.f32 %v1399_v10, %v367_v4  ;;  %v1978_v23 = vadd.f32 %v1977_v13, %v927_v8  ;;  %v948_v25 = vld [vmem:[%s16335_s0 + $0x1d00] sm:$0xff]  ;;  %v949_v26 = vld [vmem:[%s16335_s0 + $0x1d08] sm:$0xff]  ;;  %v950_v32 = vld [vmem:[%s16335_s0 + $0x1d10] sm:$0xff] }
 0x108   :  { %v908_v27 = vld [vmem:[%s16335_s0 + $0x1bc0] sm:$0xff]  ;;  %v1956_v28 = vadd.f32 %v1955_v17, %v906_v11  ;;  %v1423_v29 = vadd.f32 %v1422_v19, %v389_v12  ;;  %v929_v30 = vld [vmem:[%s16335_s0 + $0x1c68] sm:$0xff]  ;;  %v1445_v31 = vadd.f32 %v1444_v21, %v410_v14  ;;  %v2001_v33 = vadd.f32 %v949_v26, %v948_v25  ;;  %v391_v35 = vld [vmem:[%s16335_s0 + $0xb98] sm:$0xff] }
 0x109   :  { %v1401_v34 = vadd.f32 %v1400_v22, %v368_v5  ;;  %v1979_v36 = vadd.f32 %v1978_v23, %v928_v20  ;;  %v412_v37 = vld [vmem:[%s16335_s0 + $0xc40] sm:$0xff]  ;;  %v951_v38 = vld [vmem:[%s16335_s0 + $0x1d18] sm:$0xff]  ;;  %v370_v39 = vld [vmem:[%s16335_s0 + $0xaf0] sm:$0xff] }
 0x10a   :  { %v909_v40 = vld [vmem:[%s16335_s0 + $0x1bc8] sm:$0xff]  ;;  %v1957_v41 = vadd.f32 %v1956_v28, %v907_v16  ;;  %v1424_v42 = vadd.f32 %v1423_v29, %v390_v18  ;;  %v930_v43 = vld [vmem:[%s16335_s0 + $0x1c70] sm:$0xff]  ;;  %v1446_v44 = vadd.f32 %v1445_v31, %v411_v24  ;;  %v2002_v45 = vadd.f32 %v2001_v33, %v950_v32  ;;  %v392_v47 = vld [vmem:[%s16335_s0 + $0xba0] sm:$0xff] }
 0x10b   :  { %v1402_v46 = vadd.f32 %v1401_v34, %v369_v15  ;;  %v1980_v48 = vadd.f32 %v1979_v36, %v929_v30  ;;  %v413_v49 = vld [vmem:[%s16335_s0 + $0xc48] sm:$0xff]  ;;  %v952_v50 = vld [vmem:[%s16335_s0 + $0x1d20] sm:$0xff]  ;;  %v371_v51 = vld [vmem:[%s16335_s0 + $0xaf8] sm:$0xff] }
 0x10c   :  { %v910_v52 = vld [vmem:[%s16335_s0 + $0x1bd0] sm:$0xff]  ;;  %v1958_v53 = vadd.f32 %v1957_v41, %v908_v27  ;;  %v1425_v54 = vadd.f32 %v1424_v42, %v391_v35  ;;  %v931_v55 = vld [vmem:[%s16335_s0 + $0x1c78] sm:$0xff]  ;;  %v1447_v56 = vadd.f32 %v1446_v44, %v412_v37  ;;  %v2003_v57 = vadd.f32 %v2002_v45, %v951_v38  ;;  %v393_v59 = vld [vmem:[%s16335_s0 + $0xba8] sm:$0xff] }
 0x10d   :  { %v1403_v58 = vadd.f32 %v1402_v46, %v370_v39  ;;  %v1981_v60 = vadd.f32 %v1980_v48, %v930_v43  ;;  %v414_v61 = vld [vmem:[%s16335_s0 + $0xc50] sm:$0xff]  ;;  %v953_v62 = vld [vmem:[%s16335_s0 + $0x1d28] sm:$0xff]  ;;  %v911_v63 = vld [vmem:[%s16335_s0 + $0x1bd8] sm:$0xff] }
 0x10e   :  { %v1959_v0 = vadd.f32 %v1958_v53, %v909_v40  ;;  %v1426_v1 = vadd.f32 %v1425_v54, %v392_v47  ;;  %v932_v2 = vld [vmem:[%s16335_s0 + $0x1c80] sm:$0xff]  ;;  %v1448_v3 = vadd.f32 %v1447_v56, %v413_v49  ;;  %v2004_v4 = vadd.f32 %v2003_v57, %v952_v50  ;;  %v394_v6 = vld [vmem:[%s16335_s0 + $0xbb0] sm:$0xff]  ;;  %v415_v8 = vld [vmem:[%s16335_s0 + $0xc58] sm:$0xff] }
 0x10f   :  { %v1404_v5 = vadd.f32 %v1403_v58, %v371_v51  ;;  %v1982_v7 = vadd.f32 %v1981_v60, %v931_v55  ;;  %v954_v9 = vld [vmem:[%s16335_s0 + $0x1d30] sm:$0xff]  ;;  %v912_v10 = vld [vmem:[%s16335_s0 + $0x1be0] sm:$0xff]  ;;  %v395_v12 = vld [vmem:[%s16335_s0 + $0xbb8] sm:$0xff] }
 0x110   :  { %v1960_v11 = vadd.f32 %v1959_v0, %v910_v52  ;;  %v1427_v13 = vadd.f32 %v1426_v1, %v393_v59  ;;  %v933_v14 = vld [vmem:[%s16335_s0 + $0x1c88] sm:$0xff]  ;;  %v1449_v15 = vadd.f32 %v1448_v3, %v414_v61  ;;  %v2005_v16 = vadd.f32 %v2004_v4, %v953_v62  ;;  %v934_v18 = vld [vmem:[%s16335_s0 + $0x1c90] sm:$0xff]  ;;  %v416_v20 = vld [vmem:[%s16335_s0 + $0xc60] sm:$0xff] }
 0x111   :  { %1405 = vadd.xlane.f32.xlu0 %v1404_v5  ;;  %v913_v17 = vld [vmem:[%s16335_s0 + $0x1be8] sm:$0xff]  ;;  %v1983_v19 = vadd.f32 %v1982_v7, %v932_v2  ;;  %v955_v21 = vld [vmem:[%s16335_s0 + $0x1d38] sm:$0xff]  ;;  %v436_v26 = vld [vmem:[%s16335_s0 + $0xd00] sm:$0xff] }
 0x112   :  { %v1961_v22 = vadd.f32 %v1960_v11, %v911_v63  ;;  %v1428_v23 = vadd.f32 %v1427_v13, %v394_v6  ;;  %v1450_v24 = vadd.f32 %v1449_v15, %v415_v8  ;;  %v2006_v25 = vadd.f32 %v2005_v16, %v954_v9  ;;  %v437_v27 = vld [vmem:[%s16335_s0 + $0xd08] sm:$0xff]  ;;  %v438_v28 = vld [vmem:[%s16335_s0 + $0xd10] sm:$0xff]  ;;  %v396_v29 = vld [vmem:[%s16335_s0 + $0xbc0] sm:$0xff] }
 0x113   :  { %v1984_v30 = vadd.f32 %v1983_v19, %v933_v14  ;;  %v417_v31 = vld [vmem:[%s16335_s0 + $0xc68] sm:$0xff]  ;;  %v956_v32 = vld [vmem:[%s16335_s0 + $0x1d40] sm:$0xff]  ;;  %v1473_v33 = vadd.f32 %v437_v27, %v436_v26  ;;  %v914_v34 = vld [vmem:[%s16335_s0 + $0x1bf0] sm:$0xff] }
 0x114   :  { %v1962_v35 = vadd.f32 %v1961_v22, %v912_v10  ;;  %v1429_v36 = vadd.f32 %v1428_v23, %v395_v12  ;;  %v935_v37 = vld [vmem:[%s16335_s0 + $0x1c98] sm:$0xff]  ;;  %v1451_v38 = vadd.f32 %v1450_v24, %v416_v20  ;;  %v2007_v39 = vadd.f32 %v2006_v25, %v955_v21  ;;  %v397_v41 = vld [vmem:[%s16335_s0 + $0xbc8] sm:$0xff]  ;;  %v418_v43 = vld [vmem:[%s16335_s0 + $0xc70] sm:$0xff] }
 0x115   :  { %v439_v40 = vld [vmem:[%s16335_s0 + $0xd18] sm:$0xff]  ;;  %v1985_v42 = vadd.f32 %v1984_v30, %v934_v18  ;;  %v957_v44 = vld [vmem:[%s16335_s0 + $0x1d48] sm:$0xff]  ;;  %v1474_v45 = vadd.f32 %v1473_v33, %v438_v28  ;;  %v936_v49 = vld [vmem:[%s16335_s0 + $0x1ca0] sm:$0xff] }
 0x116   :  { %v915_v46 = vld [vmem:[%s16335_s0 + $0x1bf8] sm:$0xff]  ;;  %v1963_v47 = vadd.f32 %v1962_v35, %v913_v17  ;;  %v1430_v48 = vadd.f32 %v1429_v36, %v396_v29  ;;  %v1452_v50 = vadd.f32 %v1451_v38, %v417_v31  ;;  %v2008_v51 = vadd.f32 %v2007_v39, %v956_v32  ;;  %v440_v52 = vld [vmem:[%s16335_s0 + $0xd20] sm:$0xff]  ;;  %v398_v53 = vld [vmem:[%s16335_s0 + $0xbd0] sm:$0xff] }
 0x117   :  { %v1986_v54 = vadd.f32 %v1985_v42, %v935_v37  ;;  %v419_v55 = vld [vmem:[%s16335_s0 + $0xc78] sm:$0xff]  ;;  %v958_v56 = vld [vmem:[%s16335_s0 + $0x1d50] sm:$0xff]  ;;  %v1475_v57 = vadd.f32 %v1474_v45, %v439_v40  ;;  %v937_v60 = vld [vmem:[%s16335_s0 + $0x1ca8] sm:$0xff] }
 0x118   :  { %v1964_v58 = vadd.f32 %v1963_v47, %v914_v34  ;;  %v1431_v59 = vadd.f32 %v1430_v48, %v397_v41  ;;  %v1453_v61 = vadd.f32 %v1452_v50, %v418_v43  ;;  %v2009_v62 = vadd.f32 %v2008_v51, %v957_v44  ;;  %v441_v63 = vld [vmem:[%s16335_s0 + $0xd28] sm:$0xff]  ;;  %v399_v0 = vld [vmem:[%s16335_s0 + $0xbd8] sm:$0xff]  ;;  %v420_v2 = vld [vmem:[%s16335_s0 + $0xc80] sm:$0xff] }
 0x119   :  { %v1987_v1 = vadd.f32 %v1986_v54, %v936_v49  ;;  %v959_v3 = vld [vmem:[%s16335_s0 + $0x1d58] sm:$0xff]  ;;  %v1476_v4 = vadd.f32 %v1475_v57, %v440_v52  ;;  %v400_v6 = vld [vmem:[%s16335_s0 + $0xbe0] sm:$0xff]  ;;  %v938_v8 = vld [vmem:[%s16335_s0 + $0x1cb0] sm:$0xff] }
 0x11a   :  { %v1965_v5 = vadd.f32 %v1964_v58, %v915_v46  ;;  %v1432_v7 = vadd.f32 %v1431_v59, %v398_v53  ;;  %v1454_v9 = vadd.f32 %v1453_v61, %v419_v55  ;;  %v2010_v10 = vadd.f32 %v2009_v62, %v958_v56  ;;  %v442_v11 = vld [vmem:[%s16335_s0 + $0xd30] sm:$0xff]  ;;  %v401_v12 = vld [vmem:[%s16335_s0 + $0xbe8] sm:$0xff]  ;;  %v939_v13 = vld [vmem:[%s16335_s0 + $0x1cb8] sm:$0xff] }
 0x11b   :  { %v1988_v14 = vadd.f32 %v1987_v1, %v937_v60  ;;  %v421_v15 = vld [vmem:[%s16335_s0 + $0xc88] sm:$0xff]  ;;  %v960_v16 = vld [vmem:[%s16335_s0 + $0x1d60] sm:$0xff]  ;;  %v1477_v17 = vadd.f32 %v1476_v4, %v441_v63  ;;  %v422_v19 = vld [vmem:[%s16335_s0 + $0xc90] sm:$0xff] }
 0x11c   :  { %1966 = vadd.xlane.f32.xlu1 %v1965_v5  ;;  %v1433_v18 = vadd.f32 %v1432_v7, %v399_v0  ;;  %v1455_v20 = vadd.f32 %v1454_v9, %v420_v2  ;;  %v2011_v21 = vadd.f32 %v2010_v10, %v959_v3  ;;  %v443_v22 = vld [vmem:[%s16335_s0 + $0xd38] sm:$0xff]  ;;  %v980_v23 = vld [vmem:[%s16335_s0 + $0x1e00] sm:$0xff]  ;;  %v961_v25 = vld [vmem:[%s16335_s0 + $0x1d68] sm:$0xff] }
 0x11d   :  { %v1989_v24 = vadd.f32 %v1988_v14, %v938_v8  ;;  %v1478_v26 = vadd.f32 %v1477_v17, %v442_v11  ;;  %v981_v27 = vld [vmem:[%s16335_s0 + $0x1e08] sm:$0xff]  ;;  %v982_v28 = vld [vmem:[%s16335_s0 + $0x1e10] sm:$0xff]  ;;  %v940_v31 = vld [vmem:[%s16335_s0 + $0x1cc0] sm:$0xff] }
 0x11e   :  { %v402_v29 = vld [vmem:[%s16335_s0 + $0xbf0] sm:$0xff]  ;;  %v1434_v30 = vadd.f32 %v1433_v18, %v400_v6  ;;  %v1456_v32 = vadd.f32 %v1455_v20, %v421_v15  ;;  %v2012_v33 = vadd.f32 %v2011_v21, %v960_v16  ;;  %v444_v34 = vld [vmem:[%s16335_s0 + $0xd40] sm:$0xff]  ;;  %v2034_v35 = vadd.f32 %v981_v27, %v980_v23  ;;  %v423_v37 = vld [vmem:[%s16335_s0 + $0xc98] sm:$0xff] }
 0x11f   :  { %v1990_v36 = vadd.f32 %v1989_v24, %v939_v13  ;;  %v962_v38 = vld [vmem:[%s16335_s0 + $0x1d70] sm:$0xff]  ;;  %v1479_v39 = vadd.f32 %v1478_v26, %v443_v22  ;;  %v983_v40 = vld [vmem:[%s16335_s0 + $0x1e18] sm:$0xff]  ;;  %v941_v43 = vld [vmem:[%s16335_s0 + $0x1cc8] sm:$0xff] }
 0x120   :  { %v403_v41 = vld [vmem:[%s16335_s0 + $0xbf8] sm:$0xff]  ;;  %v1435_v42 = vadd.f32 %v1434_v30, %v401_v12  ;;  %v1457_v44 = vadd.f32 %v1456_v32, %v422_v19  ;;  %v2013_v45 = vadd.f32 %v2012_v33, %v961_v25  ;;  %v445_v46 = vld [vmem:[%s16335_s0 + $0xd48] sm:$0xff]  ;;  %v2035_v47 = vadd.f32 %v2034_v35, %v982_v28  ;;  %v424_v49 = vld [vmem:[%s16335_s0 + $0xca0] sm:$0xff] }
 0x121   :  { %v1991_v48 = vadd.f32 %v1990_v36, %v940_v31  ;;  %v963_v50 = vld [vmem:[%s16335_s0 + $0x1d78] sm:$0xff]  ;;  %v1480_v51 = vadd.f32 %v1479_v39, %v444_v34  ;;  %v984_v52 = vld [vmem:[%s16335_s0 + $0x1e20] sm:$0xff]  ;;  %v942_v54 = vld [vmem:[%s16335_s0 + $0x1cd0] sm:$0xff] }
 0x122   :  { %v1436_v53 = vadd.f32 %v1435_v42, %v402_v29  ;;  %v1458_v55 = vadd.f32 %v1457_v44, %v423_v37  ;;  %v2014_v56 = vadd.f32 %v2013_v45, %v962_v38  ;;  %v446_v57 = vld [vmem:[%s16335_s0 + $0xd50] sm:$0xff]  ;;  %v2036_v58 = vadd.f32 %v2035_v47, %v983_v40  ;;  %v425_v60 = vld [vmem:[%s16335_s0 + $0xca8] sm:$0xff]  ;;  %v964_v61 = vld [vmem:[%s16335_s0 + $0x1d80] sm:$0xff] }
 0x123   :  { %v1992_v59 = vadd.f32 %v1991_v48, %v941_v43  ;;  %v1481_v62 = vadd.f32 %v1480_v51, %v445_v46  ;;  %v985_v63 = vld [vmem:[%s16335_s0 + $0x1e28] sm:$0xff]  ;;  %v943_v1 = vld [vmem:[%s16335_s0 + $0x1cd8] sm:$0xff]  ;;  %v944_v2 = vld [vmem:[%s16335_s0 + $0x1ce0] sm:$0xff] }
 0x124   :  { %v1437_v0 = vadd.f32 %v1436_v53, %v403_v41  ;;  %v1459_v3 = vadd.f32 %v1458_v55, %v424_v49  ;;  %v2015_v4 = vadd.f32 %v2014_v56, %v963_v50  ;;  %v447_v5 = vld [vmem:[%s16335_s0 + $0xd58] sm:$0xff]  ;;  %v2037_v6 = vadd.f32 %v2036_v58, %v984_v52  ;;  %v426_v8 = vld [vmem:[%s16335_s0 + $0xcb0] sm:$0xff]  ;;  %v965_v9 = vld [vmem:[%s16335_s0 + $0x1d88] sm:$0xff] }
 0x125   :  { %v1993_v7 = vadd.f32 %v1992_v59, %v942_v54  ;;  %v1482_v10 = vadd.f32 %v1481_v62, %v446_v57  ;;  %v986_v11 = vld [vmem:[%s16335_s0 + $0x1e30] sm:$0xff]  ;;  %v945_v12 = vld [vmem:[%s16335_s0 + $0x1ce8] sm:$0xff]  ;;  %v427_v13 = vld [vmem:[%s16335_s0 + $0xcb8] sm:$0xff] }
 0x126   :  { %1438 = vadd.xlane.f32.xlu0 %v1437_v0  ;;  %v1460_v14 = vadd.f32 %v1459_v3, %v425_v60  ;;  %v966_v15 = vld [vmem:[%s16335_s0 + $0x1d90] sm:$0xff]  ;;  %v2016_v16 = vadd.f32 %v2015_v4, %v964_v61  ;;  %v448_v17 = vld [vmem:[%s16335_s0 + $0xd60] sm:$0xff]  ;;  %v2038_v18 = vadd.f32 %v2037_v6, %v985_v63  ;;  %v987_v21 = vld [vmem:[%s16335_s0 + $0x1e38] sm:$0xff] }
 0x127   :  { %v1994_v19 = vadd.f32 %v1993_v7, %v943_v1  ;;  %v1483_v20 = vadd.f32 %v1482_v10, %v447_v5  ;;  %v468_v22 = vld [vmem:[%s16335_s0 + $0xe00] sm:$0xff]  ;;  %v469_v23 = vld [vmem:[%s16335_s0 + $0xe08] sm:$0xff]  ;;  %v470_v29 = vld [vmem:[%s16335_s0 + $0xe10] sm:$0xff] }
 0x128   :  { %v428_v24 = vld [vmem:[%s16335_s0 + $0xcc0] sm:$0xff]  ;;  %v1461_v25 = vadd.f32 %v1460_v14, %v426_v8  ;;  %v2017_v26 = vadd.f32 %v2016_v16, %v965_v9  ;;  %v449_v27 = vld [vmem:[%s16335_s0 + $0xd68] sm:$0xff]  ;;  %v2039_v28 = vadd.f32 %v2038_v18, %v986_v11  ;;  %v1506_v30 = vadd.f32 %v469_v23, %v468_v22  ;;  %v967_v32 = vld [vmem:[%s16335_s0 + $0x1d98] sm:$0xff] }
 0x129   :  { %v1995_v31 = vadd.f32 %v1994_v19, %v944_v2  ;;  %v1484_v33 = vadd.f32 %v1483_v20, %v448_v17  ;;  %v988_v34 = vld [vmem:[%s16335_s0 + $0x1e40] sm:$0xff]  ;;  %v471_v35 = vld [vmem:[%s16335_s0 + $0xe18] sm:$0xff]  ;;  %v946_v36 = vld [vmem:[%s16335_s0 + $0x1cf0] sm:$0xff] }
 0x12a   :  { %v429_v37 = vld [vmem:[%s16335_s0 + $0xcc8] sm:$0xff]  ;;  %v1462_v38 = vadd.f32 %v1461_v25, %v427_v13  ;;  %v2018_v39 = vadd.f32 %v2017_v26, %v966_v15  ;;  %v450_v40 = vld [vmem:[%s16335_s0 + $0xd70] sm:$0xff]  ;;  %v2040_v41 = vadd.f32 %v2039_v28, %v987_v21  ;;  %v1507_v42 = vadd.f32 %v1506_v30, %v470_v29  ;;  %v968_v44 = vld [vmem:[%s16335_s0 + $0x1da0] sm:$0xff] }
 0x12b   :  { %v1996_v43 = vadd.f32 %v1995_v31, %v945_v12  ;;  %v1485_v45 = vadd.f32 %v1484_v33, %v449_v27  ;;  %v989_v46 = vld [vmem:[%s16335_s0 + $0x1e48] sm:$0xff]  ;;  %v472_v47 = vld [vmem:[%s16335_s0 + $0xe20] sm:$0xff]  ;;  %v947_v48 = vld [vmem:[%s16335_s0 + $0x1cf8] sm:$0xff] }
 0x12c   :  { %v430_v49 = vld [vmem:[%s16335_s0 + $0xcd0] sm:$0xff]  ;;  %v1463_v50 = vadd.f32 %v1462_v38, %v428_v24  ;;  %v2019_v51 = vadd.f32 %v2018_v39, %v967_v32  ;;  %v451_v52 = vld [vmem:[%s16335_s0 + $0xd78] sm:$0xff]  ;;  %v2041_v53 = vadd.f32 %v2040_v41, %v988_v34  ;;  %v1508_v54 = vadd.f32 %v1507_v42, %v471_v35  ;;  %v969_v56 = vld [vmem:[%s16335_s0 + $0x1da8] sm:$0xff] }
 0x12d   :  { %v1997_v55 = vadd.f32 %v1996_v43, %v946_v36  ;;  %v1486_v57 = vadd.f32 %v1485_v45, %v450_v40  ;;  %v990_v58 = vld [vmem:[%s16335_s0 + $0x1e50] sm:$0xff]  ;;  %v473_v59 = vld [vmem:[%s16335_s0 + $0xe28] sm:$0xff]  ;;  %v431_v60 = vld [vmem:[%s16335_s0 + $0xcd8] sm:$0xff]  ;;  %v5818_v38 = vmov 0.0  }
 0x12e   :  { %v1464_v61 = vadd.f32 %v1463_v50, %v429_v37  ;;  %v2020_v62 = vadd.f32 %v2019_v51, %v968_v44  ;;  %v452_v63 = vld [vmem:[%s16335_s0 + $0xd80] sm:$0xff]  ;;  %v2042_v0 = vadd.f32 %v2041_v53, %v989_v46  ;;  %v1509_v1 = vadd.f32 %v1508_v54, %v472_v47  ;;  %v970_v3 = vld [vmem:[%s16335_s0 + $0x1db0] sm:$0xff]  ;;  %v991_v5 = vld [vmem:[%s16335_s0 + $0x1e58] sm:$0xff]  ;;  %4748 = vmatprep.subr.mxu0 %v5818_v38 }
 0x12f   :  { %v1998_v2 = vadd.f32 %v1997_v55, %v947_v48  ;;  %v1487_v4 = vadd.f32 %v1486_v57, %v451_v52  ;;  %v474_v6 = vld [vmem:[%s16335_s0 + $0xe30] sm:$0xff]  ;;  %v432_v7 = vld [vmem:[%s16335_s0 + $0xce0] sm:$0xff]  ;;  %v971_v9 = vld [vmem:[%s16335_s0 + $0x1db8] sm:$0xff]  ;;  %4783 = vmatprep.subr.mxu1 %v5818_v38  ;;  %4780 = vmatprep.mubr.msk.f32.mxu0 %vm5819_vm0, %v5818_v38 }
 0x130   :  { %v1465_v8 = vadd.f32 %v1464_v61, %v430_v49  ;;  %v2021_v10 = vadd.f32 %v2020_v62, %v969_v56  ;;  %v453_v11 = vld [vmem:[%s16335_s0 + $0xd88] sm:$0xff]  ;;  %v2043_v12 = vadd.f32 %v2042_v0, %v990_v58  ;;  %v1510_v13 = vadd.f32 %v1509_v1, %v473_v59  ;;  %v454_v15 = vld [vmem:[%s16335_s0 + $0xd90] sm:$0xff]  ;;  %v992_v17 = vld [vmem:[%s16335_s0 + $0x1e60] sm:$0xff]  ;;  %4785 = vmatprep.mubr.msk.f32.mxu1 %vm5819_vm0, %v5818_v38 }
 0x131   :  { %1999 = vadd.xlane.f32.xlu1 %v1998_v2  ;;  %v433_v14 = vld [vmem:[%s16335_s0 + $0xce8] sm:$0xff]  ;;  %v1488_v16 = vadd.f32 %v1487_v4, %v452_v63  ;;  %v475_v18 = vld [vmem:[%s16335_s0 + $0xe38] sm:$0xff]  ;;  %v1012_v23 = vld [vmem:[%s16335_s0 + $0x1f00] sm:$0xff]  ;;  %vm2377_vm0 = vcmask 1041409  }
 0x132   :  { %v1466_v19 = vadd.f32 %v1465_v8, %v431_v60  ;;  %v2022_v20 = vadd.f32 %v2021_v10, %v970_v3  ;;  %v2044_v21 = vadd.f32 %v2043_v12, %v991_v5  ;;  %v1511_v22 = vadd.f32 %v1510_v13, %v474_v6  ;;  %v1013_v24 = vld [vmem:[%s16335_s0 + $0x1f08] sm:$0xff]  ;;  %v1014_v25 = vld [vmem:[%s16335_s0 + $0x1f10] sm:$0xff]  ;;  %v972_v26 = vld [vmem:[%s16335_s0 + $0x1dc0] sm:$0xff] }
 0x133   :  { %v1489_v27 = vadd.f32 %v1488_v16, %v453_v11  ;;  %v993_v28 = vld [vmem:[%s16335_s0 + $0x1e68] sm:$0xff]  ;;  %v476_v29 = vld [vmem:[%s16335_s0 + $0xe40] sm:$0xff]  ;;  %v2067_v30 = vadd.f32 %v1013_v24, %v1012_v23  ;;  %v434_v31 = vld [vmem:[%s16335_s0 + $0xcf0] sm:$0xff] }
 0x134   :  { %v1467_v32 = vadd.f32 %v1466_v19, %v432_v7  ;;  %v2023_v33 = vadd.f32 %v2022_v20, %v971_v9  ;;  %v455_v34 = vld [vmem:[%s16335_s0 + $0xd98] sm:$0xff]  ;;  %v2045_v35 = vadd.f32 %v2044_v21, %v992_v17  ;;  %v1512_v36 = vadd.f32 %v1511_v22, %v475_v18  ;;  %v973_v39 = vld [vmem:[%s16335_s0 + $0x1dc8] sm:$0xff]  ;;  %v994_v41 = vld [vmem:[%s16335_s0 + $0x1e70] sm:$0xff] }
 0x135   :  { %v1015_v37 = vld [vmem:[%s16335_s0 + $0x1f18] sm:$0xff]  ;;  %v1490_v40 = vadd.f32 %v1489_v27, %v454_v15  ;;  %v477_v42 = vld [vmem:[%s16335_s0 + $0xe48] sm:$0xff]  ;;  %v2068_v43 = vadd.f32 %v2067_v30, %v1014_v25  ;;  %v456_v47 = vld [vmem:[%s16335_s0 + $0xda0] sm:$0xff] }
 0x136   :  { %v435_v44 = vld [vmem:[%s16335_s0 + $0xcf8] sm:$0xff]  ;;  %v1468_v45 = vadd.f32 %v1467_v32, %v433_v14  ;;  %v2024_v46 = vadd.f32 %v2023_v33, %v972_v26  ;;  %v2046_v48 = vadd.f32 %v2045_v35, %v993_v28  ;;  %v1513_v49 = vadd.f32 %v1512_v36, %v476_v29  ;;  %v1016_v50 = vld [vmem:[%s16335_s0 + $0x1f20] sm:$0xff]  ;;  %v974_v51 = vld [vmem:[%s16335_s0 + $0x1dd0] sm:$0xff] }
 0x137   :  { %v1491_v52 = vadd.f32 %v1490_v40, %v455_v34  ;;  %v995_v53 = vld [vmem:[%s16335_s0 + $0x1e78] sm:$0xff]  ;;  %v478_v54 = vld [vmem:[%s16335_s0 + $0xe50] sm:$0xff]  ;;  %v2069_v55 = vadd.f32 %v2068_v43, %v1015_v37  ;;  %v457_v58 = vld [vmem:[%s16335_s0 + $0xda8] sm:$0xff] }
 0x138   :  { %v1469_v56 = vadd.f32 %v1468_v45, %v434_v31  ;;  %v2025_v57 = vadd.f32 %v2024_v46, %v973_v39  ;;  %v2047_v59 = vadd.f32 %v2046_v48, %v994_v41  ;;  %v1514_v60 = vadd.f32 %v1513_v49, %v477_v42  ;;  %v1017_v61 = vld [vmem:[%s16335_s0 + $0x1f28] sm:$0xff]  ;;  %v975_v62 = vld [vmem:[%s16335_s0 + $0x1dd8] sm:$0xff]  ;;  %v996_v0 = vld [vmem:[%s16335_s0 + $0x1e80] sm:$0xff] }
 0x139   :  { %v1492_v63 = vadd.f32 %v1491_v52, %v456_v47  ;;  %v479_v1 = vld [vmem:[%s16335_s0 + $0xe58] sm:$0xff]  ;;  %v2070_v2 = vadd.f32 %v2069_v55, %v1016_v50  ;;  %v976_v4 = vld [vmem:[%s16335_s0 + $0x1de0] sm:$0xff]  ;;  %v458_v6 = vld [vmem:[%s16335_s0 + $0xdb0] sm:$0xff] }
 0x13a   :  { %v1470_v3 = vadd.f32 %v1469_v56, %v435_v44  ;;  %v2026_v5 = vadd.f32 %v2025_v57, %v974_v51  ;;  %v2048_v7 = vadd.f32 %v2047_v59, %v995_v53  ;;  %v1515_v8 = vadd.f32 %v1514_v60, %v478_v54  ;;  %v1018_v9 = vld [vmem:[%s16335_s0 + $0x1f30] sm:$0xff]  ;;  %v977_v10 = vld [vmem:[%s16335_s0 + $0x1de8] sm:$0xff]  ;;  %v459_v11 = vld [vmem:[%s16335_s0 + $0xdb8] sm:$0xff] }
 0x13b   :  { %v1493_v12 = vadd.f32 %v1492_v63, %v457_v58  ;;  %v997_v13 = vld [vmem:[%s16335_s0 + $0x1e88] sm:$0xff]  ;;  %v480_v14 = vld [vmem:[%s16335_s0 + $0xe60] sm:$0xff]  ;;  %v2071_v15 = vadd.f32 %v2070_v2, %v1017_v61  ;;  %v998_v17 = vld [vmem:[%s16335_s0 + $0x1e90] sm:$0xff] }
 0x13c   :  { %1471 = vadd.xlane.f32.xlu0 %v1470_v3  ;;  %v2027_v16 = vadd.f32 %v2026_v5, %v975_v62  ;;  %v2049_v18 = vadd.f32 %v2048_v7, %v996_v0  ;;  %v1516_v19 = vadd.f32 %v1515_v8, %v479_v1  ;;  %v1019_v20 = vld [vmem:[%s16335_s0 + $0x1f38] sm:$0xff]  ;;  %v500_v21 = vld [vmem:[%s16335_s0 + $0xf00] sm:$0xff]  ;;  %v481_v23 = vld [vmem:[%s16335_s0 + $0xe68] sm:$0xff] }
 0x13d   :  { %v1494_v22 = vadd.f32 %v1493_v12, %v458_v6  ;;  %v2072_v24 = vadd.f32 %v2071_v15, %v1018_v9  ;;  %v501_v25 = vld [vmem:[%s16335_s0 + $0xf08] sm:$0xff]  ;;  %v502_v26 = vld [vmem:[%s16335_s0 + $0xf10] sm:$0xff]  ;;  %v460_v29 = vld [vmem:[%s16335_s0 + $0xdc0] sm:$0xff] }
 0x13e   :  { %v978_v27 = vld [vmem:[%s16335_s0 + $0x1df0] sm:$0xff]  ;;  %v2028_v28 = vadd.f32 %v2027_v16, %v976_v4  ;;  %v2050_v30 = vadd.f32 %v2049_v18, %v997_v13  ;;  %v1517_v31 = vadd.f32 %v1516_v19, %v480_v14  ;;  %v1020_v32 = vld [vmem:[%s16335_s0 + $0x1f40] sm:$0xff]  ;;  %v1539_v33 = vadd.f32 %v501_v25, %v500_v21  ;;  %v999_v35 = vld [vmem:[%s16335_s0 + $0x1e98] sm:$0xff] }
 0x13f   :  { %v1495_v34 = vadd.f32 %v1494_v22, %v459_v11  ;;  %v482_v36 = vld [vmem:[%s16335_s0 + $0xe70] sm:$0xff]  ;;  %v2073_v37 = vadd.f32 %v2072_v24, %v1019_v20  ;;  %v503_v39 = vld [vmem:[%s16335_s0 + $0xf18] sm:$0xff]  ;;  %v461_v42 = vld [vmem:[%s16335_s0 + $0xdc8] sm:$0xff] }
 0x140   :  { %v979_v40 = vld [vmem:[%s16335_s0 + $0x1df8] sm:$0xff]  ;;  %v2029_v41 = vadd.f32 %v2028_v28, %v977_v10  ;;  %v2051_v43 = vadd.f32 %v2050_v30, %v998_v17  ;;  %v1518_v44 = vadd.f32 %v1517_v31, %v481_v23  ;;  %v1021_v45 = vld [vmem:[%s16335_s0 + $0x1f48] sm:$0xff]  ;;  %v1540_v46 = vadd.f32 %v1539_v33, %v502_v26  ;;  %v1000_v48 = vld [vmem:[%s16335_s0 + $0x1ea0] sm:$0xff] }
 0x141   :  { %v1496_v47 = vadd.f32 %v1495_v34, %v460_v29  ;;  %v483_v49 = vld [vmem:[%s16335_s0 + $0xe78] sm:$0xff]  ;;  %v2074_v50 = vadd.f32 %v2073_v37, %v1020_v32  ;;  %v504_v51 = vld [vmem:[%s16335_s0 + $0xf20] sm:$0xff]  ;;  %v462_v53 = vld [vmem:[%s16335_s0 + $0xdd0] sm:$0xff] }
 0x142   :  { %v2030_v52 = vadd.f32 %v2029_v41, %v978_v27  ;;  %v2052_v54 = vadd.f32 %v2051_v43, %v999_v35  ;;  %v1519_v55 = vadd.f32 %v1518_v44, %v482_v36  ;;  %v1022_v56 = vld [vmem:[%s16335_s0 + $0x1f50] sm:$0xff]  ;;  %v1541_v57 = vadd.f32 %v1540_v46, %v503_v39  ;;  %v1001_v59 = vld [vmem:[%s16335_s0 + $0x1ea8] sm:$0xff]  ;;  %v484_v60 = vld [vmem:[%s16335_s0 + $0xe80] sm:$0xff] }
 0x143   :  { %v1497_v58 = vadd.f32 %v1496_v47, %v461_v42  ;;  %v2075_v61 = vadd.f32 %v2074_v50, %v1021_v45  ;;  %v505_v62 = vld [vmem:[%s16335_s0 + $0xf28] sm:$0xff]  ;;  %v463_v0 = vld [vmem:[%s16335_s0 + $0xdd8] sm:$0xff]  ;;  %v464_v1 = vld [vmem:[%s16335_s0 + $0xde0] sm:$0xff] }
 0x144   :  { %v2031_v63 = vadd.f32 %v2030_v52, %v979_v40  ;;  %v2053_v2 = vadd.f32 %v2052_v54, %v1000_v48  ;;  %v1520_v3 = vadd.f32 %v1519_v55, %v483_v49  ;;  %v1023_v4 = vld [vmem:[%s16335_s0 + $0x1f58] sm:$0xff]  ;;  %v1542_v5 = vadd.f32 %v1541_v57, %v504_v51  ;;  %v1002_v7 = vld [vmem:[%s16335_s0 + $0x1eb0] sm:$0xff]  ;;  %v485_v8 = vld [vmem:[%s16335_s0 + $0xe88] sm:$0xff] }
 0x145   :  { %v1498_v6 = vadd.f32 %v1497_v58, %v462_v53  ;;  %v2076_v9 = vadd.f32 %v2075_v61, %v1022_v56  ;;  %v506_v10 = vld [vmem:[%s16335_s0 + $0xf30] sm:$0xff]  ;;  %v1003_v11 = vld [vmem:[%s16335_s0 + $0x1eb8] sm:$0xff]  ;;  %v1024_v15 = vld [vmem:[%s16335_s0 + $0x1f60] sm:$0xff] }
 0x146   :  { %2032 = vadd.xlane.f32.xlu1 %v2031_v63  ;;  %v2054_v12 = vadd.f32 %v2053_v2, %v1001_v59  ;;  %v486_v13 = vld [vmem:[%s16335_s0 + $0xe90] sm:$0xff]  ;;  %v1521_v14 = vadd.f32 %v1520_v3, %v484_v60  ;;  %v1543_v16 = vadd.f32 %v1542_v5, %v505_v62  ;;  %v507_v19 = vld [vmem:[%s16335_s0 + $0xf38] sm:$0xff]  ;;  %v465_v22 = vld [vmem:[%s16335_s0 + $0xde8] sm:$0xff] }
 0x147   :  { %v1499_v17 = vadd.f32 %v1498_v6, %v463_v0  ;;  %v2077_v18 = vadd.f32 %v2076_v9, %v1023_v4  ;;  %v2147_v20 = vld [vmem:[%s16336_s1 + $0x78] sm:$0xff]  ;;  %v2146_v21 = vld [vmem:[%s16336_s1 + $0x70] sm:$0xff]  ;;  %v1004_v23 = vld [vmem:[%s16335_s0 + $0x1ec0] sm:$0xff] }
 0x148   :  { %v2055_v24 = vadd.f32 %v2054_v12, %v1002_v7  ;;  %v1522_v25 = vadd.f32 %v1521_v14, %v485_v8  ;;  %v1025_v26 = vld [vmem:[%s16335_s0 + $0x1f68] sm:$0xff]  ;;  %v1544_v27 = vadd.f32 %v1543_v16, %v506_v10  ;;  %4749 = vmatpush3.msra.mxu0 %v2147_v20  ;;  %v487_v29 = vld [vmem:[%s16335_s0 + $0xe98] sm:$0xff]  ;;  %v508_v31 = vld [vmem:[%s16335_s0 + $0xf40] sm:$0xff] }
 0x149   :  { %v1500_v28 = vadd.f32 %v1499_v17, %v464_v1  ;;  %v2078_v30 = vadd.f32 %v2077_v18, %v1024_v15  ;;  %4750 = vmatprep.subr.mxu0 %v5818_v38  ;;  %v2145_v32 = vld [vmem:[%s16336_s1 + $0x68] sm:$0xff]  ;;  %v466_v33 = vld [vmem:[%s16335_s0 + $0xdf0] sm:$0xff]  ;;  %v488_v41 = vld [vmem:[%s16335_s0 + $0xea0] sm:$0xff] }
 0x14a   :  { %v1005_v34 = vld [vmem:[%s16335_s0 + $0x1ec8] sm:$0xff]  ;;  %v2056_v35 = vadd.f32 %v2055_v24, %v1003_v11  ;;  %v1523_v36 = vadd.f32 %v1522_v25, %v486_v13  ;;  %v1026_v37 = vld [vmem:[%s16335_s0 + $0x1f70] sm:$0xff]  ;;  %v1545_v39 = vadd.f32 %v1544_v27, %v507_v19  ;;  %4751 = vmatpush3.msra.mxu0 %v2146_v21  ;;  %v2144_v44 = vld [vmem:[%s16336_s1 + $0x60] sm:$0xff] }
 0x14b   :  { %v1501_v40 = vadd.f32 %v1500_v28, %v465_v22  ;;  %v2079_v42 = vadd.f32 %v2078_v30, %v1025_v26  ;;  %v509_v43 = vld [vmem:[%s16335_s0 + $0xf48] sm:$0xff]  ;;  %4752 = vmatprep.subr.mxu0 %v5818_v38  ;;  %v467_v45 = vld [vmem:[%s16335_s0 + $0xdf8] sm:$0xff]  ;;  %v1006_v46 = vld [vmem:[%s16335_s0 + $0x1ed0] sm:$0xff] }
 0x14c   :  { %v2057_v47 = vadd.f32 %v2056_v35, %v1004_v23  ;;  %v1524_v48 = vadd.f32 %v1523_v36, %v487_v29  ;;  %v1027_v49 = vld [vmem:[%s16335_s0 + $0x1f78] sm:$0xff]  ;;  %v1546_v50 = vadd.f32 %v1545_v39, %v508_v31  ;;  %4753 = vmatpush3.msra.mxu0 %v2145_v32  ;;  %v489_v52 = vld [vmem:[%s16335_s0 + $0xea8] sm:$0xff]  ;;  %v510_v54 = vld [vmem:[%s16335_s0 + $0xf50] sm:$0xff] }
 0x14d   :  { %v1502_v51 = vadd.f32 %v1501_v40, %v466_v33  ;;  %v2080_v53 = vadd.f32 %v2079_v42, %v1026_v37  ;;  %4754 = vmatprep.subr.mxu0 %v5818_v38  ;;  %v2143_v55 = vld [vmem:[%s16336_s1 + $0x58] sm:$0xff]  ;;  %v1028_v59 = vld [vmem:[%s16335_s0 + $0x1f80] sm:$0xff]  ;;  %v490_v62 = vld [vmem:[%s16335_s0 + $0xeb0] sm:$0xff] }
 0x14e   :  { %v1007_v56 = vld [vmem:[%s16335_s0 + $0x1ed8] sm:$0xff]  ;;  %v2058_v57 = vadd.f32 %v2057_v47, %v1005_v34  ;;  %v1525_v58 = vadd.f32 %v1524_v48, %v488_v41  ;;  %v1547_v60 = vadd.f32 %v1546_v50, %v509_v43  ;;  %4755 = vmatpush3.msra.mxu0 %v2144_v44  ;;  %v2142_v1 = vld [vmem:[%s16336_s1 + $0x50] sm:$0xff]  ;;  %v1008_v2 = vld [vmem:[%s16335_s0 + $0x1ee0] sm:$0xff] }
 0x14f   :  { %v1503_v61 = vadd.f32 %v1502_v51, %v467_v45  ;;  %v2081_v63 = vadd.f32 %v2080_v53, %v1027_v49  ;;  %v511_v0 = vld [vmem:[%s16335_s0 + $0xf58] sm:$0xff]  ;;  %4756 = vmatprep.subr.mxu0 %v5818_v38  ;;  %v1029_v5 = vld [vmem:[%s16335_s0 + $0x1f88] sm:$0xff]  ;;  %v512_v9 = vld [vmem:[%s16335_s0 + $0xf60] sm:$0xff] }
 0x150   :  { %v2059_v3 = vadd.f32 %v2058_v57, %v1006_v46  ;;  %v1526_v4 = vadd.f32 %v1525_v58, %v489_v52  ;;  %v1548_v6 = vadd.f32 %v1547_v60, %v510_v54  ;;  %4757 = vmatpush3.msra.mxu0 %v2143_v55  ;;  %v491_v7 = vld [vmem:[%s16335_s0 + $0xeb8] sm:$0xff]  ;;  %v2141_v10 = vld [vmem:[%s16336_s1 + $0x48] sm:$0xff]  ;;  %v1030_v14 = vld [vmem:[%s16335_s0 + $0x1f90] sm:$0xff] }
 0x151   :  { %1504 = vadd.xlane.f32.xlu0 %v1503_v61  ;;  %v2082_v8 = vadd.f32 %v2081_v63, %v1028_v59  ;;  %4758 = vmatprep.subr.mxu0 %v5818_v38  ;;  %v1009_v11 = vld [vmem:[%s16335_s0 + $0x1ee8] sm:$0xff]  ;;  %v492_v16 = vld [vmem:[%s16335_s0 + $0xec0] sm:$0xff]  ;;  %v1010_v20 = vld [vmem:[%s16335_s0 + $0x1ef0] sm:$0xff] }
 0x152   :  { %v2060_v12 = vadd.f32 %v2059_v3, %v1007_v56  ;;  %v1527_v13 = vadd.f32 %v1526_v4, %v490_v62  ;;  %v1549_v15 = vadd.f32 %v1548_v6, %v511_v0  ;;  %4759 = vmatpush3.msra.mxu0 %v2142_v1  ;;  %v513_v18 = vld [vmem:[%s16335_s0 + $0xf68] sm:$0xff]  ;;  %v2140_v19 = vld [vmem:[%s16336_s1 + $0x40] sm:$0xff]  ;;  %v1031_v23 = vld [vmem:[%s16335_s0 + $0x1f98] sm:$0xff] }
 0x153   :  { %v2083_v17 = vadd.f32 %v2082_v8, %v1029_v5  ;;  %4760 = vmatprep.subr.mxu0 %v5818_v38  ;;  %v493_v25 = vld [vmem:[%s16335_s0 + $0xec8] sm:$0xff]  ;;  %v514_v27 = vld [vmem:[%s16335_s0 + $0xf70] sm:$0xff]  ;;  %v2139_v28 = vld [vmem:[%s16336_s1 + $0x38] sm:$0xff] }
 0x154   :  { %v2061_v21 = vadd.f32 %v2060_v12, %v1008_v2  ;;  %v1528_v22 = vadd.f32 %v1527_v13, %v491_v7  ;;  %v1550_v24 = vadd.f32 %v1549_v15, %v512_v9  ;;  %4761 = vmatpush3.msra.mxu0 %v2141_v10  ;;  %v1032_v31 = vld [vmem:[%s16335_s0 + $0x1fa0] sm:$0xff]  ;;  %v1011_v33 = vld [vmem:[%s16335_s0 + $0x1ef8] sm:$0xff]  ;;  %v494_v34 = vld [vmem:[%s16335_s0 + $0xed0] sm:$0xff] }
 0x155   :  { %v2084_v26 = vadd.f32 %v2083_v17, %v1030_v14  ;;  %4762 = vmatprep.subr.mxu0 %v5818_v38  ;;  %v515_v36 = vld [vmem:[%s16335_s0 + $0xf78] sm:$0xff]  ;;  %v1033_v40 = vld [vmem:[%s16335_s0 + $0x1fa8] sm:$0xff]  ;;  %v516_v44 = vld [vmem:[%s16335_s0 + $0xf80] sm:$0xff] }
 0x156   :  { %v2062_v29 = vadd.f32 %v2061_v21, %v1009_v11  ;;  %v1529_v30 = vadd.f32 %v1528_v22, %v492_v16  ;;  %v1551_v32 = vadd.f32 %v1550_v24, %v513_v18  ;;  %4763 = vmatpush3.msra.mxu0 %v2140_v19  ;;  %v495_v42 = vld [vmem:[%s16335_s0 + $0xed8] sm:$0xff]  ;;  %v1034_v47 = vld [vmem:[%s16335_s0 + $0x1fb0] sm:$0xff]  ;;  %v496_v49 = vld [vmem:[%s16335_s0 + $0xee0] sm:$0xff] }
 0x157   :  { %v2085_v35 = vadd.f32 %v2084_v26, %v1031_v23  ;;  %4764 = vmatprep.subr.mxu0 %v5818_v38  ;;  %v517_v51 = vld [vmem:[%s16335_s0 + $0xf88] sm:$0xff]  ;;  %v1035_v53 = vld [vmem:[%s16335_s0 + $0x1fb8] sm:$0xff]  ;;  %v518_v57 = vld [vmem:[%s16335_s0 + $0xf90] sm:$0xff] }
 0x158   :  { %v2063_v37 = vadd.f32 %v2062_v29, %v1010_v20  ;;  %v1530_v39 = vadd.f32 %v1529_v30, %v493_v25  ;;  %v1552_v41 = vadd.f32 %v1551_v32, %v514_v27  ;;  %4765 = vmatpush3.msra.mxu0 %v2139_v28  ;;  %v497_v55 = vld [vmem:[%s16335_s0 + $0xee8] sm:$0xff]  ;;  %v498_v58 = vld [vmem:[%s16335_s0 + $0xef0] sm:$0xff]  ;;  %v1036_v60 = vld [vmem:[%s16335_s0 + $0x1fc0] sm:$0xff] }
 0x159   :  { %v2086_v43 = vadd.f32 %v2085_v35, %v1032_v31  ;;  %4766 = vmatprep.subr.mxu0 %v5818_v38  ;;  %v519_v63 = vld [vmem:[%s16335_s0 + $0xf98] sm:$0xff]  ;;  %v2138_v0 = vld [vmem:[%s16336_s1 + $0x30] sm:$0xff]  ;;  %v2137_v1 = vld [vmem:[%s16336_s1 + $0x28] sm:$0xff] }
 0x15a   :  { %v2064_v45 = vadd.f32 %v2063_v37, %v1011_v33  ;;  %v1531_v46 = vadd.f32 %v1530_v39, %v494_v34  ;;  %v1553_v48 = vadd.f32 %v1552_v41, %v515_v36  ;;  %v1037_v3 = vld [vmem:[%s16335_s0 + $0x1fc8] sm:$0xff]  ;;  %4767 = vmatpush3.msra.mxu0 %v2138_v0  ;;  %v499_v5 = vld [vmem:[%s16335_s0 + $0xef8] sm:$0xff]  ;;  %v520_v7 = vld [vmem:[%s16335_s0 + $0xfa0] sm:$0xff] }
 0x15b   :  { %v2087_v50 = vadd.f32 %v2086_v43, %v1033_v40  ;;  %4768 = vmatprep.subr.mxu0 %v5818_v38  ;;  %v1038_v9 = vld [vmem:[%s16335_s0 + $0x1fd0] sm:$0xff]  ;;  %v521_v12 = vld [vmem:[%s16335_s0 + $0xfa8] sm:$0xff]  ;;  %v1039_v14 = vld [vmem:[%s16335_s0 + $0x1fd8] sm:$0xff] }
 0x15c   :  { %2065 = vadd.xlane.f32.xlu1 %v2064_v45  ;;  %v1532_v52 = vadd.f32 %v1531_v46, %v495_v42  ;;  %v1554_v54 = vadd.f32 %v1553_v48, %v516_v44  ;;  %4769 = vmatpush3.msra.mxu0 %v2137_v1  ;;  %v522_v17 = vld [vmem:[%s16335_s0 + $0xfb0] sm:$0xff]  ;;  %v1040_v18 = vld [vmem:[%s16335_s0 + $0x1fe0] sm:$0xff]  ;;  %v523_v21 = vld [vmem:[%s16335_s0 + $0xfb8] sm:$0xff] }
 0x15d   :  { %v2088_v56 = vadd.f32 %v2087_v50, %v1034_v47  ;;  %4770 = vmatprep.subr.mxu0 %v5818_v38  ;;  %v1041_v22 = vld [vmem:[%s16335_s0 + $0x1fe8] sm:$0xff]  ;;  %v524_v25 = vld [vmem:[%s16335_s0 + $0xfc0] sm:$0xff]  ;;  %v1042_v26 = vld [vmem:[%s16335_s0 + $0x1ff0] sm:$0xff] }
 0x15e   :  { %v1533_v59 = vadd.f32 %v1532_v52, %v496_v49  ;;  %v1555_v61 = vadd.f32 %v1554_v54, %v517_v51  ;;  %v525_v29 = vld [vmem:[%s16335_s0 + $0xfc8] sm:$0xff]  ;;  %v1043_v30 = vld [vmem:[%s16335_s0 + $0x1ff8] sm:$0xff]  ;;  %v526_v33 = vld [vmem:[%s16335_s0 + $0xfd0] sm:$0xff] }
 0x15f   :  { %v2089_v62 = vadd.f32 %v2088_v56, %v1035_v53  ;;  %v527_v36 = vld [vmem:[%s16335_s0 + $0xfd8] sm:$0xff]  ;;  %v528_v39 = vld [vmem:[%s16335_s0 + $0xfe0] sm:$0xff]  ;;  %v529_v43 = vld [vmem:[%s16335_s0 + $0xfe8] sm:$0xff]  ;;  %v1604_v53 = vpop.xlane.xlu1 %1603 }
 0x160   :  { %v1534_v2 = vadd.f32 %v1533_v59, %v497_v55  ;;  %v1556_v4 = vadd.f32 %v1555_v61, %v518_v57  ;;  %v2136_v41 = vld [vmem:[%s16336_s1 + $0x20] sm:$0xff]  ;;  %v2135_v42 = vld [vmem:[%s16336_s1 + $0x18] sm:$0xff]  ;;  %v530_v45 = vld [vmem:[%s16335_s0 + $0xff0] sm:$0xff]  ;;  %v1076_v55 = vpop.xlane.xlu0 %1075 }
 0x161   :  { %v2090_v6 = vadd.f32 %v2089_v62, %v1036_v60  ;;  %4771 = vmatpush3.msra.mxu0 %v2136_v41  ;;  %v531_v47 = vld [vmem:[%s16335_s0 + $0xff8] sm:$0xff]  ;;  %v2134_v50 = vld [vmem:[%s16336_s1 + $0x10] sm:$0xff]  ;;  %v2133_v51 = vld [vmem:[%s16336_s1 + $0x8] sm:$0xff] }
 0x162   :  { %v1535_v8 = vadd.f32 %v1534_v2, %v498_v58  ;;  %v1557_v10 = vadd.f32 %v1556_v4, %v519_v63  ;;  %4772 = vmatprep.subr.mxu0 %v5818_v38  ;;  %v2132_v52 = vld [vmem:[%s16336_s1] sm:$0xff] }
 0x163   :  { %v2091_v11 = vadd.f32 %v2090_v6, %v1037_v3  ;;  %4773 = vmatpush3.msra.mxu0 %v2135_v42  ;;  %v1637_v54 = vpop.xlane.xlu1 %1636 }
 0x164   :  { %v1536_v13 = vadd.f32 %v1535_v8, %v499_v5  ;;  %v1558_v15 = vadd.f32 %v1557_v10, %v520_v7  ;;  %4774 = vmatprep.subr.mxu0 %v5818_v38  ;;  %v1109_v57 = vpop.xlane.xlu0 %1108  ;;  %v2187_v7 = vlaneseq }
 0x165   :  { %v2092_v16 = vadd.f32 %v2091_v11, %v1038_v9  ;;  %4775 = vmatpush3.msra.mxu0 %v2134_v50 }
 0x166   :  { %1537 = vadd.xlane.f32.xlu0 %v1536_v13  ;;  %v1559_v19 = vadd.f32 %v1558_v15, %v521_v12  ;;  %4776 = vmatprep.subr.mxu0 %v5818_v38  ;;  %v9005_v9 = vand.u32 127, %v2187_v7  ;;  %v9010_v12 = vshrl.u32 %v2187_v7, 7 }
 0x167   :  { %v2093_v20 = vadd.f32 %v2092_v16, %v1039_v14  ;;  %4777 = vmatpush3.msra.mxu0 %v2133_v51  ;;  %v1670_v56 = vpop.xlane.xlu1 %1669 }
 0x168   :  { %v1560_v23 = vadd.f32 %v1559_v19, %v522_v17  ;;  %4778 = vmatprep.subr.mxu0 %v5818_v38  ;;  %v1142_v59 = vpop.xlane.xlu0 %1141  ;;  %v2193_v11 = vadd.s32 4294967288, %v9005_v9  ;;  %v2200_v13 = vadd.s32 4294967280, %v9005_v9  ;;  %v2207_v14 = vadd.s32 4294967272, %v9005_v9 }
 0x169   :  { %v2094_v24 = vadd.f32 %v2093_v20, %v1040_v18  ;;  %4779 = vmatpush3.msra.mxu0 %v2132_v52  ;;  %v2117_v17 = vmul.f32 0.00024414063, %v1637_v54  ;;  %v2214_v18 = vadd.s32 4294967264, %v9005_v9  ;;  %v2116_v20 = vmul.f32 0.00024414063, %v1604_v53 }
 0x16a   :  { %v1561_v27 = vadd.f32 %v1560_v23, %v523_v21  ;;  %v2196_v16 = vsub.s32 %v2193_v11, %v9010_v12  ;;  %v2100_v21 = vmul.f32 0.00024414063, %v1076_v55  ;;  %v2191_v23 = vsub.s32 %v9005_v9, %v9010_v12 }
 0x16b   :  { %v2095_v28 = vadd.f32 %v2094_v24, %v1041_v22  ;;  %v1703_v58 = vpop.xlane.xlu1 %1702  ;;  %v2221_v22 = vadd.s32 4294967256, %v9005_v9  ;;  %v2101_v24 = vmul.f32 0.00024414063, %v1109_v57  ;;  %v2235_v55 = vadd.s32 4294967240, %v9005_v9 }
 0x16c   :  { %v1562_v31 = vadd.f32 %v1561_v27, %v524_v25  ;;  %v1175_v61 = vpop.xlane.xlu0 %1174  ;;  %v2203_v25 = vsub.s32 %v2200_v13, %v9010_v12  ;;  %v2102_v27 = vmul.f32 0.00024414063, %v1142_v59 }
 0x16d   :  { %v2096_v32 = vadd.f32 %v2095_v28, %v1042_v26  ;;  %v2118_v26 = vmul.f32 0.00024414063, %v1670_v56  ;;  %v2210_v28 = vsub.s32 %v2207_v14, %v9010_v12  ;;  %v2197_v41 = vrot.slane %v2101_v24, %v2196_v16 }
 0x16e   :  { %v1563_v34 = vadd.f32 %v1562_v31, %v525_v29  ;;  %v2119_v29 = vmul.f32 0.00024414063, %v1703_v58  ;;  %v2103_v31 = vmul.f32 0.00024414063, %v1175_v61  ;;  %v2270_v24 = vadd.s32 4294967200, %v9005_v9 }
 0x16f   :  { %v2097_v35 = vadd.f32 %v2096_v32, %v1043_v30  ;;  %v1736_v60 = vpop.xlane.xlu1 %1735  ;;  %v2305_v30 = vrot.slane %v2117_v17, %v2196_v16  ;;  %v2217_v32 = vsub.s32 %v2214_v18, %v9010_v12  ;;  %v2310_v42 = vrot.slane %v2118_v26, %v2203_v25 }
 0x170   :  { %v1564_v37 = vadd.f32 %v1563_v34, %v526_v33  ;;  %v1208_v63 = vpop.xlane.xlu0 %1207  ;;  %v2120_v33 = vmul.f32 0.00024414063, %v1736_v60  ;;  %v2249_v16 = vadd.s32 4294967224, %v9005_v9  ;;  %v2238_v17 = vsub.s32 %v2235_v55, %v9010_v12 }
 0x171   :  { %2098 = vadd.xlane.f32.xlu1 %v2097_v35  ;;  %v2104_v34 = vmul.f32 0.00024414063, %v1208_v63  ;;  %v2224_v35 = vsub.s32 %v2221_v22, %v9010_v12 }
 0x172   :  { %v1565_v40 = vadd.f32 %v1564_v37, %v527_v36  ;;  %v2252_v26 = vsub.s32 %v2249_v16, %v9010_v12 }
 0x173   :  { %v1769_v62 = vpop.xlane.xlu1 %1768  ;;  %v2218_v50 = vrot.slane %v2104_v34, %v2217_v32  ;;  %v2284_v34 = vadd.s32 4294967184, %v9005_v9 }
 0x174   :  { %v1566_v44 = vadd.f32 %v1565_v40, %v528_v39  ;;  %v1241_v1 = vpop.xlane.xlu0 %1240  ;;  %v2121_v36 = vmul.f32 0.00024414063, %v1769_v62  ;;  %v2301_v39 = vrot.slane %v2116_v20, %v2191_v23  ;;  %v2192_v40 = vrot.slane %v2100_v21, %v2191_v23 }
 0x175   :  { %v2105_v52 = vmul.f32 0.00024414063, %v1241_v1  ;;  %v2242_v1 = vadd.s32 4294967232, %v9005_v9  ;;  %v2256_v20 = vadd.s32 4294967216, %v9005_v9  ;;  %v2263_v21 = vadd.s32 4294967208, %v9005_v9 }
 0x176   :  { %v1567_v46 = vadd.f32 %v1566_v44, %v529_v43  ;;  %v2204_v44 = vrot.slane %v2102_v27, %v2203_v25  ;;  %v2325_v51 = vrot.slane %v2121_v36, %v2224_v35  ;;  %v2199_v53 = vsel %vm2198_vm1, %v2197_v41, %v2192_v40 }
 0x177   :  { %v8989_v0 = vpop.xlane.xlu1 %1801  ;;  %v2225_v14 = vrot.slane %v2105_v52, %v2224_v35  ;;  %v2245_v23 = vsub.s32 %v2242_v1, %v9010_v12  ;;  %v2273_v40 = vsub.s32 %v2270_v24, %v9010_v12 }
 0x178   :  { %v1568_v48 = vadd.f32 %v1567_v46, %v530_v45  ;;  %v8993_v3 = vpop.xlane.xlu0 %1273  ;;  %v2315_v45 = vrot.slane %v2119_v29, %v2210_v28  ;;  %v2228_v46 = vadd.s32 4294967248, %v9005_v9  ;;  %v2206_v56 = vsel %vm2205_vm2, %v2204_v44, %v2199_v53 }
 0x179   :  { %v2122_v59 = vmul.f32 0.00024414063, %v8989_v0  ;;  %v2106_v63 = vmul.f32 0.00024414063, %v8993_v3  ;;  %v2259_v29 = vsub.s32 %v2256_v20, %v9010_v12 }
 0x17a   :  { %v1569_v49 = vadd.f32 %v1568_v48, %v531_v47  ;;  %v2306_v47 = vsel %vm2198_vm1, %v2305_v30, %v2301_v39  ;;  %v2211_v48 = vrot.slane %v2103_v31, %v2210_v28  ;;  %v2231_v58 = vsub.s32 %v2228_v46, %v9010_v12 }
 0x17b   :  { %v8991_v2 = vpop.xlane.xlu1 %1834  ;;  %v2311_v54 = vsel %vm2205_vm2, %v2310_v42, %v2306_v47  ;;  %vm2459_vm1 = vcmask 64512  }
 0x17c   :  { %1570 = vadd.xlane.f32.xlu0 %v1569_v49  ;;  %v8997_v4 = vpop.xlane.xlu0 %1306  ;;  %v2320_v49 = vrot.slane %v2120_v33, %v2217_v32  ;;  %v2316_v57 = vsel %vm2212_vm3, %v2315_v45, %v2311_v54  ;;  %v2213_v61 = vsel %vm2212_vm3, %v2211_v48, %v2206_v56  ;;  %v2123_v0 = vmul.f32 0.00024414063, %v8991_v2 }
 0x17d   :  { %v2220_v11 = vsel %vm2219_vm4, %v2218_v50, %v2213_v61  ;;  %v2107_v18 = vmul.f32 0.00024414063, %v8997_v4  ;;  %v2330_v3 = vrot.slane %v2122_v59, %v2231_v58  ;;  %v2232_v22 = vrot.slane %v2106_v63, %v2231_v58 }
 0x17e   :  { %v2321_v62 = vsel %vm2219_vm4, %v2320_v49, %v2316_v57  ;;  %v2227_v25 = vsel %vm2226_vm5, %v2225_v14, %v2220_v11  ;;  %v2277_v2 = vadd.s32 4294967192, %v9005_v9  ;;  %v2335_v27 = vrot.slane %v2123_v0, %v2238_v17 }
 0x17f   :  { %v8995_v38 = vpop.xlane.xlu1 %1867  ;;  %v2326_v13 = vsel %vm2226_vm5, %v2325_v51, %v2321_v62  ;;  %v2239_v28 = vrot.slane %v2107_v18, %v2238_v17  ;;  %v2266_v33 = vsub.s32 %v2263_v21, %v9010_v12  ;;  %v2234_v35 = vsel %vm2233_vm6, %v2232_v22, %v2227_v25 }
 0x180   :  { %v9001_v6 = vpop.xlane.xlu0 %1339  ;;  %v2331_v31 = vsel %vm2233_vm6, %v2330_v3, %v2326_v13  ;;  %v2124_v32 = vmul.f32 0.00024414063, %v8995_v38  ;;  %v2280_v42 = vsub.s32 %v2277_v2, %v9010_v12  ;;  %v2291_v38 = vadd.s32 4294967176, %v9005_v9 }
 0x181   :  { %v2108_v36 = vmul.f32 0.00024414063, %v9001_v6  ;;  %v2336_v44 = vsel %vm2240_vm7, %v2335_v27, %v2331_v31  ;;  %v2241_v45 = vsel %vm2240_vm7, %v2239_v28, %v2234_v35  ;;  %v2451_v31 = vld [vmem:[%s16337_s3] sm:$0xff] }
 0x182   :  { %v2340_v47 = vrot.slane %v2124_v32, %v2245_v23  ;;  %4784 = vmatpush3.msra.mxu1 %v2451_v31  ;;  %v4725_v32 = vld [vmem:[%s16338_s2] ss:$0 sm:$0xff] }
 0x183   :  { %v8999_v5 = vpop.xlane.xlu1 %1900  ;;  %v2246_v50 = vrot.slane %v2108_v36, %v2245_v23 }
 0x184   :  { %v2125_v39 = vmul.f32 0.00024414063, %v8999_v5 }
 0x185   :  { %v9007_v10 = vpop.xlane.xlu0 %1372  ;;  %v2248_v63 = vsel %vm2247_vm8, %v2246_v50, %v2241_v45  ;;  %v4795_v50 = vld [vmem:[%s16335_s0 + $0x108] sm:$0xff] }
 0x186   :  { %v2109_v46 = vmul.f32 0.00024414063, %v9007_v10  ;;  %v2345_v51 = vrot.slane %v2125_v39, %v2252_v26  ;;  %v2294_v10 = vsub.s32 %v2291_v38, %v9010_v12  ;;  %v4726_v39 = vld [vmem:[%s16339_s4] ss:$0 sm:$0xff] }
 0x18f   :  { %v9003_v8 = vpop.xlane.xlu1 %1933 }
 0x190   :  { %v2126_v41 = vmul.f32 0.00024414063, %v9003_v8  ;;  %v2287_v8 = vsub.s32 %v2284_v34, %v9010_v12 }
 0x192   :  { %v2350_v54 = vrot.slane %v2126_v41, %v2259_v29 }
 0x19a   :  { %v9018_v19 = vpop.xlane.xlu0 %1405 }
 0x19b   :  { %v2110_v5 = vmul.f32 0.00024414063, %v9018_v19 }
 0x19d   :  { %v2260_v59 = vrot.slane %v2110_v5, %v2259_v29  ;;  %v2608_v5 = vsub.s32 1, %v9010_v12 }
 0x1a5   :  { %v9014_v15 = vpop.xlane.xlu1 %1966 }
 0x1a6   :  { %v2127_v6 = vmul.f32 0.00024414063, %v9014_v15  ;;  %v2253_v15 = vrot.slane %v2109_v46, %v2252_v26  ;;  %v2541_v46 = vsub.s32 0, %v9010_v12 }
 0x1a8   :  { %v2355_v57 = vrot.slane %v2127_v6, %v2266_v33  ;;  %v2255_v14 = vsel %vm2254_vm9, %v2253_v15, %v2248_v63 }
 0x1a9   :  { %v2262_v18 = vsel %vm2261_vm10, %v2260_v59, %v2255_v14  ;;  %v4802_v59 = vld [vmem:[%s16335_s0 + $0x140] sm:$0xff]  ;;  %v4807_v14 = vld [vmem:[%s16335_s0 + $0x168] sm:$0xff] }
 0x1af   :  { %v9029_v43 = vpop.xlane.xlu0 %1438 }
 0x1b0   :  { %v2111_v9 = vmul.f32 0.00024414063, %v9029_v43 }
 0x1ba   :  { %v9027_v37 = vpop.xlane.xlu1 %1999 }
 0x1bb   :  { %v2128_v48 = vmul.f32 0.00024414063, %v9027_v37  ;;  %v2341_v37 = vsel %vm2247_vm8, %v2340_v47, %v2336_v44 }
 0x1bc   :  { %v2346_v43 = vsel %vm2254_vm9, %v2345_v51, %v2341_v37 }
 0x1bd   :  { %v2360_v61 = vrot.slane %v2128_v48, %v2273_v40 }
 0x1c5   :  { %v1472_v7 = vpop.xlane.xlu0 %1471 }
 0x1c6   :  { %v2112_v55 = vmul.f32 0.00024414063, %v1472_v7  ;;  %v2351_v7 = vsel %vm2261_vm10, %v2350_v54, %v2346_v43  ;;  %v4804_v43 = vld [vmem:[%s16335_s0 + $0x150] sm:$0xff] }
 0x1c7   :  { %v2356_v16 = vsel %vm2268_vm11, %v2355_v57, %v2351_v7  ;;  %v4800_v57 = vld [vmem:[%s16335_s0 + $0x130] sm:$0xff] }
 0x1c8   :  { %v2274_v11 = vrot.slane %v2112_v55, %v2273_v40  ;;  %v2361_v20 = vsel %vm2275_vm12, %v2360_v61, %v2356_v16  ;;  %v4798_v55 = vld [vmem:[%s16335_s0 + $0x120] sm:$0xff] }
 0x1cf   :  { %v2033_v60 = vpop.xlane.xlu1 %2032 }
 0x1d0   :  { %v2129_v52 = vmul.f32 0.00024414063, %v2033_v60  ;;  %v2267_v60 = vrot.slane %v2111_v9, %v2266_v33  ;;  %v4796_v9 = vld [vmem:[%s16335_s0 + $0x110] sm:$0xff] }
 0x1d2   :  { %v2365_v1 = vrot.slane %v2129_v52, %v2280_v42  ;;  %v2269_v22 = vsel %vm2268_vm11, %v2267_v60, %v2262_v18  ;;  %v4809_v18 = vld [vmem:[%s16335_s0 + $0x178] sm:$0xff] }
 0x1d3   :  { %v2276_v25 = vsel %vm2275_vm12, %v2274_v11, %v2269_v22  ;;  %v4806_v11 = vld [vmem:[%s16335_s0 + $0x160] sm:$0xff]  ;;  %v4811_v22 = vld [vmem:[%s16335_s0 + $0x188] sm:$0xff] }
 0x1d4   :  { %v2366_v23 = vsel %vm2282_vm13, %v2365_v1, %v2361_v20  ;;  %v4805_v1 = vld [vmem:[%s16335_s0 + $0x158] sm:$0xff] }
 0x1da   :  { %v1505_v30 = vpop.xlane.xlu0 %1504 }
 0x1db   :  { %v2113_v58 = vmul.f32 0.00024414063, %v1505_v30 }
 0x1dd   :  { %v2281_v17 = vrot.slane %v2113_v58, %v2280_v42 }
 0x1df   :  { %v2283_v2 = vsel %vm2282_vm13, %v2281_v17, %v2276_v25  ;;  %v4808_v17 = vld [vmem:[%s16335_s0 + $0x170] sm:$0xff] }
 0x1e5   :  { %v2066_v4 = vpop.xlane.xlu1 %2065 }
 0x1e6   :  { %v2130_v56 = vmul.f32 0.00024414063, %v2066_v4 }
 0x1e8   :  { %v2370_v13 = vrot.slane %v2130_v56, %v2287_v8 }
 0x1ea   :  { %v2371_v26 = vsel %vm2289_vm14, %v2370_v13, %v2366_v23 }
 0x1ef   :  { %v1538_v53 = vpop.xlane.xlu0 %1537 }
 0x1f0   :  { %v2114_v62 = vmul.f32 0.00024414063, %v1538_v53  ;;  %v4797_v53 = vld [vmem:[%s16335_s0 + $0x118] sm:$0xff] }
 0x1f2   :  { %v2288_v3 = vrot.slane %v2114_v62, %v2287_v8  ;;  %v4794_v8 = vld [vmem:[%s16335_s0 + $0x100] sm:$0xff]  ;;  %v4803_v62 = vld [vmem:[%s16335_s0 + $0x148] sm:$0xff] }
 0x1f4   :  { %v2290_v28 = vsel %vm2289_vm14, %v2288_v3, %v2283_v2  ;;  %v4810_v3 = vld [vmem:[%s16335_s0 + $0x180] sm:$0xff] }
 0x1fa   :  { %v2099_v49 = vpop.xlane.xlu1 %2098 }
 0x1fb   :  { %v2131_v19 = vmul.f32 0.00024414063, %v2099_v49 }
 0x1fd   :  { %v2375_v0 = vrot.slane %v2131_v19, %v2294_v10  ;;  %v4801_v19 = vld [vmem:[%s16335_s0 + $0x138] sm:$0xff] }
 0x1ff   :  { %v2376_v27 = vsel %vm2296_vm15, %v2375_v0, %v2371_v26  ;;  %v4813_v26 = vld [vmem:[%s16335_s0 + $0x198] sm:$0xff] }
 0x205   :  { %v1571_v21 = vpop.xlane.xlu0 %1570 }
 0x206   :  { %v2115_v24 = vmul.f32 0.00024414063, %v1571_v21 }
 0x208   :  { %v2295_v4 = vrot.slane %v2115_v24, %v2294_v10  ;;  %v4799_v10 = vld [vmem:[%s16335_s0 + $0x128] sm:$0xff]  ;;  %v4812_v24 = vld [vmem:[%s16335_s0 + $0x190] sm:$0xff] }
 0x20a   :  { %v2297_v29 = vsel %vm2296_vm15, %v2295_v4, %v2290_v28  ;;  %v4814_v4 = vld [vmem:[%s16335_s0 + $0x1a0] sm:$0xff]  ;;  %v4815_v28 = vld [vmem:[%s16335_s0 + $0x1a8] sm:$0xff] }
 0x20b   :  { %v2378_v30 = vsel %vm2377_vm0, %v2376_v27, %v2297_v29 }
 0x20c   :  { %4781 = vmatmul.mubr.f32.vlgmr.msra.gmra.mxu0 %v2378_v30  ;;  %v4816_v30 = vld [vmem:[%s16335_s0 + $0x1b0] sm:$0xff] }
 0x2cc   :  { %v2446_v33 = vpop.f32.mrf.mxu0 }
 0x2cd   :  { %v2447_v34 = vadd.f32 %v4725_v32, %v2446_v33  ;;  %v4817_v32 = vld [vmem:[%s16335_s0 + $0x1b8] sm:$0xff] }
 0x2ce   :  { %v4782_v35 = vpop.f32.mrf.mxu0 }
 0x2cf   :  { %v2450_v36 = vmax.f32 %v2447_v34, 0.0  ;;  %v4818_v35 = vld [vmem:[%s16335_s0 + $0x1c0] sm:$0xff] }
 0x2d1   :  { %4786 = vmatmul.mubr.msk.f32.vlgmr.msra.gmra.mxu1 %vm2459_vm1, %v2450_v36 }
 0x391   :  { %v2529_v40 = vpop.f32.mrf.mxu1 }
 0x392   :  { %v2530_v41 = vadd.f32 %v4726_v39, %v2529_v40  ;;  %v4819_v39 = vld [vmem:[%s16335_s0 + $0x1c8] sm:$0xff] }
 0x393   :  { %v4787_v42 = vpop.f32.mrf.mxu1 }
 0x394   :  { %v4728_v38 = vmul.f32 -1.442695, %v2530_v41  ;;  %v4820_v41 = vld [vmem:[%s16335_s0 + $0x1d0] sm:$0xff] }
 0x396   :  { %4790 = vpow2.f32 %v4728_v38  ;;  %v4821_v38 = vld [vmem:[%s16335_s0 + $0x1d8] sm:$0xff] }
 0x3a3   :  { %v4791_v44 = vpop.eup %4790 }
 0x3a4   :  { %v2536_v45 = vadd.f32 1.0, %v4791_v44 }
 0x3a6   :  { %4792 = vrcp.f32 %v2536_v45  ;;  %v4822_v45 = vld [vmem:[%s16335_s0 + $0x1e0] sm:$0xff] }
 0x3b3   :  { %v4793_v6 = vpop.eup %4792 }
 0x3b4   :  { %v2542_v47 = vrot.slane %v4793_v6, %v2541_v46  ;;  %v2609_v48 = vrot.slane %v4793_v6, %v2608_v5  ;;  %v4823_v6 = vld [vmem:[%s16335_s0 + $0x1e8] sm:$0xff]  ;;  %v4824_v5 = vld [vmem:[%s16335_s0 + $0x1f0] sm:$0xff] }
 0x3b6   :  { %2548 = vbcast.lane.b32.xlu1 %v2542_v47, 264  ;;  %2544 = vbcast.lane.b32.xlu0 %v2542_v47, 256 }
 0x3ba   :  { %2552 = vbcast.lane.b32.xlu1 %v2542_v47, 272  ;;  %2560 = vbcast.lane.b32.xlu0 %v2542_v47, 288 }
 0x3be   :  { %2556 = vbcast.lane.b32.xlu1 %v2542_v47, 280  ;;  %2568 = vbcast.lane.b32.xlu0 %v2542_v47, 304 }
 0x3c2   :  { %2564 = vbcast.lane.b32.xlu1 %v2542_v47, 296  ;;  %2576 = vbcast.lane.b32.xlu0 %v2542_v47, 320 }
 0x3c6   :  { %2572 = vbcast.lane.b32.xlu1 %v2542_v47, 312  ;;  %2584 = vbcast.lane.b32.xlu0 %v2542_v47, 336 }
 0x3ca   :  { %2580 = vbcast.lane.b32.xlu1 %v2542_v47, 328  ;;  %2592 = vbcast.lane.b32.xlu0 %v2542_v47, 352 }
 0x3ce   :  { %2588 = vbcast.lane.b32.xlu1 %v2542_v47, 344  ;;  %2600 = vbcast.lane.b32.xlu0 %v2542_v47, 368 }
 0x3d2   :  { %2596 = vbcast.lane.b32.xlu1 %v2542_v47, 360  ;;  %2611 = vbcast.lane.b32.xlu0 %v2609_v48, 256 }
 0x3d6   :  { %2604 = vbcast.lane.b32.xlu1 %v2542_v47, 376  ;;  %2619 = vbcast.lane.b32.xlu0 %v2609_v48, 272 }
 0x3da   :  { %2615 = vbcast.lane.b32.xlu1 %v2609_v48, 264  ;;  %2627 = vbcast.lane.b32.xlu0 %v2609_v48, 288 }
 0x3de   :  { %2623 = vbcast.lane.b32.xlu1 %v2609_v48, 280  ;;  %2635 = vbcast.lane.b32.xlu0 %v2609_v48, 304 }
 0x3e2   :  { %2631 = vbcast.lane.b32.xlu1 %v2609_v48, 296  ;;  %2643 = vbcast.lane.b32.xlu0 %v2609_v48, 320 }
 0x3e6   :  { %2639 = vbcast.lane.b32.xlu1 %v2609_v48, 312  ;;  %2651 = vbcast.lane.b32.xlu0 %v2609_v48, 336 }
 0x3ea   :  { %2647 = vbcast.lane.b32.xlu1 %v2609_v48, 328  ;;  %2659 = vbcast.lane.b32.xlu0 %v2609_v48, 352 }
 0x3ee   :  { %2655 = vbcast.lane.b32.xlu1 %v2609_v48, 344  ;;  %2667 = vbcast.lane.b32.xlu0 %v2609_v48, 368 }
 0x3f2   :  { %2663 = vbcast.lane.b32.xlu1 %v2609_v48, 360 }
 0x3f6   :  { %2671 = vbcast.lane.b32.xlu1 %v2609_v48, 376 }
 0x428   :  { %v9103_v12 = vpop.permute.xlu1 %2548  ;;  %v9249_v34 = vpop.permute.xlu0 %2544 }
 0x429   :  { %v2705_v49 = vmul.f32 %v4794_v8, %v9103_v12  ;;  %v2706_v51 = vmul.f32 %v4795_v50, %v9103_v12  ;;  %v2707_v52 = vmul.f32 %v4796_v9, %v9103_v12  ;;  %v2708_v54 = vmul.f32 %v4797_v53, %v9103_v12  ;;  %v4825_v8 = vld [vmem:[%s16335_s0 + $0x1f8] sm:$0xff] }
 0x42a   :  { %v2709_v56 = vmul.f32 %v4798_v55, %v9103_v12  ;;  %v2710_v15 = vmul.f32 %v4799_v10, %v9103_v12  ;;  %v2711_v58 = vmul.f32 %v4800_v57, %v9103_v12  ;;  %v2712_v37 = vmul.f32 %v4801_v19, %v9103_v12 }
 0x42b   :  { %v2713_v61 = vmul.f32 %v4802_v59, %v9103_v12  ;;  %v2714_v63 = vmul.f32 %v4803_v62, %v9103_v12  ;;  %v2715_v60 = vmul.f32 %v4804_v43, %v9103_v12  ;;  %v2716_v7 = vmul.f32 %v4805_v1, %v9103_v12  ;;  %3729 = vst [vmem:[%s16340_s5 + $0x100] sm:$0xff] %v2705_v49 }
 0x42c   :  { %3730 = vst [vmem:[%s16340_s5 + $0x108] sm:$0xff] %v2706_v51  ;;  %3731 = vst [vmem:[%s16340_s5 + $0x110] sm:$0xff] %v2707_v52  ;;  %v2717_v13 = vmul.f32 %v4806_v11, %v9103_v12  ;;  %v2718_v16 = vmul.f32 %v4807_v14, %v9103_v12  ;;  %v2719_v0 = vmul.f32 %v4808_v17, %v9103_v12  ;;  %v4827_v51 = vld [vmem:[%s16335_s0 + $0x8] sm:$0xff]  ;;  %v4828_v52 = vld [vmem:[%s16335_s0 + $0x10] sm:$0xff] }
 0x42d   :  { %3732 = vst [vmem:[%s16340_s5 + $0x118] sm:$0xff] %v2708_v54  ;;  %v2720_v20 = vmul.f32 %v4809_v18, %v9103_v12  ;;  %3733 = vst [vmem:[%s16340_s5 + $0x120] sm:$0xff] %v2709_v56  ;;  %v2721_v21 = vmul.f32 %v4810_v3, %v9103_v12  ;;  %v2722_v23 = vmul.f32 %v4811_v22, %v9103_v12  ;;  %v4829_v54 = vld [vmem:[%s16335_s0 + $0x18] sm:$0xff]  ;;  %v4830_v56 = vld [vmem:[%s16335_s0 + $0x20] sm:$0xff] }
 0x42e   :  { %3734 = vst [vmem:[%s16340_s5 + $0x128] sm:$0xff] %v2710_v15  ;;  %3735 = vst [vmem:[%s16340_s5 + $0x130] sm:$0xff] %v2711_v58  ;;  %v2723_v25 = vmul.f32 %v4812_v24, %v9103_v12  ;;  %v2724_v2 = vmul.f32 %v4813_v26, %v9103_v12  ;;  %v2725_v27 = vmul.f32 %v4814_v4, %v9103_v12  ;;  %v4831_v15 = vld [vmem:[%s16335_s0 + $0x28] sm:$0xff]  ;;  %v4832_v58 = vld [vmem:[%s16335_s0 + $0x30] sm:$0xff] }
 0x42f   :  { %3736 = vst [vmem:[%s16340_s5 + $0x138] sm:$0xff] %v2712_v37  ;;  %3737 = vst [vmem:[%s16340_s5 + $0x140] sm:$0xff] %v2713_v61  ;;  %v2726_v29 = vmul.f32 %v4815_v28, %v9103_v12  ;;  %v2727_v31 = vmul.f32 %v4816_v30, %v9103_v12  ;;  %v2728_v33 = vmul.f32 %v4817_v32, %v9103_v12  ;;  %v4833_v37 = vld [vmem:[%s16335_s0 + $0x38] sm:$0xff]  ;;  %v4834_v61 = vld [vmem:[%s16335_s0 + $0x40] sm:$0xff] }
 0x430   :  { %3738 = vst [vmem:[%s16340_s5 + $0x148] sm:$0xff] %v2714_v63  ;;  %3739 = vst [vmem:[%s16340_s5 + $0x150] sm:$0xff] %v2715_v60  ;;  %v2729_v36 = vmul.f32 %v4818_v35, %v9103_v12  ;;  %v2730_v40 = vmul.f32 %v4819_v39, %v9103_v12  ;;  %v2731_v42 = vmul.f32 %v4820_v41, %v9103_v12  ;;  %v4835_v63 = vld [vmem:[%s16335_s0 + $0x48] sm:$0xff]  ;;  %v4836_v60 = vld [vmem:[%s16335_s0 + $0x50] sm:$0xff] }
 0x431   :  { %3740 = vst [vmem:[%s16340_s5 + $0x158] sm:$0xff] %v2716_v7  ;;  %3741 = vst [vmem:[%s16340_s5 + $0x160] sm:$0xff] %v2717_v13  ;;  %v2732_v44 = vmul.f32 %v4821_v38, %v9103_v12  ;;  %v2733_v46 = vmul.f32 %v4822_v45, %v9103_v12  ;;  %v2734_v47 = vmul.f32 %v4823_v6, %v9103_v12  ;;  %v4837_v7 = vld [vmem:[%s16335_s0 + $0x58] sm:$0xff]  ;;  %v4838_v13 = vld [vmem:[%s16335_s0 + $0x60] sm:$0xff] }
 0x432   :  { %3742 = vst [vmem:[%s16340_s5 + $0x168] sm:$0xff] %v2718_v16  ;;  %3743 = vst [vmem:[%s16340_s5 + $0x170] sm:$0xff] %v2719_v0  ;;  %v2735_v48 = vmul.f32 %v4824_v5, %v9103_v12  ;;  %v2736_v49 = vmul.f32 %v4825_v8, %v9103_v12  ;;  %v4826_v12 = vld [vmem:[%s16335_s0] sm:$0xff]  ;;  %v2674_v9 = vmul.f32 %v4827_v51, %v9249_v34  ;;  %v4839_v16 = vld [vmem:[%s16335_s0 + $0x68] sm:$0xff] }
 0x433   :  { %3744 = vst [vmem:[%s16340_s5 + $0x178] sm:$0xff] %v2720_v20  ;;  %3745 = vst [vmem:[%s16340_s5 + $0x180] sm:$0xff] %v2721_v21  ;;  %v2673_v50 = vmul.f32 %v4826_v12, %v9249_v34  ;;  %v2675_v53 = vmul.f32 %v4828_v52, %v9249_v34  ;;  %v2676_v55 = vmul.f32 %v4829_v54, %v9249_v34  ;;  %v4840_v0 = vld [vmem:[%s16335_s0 + $0x70] sm:$0xff]  ;;  %v4841_v20 = vld [vmem:[%s16335_s0 + $0x78] sm:$0xff] }
 0x434   :  { %3746 = vst [vmem:[%s16340_s5 + $0x188] sm:$0xff] %v2722_v23  ;;  %3747 = vst [vmem:[%s16340_s5 + $0x190] sm:$0xff] %v2723_v25  ;;  %v2677_v10 = vmul.f32 %v4830_v56, %v9249_v34  ;;  %v2678_v57 = vmul.f32 %v4831_v15, %v9249_v34  ;;  %v2679_v19 = vmul.f32 %v4832_v58, %v9249_v34  ;;  %v4842_v21 = vld [vmem:[%s16335_s0 + $0x80] sm:$0xff]  ;;  %v4843_v23 = vld [vmem:[%s16335_s0 + $0x88] sm:$0xff] }
 0x435   :  { %3748 = vst [vmem:[%s16340_s5 + $0x198] sm:$0xff] %v2724_v2  ;;  %3749 = vst [vmem:[%s16340_s5 + $0x1a0] sm:$0xff] %v2725_v27  ;;  %v2680_v59 = vmul.f32 %v4833_v37, %v9249_v34  ;;  %v2681_v62 = vmul.f32 %v4834_v61, %v9249_v34  ;;  %v2682_v43 = vmul.f32 %v4835_v63, %v9249_v34  ;;  %v4844_v25 = vld [vmem:[%s16335_s0 + $0x90] sm:$0xff]  ;;  %v4845_v2 = vld [vmem:[%s16335_s0 + $0x98] sm:$0xff] }
 0x436   :  { %3750 = vst [vmem:[%s16340_s5 + $0x1a8] sm:$0xff] %v2726_v29  ;;  %3751 = vst [vmem:[%s16340_s5 + $0x1b0] sm:$0xff] %v2727_v31  ;;  %v2683_v1 = vmul.f32 %v4836_v60, %v9249_v34  ;;  %v2684_v11 = vmul.f32 %v4837_v7, %v9249_v34  ;;  %v2685_v14 = vmul.f32 %v4838_v13, %v9249_v34  ;;  %v4846_v27 = vld [vmem:[%s16335_s0 + $0xa0] sm:$0xff]  ;;  %v4847_v29 = vld [vmem:[%s16335_s0 + $0xa8] sm:$0xff] }
 0x437   :  { %3752 = vst [vmem:[%s16340_s5 + $0x1b8] sm:$0xff] %v2728_v33  ;;  %3753 = vst [vmem:[%s16340_s5 + $0x1c0] sm:$0xff] %v2729_v36  ;;  %v2686_v17 = vmul.f32 %v4839_v16, %v9249_v34  ;;  %v2687_v18 = vmul.f32 %v4840_v0, %v9249_v34  ;;  %v2688_v3 = vmul.f32 %v4841_v20, %v9249_v34  ;;  %v4848_v31 = vld [vmem:[%s16335_s0 + $0xb0] sm:$0xff]  ;;  %v4849_v33 = vld [vmem:[%s16335_s0 + $0xb8] sm:$0xff]  ;;  %v9475_v36 = vpop.permute.xlu1 %2552 }
 0x438   :  { %3754 = vst [vmem:[%s16340_s5 + $0x1c8] sm:$0xff] %v2730_v40  ;;  %3755 = vst [vmem:[%s16340_s5 + $0x1d0] sm:$0xff] %v2731_v42  ;;  %v2689_v22 = vmul.f32 %v4842_v21, %v9249_v34  ;;  %v2690_v24 = vmul.f32 %v4843_v23, %v9249_v34  ;;  %v2691_v26 = vmul.f32 %v4844_v25, %v9249_v34  ;;  %v4850_v39 = vld [vmem:[%s16335_s0 + $0xc0] sm:$0xff]  ;;  %v4851_v41 = vld [vmem:[%s16335_s0 + $0xc8] sm:$0xff] }
 0x439   :  { %3756 = vst [vmem:[%s16340_s5 + $0x1d8] sm:$0xff] %v2732_v44  ;;  %3757 = vst [vmem:[%s16340_s5 + $0x1e0] sm:$0xff] %v2733_v46  ;;  %v2692_v4 = vmul.f32 %v4845_v2, %v9249_v34  ;;  %v2693_v28 = vmul.f32 %v4846_v27, %v9249_v34  ;;  %v2694_v30 = vmul.f32 %v4847_v29, %v9249_v34  ;;  %v4852_v38 = vld [vmem:[%s16335_s0 + $0xd0] sm:$0xff]  ;;  %v4853_v45 = vld [vmem:[%s16335_s0 + $0xd8] sm:$0xff] }
 0x43a   :  { %3758 = vst [vmem:[%s16340_s5 + $0x1e8] sm:$0xff] %v2734_v47  ;;  %3759 = vst [vmem:[%s16340_s5 + $0x1f0] sm:$0xff] %v2735_v48  ;;  %v2695_v32 = vmul.f32 %v4848_v31, %v9249_v34  ;;  %v2696_v35 = vmul.f32 %v4849_v33, %v9249_v34  ;;  %v2697_v40 = vmul.f32 %v4850_v39, %v9249_v34  ;;  %v4854_v6 = vld [vmem:[%s16335_s0 + $0xe0] sm:$0xff]  ;;  %v4855_v5 = vld [vmem:[%s16335_s0 + $0xe8] sm:$0xff] }
 0x43b   :  { %3760 = vst [vmem:[%s16340_s5 + $0x1f8] sm:$0xff] %v2736_v49  ;;  %3697 = vst [vmem:[%s16340_s5] sm:$0xff] %v2673_v50  ;;  %v2698_v42 = vmul.f32 %v4851_v41, %v9249_v34  ;;  %v2699_v44 = vmul.f32 %v4852_v38, %v9249_v34  ;;  %v2700_v46 = vmul.f32 %v4853_v45, %v9249_v34  ;;  %v4856_v8 = vld [vmem:[%s16335_s0 + $0xf0] sm:$0xff]  ;;  %v4857_v12 = vld [vmem:[%s16335_s0 + $0xf8] sm:$0xff] }
 0x43c   :  { %3698 = vst [vmem:[%s16340_s5 + $0x8] sm:$0xff] %v2674_v9  ;;  %3699 = vst [vmem:[%s16340_s5 + $0x10] sm:$0xff] %v2675_v53  ;;  %v2701_v47 = vmul.f32 %v4854_v6, %v9249_v34  ;;  %v2702_v48 = vmul.f32 %v4855_v5, %v9249_v34  ;;  %v2703_v49 = vmul.f32 %v4856_v8, %v9249_v34  ;;  %v4859_v9 = vld [vmem:[%s16335_s0 + $0x208] sm:$0xff]  ;;  %v4860_v53 = vld [vmem:[%s16335_s0 + $0x210] sm:$0xff] }
 0x43d   :  { %3700 = vst [vmem:[%s16340_s5 + $0x18] sm:$0xff] %v2676_v55  ;;  %3701 = vst [vmem:[%s16340_s5 + $0x20] sm:$0xff] %v2677_v10  ;;  %v2704_v50 = vmul.f32 %v4857_v12, %v9249_v34  ;;  %v4858_v34 = vld [vmem:[%s16335_s0 + $0x200] sm:$0xff]  ;;  %v2738_v52 = vmul.f32 %v4859_v9, %v9475_v36  ;;  %v2739_v54 = vmul.f32 %v4860_v53, %v9475_v36  ;;  %v4861_v55 = vld [vmem:[%s16335_s0 + $0x218] sm:$0xff] }
 0x43e   :  { %3702 = vst [vmem:[%s16340_s5 + $0x28] sm:$0xff] %v2678_v57  ;;  %3703 = vst [vmem:[%s16340_s5 + $0x30] sm:$0xff] %v2679_v19  ;;  %v2737_v51 = vmul.f32 %v4858_v34, %v9475_v36  ;;  %v2740_v56 = vmul.f32 %v4861_v55, %v9475_v36  ;;  %v4862_v10 = vld [vmem:[%s16335_s0 + $0x220] sm:$0xff]  ;;  %v4863_v57 = vld [vmem:[%s16335_s0 + $0x228] sm:$0xff] }
 0x43f   :  { %3704 = vst [vmem:[%s16340_s5 + $0x38] sm:$0xff] %v2680_v59  ;;  %3705 = vst [vmem:[%s16340_s5 + $0x40] sm:$0xff] %v2681_v62  ;;  %v2741_v15 = vmul.f32 %v4862_v10, %v9475_v36  ;;  %v2742_v58 = vmul.f32 %v4863_v57, %v9475_v36  ;;  %v4864_v19 = vld [vmem:[%s16335_s0 + $0x230] sm:$0xff]  ;;  %v4865_v59 = vld [vmem:[%s16335_s0 + $0x238] sm:$0xff] }
 0x440   :  { %3706 = vst [vmem:[%s16340_s5 + $0x48] sm:$0xff] %v2682_v43  ;;  %3707 = vst [vmem:[%s16340_s5 + $0x50] sm:$0xff] %v2683_v1  ;;  %v2743_v37 = vmul.f32 %v4864_v19, %v9475_v36  ;;  %v2744_v61 = vmul.f32 %v4865_v59, %v9475_v36  ;;  %v4866_v62 = vld [vmem:[%s16335_s0 + $0x240] sm:$0xff]  ;;  %v4867_v43 = vld [vmem:[%s16335_s0 + $0x248] sm:$0xff] }
 0x441   :  { %3708 = vst [vmem:[%s16340_s5 + $0x58] sm:$0xff] %v2684_v11  ;;  %3709 = vst [vmem:[%s16340_s5 + $0x60] sm:$0xff] %v2685_v14  ;;  %v2745_v63 = vmul.f32 %v4866_v62, %v9475_v36  ;;  %v2746_v60 = vmul.f32 %v4867_v43, %v9475_v36  ;;  %v4868_v1 = vld [vmem:[%s16335_s0 + $0x250] sm:$0xff]  ;;  %v4869_v11 = vld [vmem:[%s16335_s0 + $0x258] sm:$0xff] }
 0x442   :  { %3710 = vst [vmem:[%s16340_s5 + $0x68] sm:$0xff] %v2686_v17  ;;  %3711 = vst [vmem:[%s16340_s5 + $0x70] sm:$0xff] %v2687_v18  ;;  %v2747_v7 = vmul.f32 %v4868_v1, %v9475_v36  ;;  %v2748_v13 = vmul.f32 %v4869_v11, %v9475_v36  ;;  %v4870_v14 = vld [vmem:[%s16335_s0 + $0x260] sm:$0xff]  ;;  %v4871_v17 = vld [vmem:[%s16335_s0 + $0x268] sm:$0xff] }
 0x443   :  { %3712 = vst [vmem:[%s16340_s5 + $0x78] sm:$0xff] %v2688_v3  ;;  %3713 = vst [vmem:[%s16340_s5 + $0x80] sm:$0xff] %v2689_v22  ;;  %v2749_v16 = vmul.f32 %v4870_v14, %v9475_v36  ;;  %v2750_v0 = vmul.f32 %v4871_v17, %v9475_v36  ;;  %v4872_v18 = vld [vmem:[%s16335_s0 + $0x270] sm:$0xff]  ;;  %v4873_v3 = vld [vmem:[%s16335_s0 + $0x278] sm:$0xff] }
 0x444   :  { %3714 = vst [vmem:[%s16340_s5 + $0x88] sm:$0xff] %v2690_v24  ;;  %3715 = vst [vmem:[%s16340_s5 + $0x90] sm:$0xff] %v2691_v26  ;;  %v2751_v20 = vmul.f32 %v4872_v18, %v9475_v36  ;;  %v2752_v21 = vmul.f32 %v4873_v3, %v9475_v36  ;;  %v4874_v22 = vld [vmem:[%s16335_s0 + $0x280] sm:$0xff]  ;;  %v4875_v24 = vld [vmem:[%s16335_s0 + $0x288] sm:$0xff] }
 0x445   :  { %3716 = vst [vmem:[%s16340_s5 + $0x98] sm:$0xff] %v2692_v4  ;;  %3717 = vst [vmem:[%s16340_s5 + $0xa0] sm:$0xff] %v2693_v28  ;;  %v2753_v23 = vmul.f32 %v4874_v22, %v9475_v36  ;;  %v2754_v25 = vmul.f32 %v4875_v24, %v9475_v36  ;;  %v4876_v26 = vld [vmem:[%s16335_s0 + $0x290] sm:$0xff]  ;;  %v4877_v4 = vld [vmem:[%s16335_s0 + $0x298] sm:$0xff] }
 0x446   :  { %3718 = vst [vmem:[%s16340_s5 + $0xa8] sm:$0xff] %v2694_v30  ;;  %3719 = vst [vmem:[%s16340_s5 + $0xb0] sm:$0xff] %v2695_v32  ;;  %v2755_v2 = vmul.f32 %v4876_v26, %v9475_v36  ;;  %v2756_v27 = vmul.f32 %v4877_v4, %v9475_v36  ;;  %v4878_v28 = vld [vmem:[%s16335_s0 + $0x2a0] sm:$0xff]  ;;  %v4879_v30 = vld [vmem:[%s16335_s0 + $0x2a8] sm:$0xff] }
 0x447   :  { %3720 = vst [vmem:[%s16340_s5 + $0xb8] sm:$0xff] %v2696_v35  ;;  %3721 = vst [vmem:[%s16340_s5 + $0xc0] sm:$0xff] %v2697_v40  ;;  %v2757_v29 = vmul.f32 %v4878_v28, %v9475_v36  ;;  %v2758_v31 = vmul.f32 %v4879_v30, %v9475_v36  ;;  %v4880_v32 = vld [vmem:[%s16335_s0 + $0x2b0] sm:$0xff]  ;;  %v4881_v35 = vld [vmem:[%s16335_s0 + $0x2b8] sm:$0xff]  ;;  %v9701_v40 = vpop.permute.xlu0 %2560 }
 0x448   :  { %3722 = vst [vmem:[%s16340_s5 + $0xc8] sm:$0xff] %v2698_v42  ;;  %3723 = vst [vmem:[%s16340_s5 + $0xd0] sm:$0xff] %v2699_v44  ;;  %v2759_v33 = vmul.f32 %v4880_v32, %v9475_v36  ;;  %v2760_v39 = vmul.f32 %v4881_v35, %v9475_v36  ;;  %v4882_v41 = vld [vmem:[%s16335_s0 + $0x2c0] sm:$0xff]  ;;  %v4883_v38 = vld [vmem:[%s16335_s0 + $0x2c8] sm:$0xff] }
 0x449   :  { %3724 = vst [vmem:[%s16340_s5 + $0xd8] sm:$0xff] %v2700_v46  ;;  %3725 = vst [vmem:[%s16340_s5 + $0xe0] sm:$0xff] %v2701_v47  ;;  %v2761_v42 = vmul.f32 %v4882_v41, %v9475_v36  ;;  %v2762_v44 = vmul.f32 %v4883_v38, %v9475_v36  ;;  %v4884_v45 = vld [vmem:[%s16335_s0 + $0x2d0] sm:$0xff]  ;;  %v4885_v6 = vld [vmem:[%s16335_s0 + $0x2d8] sm:$0xff] }
 0x44a   :  { %3726 = vst [vmem:[%s16340_s5 + $0xe8] sm:$0xff] %v2702_v48  ;;  %3727 = vst [vmem:[%s16340_s5 + $0xf0] sm:$0xff] %v2703_v49  ;;  %v2763_v46 = vmul.f32 %v4884_v45, %v9475_v36  ;;  %v2764_v47 = vmul.f32 %v4885_v6, %v9475_v36  ;;  %v4886_v5 = vld [vmem:[%s16335_s0 + $0x2e0] sm:$0xff]  ;;  %v4887_v8 = vld [vmem:[%s16335_s0 + $0x2e8] sm:$0xff] }
 0x44b   :  { %3728 = vst [vmem:[%s16340_s5 + $0xf8] sm:$0xff] %v2704_v50  ;;  %3761 = vst [vmem:[%s16340_s5 + $0x200] sm:$0xff] %v2737_v51  ;;  %v2765_v48 = vmul.f32 %v4886_v5, %v9475_v36  ;;  %v2766_v49 = vmul.f32 %v4887_v8, %v9475_v36  ;;  %v4888_v12 = vld [vmem:[%s16335_s0 + $0x2f0] sm:$0xff]  ;;  %v4889_v34 = vld [vmem:[%s16335_s0 + $0x2f8] sm:$0xff] }
 0x44c   :  { %3762 = vst [vmem:[%s16340_s5 + $0x208] sm:$0xff] %v2738_v52  ;;  %3763 = vst [vmem:[%s16340_s5 + $0x210] sm:$0xff] %v2739_v54  ;;  %v2767_v50 = vmul.f32 %v4888_v12, %v9475_v36  ;;  %v2768_v51 = vmul.f32 %v4889_v34, %v9475_v36  ;;  %v4890_v36 = vld [vmem:[%s16335_s0 + $0x400] sm:$0xff]  ;;  %v4891_v52 = vld [vmem:[%s16335_s0 + $0x408] sm:$0xff] }
 0x44d   :  { %3764 = vst [vmem:[%s16340_s5 + $0x218] sm:$0xff] %v2740_v56  ;;  %3765 = vst [vmem:[%s16340_s5 + $0x220] sm:$0xff] %v2741_v15  ;;  %v2801_v9 = vmul.f32 %v4890_v36, %v9701_v40  ;;  %v2802_v53 = vmul.f32 %v4891_v52, %v9701_v40  ;;  %v4892_v54 = vld [vmem:[%s16335_s0 + $0x410] sm:$0xff]  ;;  %v4893_v56 = vld [vmem:[%s16335_s0 + $0x418] sm:$0xff] }
 0x44e   :  { %3766 = vst [vmem:[%s16340_s5 + $0x228] sm:$0xff] %v2742_v58  ;;  %3767 = vst [vmem:[%s16340_s5 + $0x230] sm:$0xff] %v2743_v37  ;;  %v2803_v55 = vmul.f32 %v4892_v54, %v9701_v40  ;;  %v2804_v10 = vmul.f32 %v4893_v56, %v9701_v40  ;;  %v4894_v15 = vld [vmem:[%s16335_s0 + $0x420] sm:$0xff]  ;;  %v4895_v58 = vld [vmem:[%s16335_s0 + $0x428] sm:$0xff] }
 0x44f   :  { %3768 = vst [vmem:[%s16340_s5 + $0x238] sm:$0xff] %v2744_v61  ;;  %3769 = vst [vmem:[%s16340_s5 + $0x240] sm:$0xff] %v2745_v63  ;;  %v2805_v57 = vmul.f32 %v4894_v15, %v9701_v40  ;;  %v2806_v19 = vmul.f32 %v4895_v58, %v9701_v40  ;;  %v4896_v37 = vld [vmem:[%s16335_s0 + $0x430] sm:$0xff]  ;;  %v4897_v61 = vld [vmem:[%s16335_s0 + $0x438] sm:$0xff] }
 0x450   :  { %3770 = vst [vmem:[%s16340_s5 + $0x248] sm:$0xff] %v2746_v60  ;;  %3771 = vst [vmem:[%s16340_s5 + $0x250] sm:$0xff] %v2747_v7  ;;  %v2807_v59 = vmul.f32 %v4896_v37, %v9701_v40  ;;  %v2808_v62 = vmul.f32 %v4897_v61, %v9701_v40  ;;  %v4898_v63 = vld [vmem:[%s16335_s0 + $0x440] sm:$0xff]  ;;  %v4899_v60 = vld [vmem:[%s16335_s0 + $0x448] sm:$0xff] }
 0x451   :  { %3772 = vst [vmem:[%s16340_s5 + $0x258] sm:$0xff] %v2748_v13  ;;  %3773 = vst [vmem:[%s16340_s5 + $0x260] sm:$0xff] %v2749_v16  ;;  %v2809_v43 = vmul.f32 %v4898_v63, %v9701_v40  ;;  %v2810_v1 = vmul.f32 %v4899_v60, %v9701_v40  ;;  %v4900_v7 = vld [vmem:[%s16335_s0 + $0x450] sm:$0xff]  ;;  %v4901_v13 = vld [vmem:[%s16335_s0 + $0x458] sm:$0xff] }
 0x452   :  { %3774 = vst [vmem:[%s16340_s5 + $0x268] sm:$0xff] %v2750_v0  ;;  %3775 = vst [vmem:[%s16340_s5 + $0x270] sm:$0xff] %v2751_v20  ;;  %v2811_v11 = vmul.f32 %v4900_v7, %v9701_v40  ;;  %v2812_v14 = vmul.f32 %v4901_v13, %v9701_v40  ;;  %v4902_v16 = vld [vmem:[%s16335_s0 + $0x460] sm:$0xff]  ;;  %v4903_v0 = vld [vmem:[%s16335_s0 + $0x468] sm:$0xff] }
 0x453   :  { %3776 = vst [vmem:[%s16340_s5 + $0x278] sm:$0xff] %v2752_v21  ;;  %3777 = vst [vmem:[%s16340_s5 + $0x280] sm:$0xff] %v2753_v23  ;;  %v2813_v17 = vmul.f32 %v4902_v16, %v9701_v40  ;;  %v2814_v18 = vmul.f32 %v4903_v0, %v9701_v40  ;;  %v4904_v20 = vld [vmem:[%s16335_s0 + $0x470] sm:$0xff]  ;;  %v4905_v21 = vld [vmem:[%s16335_s0 + $0x478] sm:$0xff] }
 0x454   :  { %3778 = vst [vmem:[%s16340_s5 + $0x288] sm:$0xff] %v2754_v25  ;;  %3779 = vst [vmem:[%s16340_s5 + $0x290] sm:$0xff] %v2755_v2  ;;  %v2815_v3 = vmul.f32 %v4904_v20, %v9701_v40  ;;  %v2816_v22 = vmul.f32 %v4905_v21, %v9701_v40  ;;  %v4906_v23 = vld [vmem:[%s16335_s0 + $0x480] sm:$0xff]  ;;  %v4907_v25 = vld [vmem:[%s16335_s0 + $0x488] sm:$0xff] }
 0x455   :  { %3780 = vst [vmem:[%s16340_s5 + $0x298] sm:$0xff] %v2756_v27  ;;  %3781 = vst [vmem:[%s16340_s5 + $0x2a0] sm:$0xff] %v2757_v29  ;;  %v2817_v24 = vmul.f32 %v4906_v23, %v9701_v40  ;;  %v2818_v26 = vmul.f32 %v4907_v25, %v9701_v40  ;;  %v4908_v2 = vld [vmem:[%s16335_s0 + $0x490] sm:$0xff]  ;;  %v4909_v27 = vld [vmem:[%s16335_s0 + $0x498] sm:$0xff] }
 0x456   :  { %3782 = vst [vmem:[%s16340_s5 + $0x2a8] sm:$0xff] %v2758_v31  ;;  %3783 = vst [vmem:[%s16340_s5 + $0x2b0] sm:$0xff] %v2759_v33  ;;  %v2819_v4 = vmul.f32 %v4908_v2, %v9701_v40  ;;  %v2820_v28 = vmul.f32 %v4909_v27, %v9701_v40  ;;  %v4910_v29 = vld [vmem:[%s16335_s0 + $0x4a0] sm:$0xff]  ;;  %v4911_v31 = vld [vmem:[%s16335_s0 + $0x4a8] sm:$0xff] }
 0x457   :  { %3784 = vst [vmem:[%s16340_s5 + $0x2b8] sm:$0xff] %v2760_v39  ;;  %3785 = vst [vmem:[%s16340_s5 + $0x2c0] sm:$0xff] %v2761_v42  ;;  %v2821_v30 = vmul.f32 %v4910_v29, %v9701_v40  ;;  %v2822_v32 = vmul.f32 %v4911_v31, %v9701_v40  ;;  %v4912_v33 = vld [vmem:[%s16335_s0 + $0x4b0] sm:$0xff]  ;;  %v4913_v39 = vld [vmem:[%s16335_s0 + $0x4b8] sm:$0xff]  ;;  %v9927_v42 = vpop.permute.xlu1 %2556 }
 0x458   :  { %3786 = vst [vmem:[%s16340_s5 + $0x2c8] sm:$0xff] %v2762_v44  ;;  %3787 = vst [vmem:[%s16340_s5 + $0x2d0] sm:$0xff] %v2763_v46  ;;  %v2823_v35 = vmul.f32 %v4912_v33, %v9701_v40  ;;  %v2824_v41 = vmul.f32 %v4913_v39, %v9701_v40  ;;  %v4914_v38 = vld [vmem:[%s16335_s0 + $0x4c0] sm:$0xff]  ;;  %v4915_v45 = vld [vmem:[%s16335_s0 + $0x4c8] sm:$0xff] }
 0x459   :  { %3788 = vst [vmem:[%s16340_s5 + $0x2d8] sm:$0xff] %v2764_v47  ;;  %3789 = vst [vmem:[%s16340_s5 + $0x2e0] sm:$0xff] %v2765_v48  ;;  %v2825_v44 = vmul.f32 %v4914_v38, %v9701_v40  ;;  %v2826_v46 = vmul.f32 %v4915_v45, %v9701_v40  ;;  %v4916_v6 = vld [vmem:[%s16335_s0 + $0x4d0] sm:$0xff]  ;;  %v4917_v5 = vld [vmem:[%s16335_s0 + $0x4d8] sm:$0xff] }
 0x45a   :  { %3790 = vst [vmem:[%s16340_s5 + $0x2e8] sm:$0xff] %v2766_v49  ;;  %3791 = vst [vmem:[%s16340_s5 + $0x2f0] sm:$0xff] %v2767_v50  ;;  %v2827_v47 = vmul.f32 %v4916_v6, %v9701_v40  ;;  %v2828_v48 = vmul.f32 %v4917_v5, %v9701_v40  ;;  %v4918_v8 = vld [vmem:[%s16335_s0 + $0x4e0] sm:$0xff]  ;;  %v4919_v12 = vld [vmem:[%s16335_s0 + $0x4e8] sm:$0xff] }
 0x45b   :  { %3792 = vst [vmem:[%s16340_s5 + $0x2f8] sm:$0xff] %v2768_v51  ;;  %3825 = vst [vmem:[%s16340_s5 + $0x400] sm:$0xff] %v2801_v9  ;;  %v2829_v49 = vmul.f32 %v4918_v8, %v9701_v40  ;;  %v2830_v50 = vmul.f32 %v4919_v12, %v9701_v40  ;;  %v4920_v34 = vld [vmem:[%s16335_s0 + $0x4f0] sm:$0xff]  ;;  %v4921_v36 = vld [vmem:[%s16335_s0 + $0x4f8] sm:$0xff] }
 0x45c   :  { %3826 = vst [vmem:[%s16340_s5 + $0x408] sm:$0xff] %v2802_v53  ;;  %3827 = vst [vmem:[%s16340_s5 + $0x410] sm:$0xff] %v2803_v55  ;;  %v2831_v51 = vmul.f32 %v4920_v34, %v9701_v40  ;;  %v2832_v9 = vmul.f32 %v4921_v36, %v9701_v40  ;;  %v4922_v40 = vld [vmem:[%s16335_s0 + $0x300] sm:$0xff]  ;;  %v4923_v53 = vld [vmem:[%s16335_s0 + $0x308] sm:$0xff] }
 0x45d   :  { %3828 = vst [vmem:[%s16340_s5 + $0x418] sm:$0xff] %v2804_v10  ;;  %3829 = vst [vmem:[%s16340_s5 + $0x420] sm:$0xff] %v2805_v57  ;;  %v2769_v52 = vmul.f32 %v4922_v40, %v9927_v42  ;;  %v2770_v54 = vmul.f32 %v4923_v53, %v9927_v42  ;;  %v4924_v55 = vld [vmem:[%s16335_s0 + $0x310] sm:$0xff]  ;;  %v4925_v10 = vld [vmem:[%s16335_s0 + $0x318] sm:$0xff] }
 0x45e   :  { %3830 = vst [vmem:[%s16340_s5 + $0x428] sm:$0xff] %v2806_v19  ;;  %3831 = vst [vmem:[%s16340_s5 + $0x430] sm:$0xff] %v2807_v59  ;;  %v2771_v56 = vmul.f32 %v4924_v55, %v9927_v42  ;;  %v2772_v15 = vmul.f32 %v4925_v10, %v9927_v42  ;;  %v4926_v57 = vld [vmem:[%s16335_s0 + $0x320] sm:$0xff]  ;;  %v4927_v19 = vld [vmem:[%s16335_s0 + $0x328] sm:$0xff] }
 0x45f   :  { %3832 = vst [vmem:[%s16340_s5 + $0x438] sm:$0xff] %v2808_v62  ;;  %3833 = vst [vmem:[%s16340_s5 + $0x440] sm:$0xff] %v2809_v43  ;;  %v2773_v58 = vmul.f32 %v4926_v57, %v9927_v42  ;;  %v2774_v37 = vmul.f32 %v4927_v19, %v9927_v42  ;;  %v4928_v59 = vld [vmem:[%s16335_s0 + $0x330] sm:$0xff]  ;;  %v4929_v62 = vld [vmem:[%s16335_s0 + $0x338] sm:$0xff] }
 0x460   :  { %3834 = vst [vmem:[%s16340_s5 + $0x448] sm:$0xff] %v2810_v1  ;;  %3835 = vst [vmem:[%s16340_s5 + $0x450] sm:$0xff] %v2811_v11  ;;  %v2775_v61 = vmul.f32 %v4928_v59, %v9927_v42  ;;  %v2776_v63 = vmul.f32 %v4929_v62, %v9927_v42  ;;  %v4930_v43 = vld [vmem:[%s16335_s0 + $0x340] sm:$0xff]  ;;  %v4931_v1 = vld [vmem:[%s16335_s0 + $0x348] sm:$0xff] }
 0x461   :  { %3836 = vst [vmem:[%s16340_s5 + $0x458] sm:$0xff] %v2812_v14  ;;  %3837 = vst [vmem:[%s16340_s5 + $0x460] sm:$0xff] %v2813_v17  ;;  %v2777_v60 = vmul.f32 %v4930_v43, %v9927_v42  ;;  %v2778_v7 = vmul.f32 %v4931_v1, %v9927_v42  ;;  %v4932_v11 = vld [vmem:[%s16335_s0 + $0x350] sm:$0xff]  ;;  %v4933_v14 = vld [vmem:[%s16335_s0 + $0x358] sm:$0xff] }
 0x462   :  { %3838 = vst [vmem:[%s16340_s5 + $0x468] sm:$0xff] %v2814_v18  ;;  %3839 = vst [vmem:[%s16340_s5 + $0x470] sm:$0xff] %v2815_v3  ;;  %v2779_v13 = vmul.f32 %v4932_v11, %v9927_v42  ;;  %v2780_v16 = vmul.f32 %v4933_v14, %v9927_v42  ;;  %v4934_v17 = vld [vmem:[%s16335_s0 + $0x360] sm:$0xff]  ;;  %v4935_v18 = vld [vmem:[%s16335_s0 + $0x368] sm:$0xff] }
 0x463   :  { %3840 = vst [vmem:[%s16340_s5 + $0x478] sm:$0xff] %v2816_v22  ;;  %3841 = vst [vmem:[%s16340_s5 + $0x480] sm:$0xff] %v2817_v24  ;;  %v2781_v0 = vmul.f32 %v4934_v17, %v9927_v42  ;;  %v2782_v20 = vmul.f32 %v4935_v18, %v9927_v42  ;;  %v4936_v3 = vld [vmem:[%s16335_s0 + $0x370] sm:$0xff]  ;;  %v4937_v22 = vld [vmem:[%s16335_s0 + $0x378] sm:$0xff] }
 0x464   :  { %3842 = vst [vmem:[%s16340_s5 + $0x488] sm:$0xff] %v2818_v26  ;;  %3843 = vst [vmem:[%s16340_s5 + $0x490] sm:$0xff] %v2819_v4  ;;  %v2783_v21 = vmul.f32 %v4936_v3, %v9927_v42  ;;  %v2784_v23 = vmul.f32 %v4937_v22, %v9927_v42  ;;  %v4938_v24 = vld [vmem:[%s16335_s0 + $0x380] sm:$0xff]  ;;  %v4939_v26 = vld [vmem:[%s16335_s0 + $0x388] sm:$0xff] }
 0x465   :  { %3844 = vst [vmem:[%s16340_s5 + $0x498] sm:$0xff] %v2820_v28  ;;  %3845 = vst [vmem:[%s16340_s5 + $0x4a0] sm:$0xff] %v2821_v30  ;;  %v2785_v25 = vmul.f32 %v4938_v24, %v9927_v42  ;;  %v2786_v2 = vmul.f32 %v4939_v26, %v9927_v42  ;;  %v4940_v4 = vld [vmem:[%s16335_s0 + $0x390] sm:$0xff]  ;;  %v4941_v28 = vld [vmem:[%s16335_s0 + $0x398] sm:$0xff] }
 0x466   :  { %3846 = vst [vmem:[%s16340_s5 + $0x4a8] sm:$0xff] %v2822_v32  ;;  %3847 = vst [vmem:[%s16340_s5 + $0x4b0] sm:$0xff] %v2823_v35  ;;  %v2787_v27 = vmul.f32 %v4940_v4, %v9927_v42  ;;  %v2788_v29 = vmul.f32 %v4941_v28, %v9927_v42  ;;  %v4942_v30 = vld [vmem:[%s16335_s0 + $0x3a0] sm:$0xff]  ;;  %v4943_v32 = vld [vmem:[%s16335_s0 + $0x3a8] sm:$0xff] }
 0x467   :  { %3848 = vst [vmem:[%s16340_s5 + $0x4b8] sm:$0xff] %v2824_v41  ;;  %3849 = vst [vmem:[%s16340_s5 + $0x4c0] sm:$0xff] %v2825_v44  ;;  %v2789_v31 = vmul.f32 %v4942_v30, %v9927_v42  ;;  %v2790_v33 = vmul.f32 %v4943_v32, %v9927_v42  ;;  %v4944_v35 = vld [vmem:[%s16335_s0 + $0x3b0] sm:$0xff]  ;;  %v4945_v41 = vld [vmem:[%s16335_s0 + $0x3b8] sm:$0xff]  ;;  %v10153_v44 = vpop.permute.xlu0 %2568 }
 0x468   :  { %3850 = vst [vmem:[%s16340_s5 + $0x4c8] sm:$0xff] %v2826_v46  ;;  %3851 = vst [vmem:[%s16340_s5 + $0x4d0] sm:$0xff] %v2827_v47  ;;  %v2791_v39 = vmul.f32 %v4944_v35, %v9927_v42  ;;  %v2792_v38 = vmul.f32 %v4945_v41, %v9927_v42  ;;  %v4946_v45 = vld [vmem:[%s16335_s0 + $0x3c0] sm:$0xff]  ;;  %v4947_v6 = vld [vmem:[%s16335_s0 + $0x3c8] sm:$0xff] }
 0x469   :  { %3852 = vst [vmem:[%s16340_s5 + $0x4d8] sm:$0xff] %v2828_v48  ;;  %3853 = vst [vmem:[%s16340_s5 + $0x4e0] sm:$0xff] %v2829_v49  ;;  %v2793_v46 = vmul.f32 %v4946_v45, %v9927_v42  ;;  %v2794_v47 = vmul.f32 %v4947_v6, %v9927_v42  ;;  %v4948_v5 = vld [vmem:[%s16335_s0 + $0x3d0] sm:$0xff]  ;;  %v4949_v8 = vld [vmem:[%s16335_s0 + $0x3d8] sm:$0xff] }
 0x46a   :  { %3854 = vst [vmem:[%s16340_s5 + $0x4e8] sm:$0xff] %v2830_v50  ;;  %3855 = vst [vmem:[%s16340_s5 + $0x4f0] sm:$0xff] %v2831_v51  ;;  %v2795_v48 = vmul.f32 %v4948_v5, %v9927_v42  ;;  %v2796_v49 = vmul.f32 %v4949_v8, %v9927_v42  ;;  %v4950_v12 = vld [vmem:[%s16335_s0 + $0x3e0] sm:$0xff]  ;;  %v4951_v34 = vld [vmem:[%s16335_s0 + $0x3e8] sm:$0xff] }
 0x46b   :  { %3856 = vst [vmem:[%s16340_s5 + $0x4f8] sm:$0xff] %v2832_v9  ;;  %3793 = vst [vmem:[%s16340_s5 + $0x300] sm:$0xff] %v2769_v52  ;;  %v2797_v50 = vmul.f32 %v4950_v12, %v9927_v42  ;;  %v2798_v51 = vmul.f32 %v4951_v34, %v9927_v42  ;;  %v4952_v36 = vld [vmem:[%s16335_s0 + $0x3f0] sm:$0xff]  ;;  %v4953_v40 = vld [vmem:[%s16335_s0 + $0x3f8] sm:$0xff] }
 0x46c   :  { %3794 = vst [vmem:[%s16340_s5 + $0x308] sm:$0xff] %v2770_v54  ;;  %3795 = vst [vmem:[%s16340_s5 + $0x310] sm:$0xff] %v2771_v56  ;;  %v2799_v9 = vmul.f32 %v4952_v36, %v9927_v42  ;;  %v2800_v52 = vmul.f32 %v4953_v40, %v9927_v42  ;;  %v4954_v42 = vld [vmem:[%s16335_s0 + $0x600] sm:$0xff]  ;;  %v4955_v54 = vld [vmem:[%s16335_s0 + $0x608] sm:$0xff] }
 0x46d   :  { %3796 = vst [vmem:[%s16340_s5 + $0x318] sm:$0xff] %v2772_v15  ;;  %3797 = vst [vmem:[%s16340_s5 + $0x320] sm:$0xff] %v2773_v58  ;;  %v2865_v53 = vmul.f32 %v4954_v42, %v10153_v44  ;;  %v2866_v55 = vmul.f32 %v4955_v54, %v10153_v44  ;;  %v4956_v56 = vld [vmem:[%s16335_s0 + $0x610] sm:$0xff]  ;;  %v4957_v15 = vld [vmem:[%s16335_s0 + $0x618] sm:$0xff] }
 0x46e   :  { %3798 = vst [vmem:[%s16340_s5 + $0x328] sm:$0xff] %v2774_v37  ;;  %3799 = vst [vmem:[%s16340_s5 + $0x330] sm:$0xff] %v2775_v61  ;;  %v2867_v10 = vmul.f32 %v4956_v56, %v10153_v44  ;;  %v2868_v57 = vmul.f32 %v4957_v15, %v10153_v44  ;;  %v4958_v58 = vld [vmem:[%s16335_s0 + $0x620] sm:$0xff]  ;;  %v4959_v37 = vld [vmem:[%s16335_s0 + $0x628] sm:$0xff] }
 0x46f   :  { %3800 = vst [vmem:[%s16340_s5 + $0x338] sm:$0xff] %v2776_v63  ;;  %3801 = vst [vmem:[%s16340_s5 + $0x340] sm:$0xff] %v2777_v60  ;;  %v2869_v19 = vmul.f32 %v4958_v58, %v10153_v44  ;;  %v2870_v59 = vmul.f32 %v4959_v37, %v10153_v44  ;;  %v4960_v61 = vld [vmem:[%s16335_s0 + $0x630] sm:$0xff]  ;;  %v4961_v63 = vld [vmem:[%s16335_s0 + $0x638] sm:$0xff] }
 0x470   :  { %3802 = vst [vmem:[%s16340_s5 + $0x348] sm:$0xff] %v2778_v7  ;;  %3803 = vst [vmem:[%s16340_s5 + $0x350] sm:$0xff] %v2779_v13  ;;  %v2871_v62 = vmul.f32 %v4960_v61, %v10153_v44  ;;  %v2872_v43 = vmul.f32 %v4961_v63, %v10153_v44  ;;  %v4962_v60 = vld [vmem:[%s16335_s0 + $0x640] sm:$0xff]  ;;  %v4963_v7 = vld [vmem:[%s16335_s0 + $0x648] sm:$0xff] }
 0x471   :  { %3804 = vst [vmem:[%s16340_s5 + $0x358] sm:$0xff] %v2780_v16  ;;  %3805 = vst [vmem:[%s16340_s5 + $0x360] sm:$0xff] %v2781_v0  ;;  %v2873_v1 = vmul.f32 %v4962_v60, %v10153_v44  ;;  %v2874_v11 = vmul.f32 %v4963_v7, %v10153_v44  ;;  %v4964_v13 = vld [vmem:[%s16335_s0 + $0x650] sm:$0xff]  ;;  %v4965_v16 = vld [vmem:[%s16335_s0 + $0x658] sm:$0xff] }
 0x472   :  { %3806 = vst [vmem:[%s16340_s5 + $0x368] sm:$0xff] %v2782_v20  ;;  %3807 = vst [vmem:[%s16340_s5 + $0x370] sm:$0xff] %v2783_v21  ;;  %v2875_v14 = vmul.f32 %v4964_v13, %v10153_v44  ;;  %v2876_v17 = vmul.f32 %v4965_v16, %v10153_v44  ;;  %v4966_v0 = vld [vmem:[%s16335_s0 + $0x660] sm:$0xff]  ;;  %v4967_v20 = vld [vmem:[%s16335_s0 + $0x668] sm:$0xff] }
 0x473   :  { %3808 = vst [vmem:[%s16340_s5 + $0x378] sm:$0xff] %v2784_v23  ;;  %3809 = vst [vmem:[%s16340_s5 + $0x380] sm:$0xff] %v2785_v25  ;;  %v2877_v18 = vmul.f32 %v4966_v0, %v10153_v44  ;;  %v2878_v3 = vmul.f32 %v4967_v20, %v10153_v44  ;;  %v4968_v21 = vld [vmem:[%s16335_s0 + $0x670] sm:$0xff]  ;;  %v4969_v23 = vld [vmem:[%s16335_s0 + $0x678] sm:$0xff] }
 0x474   :  { %3810 = vst [vmem:[%s16340_s5 + $0x388] sm:$0xff] %v2786_v2  ;;  %3811 = vst [vmem:[%s16340_s5 + $0x390] sm:$0xff] %v2787_v27  ;;  %v2879_v22 = vmul.f32 %v4968_v21, %v10153_v44  ;;  %v2880_v24 = vmul.f32 %v4969_v23, %v10153_v44  ;;  %v4970_v25 = vld [vmem:[%s16335_s0 + $0x680] sm:$0xff]  ;;  %v4971_v2 = vld [vmem:[%s16335_s0 + $0x688] sm:$0xff] }
 0x475   :  { %3812 = vst [vmem:[%s16340_s5 + $0x398] sm:$0xff] %v2788_v29  ;;  %3813 = vst [vmem:[%s16340_s5 + $0x3a0] sm:$0xff] %v2789_v31  ;;  %v2881_v26 = vmul.f32 %v4970_v25, %v10153_v44  ;;  %v2882_v4 = vmul.f32 %v4971_v2, %v10153_v44  ;;  %v4972_v27 = vld [vmem:[%s16335_s0 + $0x690] sm:$0xff]  ;;  %v4973_v29 = vld [vmem:[%s16335_s0 + $0x698] sm:$0xff] }
 0x476   :  { %3814 = vst [vmem:[%s16340_s5 + $0x3a8] sm:$0xff] %v2790_v33  ;;  %3815 = vst [vmem:[%s16340_s5 + $0x3b0] sm:$0xff] %v2791_v39  ;;  %v2883_v28 = vmul.f32 %v4972_v27, %v10153_v44  ;;  %v2884_v30 = vmul.f32 %v4973_v29, %v10153_v44  ;;  %v4974_v31 = vld [vmem:[%s16335_s0 + $0x6a0] sm:$0xff]  ;;  %v4975_v33 = vld [vmem:[%s16335_s0 + $0x6a8] sm:$0xff] }
 0x477   :  { %3816 = vst [vmem:[%s16340_s5 + $0x3b8] sm:$0xff] %v2792_v38  ;;  %3817 = vst [vmem:[%s16340_s5 + $0x3c0] sm:$0xff] %v2793_v46  ;;  %v2885_v32 = vmul.f32 %v4974_v31, %v10153_v44  ;;  %v2886_v35 = vmul.f32 %v4975_v33, %v10153_v44  ;;  %v4976_v39 = vld [vmem:[%s16335_s0 + $0x6b0] sm:$0xff]  ;;  %v4977_v38 = vld [vmem:[%s16335_s0 + $0x6b8] sm:$0xff]  ;;  %v10379_v46 = vpop.permute.xlu1 %2564 }
 0x478   :  { %3818 = vst [vmem:[%s16340_s5 + $0x3c8] sm:$0xff] %v2794_v47  ;;  %3819 = vst [vmem:[%s16340_s5 + $0x3d0] sm:$0xff] %v2795_v48  ;;  %v2887_v41 = vmul.f32 %v4976_v39, %v10153_v44  ;;  %v2888_v45 = vmul.f32 %v4977_v38, %v10153_v44  ;;  %v4978_v6 = vld [vmem:[%s16335_s0 + $0x6c0] sm:$0xff]  ;;  %v4979_v5 = vld [vmem:[%s16335_s0 + $0x6c8] sm:$0xff] }
 0x479   :  { %3820 = vst [vmem:[%s16340_s5 + $0x3d8] sm:$0xff] %v2796_v49  ;;  %3821 = vst [vmem:[%s16340_s5 + $0x3e0] sm:$0xff] %v2797_v50  ;;  %v2889_v47 = vmul.f32 %v4978_v6, %v10153_v44  ;;  %v2890_v48 = vmul.f32 %v4979_v5, %v10153_v44  ;;  %v4980_v8 = vld [vmem:[%s16335_s0 + $0x6d0] sm:$0xff]  ;;  %v4981_v12 = vld [vmem:[%s16335_s0 + $0x6d8] sm:$0xff] }
 0x47a   :  { %3822 = vst [vmem:[%s16340_s5 + $0x3e8] sm:$0xff] %v2798_v51  ;;  %3823 = vst [vmem:[%s16340_s5 + $0x3f0] sm:$0xff] %v2799_v9  ;;  %v2891_v49 = vmul.f32 %v4980_v8, %v10153_v44  ;;  %v2892_v50 = vmul.f32 %v4981_v12, %v10153_v44  ;;  %v4982_v34 = vld [vmem:[%s16335_s0 + $0x6e0] sm:$0xff]  ;;  %v4983_v36 = vld [vmem:[%s16335_s0 + $0x6e8] sm:$0xff] }
 0x47b   :  { %3824 = vst [vmem:[%s16340_s5 + $0x3f8] sm:$0xff] %v2800_v52  ;;  %3889 = vst [vmem:[%s16340_s5 + $0x600] sm:$0xff] %v2865_v53  ;;  %v2893_v51 = vmul.f32 %v4982_v34, %v10153_v44  ;;  %v2894_v9 = vmul.f32 %v4983_v36, %v10153_v44  ;;  %v4984_v40 = vld [vmem:[%s16335_s0 + $0x6f0] sm:$0xff]  ;;  %v4985_v42 = vld [vmem:[%s16335_s0 + $0x6f8] sm:$0xff] }
 0x47c   :  { %3890 = vst [vmem:[%s16340_s5 + $0x608] sm:$0xff] %v2866_v55  ;;  %3891 = vst [vmem:[%s16340_s5 + $0x610] sm:$0xff] %v2867_v10  ;;  %v2895_v52 = vmul.f32 %v4984_v40, %v10153_v44  ;;  %v2896_v53 = vmul.f32 %v4985_v42, %v10153_v44  ;;  %v4986_v44 = vld [vmem:[%s16335_s0 + $0x500] sm:$0xff]  ;;  %v4987_v55 = vld [vmem:[%s16335_s0 + $0x508] sm:$0xff] }
 0x47d   :  { %3892 = vst [vmem:[%s16340_s5 + $0x618] sm:$0xff] %v2868_v57  ;;  %3893 = vst [vmem:[%s16340_s5 + $0x620] sm:$0xff] %v2869_v19  ;;  %v2833_v54 = vmul.f32 %v4986_v44, %v10379_v46  ;;  %v2834_v56 = vmul.f32 %v4987_v55, %v10379_v46  ;;  %v4988_v10 = vld [vmem:[%s16335_s0 + $0x510] sm:$0xff]  ;;  %v4989_v57 = vld [vmem:[%s16335_s0 + $0x518] sm:$0xff] }
 0x47e   :  { %3894 = vst [vmem:[%s16340_s5 + $0x628] sm:$0xff] %v2870_v59  ;;  %3895 = vst [vmem:[%s16340_s5 + $0x630] sm:$0xff] %v2871_v62  ;;  %v2835_v15 = vmul.f32 %v4988_v10, %v10379_v46  ;;  %v2836_v58 = vmul.f32 %v4989_v57, %v10379_v46  ;;  %v4990_v19 = vld [vmem:[%s16335_s0 + $0x520] sm:$0xff]  ;;  %v4991_v59 = vld [vmem:[%s16335_s0 + $0x528] sm:$0xff] }
 0x47f   :  { %3896 = vst [vmem:[%s16340_s5 + $0x638] sm:$0xff] %v2872_v43  ;;  %3897 = vst [vmem:[%s16340_s5 + $0x640] sm:$0xff] %v2873_v1  ;;  %v2837_v37 = vmul.f32 %v4990_v19, %v10379_v46  ;;  %v2838_v61 = vmul.f32 %v4991_v59, %v10379_v46  ;;  %v4992_v62 = vld [vmem:[%s16335_s0 + $0x530] sm:$0xff]  ;;  %v4993_v43 = vld [vmem:[%s16335_s0 + $0x538] sm:$0xff] }
 0x480   :  { %3898 = vst [vmem:[%s16340_s5 + $0x648] sm:$0xff] %v2874_v11  ;;  %3899 = vst [vmem:[%s16340_s5 + $0x650] sm:$0xff] %v2875_v14  ;;  %v2839_v63 = vmul.f32 %v4992_v62, %v10379_v46  ;;  %v2840_v60 = vmul.f32 %v4993_v43, %v10379_v46  ;;  %v4994_v1 = vld [vmem:[%s16335_s0 + $0x540] sm:$0xff]  ;;  %v4995_v11 = vld [vmem:[%s16335_s0 + $0x548] sm:$0xff] }
 0x481   :  { %3900 = vst [vmem:[%s16340_s5 + $0x658] sm:$0xff] %v2876_v17  ;;  %3901 = vst [vmem:[%s16340_s5 + $0x660] sm:$0xff] %v2877_v18  ;;  %v2841_v7 = vmul.f32 %v4994_v1, %v10379_v46  ;;  %v2842_v13 = vmul.f32 %v4995_v11, %v10379_v46  ;;  %v4996_v14 = vld [vmem:[%s16335_s0 + $0x550] sm:$0xff]  ;;  %v4997_v17 = vld [vmem:[%s16335_s0 + $0x558] sm:$0xff] }
 0x482   :  { %3902 = vst [vmem:[%s16340_s5 + $0x668] sm:$0xff] %v2878_v3  ;;  %3903 = vst [vmem:[%s16340_s5 + $0x670] sm:$0xff] %v2879_v22  ;;  %v2843_v16 = vmul.f32 %v4996_v14, %v10379_v46  ;;  %v2844_v0 = vmul.f32 %v4997_v17, %v10379_v46  ;;  %v4998_v18 = vld [vmem:[%s16335_s0 + $0x560] sm:$0xff]  ;;  %v4999_v3 = vld [vmem:[%s16335_s0 + $0x568] sm:$0xff] }
 0x483   :  { %3904 = vst [vmem:[%s16340_s5 + $0x678] sm:$0xff] %v2880_v24  ;;  %3905 = vst [vmem:[%s16340_s5 + $0x680] sm:$0xff] %v2881_v26  ;;  %v2845_v20 = vmul.f32 %v4998_v18, %v10379_v46  ;;  %v2846_v21 = vmul.f32 %v4999_v3, %v10379_v46  ;;  %v5000_v22 = vld [vmem:[%s16335_s0 + $0x570] sm:$0xff]  ;;  %v5001_v24 = vld [vmem:[%s16335_s0 + $0x578] sm:$0xff] }
 0x484   :  { %3906 = vst [vmem:[%s16340_s5 + $0x688] sm:$0xff] %v2882_v4  ;;  %3907 = vst [vmem:[%s16340_s5 + $0x690] sm:$0xff] %v2883_v28  ;;  %v2847_v23 = vmul.f32 %v5000_v22, %v10379_v46  ;;  %v2848_v25 = vmul.f32 %v5001_v24, %v10379_v46  ;;  %v5002_v26 = vld [vmem:[%s16335_s0 + $0x580] sm:$0xff]  ;;  %v5003_v4 = vld [vmem:[%s16335_s0 + $0x588] sm:$0xff] }
 0x485   :  { %3908 = vst [vmem:[%s16340_s5 + $0x698] sm:$0xff] %v2884_v30  ;;  %3909 = vst [vmem:[%s16340_s5 + $0x6a0] sm:$0xff] %v2885_v32  ;;  %v2849_v2 = vmul.f32 %v5002_v26, %v10379_v46  ;;  %v2850_v27 = vmul.f32 %v5003_v4, %v10379_v46  ;;  %v5004_v28 = vld [vmem:[%s16335_s0 + $0x590] sm:$0xff]  ;;  %v5005_v30 = vld [vmem:[%s16335_s0 + $0x598] sm:$0xff] }
 0x486   :  { %3910 = vst [vmem:[%s16340_s5 + $0x6a8] sm:$0xff] %v2886_v35  ;;  %3911 = vst [vmem:[%s16340_s5 + $0x6b0] sm:$0xff] %v2887_v41  ;;  %v2851_v29 = vmul.f32 %v5004_v28, %v10379_v46  ;;  %v2852_v31 = vmul.f32 %v5005_v30, %v10379_v46  ;;  %v5006_v32 = vld [vmem:[%s16335_s0 + $0x5a0] sm:$0xff]  ;;  %v5007_v35 = vld [vmem:[%s16335_s0 + $0x5a8] sm:$0xff] }
 0x487   :  { %3912 = vst [vmem:[%s16340_s5 + $0x6b8] sm:$0xff] %v2888_v45  ;;  %3913 = vst [vmem:[%s16340_s5 + $0x6c0] sm:$0xff] %v2889_v47  ;;  %v2853_v33 = vmul.f32 %v5006_v32, %v10379_v46  ;;  %v2854_v39 = vmul.f32 %v5007_v35, %v10379_v46  ;;  %v5008_v41 = vld [vmem:[%s16335_s0 + $0x5b0] sm:$0xff]  ;;  %v5009_v45 = vld [vmem:[%s16335_s0 + $0x5b8] sm:$0xff]  ;;  %v10605_v47 = vpop.permute.xlu0 %2576 }
 0x488   :  { %3914 = vst [vmem:[%s16340_s5 + $0x6c8] sm:$0xff] %v2890_v48  ;;  %3915 = vst [vmem:[%s16340_s5 + $0x6d0] sm:$0xff] %v2891_v49  ;;  %v2855_v38 = vmul.f32 %v5008_v41, %v10379_v46  ;;  %v2856_v6 = vmul.f32 %v5009_v45, %v10379_v46  ;;  %v5010_v5 = vld [vmem:[%s16335_s0 + $0x5c0] sm:$0xff]  ;;  %v5011_v8 = vld [vmem:[%s16335_s0 + $0x5c8] sm:$0xff] }
 0x489   :  { %3916 = vst [vmem:[%s16340_s5 + $0x6d8] sm:$0xff] %v2892_v50  ;;  %3917 = vst [vmem:[%s16340_s5 + $0x6e0] sm:$0xff] %v2893_v51  ;;  %v2857_v48 = vmul.f32 %v5010_v5, %v10379_v46  ;;  %v2858_v49 = vmul.f32 %v5011_v8, %v10379_v46  ;;  %v5012_v12 = vld [vmem:[%s16335_s0 + $0x5d0] sm:$0xff]  ;;  %v5013_v34 = vld [vmem:[%s16335_s0 + $0x5d8] sm:$0xff] }
 0x48a   :  { %3918 = vst [vmem:[%s16340_s5 + $0x6e8] sm:$0xff] %v2894_v9  ;;  %3919 = vst [vmem:[%s16340_s5 + $0x6f0] sm:$0xff] %v2895_v52  ;;  %v2859_v50 = vmul.f32 %v5012_v12, %v10379_v46  ;;  %v2860_v51 = vmul.f32 %v5013_v34, %v10379_v46  ;;  %v5014_v36 = vld [vmem:[%s16335_s0 + $0x5e0] sm:$0xff]  ;;  %v5015_v40 = vld [vmem:[%s16335_s0 + $0x5e8] sm:$0xff] }
 0x48b   :  { %3920 = vst [vmem:[%s16340_s5 + $0x6f8] sm:$0xff] %v2896_v53  ;;  %3857 = vst [vmem:[%s16340_s5 + $0x500] sm:$0xff] %v2833_v54  ;;  %v2861_v9 = vmul.f32 %v5014_v36, %v10379_v46  ;;  %v2862_v52 = vmul.f32 %v5015_v40, %v10379_v46  ;;  %v5016_v42 = vld [vmem:[%s16335_s0 + $0x5f0] sm:$0xff]  ;;  %v5017_v44 = vld [vmem:[%s16335_s0 + $0x5f8] sm:$0xff] }
 0x48c   :  { %3858 = vst [vmem:[%s16340_s5 + $0x508] sm:$0xff] %v2834_v56  ;;  %3859 = vst [vmem:[%s16340_s5 + $0x510] sm:$0xff] %v2835_v15  ;;  %v2863_v53 = vmul.f32 %v5016_v42, %v10379_v46  ;;  %v2864_v54 = vmul.f32 %v5017_v44, %v10379_v46  ;;  %v5018_v46 = vld [vmem:[%s16335_s0 + $0x800] sm:$0xff]  ;;  %v5019_v56 = vld [vmem:[%s16335_s0 + $0x808] sm:$0xff] }
 0x48d   :  { %3860 = vst [vmem:[%s16340_s5 + $0x518] sm:$0xff] %v2836_v58  ;;  %3861 = vst [vmem:[%s16340_s5 + $0x520] sm:$0xff] %v2837_v37  ;;  %v2929_v55 = vmul.f32 %v5018_v46, %v10605_v47  ;;  %v2930_v10 = vmul.f32 %v5019_v56, %v10605_v47  ;;  %v5020_v15 = vld [vmem:[%s16335_s0 + $0x810] sm:$0xff]  ;;  %v5021_v58 = vld [vmem:[%s16335_s0 + $0x818] sm:$0xff] }
 0x48e   :  { %3862 = vst [vmem:[%s16340_s5 + $0x528] sm:$0xff] %v2838_v61  ;;  %3863 = vst [vmem:[%s16340_s5 + $0x530] sm:$0xff] %v2839_v63  ;;  %v2931_v57 = vmul.f32 %v5020_v15, %v10605_v47  ;;  %v2932_v19 = vmul.f32 %v5021_v58, %v10605_v47  ;;  %v5022_v37 = vld [vmem:[%s16335_s0 + $0x820] sm:$0xff]  ;;  %v5023_v61 = vld [vmem:[%s16335_s0 + $0x828] sm:$0xff] }
 0x48f   :  { %3864 = vst [vmem:[%s16340_s5 + $0x538] sm:$0xff] %v2840_v60  ;;  %3865 = vst [vmem:[%s16340_s5 + $0x540] sm:$0xff] %v2841_v7  ;;  %v2933_v59 = vmul.f32 %v5022_v37, %v10605_v47  ;;  %v2934_v62 = vmul.f32 %v5023_v61, %v10605_v47  ;;  %v5024_v63 = vld [vmem:[%s16335_s0 + $0x830] sm:$0xff]  ;;  %v5025_v60 = vld [vmem:[%s16335_s0 + $0x838] sm:$0xff] }
 0x490   :  { %3866 = vst [vmem:[%s16340_s5 + $0x548] sm:$0xff] %v2842_v13  ;;  %3867 = vst [vmem:[%s16340_s5 + $0x550] sm:$0xff] %v2843_v16  ;;  %v2935_v43 = vmul.f32 %v5024_v63, %v10605_v47  ;;  %v2936_v1 = vmul.f32 %v5025_v60, %v10605_v47  ;;  %v5026_v7 = vld [vmem:[%s16335_s0 + $0x840] sm:$0xff]  ;;  %v5027_v13 = vld [vmem:[%s16335_s0 + $0x848] sm:$0xff] }
 0x491   :  { %3868 = vst [vmem:[%s16340_s5 + $0x558] sm:$0xff] %v2844_v0  ;;  %3869 = vst [vmem:[%s16340_s5 + $0x560] sm:$0xff] %v2845_v20  ;;  %v2937_v11 = vmul.f32 %v5026_v7, %v10605_v47  ;;  %v2938_v14 = vmul.f32 %v5027_v13, %v10605_v47  ;;  %v5028_v16 = vld [vmem:[%s16335_s0 + $0x850] sm:$0xff]  ;;  %v5029_v0 = vld [vmem:[%s16335_s0 + $0x858] sm:$0xff] }
 0x492   :  { %3870 = vst [vmem:[%s16340_s5 + $0x568] sm:$0xff] %v2846_v21  ;;  %3871 = vst [vmem:[%s16340_s5 + $0x570] sm:$0xff] %v2847_v23  ;;  %v2939_v17 = vmul.f32 %v5028_v16, %v10605_v47  ;;  %v2940_v18 = vmul.f32 %v5029_v0, %v10605_v47  ;;  %v5030_v20 = vld [vmem:[%s16335_s0 + $0x860] sm:$0xff]  ;;  %v5031_v21 = vld [vmem:[%s16335_s0 + $0x868] sm:$0xff] }
 0x493   :  { %3872 = vst [vmem:[%s16340_s5 + $0x578] sm:$0xff] %v2848_v25  ;;  %3873 = vst [vmem:[%s16340_s5 + $0x580] sm:$0xff] %v2849_v2  ;;  %v2941_v3 = vmul.f32 %v5030_v20, %v10605_v47  ;;  %v2942_v22 = vmul.f32 %v5031_v21, %v10605_v47  ;;  %v5032_v23 = vld [vmem:[%s16335_s0 + $0x870] sm:$0xff]  ;;  %v5033_v25 = vld [vmem:[%s16335_s0 + $0x878] sm:$0xff] }
 0x494   :  { %3874 = vst [vmem:[%s16340_s5 + $0x588] sm:$0xff] %v2850_v27  ;;  %3875 = vst [vmem:[%s16340_s5 + $0x590] sm:$0xff] %v2851_v29  ;;  %v2943_v24 = vmul.f32 %v5032_v23, %v10605_v47  ;;  %v2944_v26 = vmul.f32 %v5033_v25, %v10605_v47  ;;  %v5034_v2 = vld [vmem:[%s16335_s0 + $0x880] sm:$0xff]  ;;  %v5035_v27 = vld [vmem:[%s16335_s0 + $0x888] sm:$0xff] }
 0x495   :  { %3876 = vst [vmem:[%s16340_s5 + $0x598] sm:$0xff] %v2852_v31  ;;  %3877 = vst [vmem:[%s16340_s5 + $0x5a0] sm:$0xff] %v2853_v33  ;;  %v2945_v4 = vmul.f32 %v5034_v2, %v10605_v47  ;;  %v2946_v28 = vmul.f32 %v5035_v27, %v10605_v47  ;;  %v5036_v29 = vld [vmem:[%s16335_s0 + $0x890] sm:$0xff]  ;;  %v5037_v31 = vld [vmem:[%s16335_s0 + $0x898] sm:$0xff] }
 0x496   :  { %3878 = vst [vmem:[%s16340_s5 + $0x5a8] sm:$0xff] %v2854_v39  ;;  %3879 = vst [vmem:[%s16340_s5 + $0x5b0] sm:$0xff] %v2855_v38  ;;  %v2947_v30 = vmul.f32 %v5036_v29, %v10605_v47  ;;  %v2948_v32 = vmul.f32 %v5037_v31, %v10605_v47  ;;  %v5038_v33 = vld [vmem:[%s16335_s0 + $0x8a0] sm:$0xff]  ;;  %v5039_v39 = vld [vmem:[%s16335_s0 + $0x8a8] sm:$0xff] }
 0x497   :  { %3880 = vst [vmem:[%s16340_s5 + $0x5b8] sm:$0xff] %v2856_v6  ;;  %3881 = vst [vmem:[%s16340_s5 + $0x5c0] sm:$0xff] %v2857_v48  ;;  %v2949_v35 = vmul.f32 %v5038_v33, %v10605_v47  ;;  %v2950_v41 = vmul.f32 %v5039_v39, %v10605_v47  ;;  %v5040_v38 = vld [vmem:[%s16335_s0 + $0x8b0] sm:$0xff]  ;;  %v5041_v6 = vld [vmem:[%s16335_s0 + $0x8b8] sm:$0xff]  ;;  %v10831_v48 = vpop.permute.xlu1 %2572 }
 0x498   :  { %3882 = vst [vmem:[%s16340_s5 + $0x5c8] sm:$0xff] %v2858_v49  ;;  %3883 = vst [vmem:[%s16340_s5 + $0x5d0] sm:$0xff] %v2859_v50  ;;  %v2951_v45 = vmul.f32 %v5040_v38, %v10605_v47  ;;  %v2952_v5 = vmul.f32 %v5041_v6, %v10605_v47  ;;  %v5042_v8 = vld [vmem:[%s16335_s0 + $0x8c0] sm:$0xff]  ;;  %v5043_v12 = vld [vmem:[%s16335_s0 + $0x8c8] sm:$0xff] }
 0x499   :  { %3884 = vst [vmem:[%s16340_s5 + $0x5d8] sm:$0xff] %v2860_v51  ;;  %3885 = vst [vmem:[%s16340_s5 + $0x5e0] sm:$0xff] %v2861_v9  ;;  %v2953_v49 = vmul.f32 %v5042_v8, %v10605_v47  ;;  %v2954_v50 = vmul.f32 %v5043_v12, %v10605_v47  ;;  %v5044_v34 = vld [vmem:[%s16335_s0 + $0x8d0] sm:$0xff]  ;;  %v5045_v36 = vld [vmem:[%s16335_s0 + $0x8d8] sm:$0xff] }
 0x49a   :  { %3886 = vst [vmem:[%s16340_s5 + $0x5e8] sm:$0xff] %v2862_v52  ;;  %3887 = vst [vmem:[%s16340_s5 + $0x5f0] sm:$0xff] %v2863_v53  ;;  %v2955_v51 = vmul.f32 %v5044_v34, %v10605_v47  ;;  %v2956_v9 = vmul.f32 %v5045_v36, %v10605_v47  ;;  %v5046_v40 = vld [vmem:[%s16335_s0 + $0x8e0] sm:$0xff]  ;;  %v5047_v42 = vld [vmem:[%s16335_s0 + $0x8e8] sm:$0xff] }
 0x49b   :  { %3888 = vst [vmem:[%s16340_s5 + $0x5f8] sm:$0xff] %v2864_v54  ;;  %3953 = vst [vmem:[%s16340_s5 + $0x800] sm:$0xff] %v2929_v55  ;;  %v2957_v52 = vmul.f32 %v5046_v40, %v10605_v47  ;;  %v2958_v53 = vmul.f32 %v5047_v42, %v10605_v47  ;;  %v5048_v44 = vld [vmem:[%s16335_s0 + $0x8f0] sm:$0xff]  ;;  %v5049_v46 = vld [vmem:[%s16335_s0 + $0x8f8] sm:$0xff] }
 0x49c   :  { %3954 = vst [vmem:[%s16340_s5 + $0x808] sm:$0xff] %v2930_v10  ;;  %3955 = vst [vmem:[%s16340_s5 + $0x810] sm:$0xff] %v2931_v57  ;;  %v2959_v54 = vmul.f32 %v5048_v44, %v10605_v47  ;;  %v2960_v55 = vmul.f32 %v5049_v46, %v10605_v47  ;;  %v5050_v47 = vld [vmem:[%s16335_s0 + $0x700] sm:$0xff]  ;;  %v5051_v10 = vld [vmem:[%s16335_s0 + $0x708] sm:$0xff] }
 0x49d   :  { %3956 = vst [vmem:[%s16340_s5 + $0x818] sm:$0xff] %v2932_v19  ;;  %3957 = vst [vmem:[%s16340_s5 + $0x820] sm:$0xff] %v2933_v59  ;;  %v2897_v56 = vmul.f32 %v5050_v47, %v10831_v48  ;;  %v2898_v15 = vmul.f32 %v5051_v10, %v10831_v48  ;;  %v5052_v57 = vld [vmem:[%s16335_s0 + $0x710] sm:$0xff]  ;;  %v5053_v19 = vld [vmem:[%s16335_s0 + $0x718] sm:$0xff] }
 0x49e   :  { %3958 = vst [vmem:[%s16340_s5 + $0x828] sm:$0xff] %v2934_v62  ;;  %3959 = vst [vmem:[%s16340_s5 + $0x830] sm:$0xff] %v2935_v43  ;;  %v2899_v58 = vmul.f32 %v5052_v57, %v10831_v48  ;;  %v2900_v37 = vmul.f32 %v5053_v19, %v10831_v48  ;;  %v5054_v59 = vld [vmem:[%s16335_s0 + $0x720] sm:$0xff]  ;;  %v5055_v62 = vld [vmem:[%s16335_s0 + $0x728] sm:$0xff] }
 0x49f   :  { %3960 = vst [vmem:[%s16340_s5 + $0x838] sm:$0xff] %v2936_v1  ;;  %3961 = vst [vmem:[%s16340_s5 + $0x840] sm:$0xff] %v2937_v11  ;;  %v2901_v61 = vmul.f32 %v5054_v59, %v10831_v48  ;;  %v2902_v63 = vmul.f32 %v5055_v62, %v10831_v48  ;;  %v5056_v43 = vld [vmem:[%s16335_s0 + $0x730] sm:$0xff]  ;;  %v5057_v1 = vld [vmem:[%s16335_s0 + $0x738] sm:$0xff] }
 0x4a0   :  { %3962 = vst [vmem:[%s16340_s5 + $0x848] sm:$0xff] %v2938_v14  ;;  %3963 = vst [vmem:[%s16340_s5 + $0x850] sm:$0xff] %v2939_v17  ;;  %v2903_v60 = vmul.f32 %v5056_v43, %v10831_v48  ;;  %v2904_v7 = vmul.f32 %v5057_v1, %v10831_v48  ;;  %v5058_v11 = vld [vmem:[%s16335_s0 + $0x740] sm:$0xff]  ;;  %v5059_v14 = vld [vmem:[%s16335_s0 + $0x748] sm:$0xff] }
 0x4a1   :  { %3964 = vst [vmem:[%s16340_s5 + $0x858] sm:$0xff] %v2940_v18  ;;  %3965 = vst [vmem:[%s16340_s5 + $0x860] sm:$0xff] %v2941_v3  ;;  %v2905_v13 = vmul.f32 %v5058_v11, %v10831_v48  ;;  %v2906_v16 = vmul.f32 %v5059_v14, %v10831_v48  ;;  %v5060_v17 = vld [vmem:[%s16335_s0 + $0x750] sm:$0xff]  ;;  %v5061_v18 = vld [vmem:[%s16335_s0 + $0x758] sm:$0xff] }
 0x4a2   :  { %3966 = vst [vmem:[%s16340_s5 + $0x868] sm:$0xff] %v2942_v22  ;;  %3967 = vst [vmem:[%s16340_s5 + $0x870] sm:$0xff] %v2943_v24  ;;  %v2907_v0 = vmul.f32 %v5060_v17, %v10831_v48  ;;  %v2908_v20 = vmul.f32 %v5061_v18, %v10831_v48  ;;  %v5062_v3 = vld [vmem:[%s16335_s0 + $0x760] sm:$0xff]  ;;  %v5063_v22 = vld [vmem:[%s16335_s0 + $0x768] sm:$0xff] }
 0x4a3   :  { %3968 = vst [vmem:[%s16340_s5 + $0x878] sm:$0xff] %v2944_v26  ;;  %3969 = vst [vmem:[%s16340_s5 + $0x880] sm:$0xff] %v2945_v4  ;;  %v2909_v21 = vmul.f32 %v5062_v3, %v10831_v48  ;;  %v2910_v23 = vmul.f32 %v5063_v22, %v10831_v48  ;;  %v5064_v24 = vld [vmem:[%s16335_s0 + $0x770] sm:$0xff]  ;;  %v5065_v26 = vld [vmem:[%s16335_s0 + $0x778] sm:$0xff] }
 0x4a4   :  { %3970 = vst [vmem:[%s16340_s5 + $0x888] sm:$0xff] %v2946_v28  ;;  %3971 = vst [vmem:[%s16340_s5 + $0x890] sm:$0xff] %v2947_v30  ;;  %v2911_v25 = vmul.f32 %v5064_v24, %v10831_v48  ;;  %v2912_v2 = vmul.f32 %v5065_v26, %v10831_v48  ;;  %v5066_v4 = vld [vmem:[%s16335_s0 + $0x780] sm:$0xff]  ;;  %v5067_v28 = vld [vmem:[%s16335_s0 + $0x788] sm:$0xff] }
 0x4a5   :  { %3972 = vst [vmem:[%s16340_s5 + $0x898] sm:$0xff] %v2948_v32  ;;  %3973 = vst [vmem:[%s16340_s5 + $0x8a0] sm:$0xff] %v2949_v35  ;;  %v2913_v27 = vmul.f32 %v5066_v4, %v10831_v48  ;;  %v2914_v29 = vmul.f32 %v5067_v28, %v10831_v48  ;;  %v5068_v30 = vld [vmem:[%s16335_s0 + $0x790] sm:$0xff]  ;;  %v5069_v32 = vld [vmem:[%s16335_s0 + $0x798] sm:$0xff] }
 0x4a6   :  { %3974 = vst [vmem:[%s16340_s5 + $0x8a8] sm:$0xff] %v2950_v41  ;;  %3975 = vst [vmem:[%s16340_s5 + $0x8b0] sm:$0xff] %v2951_v45  ;;  %v2915_v31 = vmul.f32 %v5068_v30, %v10831_v48  ;;  %v2916_v33 = vmul.f32 %v5069_v32, %v10831_v48  ;;  %v5070_v35 = vld [vmem:[%s16335_s0 + $0x7a0] sm:$0xff]  ;;  %v5071_v41 = vld [vmem:[%s16335_s0 + $0x7a8] sm:$0xff] }
 0x4a7   :  { %3976 = vst [vmem:[%s16340_s5 + $0x8b8] sm:$0xff] %v2952_v5  ;;  %3977 = vst [vmem:[%s16340_s5 + $0x8c0] sm:$0xff] %v2953_v49  ;;  %v2917_v39 = vmul.f32 %v5070_v35, %v10831_v48  ;;  %v2918_v38 = vmul.f32 %v5071_v41, %v10831_v48  ;;  %v5072_v45 = vld [vmem:[%s16335_s0 + $0x7b0] sm:$0xff]  ;;  %v5073_v5 = vld [vmem:[%s16335_s0 + $0x7b8] sm:$0xff]  ;;  %v11057_v49 = vpop.permute.xlu0 %2584 }
 0x4a8   :  { %3978 = vst [vmem:[%s16340_s5 + $0x8c8] sm:$0xff] %v2954_v50  ;;  %3979 = vst [vmem:[%s16340_s5 + $0x8d0] sm:$0xff] %v2955_v51  ;;  %v2919_v6 = vmul.f32 %v5072_v45, %v10831_v48  ;;  %v2920_v8 = vmul.f32 %v5073_v5, %v10831_v48  ;;  %v5074_v12 = vld [vmem:[%s16335_s0 + $0x7c0] sm:$0xff]  ;;  %v5075_v34 = vld [vmem:[%s16335_s0 + $0x7c8] sm:$0xff] }
 0x4a9   :  { %3980 = vst [vmem:[%s16340_s5 + $0x8d8] sm:$0xff] %v2956_v9  ;;  %3981 = vst [vmem:[%s16340_s5 + $0x8e0] sm:$0xff] %v2957_v52  ;;  %v2921_v50 = vmul.f32 %v5074_v12, %v10831_v48  ;;  %v2922_v51 = vmul.f32 %v5075_v34, %v10831_v48  ;;  %v5076_v36 = vld [vmem:[%s16335_s0 + $0x7d0] sm:$0xff]  ;;  %v5077_v40 = vld [vmem:[%s16335_s0 + $0x7d8] sm:$0xff] }
 0x4aa   :  { %3982 = vst [vmem:[%s16340_s5 + $0x8e8] sm:$0xff] %v2958_v53  ;;  %3983 = vst [vmem:[%s16340_s5 + $0x8f0] sm:$0xff] %v2959_v54  ;;  %v2923_v9 = vmul.f32 %v5076_v36, %v10831_v48  ;;  %v2924_v52 = vmul.f32 %v5077_v40, %v10831_v48  ;;  %v5078_v42 = vld [vmem:[%s16335_s0 + $0x7e0] sm:$0xff]  ;;  %v5079_v44 = vld [vmem:[%s16335_s0 + $0x7e8] sm:$0xff] }
 0x4ab   :  { %3984 = vst [vmem:[%s16340_s5 + $0x8f8] sm:$0xff] %v2960_v55  ;;  %3921 = vst [vmem:[%s16340_s5 + $0x700] sm:$0xff] %v2897_v56  ;;  %v2925_v53 = vmul.f32 %v5078_v42, %v10831_v48  ;;  %v2926_v54 = vmul.f32 %v5079_v44, %v10831_v48  ;;  %v5080_v46 = vld [vmem:[%s16335_s0 + $0x7f0] sm:$0xff]  ;;  %v5081_v47 = vld [vmem:[%s16335_s0 + $0x7f8] sm:$0xff] }
 0x4ac   :  { %3922 = vst [vmem:[%s16340_s5 + $0x708] sm:$0xff] %v2898_v15  ;;  %3923 = vst [vmem:[%s16340_s5 + $0x710] sm:$0xff] %v2899_v58  ;;  %v2927_v55 = vmul.f32 %v5080_v46, %v10831_v48  ;;  %v2928_v56 = vmul.f32 %v5081_v47, %v10831_v48  ;;  %v5082_v48 = vld [vmem:[%s16335_s0 + $0xa00] sm:$0xff]  ;;  %v5083_v15 = vld [vmem:[%s16335_s0 + $0xa08] sm:$0xff] }
 0x4ad   :  { %3924 = vst [vmem:[%s16340_s5 + $0x718] sm:$0xff] %v2900_v37  ;;  %3925 = vst [vmem:[%s16340_s5 + $0x720] sm:$0xff] %v2901_v61  ;;  %v2993_v10 = vmul.f32 %v5082_v48, %v11057_v49  ;;  %v2994_v57 = vmul.f32 %v5083_v15, %v11057_v49  ;;  %v5084_v58 = vld [vmem:[%s16335_s0 + $0xa10] sm:$0xff]  ;;  %v5085_v37 = vld [vmem:[%s16335_s0 + $0xa18] sm:$0xff] }
 0x4ae   :  { %3926 = vst [vmem:[%s16340_s5 + $0x728] sm:$0xff] %v2902_v63  ;;  %3927 = vst [vmem:[%s16340_s5 + $0x730] sm:$0xff] %v2903_v60  ;;  %v2995_v19 = vmul.f32 %v5084_v58, %v11057_v49  ;;  %v2996_v59 = vmul.f32 %v5085_v37, %v11057_v49  ;;  %v5086_v61 = vld [vmem:[%s16335_s0 + $0xa20] sm:$0xff]  ;;  %v5087_v63 = vld [vmem:[%s16335_s0 + $0xa28] sm:$0xff] }
 0x4af   :  { %3928 = vst [vmem:[%s16340_s5 + $0x738] sm:$0xff] %v2904_v7  ;;  %3929 = vst [vmem:[%s16340_s5 + $0x740] sm:$0xff] %v2905_v13  ;;  %v2997_v62 = vmul.f32 %v5086_v61, %v11057_v49  ;;  %v2998_v43 = vmul.f32 %v5087_v63, %v11057_v49  ;;  %v5088_v60 = vld [vmem:[%s16335_s0 + $0xa30] sm:$0xff]  ;;  %v5089_v7 = vld [vmem:[%s16335_s0 + $0xa38] sm:$0xff] }
 0x4b0   :  { %3930 = vst [vmem:[%s16340_s5 + $0x748] sm:$0xff] %v2906_v16  ;;  %3931 = vst [vmem:[%s16340_s5 + $0x750] sm:$0xff] %v2907_v0  ;;  %v2999_v1 = vmul.f32 %v5088_v60, %v11057_v49  ;;  %v3000_v11 = vmul.f32 %v5089_v7, %v11057_v49  ;;  %v5090_v13 = vld [vmem:[%s16335_s0 + $0xa40] sm:$0xff]  ;;  %v5091_v16 = vld [vmem:[%s16335_s0 + $0xa48] sm:$0xff] }
 0x4b1   :  { %3932 = vst [vmem:[%s16340_s5 + $0x758] sm:$0xff] %v2908_v20  ;;  %3933 = vst [vmem:[%s16340_s5 + $0x760] sm:$0xff] %v2909_v21  ;;  %v3001_v14 = vmul.f32 %v5090_v13, %v11057_v49  ;;  %v3002_v17 = vmul.f32 %v5091_v16, %v11057_v49  ;;  %v5092_v0 = vld [vmem:[%s16335_s0 + $0xa50] sm:$0xff]  ;;  %v5093_v20 = vld [vmem:[%s16335_s0 + $0xa58] sm:$0xff] }
 0x4b2   :  { %3934 = vst [vmem:[%s16340_s5 + $0x768] sm:$0xff] %v2910_v23  ;;  %3935 = vst [vmem:[%s16340_s5 + $0x770] sm:$0xff] %v2911_v25  ;;  %v3003_v18 = vmul.f32 %v5092_v0, %v11057_v49  ;;  %v3004_v3 = vmul.f32 %v5093_v20, %v11057_v49  ;;  %v5094_v21 = vld [vmem:[%s16335_s0 + $0xa60] sm:$0xff]  ;;  %v5095_v23 = vld [vmem:[%s16335_s0 + $0xa68] sm:$0xff] }
 0x4b3   :  { %3936 = vst [vmem:[%s16340_s5 + $0x778] sm:$0xff] %v2912_v2  ;;  %3937 = vst [vmem:[%s16340_s5 + $0x780] sm:$0xff] %v2913_v27  ;;  %v3005_v22 = vmul.f32 %v5094_v21, %v11057_v49  ;;  %v3006_v24 = vmul.f32 %v5095_v23, %v11057_v49  ;;  %v5096_v25 = vld [vmem:[%s16335_s0 + $0xa70] sm:$0xff]  ;;  %v5097_v2 = vld [vmem:[%s16335_s0 + $0xa78] sm:$0xff] }
 0x4b4   :  { %3938 = vst [vmem:[%s16340_s5 + $0x788] sm:$0xff] %v2914_v29  ;;  %3939 = vst [vmem:[%s16340_s5 + $0x790] sm:$0xff] %v2915_v31  ;;  %v3007_v26 = vmul.f32 %v5096_v25, %v11057_v49  ;;  %v3008_v4 = vmul.f32 %v5097_v2, %v11057_v49  ;;  %v5098_v27 = vld [vmem:[%s16335_s0 + $0xa80] sm:$0xff]  ;;  %v5099_v29 = vld [vmem:[%s16335_s0 + $0xa88] sm:$0xff] }
 0x4b5   :  { %3940 = vst [vmem:[%s16340_s5 + $0x798] sm:$0xff] %v2916_v33  ;;  %3941 = vst [vmem:[%s16340_s5 + $0x7a0] sm:$0xff] %v2917_v39  ;;  %v3009_v28 = vmul.f32 %v5098_v27, %v11057_v49  ;;  %v3010_v30 = vmul.f32 %v5099_v29, %v11057_v49  ;;  %v5100_v31 = vld [vmem:[%s16335_s0 + $0xa90] sm:$0xff]  ;;  %v5101_v33 = vld [vmem:[%s16335_s0 + $0xa98] sm:$0xff] }
 0x4b6   :  { %3942 = vst [vmem:[%s16340_s5 + $0x7a8] sm:$0xff] %v2918_v38  ;;  %3943 = vst [vmem:[%s16340_s5 + $0x7b0] sm:$0xff] %v2919_v6  ;;  %v3011_v32 = vmul.f32 %v5100_v31, %v11057_v49  ;;  %v3012_v35 = vmul.f32 %v5101_v33, %v11057_v49  ;;  %v5102_v39 = vld [vmem:[%s16335_s0 + $0xaa0] sm:$0xff]  ;;  %v5103_v38 = vld [vmem:[%s16335_s0 + $0xaa8] sm:$0xff] }
 0x4b7   :  { %3944 = vst [vmem:[%s16340_s5 + $0x7b8] sm:$0xff] %v2920_v8  ;;  %3945 = vst [vmem:[%s16340_s5 + $0x7c0] sm:$0xff] %v2921_v50  ;;  %v3013_v41 = vmul.f32 %v5102_v39, %v11057_v49  ;;  %v3014_v45 = vmul.f32 %v5103_v38, %v11057_v49  ;;  %v5104_v6 = vld [vmem:[%s16335_s0 + $0xab0] sm:$0xff]  ;;  %v5105_v8 = vld [vmem:[%s16335_s0 + $0xab8] sm:$0xff]  ;;  %v11283_v50 = vpop.permute.xlu1 %2580 }
 0x4b8   :  { %3946 = vst [vmem:[%s16340_s5 + $0x7c8] sm:$0xff] %v2922_v51  ;;  %3947 = vst [vmem:[%s16340_s5 + $0x7d0] sm:$0xff] %v2923_v9  ;;  %v3015_v5 = vmul.f32 %v5104_v6, %v11057_v49  ;;  %v3016_v12 = vmul.f32 %v5105_v8, %v11057_v49  ;;  %v5106_v34 = vld [vmem:[%s16335_s0 + $0xac0] sm:$0xff]  ;;  %v5107_v36 = vld [vmem:[%s16335_s0 + $0xac8] sm:$0xff] }
 0x4b9   :  { %3948 = vst [vmem:[%s16340_s5 + $0x7d8] sm:$0xff] %v2924_v52  ;;  %3949 = vst [vmem:[%s16340_s5 + $0x7e0] sm:$0xff] %v2925_v53  ;;  %v3017_v51 = vmul.f32 %v5106_v34, %v11057_v49  ;;  %v3018_v9 = vmul.f32 %v5107_v36, %v11057_v49  ;;  %v5108_v40 = vld [vmem:[%s16335_s0 + $0xad0] sm:$0xff]  ;;  %v5109_v42 = vld [vmem:[%s16335_s0 + $0xad8] sm:$0xff] }
 0x4ba   :  { %3950 = vst [vmem:[%s16340_s5 + $0x7e8] sm:$0xff] %v2926_v54  ;;  %3951 = vst [vmem:[%s16340_s5 + $0x7f0] sm:$0xff] %v2927_v55  ;;  %v3019_v52 = vmul.f32 %v5108_v40, %v11057_v49  ;;  %v3020_v53 = vmul.f32 %v5109_v42, %v11057_v49  ;;  %v5110_v44 = vld [vmem:[%s16335_s0 + $0xae0] sm:$0xff]  ;;  %v5111_v46 = vld [vmem:[%s16335_s0 + $0xae8] sm:$0xff] }
 0x4bb   :  { %3952 = vst [vmem:[%s16340_s5 + $0x7f8] sm:$0xff] %v2928_v56  ;;  %4017 = vst [vmem:[%s16340_s5 + $0xa00] sm:$0xff] %v2993_v10  ;;  %v3021_v54 = vmul.f32 %v5110_v44, %v11057_v49  ;;  %v3022_v55 = vmul.f32 %v5111_v46, %v11057_v49  ;;  %v5112_v47 = vld [vmem:[%s16335_s0 + $0xaf0] sm:$0xff]  ;;  %v5113_v48 = vld [vmem:[%s16335_s0 + $0xaf8] sm:$0xff] }
 0x4bc   :  { %4018 = vst [vmem:[%s16340_s5 + $0xa08] sm:$0xff] %v2994_v57  ;;  %4019 = vst [vmem:[%s16340_s5 + $0xa10] sm:$0xff] %v2995_v19  ;;  %v3023_v56 = vmul.f32 %v5112_v47, %v11057_v49  ;;  %v3024_v10 = vmul.f32 %v5113_v48, %v11057_v49  ;;  %v5114_v49 = vld [vmem:[%s16335_s0 + $0x900] sm:$0xff]  ;;  %v5115_v57 = vld [vmem:[%s16335_s0 + $0x908] sm:$0xff] }
 0x4bd   :  { %4020 = vst [vmem:[%s16340_s5 + $0xa18] sm:$0xff] %v2996_v59  ;;  %4021 = vst [vmem:[%s16340_s5 + $0xa20] sm:$0xff] %v2997_v62  ;;  %v2961_v15 = vmul.f32 %v5114_v49, %v11283_v50  ;;  %v2962_v58 = vmul.f32 %v5115_v57, %v11283_v50  ;;  %v5116_v19 = vld [vmem:[%s16335_s0 + $0x910] sm:$0xff]  ;;  %v5117_v59 = vld [vmem:[%s16335_s0 + $0x918] sm:$0xff] }
 0x4be   :  { %4022 = vst [vmem:[%s16340_s5 + $0xa28] sm:$0xff] %v2998_v43  ;;  %4023 = vst [vmem:[%s16340_s5 + $0xa30] sm:$0xff] %v2999_v1  ;;  %v2963_v37 = vmul.f32 %v5116_v19, %v11283_v50  ;;  %v2964_v61 = vmul.f32 %v5117_v59, %v11283_v50  ;;  %v5118_v62 = vld [vmem:[%s16335_s0 + $0x920] sm:$0xff]  ;;  %v5119_v43 = vld [vmem:[%s16335_s0 + $0x928] sm:$0xff] }
 0x4bf   :  { %4024 = vst [vmem:[%s16340_s5 + $0xa38] sm:$0xff] %v3000_v11  ;;  %4025 = vst [vmem:[%s16340_s5 + $0xa40] sm:$0xff] %v3001_v14  ;;  %v2965_v63 = vmul.f32 %v5118_v62, %v11283_v50  ;;  %v2966_v60 = vmul.f32 %v5119_v43, %v11283_v50  ;;  %v5120_v1 = vld [vmem:[%s16335_s0 + $0x930] sm:$0xff]  ;;  %v5121_v11 = vld [vmem:[%s16335_s0 + $0x938] sm:$0xff] }
 0x4c0   :  { %4026 = vst [vmem:[%s16340_s5 + $0xa48] sm:$0xff] %v3002_v17  ;;  %4027 = vst [vmem:[%s16340_s5 + $0xa50] sm:$0xff] %v3003_v18  ;;  %v2967_v7 = vmul.f32 %v5120_v1, %v11283_v50  ;;  %v2968_v13 = vmul.f32 %v5121_v11, %v11283_v50  ;;  %v5122_v14 = vld [vmem:[%s16335_s0 + $0x940] sm:$0xff]  ;;  %v5123_v17 = vld [vmem:[%s16335_s0 + $0x948] sm:$0xff] }
 0x4c1   :  { %4028 = vst [vmem:[%s16340_s5 + $0xa58] sm:$0xff] %v3004_v3  ;;  %4029 = vst [vmem:[%s16340_s5 + $0xa60] sm:$0xff] %v3005_v22  ;;  %v2969_v16 = vmul.f32 %v5122_v14, %v11283_v50  ;;  %v2970_v0 = vmul.f32 %v5123_v17, %v11283_v50  ;;  %v5124_v18 = vld [vmem:[%s16335_s0 + $0x950] sm:$0xff]  ;;  %v5125_v3 = vld [vmem:[%s16335_s0 + $0x958] sm:$0xff] }
 0x4c2   :  { %4030 = vst [vmem:[%s16340_s5 + $0xa68] sm:$0xff] %v3006_v24  ;;  %4031 = vst [vmem:[%s16340_s5 + $0xa70] sm:$0xff] %v3007_v26  ;;  %v2971_v20 = vmul.f32 %v5124_v18, %v11283_v50  ;;  %v2972_v21 = vmul.f32 %v5125_v3, %v11283_v50  ;;  %v5126_v22 = vld [vmem:[%s16335_s0 + $0x960] sm:$0xff]  ;;  %v5127_v24 = vld [vmem:[%s16335_s0 + $0x968] sm:$0xff] }
 0x4c3   :  { %4032 = vst [vmem:[%s16340_s5 + $0xa78] sm:$0xff] %v3008_v4  ;;  %4033 = vst [vmem:[%s16340_s5 + $0xa80] sm:$0xff] %v3009_v28  ;;  %v2973_v23 = vmul.f32 %v5126_v22, %v11283_v50  ;;  %v2974_v25 = vmul.f32 %v5127_v24, %v11283_v50  ;;  %v5128_v26 = vld [vmem:[%s16335_s0 + $0x970] sm:$0xff]  ;;  %v5129_v4 = vld [vmem:[%s16335_s0 + $0x978] sm:$0xff] }
 0x4c4   :  { %4034 = vst [vmem:[%s16340_s5 + $0xa88] sm:$0xff] %v3010_v30  ;;  %4035 = vst [vmem:[%s16340_s5 + $0xa90] sm:$0xff] %v3011_v32  ;;  %v2975_v2 = vmul.f32 %v5128_v26, %v11283_v50  ;;  %v2976_v27 = vmul.f32 %v5129_v4, %v11283_v50  ;;  %v5130_v28 = vld [vmem:[%s16335_s0 + $0x980] sm:$0xff]  ;;  %v5131_v30 = vld [vmem:[%s16335_s0 + $0x988] sm:$0xff] }
 0x4c5   :  { %4036 = vst [vmem:[%s16340_s5 + $0xa98] sm:$0xff] %v3012_v35  ;;  %4037 = vst [vmem:[%s16340_s5 + $0xaa0] sm:$0xff] %v3013_v41  ;;  %v2977_v29 = vmul.f32 %v5130_v28, %v11283_v50  ;;  %v2978_v31 = vmul.f32 %v5131_v30, %v11283_v50  ;;  %v5132_v32 = vld [vmem:[%s16335_s0 + $0x990] sm:$0xff]  ;;  %v5133_v35 = vld [vmem:[%s16335_s0 + $0x998] sm:$0xff] }
 0x4c6   :  { %4038 = vst [vmem:[%s16340_s5 + $0xaa8] sm:$0xff] %v3014_v45  ;;  %4039 = vst [vmem:[%s16340_s5 + $0xab0] sm:$0xff] %v3015_v5  ;;  %v2979_v33 = vmul.f32 %v5132_v32, %v11283_v50  ;;  %v2980_v39 = vmul.f32 %v5133_v35, %v11283_v50  ;;  %v5134_v41 = vld [vmem:[%s16335_s0 + $0x9a0] sm:$0xff]  ;;  %v5135_v45 = vld [vmem:[%s16335_s0 + $0x9a8] sm:$0xff] }
 0x4c7   :  { %4040 = vst [vmem:[%s16340_s5 + $0xab8] sm:$0xff] %v3016_v12  ;;  %4041 = vst [vmem:[%s16340_s5 + $0xac0] sm:$0xff] %v3017_v51  ;;  %v2981_v38 = vmul.f32 %v5134_v41, %v11283_v50  ;;  %v2982_v6 = vmul.f32 %v5135_v45, %v11283_v50  ;;  %v5136_v5 = vld [vmem:[%s16335_s0 + $0x9b0] sm:$0xff]  ;;  %v5137_v12 = vld [vmem:[%s16335_s0 + $0x9b8] sm:$0xff]  ;;  %v11509_v51 = vpop.permute.xlu0 %2592 }
 0x4c8   :  { %4042 = vst [vmem:[%s16340_s5 + $0xac8] sm:$0xff] %v3018_v9  ;;  %4043 = vst [vmem:[%s16340_s5 + $0xad0] sm:$0xff] %v3019_v52  ;;  %v2983_v8 = vmul.f32 %v5136_v5, %v11283_v50  ;;  %v2984_v34 = vmul.f32 %v5137_v12, %v11283_v50  ;;  %v5138_v36 = vld [vmem:[%s16335_s0 + $0x9c0] sm:$0xff]  ;;  %v5139_v40 = vld [vmem:[%s16335_s0 + $0x9c8] sm:$0xff] }
 0x4c9   :  { %4044 = vst [vmem:[%s16340_s5 + $0xad8] sm:$0xff] %v3020_v53  ;;  %4045 = vst [vmem:[%s16340_s5 + $0xae0] sm:$0xff] %v3021_v54  ;;  %v2985_v9 = vmul.f32 %v5138_v36, %v11283_v50  ;;  %v2986_v52 = vmul.f32 %v5139_v40, %v11283_v50  ;;  %v5140_v42 = vld [vmem:[%s16335_s0 + $0x9d0] sm:$0xff]  ;;  %v5141_v44 = vld [vmem:[%s16335_s0 + $0x9d8] sm:$0xff] }
 0x4ca   :  { %4046 = vst [vmem:[%s16340_s5 + $0xae8] sm:$0xff] %v3022_v55  ;;  %4047 = vst [vmem:[%s16340_s5 + $0xaf0] sm:$0xff] %v3023_v56  ;;  %v2987_v53 = vmul.f32 %v5140_v42, %v11283_v50  ;;  %v2988_v54 = vmul.f32 %v5141_v44, %v11283_v50  ;;  %v5142_v46 = vld [vmem:[%s16335_s0 + $0x9e0] sm:$0xff]  ;;  %v5143_v47 = vld [vmem:[%s16335_s0 + $0x9e8] sm:$0xff] }
 0x4cb   :  { %4048 = vst [vmem:[%s16340_s5 + $0xaf8] sm:$0xff] %v3024_v10  ;;  %3985 = vst [vmem:[%s16340_s5 + $0x900] sm:$0xff] %v2961_v15  ;;  %v2989_v55 = vmul.f32 %v5142_v46, %v11283_v50  ;;  %v2990_v56 = vmul.f32 %v5143_v47, %v11283_v50  ;;  %v5144_v48 = vld [vmem:[%s16335_s0 + $0x9f0] sm:$0xff]  ;;  %v5145_v49 = vld [vmem:[%s16335_s0 + $0x9f8] sm:$0xff] }
 0x4cc   :  { %3986 = vst [vmem:[%s16340_s5 + $0x908] sm:$0xff] %v2962_v58  ;;  %3987 = vst [vmem:[%s16340_s5 + $0x910] sm:$0xff] %v2963_v37  ;;  %v2991_v10 = vmul.f32 %v5144_v48, %v11283_v50  ;;  %v2992_v15 = vmul.f32 %v5145_v49, %v11283_v50  ;;  %v5146_v50 = vld [vmem:[%s16335_s0 + $0xc00] sm:$0xff]  ;;  %v5147_v58 = vld [vmem:[%s16335_s0 + $0xc08] sm:$0xff] }
 0x4cd   :  { %3988 = vst [vmem:[%s16340_s5 + $0x918] sm:$0xff] %v2964_v61  ;;  %3989 = vst [vmem:[%s16340_s5 + $0x920] sm:$0xff] %v2965_v63  ;;  %v3057_v57 = vmul.f32 %v5146_v50, %v11509_v51  ;;  %v3058_v19 = vmul.f32 %v5147_v58, %v11509_v51  ;;  %v5148_v37 = vld [vmem:[%s16335_s0 + $0xc10] sm:$0xff]  ;;  %v5149_v61 = vld [vmem:[%s16335_s0 + $0xc18] sm:$0xff] }
 0x4ce   :  { %3990 = vst [vmem:[%s16340_s5 + $0x928] sm:$0xff] %v2966_v60  ;;  %3991 = vst [vmem:[%s16340_s5 + $0x930] sm:$0xff] %v2967_v7  ;;  %v3059_v59 = vmul.f32 %v5148_v37, %v11509_v51  ;;  %v3060_v62 = vmul.f32 %v5149_v61, %v11509_v51  ;;  %v5150_v63 = vld [vmem:[%s16335_s0 + $0xc20] sm:$0xff]  ;;  %v5151_v60 = vld [vmem:[%s16335_s0 + $0xc28] sm:$0xff] }
 0x4cf   :  { %3992 = vst [vmem:[%s16340_s5 + $0x938] sm:$0xff] %v2968_v13  ;;  %3993 = vst [vmem:[%s16340_s5 + $0x940] sm:$0xff] %v2969_v16  ;;  %v3061_v43 = vmul.f32 %v5150_v63, %v11509_v51  ;;  %v3062_v1 = vmul.f32 %v5151_v60, %v11509_v51  ;;  %v5152_v7 = vld [vmem:[%s16335_s0 + $0xc30] sm:$0xff]  ;;  %v5153_v13 = vld [vmem:[%s16335_s0 + $0xc38] sm:$0xff] }
 0x4d0   :  { %3994 = vst [vmem:[%s16340_s5 + $0x948] sm:$0xff] %v2970_v0  ;;  %3995 = vst [vmem:[%s16340_s5 + $0x950] sm:$0xff] %v2971_v20  ;;  %v3063_v11 = vmul.f32 %v5152_v7, %v11509_v51  ;;  %v3064_v14 = vmul.f32 %v5153_v13, %v11509_v51  ;;  %v5154_v16 = vld [vmem:[%s16335_s0 + $0xc40] sm:$0xff]  ;;  %v5155_v0 = vld [vmem:[%s16335_s0 + $0xc48] sm:$0xff] }
 0x4d1   :  { %3996 = vst [vmem:[%s16340_s5 + $0x958] sm:$0xff] %v2972_v21  ;;  %3997 = vst [vmem:[%s16340_s5 + $0x960] sm:$0xff] %v2973_v23  ;;  %v3065_v17 = vmul.f32 %v5154_v16, %v11509_v51  ;;  %v3066_v18 = vmul.f32 %v5155_v0, %v11509_v51  ;;  %v5156_v20 = vld [vmem:[%s16335_s0 + $0xc50] sm:$0xff]  ;;  %v5157_v21 = vld [vmem:[%s16335_s0 + $0xc58] sm:$0xff] }
 0x4d2   :  { %3998 = vst [vmem:[%s16340_s5 + $0x968] sm:$0xff] %v2974_v25  ;;  %3999 = vst [vmem:[%s16340_s5 + $0x970] sm:$0xff] %v2975_v2  ;;  %v3067_v3 = vmul.f32 %v5156_v20, %v11509_v51  ;;  %v3068_v22 = vmul.f32 %v5157_v21, %v11509_v51  ;;  %v5158_v23 = vld [vmem:[%s16335_s0 + $0xc60] sm:$0xff]  ;;  %v5159_v25 = vld [vmem:[%s16335_s0 + $0xc68] sm:$0xff] }
 0x4d3   :  { %4000 = vst [vmem:[%s16340_s5 + $0x978] sm:$0xff] %v2976_v27  ;;  %4001 = vst [vmem:[%s16340_s5 + $0x980] sm:$0xff] %v2977_v29  ;;  %v3069_v24 = vmul.f32 %v5158_v23, %v11509_v51  ;;  %v3070_v26 = vmul.f32 %v5159_v25, %v11509_v51  ;;  %v5160_v2 = vld [vmem:[%s16335_s0 + $0xc70] sm:$0xff]  ;;  %v5161_v27 = vld [vmem:[%s16335_s0 + $0xc78] sm:$0xff] }
 0x4d4   :  { %4002 = vst [vmem:[%s16340_s5 + $0x988] sm:$0xff] %v2978_v31  ;;  %4003 = vst [vmem:[%s16340_s5 + $0x990] sm:$0xff] %v2979_v33  ;;  %v3071_v4 = vmul.f32 %v5160_v2, %v11509_v51  ;;  %v3072_v28 = vmul.f32 %v5161_v27, %v11509_v51  ;;  %v5162_v29 = vld [vmem:[%s16335_s0 + $0xc80] sm:$0xff]  ;;  %v5163_v31 = vld [vmem:[%s16335_s0 + $0xc88] sm:$0xff] }
 0x4d5   :  { %4004 = vst [vmem:[%s16340_s5 + $0x998] sm:$0xff] %v2980_v39  ;;  %4005 = vst [vmem:[%s16340_s5 + $0x9a0] sm:$0xff] %v2981_v38  ;;  %v3073_v30 = vmul.f32 %v5162_v29, %v11509_v51  ;;  %v3074_v32 = vmul.f32 %v5163_v31, %v11509_v51  ;;  %v5164_v33 = vld [vmem:[%s16335_s0 + $0xc90] sm:$0xff]  ;;  %v5165_v39 = vld [vmem:[%s16335_s0 + $0xc98] sm:$0xff] }
 0x4d6   :  { %4006 = vst [vmem:[%s16340_s5 + $0x9a8] sm:$0xff] %v2982_v6  ;;  %4007 = vst [vmem:[%s16340_s5 + $0x9b0] sm:$0xff] %v2983_v8  ;;  %v3075_v35 = vmul.f32 %v5164_v33, %v11509_v51  ;;  %v3076_v41 = vmul.f32 %v5165_v39, %v11509_v51  ;;  %v5166_v38 = vld [vmem:[%s16335_s0 + $0xca0] sm:$0xff]  ;;  %v5167_v6 = vld [vmem:[%s16335_s0 + $0xca8] sm:$0xff] }
 0x4d7   :  { %4008 = vst [vmem:[%s16340_s5 + $0x9b8] sm:$0xff] %v2984_v34  ;;  %4009 = vst [vmem:[%s16340_s5 + $0x9c0] sm:$0xff] %v2985_v9  ;;  %v3077_v45 = vmul.f32 %v5166_v38, %v11509_v51  ;;  %v3078_v5 = vmul.f32 %v5167_v6, %v11509_v51  ;;  %v5168_v8 = vld [vmem:[%s16335_s0 + $0xcb0] sm:$0xff]  ;;  %v5169_v34 = vld [vmem:[%s16335_s0 + $0xcb8] sm:$0xff]  ;;  %v11735_v9 = vpop.permute.xlu1 %2588 }
 0x4d8   :  { %4010 = vst [vmem:[%s16340_s5 + $0x9c8] sm:$0xff] %v2986_v52  ;;  %4011 = vst [vmem:[%s16340_s5 + $0x9d0] sm:$0xff] %v2987_v53  ;;  %v3079_v12 = vmul.f32 %v5168_v8, %v11509_v51  ;;  %v3080_v36 = vmul.f32 %v5169_v34, %v11509_v51  ;;  %v5170_v40 = vld [vmem:[%s16335_s0 + $0xcc0] sm:$0xff]  ;;  %v5171_v42 = vld [vmem:[%s16335_s0 + $0xcc8] sm:$0xff] }
 0x4d9   :  { %4012 = vst [vmem:[%s16340_s5 + $0x9d8] sm:$0xff] %v2988_v54  ;;  %4013 = vst [vmem:[%s16340_s5 + $0x9e0] sm:$0xff] %v2989_v55  ;;  %v3081_v52 = vmul.f32 %v5170_v40, %v11509_v51  ;;  %v3082_v53 = vmul.f32 %v5171_v42, %v11509_v51  ;;  %v5172_v44 = vld [vmem:[%s16335_s0 + $0xcd0] sm:$0xff]  ;;  %v5173_v46 = vld [vmem:[%s16335_s0 + $0xcd8] sm:$0xff] }
 0x4da   :  { %4014 = vst [vmem:[%s16340_s5 + $0x9e8] sm:$0xff] %v2990_v56  ;;  %4015 = vst [vmem:[%s16340_s5 + $0x9f0] sm:$0xff] %v2991_v10  ;;  %v3083_v54 = vmul.f32 %v5172_v44, %v11509_v51  ;;  %v3084_v55 = vmul.f32 %v5173_v46, %v11509_v51  ;;  %v5174_v47 = vld [vmem:[%s16335_s0 + $0xce0] sm:$0xff]  ;;  %v5175_v48 = vld [vmem:[%s16335_s0 + $0xce8] sm:$0xff] }
 0x4db   :  { %4016 = vst [vmem:[%s16340_s5 + $0x9f8] sm:$0xff] %v2992_v15  ;;  %4081 = vst [vmem:[%s16340_s5 + $0xc00] sm:$0xff] %v3057_v57  ;;  %v3085_v56 = vmul.f32 %v5174_v47, %v11509_v51  ;;  %v3086_v10 = vmul.f32 %v5175_v48, %v11509_v51  ;;  %v5176_v49 = vld [vmem:[%s16335_s0 + $0xcf0] sm:$0xff]  ;;  %v5177_v50 = vld [vmem:[%s16335_s0 + $0xcf8] sm:$0xff] }
 0x4dc   :  { %4082 = vst [vmem:[%s16340_s5 + $0xc08] sm:$0xff] %v3058_v19  ;;  %4083 = vst [vmem:[%s16340_s5 + $0xc10] sm:$0xff] %v3059_v59  ;;  %v3087_v15 = vmul.f32 %v5176_v49, %v11509_v51  ;;  %v3088_v57 = vmul.f32 %v5177_v50, %v11509_v51  ;;  %v5178_v51 = vld [vmem:[%s16335_s0 + $0xb00] sm:$0xff]  ;;  %v5179_v19 = vld [vmem:[%s16335_s0 + $0xb08] sm:$0xff] }
 0x4dd   :  { %4084 = vst [vmem:[%s16340_s5 + $0xc18] sm:$0xff] %v3060_v62  ;;  %4085 = vst [vmem:[%s16340_s5 + $0xc20] sm:$0xff] %v3061_v43  ;;  %v3025_v58 = vmul.f32 %v5178_v51, %v11735_v9  ;;  %v3026_v37 = vmul.f32 %v5179_v19, %v11735_v9  ;;  %v5180_v59 = vld [vmem:[%s16335_s0 + $0xb10] sm:$0xff]  ;;  %v5181_v62 = vld [vmem:[%s16335_s0 + $0xb18] sm:$0xff] }
 0x4de   :  { %4086 = vst [vmem:[%s16340_s5 + $0xc28] sm:$0xff] %v3062_v1  ;;  %4087 = vst [vmem:[%s16340_s5 + $0xc30] sm:$0xff] %v3063_v11  ;;  %v3027_v61 = vmul.f32 %v5180_v59, %v11735_v9  ;;  %v3028_v63 = vmul.f32 %v5181_v62, %v11735_v9  ;;  %v5182_v43 = vld [vmem:[%s16335_s0 + $0xb20] sm:$0xff]  ;;  %v5183_v1 = vld [vmem:[%s16335_s0 + $0xb28] sm:$0xff] }
 0x4df   :  { %4088 = vst [vmem:[%s16340_s5 + $0xc38] sm:$0xff] %v3064_v14  ;;  %4089 = vst [vmem:[%s16340_s5 + $0xc40] sm:$0xff] %v3065_v17  ;;  %v3029_v60 = vmul.f32 %v5182_v43, %v11735_v9  ;;  %v3030_v7 = vmul.f32 %v5183_v1, %v11735_v9  ;;  %v5184_v11 = vld [vmem:[%s16335_s0 + $0xb30] sm:$0xff]  ;;  %v5185_v14 = vld [vmem:[%s16335_s0 + $0xb38] sm:$0xff] }
 0x4e0   :  { %4090 = vst [vmem:[%s16340_s5 + $0xc48] sm:$0xff] %v3066_v18  ;;  %4091 = vst [vmem:[%s16340_s5 + $0xc50] sm:$0xff] %v3067_v3  ;;  %v3031_v13 = vmul.f32 %v5184_v11, %v11735_v9  ;;  %v3032_v16 = vmul.f32 %v5185_v14, %v11735_v9  ;;  %v5186_v17 = vld [vmem:[%s16335_s0 + $0xb40] sm:$0xff]  ;;  %v5187_v18 = vld [vmem:[%s16335_s0 + $0xb48] sm:$0xff] }
 0x4e1   :  { %4092 = vst [vmem:[%s16340_s5 + $0xc58] sm:$0xff] %v3068_v22  ;;  %4093 = vst [vmem:[%s16340_s5 + $0xc60] sm:$0xff] %v3069_v24  ;;  %v3033_v0 = vmul.f32 %v5186_v17, %v11735_v9  ;;  %v3034_v20 = vmul.f32 %v5187_v18, %v11735_v9  ;;  %v5188_v3 = vld [vmem:[%s16335_s0 + $0xb50] sm:$0xff]  ;;  %v5189_v22 = vld [vmem:[%s16335_s0 + $0xb58] sm:$0xff] }
 0x4e2   :  { %4094 = vst [vmem:[%s16340_s5 + $0xc68] sm:$0xff] %v3070_v26  ;;  %4095 = vst [vmem:[%s16340_s5 + $0xc70] sm:$0xff] %v3071_v4  ;;  %v3035_v21 = vmul.f32 %v5188_v3, %v11735_v9  ;;  %v3036_v23 = vmul.f32 %v5189_v22, %v11735_v9  ;;  %v5190_v24 = vld [vmem:[%s16335_s0 + $0xb60] sm:$0xff]  ;;  %v5191_v26 = vld [vmem:[%s16335_s0 + $0xb68] sm:$0xff] }
 0x4e3   :  { %4096 = vst [vmem:[%s16340_s5 + $0xc78] sm:$0xff] %v3072_v28  ;;  %4097 = vst [vmem:[%s16340_s5 + $0xc80] sm:$0xff] %v3073_v30  ;;  %v3037_v25 = vmul.f32 %v5190_v24, %v11735_v9  ;;  %v3038_v2 = vmul.f32 %v5191_v26, %v11735_v9  ;;  %v5192_v4 = vld [vmem:[%s16335_s0 + $0xb70] sm:$0xff]  ;;  %v5193_v28 = vld [vmem:[%s16335_s0 + $0xb78] sm:$0xff] }
 0x4e4   :  { %4098 = vst [vmem:[%s16340_s5 + $0xc88] sm:$0xff] %v3074_v32  ;;  %4099 = vst [vmem:[%s16340_s5 + $0xc90] sm:$0xff] %v3075_v35  ;;  %v3039_v27 = vmul.f32 %v5192_v4, %v11735_v9  ;;  %v3040_v29 = vmul.f32 %v5193_v28, %v11735_v9  ;;  %v5194_v30 = vld [vmem:[%s16335_s0 + $0xb80] sm:$0xff]  ;;  %v5195_v32 = vld [vmem:[%s16335_s0 + $0xb88] sm:$0xff] }
 0x4e5   :  { %4100 = vst [vmem:[%s16340_s5 + $0xc98] sm:$0xff] %v3076_v41  ;;  %4101 = vst [vmem:[%s16340_s5 + $0xca0] sm:$0xff] %v3077_v45  ;;  %v3041_v31 = vmul.f32 %v5194_v30, %v11735_v9  ;;  %v3042_v33 = vmul.f32 %v5195_v32, %v11735_v9  ;;  %v5196_v35 = vld [vmem:[%s16335_s0 + $0xb90] sm:$0xff]  ;;  %v5197_v41 = vld [vmem:[%s16335_s0 + $0xb98] sm:$0xff] }
 0x4e6   :  { %4102 = vst [vmem:[%s16340_s5 + $0xca8] sm:$0xff] %v3078_v5  ;;  %4103 = vst [vmem:[%s16340_s5 + $0xcb0] sm:$0xff] %v3079_v12  ;;  %v3043_v39 = vmul.f32 %v5196_v35, %v11735_v9  ;;  %v3044_v38 = vmul.f32 %v5197_v41, %v11735_v9  ;;  %v5198_v45 = vld [vmem:[%s16335_s0 + $0xba0] sm:$0xff]  ;;  %v5199_v5 = vld [vmem:[%s16335_s0 + $0xba8] sm:$0xff] }
 0x4e7   :  { %4104 = vst [vmem:[%s16340_s5 + $0xcb8] sm:$0xff] %v3080_v36  ;;  %4105 = vst [vmem:[%s16340_s5 + $0xcc0] sm:$0xff] %v3081_v52  ;;  %v3045_v6 = vmul.f32 %v5198_v45, %v11735_v9  ;;  %v3046_v8 = vmul.f32 %v5199_v5, %v11735_v9  ;;  %v5200_v12 = vld [vmem:[%s16335_s0 + $0xbb0] sm:$0xff]  ;;  %v5201_v36 = vld [vmem:[%s16335_s0 + $0xbb8] sm:$0xff]  ;;  %v11961_v52 = vpop.permute.xlu0 %2600 }
 0x4e8   :  { %4106 = vst [vmem:[%s16340_s5 + $0xcc8] sm:$0xff] %v3082_v53  ;;  %4107 = vst [vmem:[%s16340_s5 + $0xcd0] sm:$0xff] %v3083_v54  ;;  %v3047_v34 = vmul.f32 %v5200_v12, %v11735_v9  ;;  %v3048_v40 = vmul.f32 %v5201_v36, %v11735_v9  ;;  %v5202_v42 = vld [vmem:[%s16335_s0 + $0xbc0] sm:$0xff]  ;;  %v5203_v44 = vld [vmem:[%s16335_s0 + $0xbc8] sm:$0xff] }
 0x4e9   :  { %4108 = vst [vmem:[%s16340_s5 + $0xcd8] sm:$0xff] %v3084_v55  ;;  %4109 = vst [vmem:[%s16340_s5 + $0xce0] sm:$0xff] %v3085_v56  ;;  %v3049_v53 = vmul.f32 %v5202_v42, %v11735_v9  ;;  %v3050_v54 = vmul.f32 %v5203_v44, %v11735_v9  ;;  %v5204_v46 = vld [vmem:[%s16335_s0 + $0xbd0] sm:$0xff]  ;;  %v5205_v47 = vld [vmem:[%s16335_s0 + $0xbd8] sm:$0xff] }
 0x4ea   :  { %4110 = vst [vmem:[%s16340_s5 + $0xce8] sm:$0xff] %v3086_v10  ;;  %4111 = vst [vmem:[%s16340_s5 + $0xcf0] sm:$0xff] %v3087_v15  ;;  %v3051_v55 = vmul.f32 %v5204_v46, %v11735_v9  ;;  %v3052_v56 = vmul.f32 %v5205_v47, %v11735_v9  ;;  %v5206_v48 = vld [vmem:[%s16335_s0 + $0xbe0] sm:$0xff]  ;;  %v5207_v49 = vld [vmem:[%s16335_s0 + $0xbe8] sm:$0xff] }
 0x4eb   :  { %4112 = vst [vmem:[%s16340_s5 + $0xcf8] sm:$0xff] %v3088_v57  ;;  %4049 = vst [vmem:[%s16340_s5 + $0xb00] sm:$0xff] %v3025_v58  ;;  %v3053_v10 = vmul.f32 %v5206_v48, %v11735_v9  ;;  %v3054_v15 = vmul.f32 %v5207_v49, %v11735_v9  ;;  %v5208_v50 = vld [vmem:[%s16335_s0 + $0xbf0] sm:$0xff]  ;;  %v5209_v51 = vld [vmem:[%s16335_s0 + $0xbf8] sm:$0xff] }
 0x4ec   :  { %4050 = vst [vmem:[%s16340_s5 + $0xb08] sm:$0xff] %v3026_v37  ;;  %4051 = vst [vmem:[%s16340_s5 + $0xb10] sm:$0xff] %v3027_v61  ;;  %v3055_v57 = vmul.f32 %v5208_v50, %v11735_v9  ;;  %v3056_v58 = vmul.f32 %v5209_v51, %v11735_v9  ;;  %v5210_v9 = vld [vmem:[%s16335_s0 + $0xe00] sm:$0xff]  ;;  %v5211_v37 = vld [vmem:[%s16335_s0 + $0xe08] sm:$0xff] }
 0x4ed   :  { %4052 = vst [vmem:[%s16340_s5 + $0xb18] sm:$0xff] %v3028_v63  ;;  %4053 = vst [vmem:[%s16340_s5 + $0xb20] sm:$0xff] %v3029_v60  ;;  %v3121_v19 = vmul.f32 %v5210_v9, %v11961_v52  ;;  %v3122_v59 = vmul.f32 %v5211_v37, %v11961_v52  ;;  %v5212_v61 = vld [vmem:[%s16335_s0 + $0xe10] sm:$0xff]  ;;  %v5213_v63 = vld [vmem:[%s16335_s0 + $0xe18] sm:$0xff] }
 0x4ee   :  { %4054 = vst [vmem:[%s16340_s5 + $0xb28] sm:$0xff] %v3030_v7  ;;  %4055 = vst [vmem:[%s16340_s5 + $0xb30] sm:$0xff] %v3031_v13  ;;  %v3123_v62 = vmul.f32 %v5212_v61, %v11961_v52  ;;  %v3124_v43 = vmul.f32 %v5213_v63, %v11961_v52  ;;  %v5214_v60 = vld [vmem:[%s16335_s0 + $0xe20] sm:$0xff]  ;;  %v5215_v7 = vld [vmem:[%s16335_s0 + $0xe28] sm:$0xff] }
 0x4ef   :  { %4056 = vst [vmem:[%s16340_s5 + $0xb38] sm:$0xff] %v3032_v16  ;;  %4057 = vst [vmem:[%s16340_s5 + $0xb40] sm:$0xff] %v3033_v0  ;;  %v3125_v1 = vmul.f32 %v5214_v60, %v11961_v52  ;;  %v3126_v11 = vmul.f32 %v5215_v7, %v11961_v52  ;;  %v5216_v13 = vld [vmem:[%s16335_s0 + $0xe30] sm:$0xff]  ;;  %v5217_v16 = vld [vmem:[%s16335_s0 + $0xe38] sm:$0xff] }
 0x4f0   :  { %4058 = vst [vmem:[%s16340_s5 + $0xb48] sm:$0xff] %v3034_v20  ;;  %4059 = vst [vmem:[%s16340_s5 + $0xb50] sm:$0xff] %v3035_v21  ;;  %v3127_v14 = vmul.f32 %v5216_v13, %v11961_v52  ;;  %v3128_v17 = vmul.f32 %v5217_v16, %v11961_v52  ;;  %v5218_v0 = vld [vmem:[%s16335_s0 + $0xe40] sm:$0xff]  ;;  %v5219_v20 = vld [vmem:[%s16335_s0 + $0xe48] sm:$0xff] }
 0x4f1   :  { %4060 = vst [vmem:[%s16340_s5 + $0xb58] sm:$0xff] %v3036_v23  ;;  %4061 = vst [vmem:[%s16340_s5 + $0xb60] sm:$0xff] %v3037_v25  ;;  %v3129_v18 = vmul.f32 %v5218_v0, %v11961_v52  ;;  %v3130_v3 = vmul.f32 %v5219_v20, %v11961_v52  ;;  %v5220_v21 = vld [vmem:[%s16335_s0 + $0xe50] sm:$0xff]  ;;  %v5221_v23 = vld [vmem:[%s16335_s0 + $0xe58] sm:$0xff] }
 0x4f2   :  { %4062 = vst [vmem:[%s16340_s5 + $0xb68] sm:$0xff] %v3038_v2  ;;  %4063 = vst [vmem:[%s16340_s5 + $0xb70] sm:$0xff] %v3039_v27  ;;  %v3131_v22 = vmul.f32 %v5220_v21, %v11961_v52  ;;  %v3132_v24 = vmul.f32 %v5221_v23, %v11961_v52  ;;  %v5222_v25 = vld [vmem:[%s16335_s0 + $0xe60] sm:$0xff]  ;;  %v5223_v2 = vld [vmem:[%s16335_s0 + $0xe68] sm:$0xff] }
 0x4f3   :  { %4064 = vst [vmem:[%s16340_s5 + $0xb78] sm:$0xff] %v3040_v29  ;;  %4065 = vst [vmem:[%s16340_s5 + $0xb80] sm:$0xff] %v3041_v31  ;;  %v3133_v26 = vmul.f32 %v5222_v25, %v11961_v52  ;;  %v3134_v4 = vmul.f32 %v5223_v2, %v11961_v52  ;;  %v5224_v27 = vld [vmem:[%s16335_s0 + $0xe70] sm:$0xff]  ;;  %v5225_v29 = vld [vmem:[%s16335_s0 + $0xe78] sm:$0xff] }
 0x4f4   :  { %4066 = vst [vmem:[%s16340_s5 + $0xb88] sm:$0xff] %v3042_v33  ;;  %4067 = vst [vmem:[%s16340_s5 + $0xb90] sm:$0xff] %v3043_v39  ;;  %v3135_v28 = vmul.f32 %v5224_v27, %v11961_v52  ;;  %v3136_v30 = vmul.f32 %v5225_v29, %v11961_v52  ;;  %v5226_v31 = vld [vmem:[%s16335_s0 + $0xe80] sm:$0xff]  ;;  %v5227_v33 = vld [vmem:[%s16335_s0 + $0xe88] sm:$0xff] }
 0x4f5   :  { %4068 = vst [vmem:[%s16340_s5 + $0xb98] sm:$0xff] %v3044_v38  ;;  %4069 = vst [vmem:[%s16340_s5 + $0xba0] sm:$0xff] %v3045_v6  ;;  %v3137_v32 = vmul.f32 %v5226_v31, %v11961_v52  ;;  %v3138_v35 = vmul.f32 %v5227_v33, %v11961_v52  ;;  %v5228_v39 = vld [vmem:[%s16335_s0 + $0xe90] sm:$0xff]  ;;  %v5229_v38 = vld [vmem:[%s16335_s0 + $0xe98] sm:$0xff] }
 0x4f6   :  { %4070 = vst [vmem:[%s16340_s5 + $0xba8] sm:$0xff] %v3046_v8  ;;  %4071 = vst [vmem:[%s16340_s5 + $0xbb0] sm:$0xff] %v3047_v34  ;;  %v3139_v41 = vmul.f32 %v5228_v39, %v11961_v52  ;;  %v3140_v45 = vmul.f32 %v5229_v38, %v11961_v52  ;;  %v5230_v6 = vld [vmem:[%s16335_s0 + $0xea0] sm:$0xff]  ;;  %v5231_v8 = vld [vmem:[%s16335_s0 + $0xea8] sm:$0xff] }
 0x4f7   :  { %4072 = vst [vmem:[%s16340_s5 + $0xbb8] sm:$0xff] %v3048_v40  ;;  %4073 = vst [vmem:[%s16340_s5 + $0xbc0] sm:$0xff] %v3049_v53  ;;  %v3141_v5 = vmul.f32 %v5230_v6, %v11961_v52  ;;  %v3142_v12 = vmul.f32 %v5231_v8, %v11961_v52  ;;  %v5232_v34 = vld [vmem:[%s16335_s0 + $0xeb0] sm:$0xff]  ;;  %v5233_v40 = vld [vmem:[%s16335_s0 + $0xeb8] sm:$0xff]  ;;  %v12187_v53 = vpop.permute.xlu1 %2596 }
 0x4f8   :  { %4074 = vst [vmem:[%s16340_s5 + $0xbc8] sm:$0xff] %v3050_v54  ;;  %4075 = vst [vmem:[%s16340_s5 + $0xbd0] sm:$0xff] %v3051_v55  ;;  %v3143_v36 = vmul.f32 %v5232_v34, %v11961_v52  ;;  %v3144_v42 = vmul.f32 %v5233_v40, %v11961_v52  ;;  %v5234_v44 = vld [vmem:[%s16335_s0 + $0xec0] sm:$0xff]  ;;  %v5235_v46 = vld [vmem:[%s16335_s0 + $0xec8] sm:$0xff] }
 0x4f9   :  { %4076 = vst [vmem:[%s16340_s5 + $0xbd8] sm:$0xff] %v3052_v56  ;;  %4077 = vst [vmem:[%s16340_s5 + $0xbe0] sm:$0xff] %v3053_v10  ;;  %v3145_v54 = vmul.f32 %v5234_v44, %v11961_v52  ;;  %v3146_v55 = vmul.f32 %v5235_v46, %v11961_v52  ;;  %v5236_v47 = vld [vmem:[%s16335_s0 + $0xed0] sm:$0xff]  ;;  %v5237_v48 = vld [vmem:[%s16335_s0 + $0xed8] sm:$0xff] }
 0x4fa   :  { %4078 = vst [vmem:[%s16340_s5 + $0xbe8] sm:$0xff] %v3054_v15  ;;  %4079 = vst [vmem:[%s16340_s5 + $0xbf0] sm:$0xff] %v3055_v57  ;;  %v3147_v56 = vmul.f32 %v5236_v47, %v11961_v52  ;;  %v3148_v10 = vmul.f32 %v5237_v48, %v11961_v52  ;;  %v5238_v49 = vld [vmem:[%s16335_s0 + $0xee0] sm:$0xff]  ;;  %v5239_v50 = vld [vmem:[%s16335_s0 + $0xee8] sm:$0xff] }
 0x4fb   :  { %4080 = vst [vmem:[%s16340_s5 + $0xbf8] sm:$0xff] %v3056_v58  ;;  %4145 = vst [vmem:[%s16340_s5 + $0xe00] sm:$0xff] %v3121_v19  ;;  %v3149_v15 = vmul.f32 %v5238_v49, %v11961_v52  ;;  %v3150_v57 = vmul.f32 %v5239_v50, %v11961_v52  ;;  %v5240_v51 = vld [vmem:[%s16335_s0 + $0xef0] sm:$0xff]  ;;  %v5241_v9 = vld [vmem:[%s16335_s0 + $0xef8] sm:$0xff] }
 0x4fc   :  { %4146 = vst [vmem:[%s16340_s5 + $0xe08] sm:$0xff] %v3122_v59  ;;  %4147 = vst [vmem:[%s16340_s5 + $0xe10] sm:$0xff] %v3123_v62  ;;  %v3151_v58 = vmul.f32 %v5240_v51, %v11961_v52  ;;  %v3152_v19 = vmul.f32 %v5241_v9, %v11961_v52  ;;  %v5242_v52 = vld [vmem:[%s16335_s0 + $0xd00] sm:$0xff]  ;;  %v5243_v59 = vld [vmem:[%s16335_s0 + $0xd08] sm:$0xff] }
 0x4fd   :  { %4148 = vst [vmem:[%s16340_s5 + $0xe18] sm:$0xff] %v3124_v43  ;;  %4149 = vst [vmem:[%s16340_s5 + $0xe20] sm:$0xff] %v3125_v1  ;;  %v3089_v37 = vmul.f32 %v5242_v52, %v12187_v53  ;;  %v3090_v61 = vmul.f32 %v5243_v59, %v12187_v53  ;;  %v5244_v62 = vld [vmem:[%s16335_s0 + $0xd10] sm:$0xff]  ;;  %v5245_v43 = vld [vmem:[%s16335_s0 + $0xd18] sm:$0xff] }
 0x4fe   :  { %4150 = vst [vmem:[%s16340_s5 + $0xe28] sm:$0xff] %v3126_v11  ;;  %4151 = vst [vmem:[%s16340_s5 + $0xe30] sm:$0xff] %v3127_v14  ;;  %v3091_v63 = vmul.f32 %v5244_v62, %v12187_v53  ;;  %v3092_v60 = vmul.f32 %v5245_v43, %v12187_v53  ;;  %v5246_v1 = vld [vmem:[%s16335_s0 + $0xd20] sm:$0xff]  ;;  %v5247_v11 = vld [vmem:[%s16335_s0 + $0xd28] sm:$0xff] }
 0x4ff   :  { %4152 = vst [vmem:[%s16340_s5 + $0xe38] sm:$0xff] %v3128_v17  ;;  %4153 = vst [vmem:[%s16340_s5 + $0xe40] sm:$0xff] %v3129_v18  ;;  %v3093_v7 = vmul.f32 %v5246_v1, %v12187_v53  ;;  %v3094_v13 = vmul.f32 %v5247_v11, %v12187_v53  ;;  %v5248_v14 = vld [vmem:[%s16335_s0 + $0xd30] sm:$0xff]  ;;  %v5249_v17 = vld [vmem:[%s16335_s0 + $0xd38] sm:$0xff] }
 0x500   :  { %4154 = vst [vmem:[%s16340_s5 + $0xe48] sm:$0xff] %v3130_v3  ;;  %4155 = vst [vmem:[%s16340_s5 + $0xe50] sm:$0xff] %v3131_v22  ;;  %v3095_v16 = vmul.f32 %v5248_v14, %v12187_v53  ;;  %v3096_v0 = vmul.f32 %v5249_v17, %v12187_v53  ;;  %v5250_v18 = vld [vmem:[%s16335_s0 + $0xd40] sm:$0xff]  ;;  %v5251_v3 = vld [vmem:[%s16335_s0 + $0xd48] sm:$0xff] }
 0x501   :  { %4156 = vst [vmem:[%s16340_s5 + $0xe58] sm:$0xff] %v3132_v24  ;;  %4157 = vst [vmem:[%s16340_s5 + $0xe60] sm:$0xff] %v3133_v26  ;;  %v3097_v20 = vmul.f32 %v5250_v18, %v12187_v53  ;;  %v3098_v21 = vmul.f32 %v5251_v3, %v12187_v53  ;;  %v5252_v22 = vld [vmem:[%s16335_s0 + $0xd50] sm:$0xff]  ;;  %v5253_v24 = vld [vmem:[%s16335_s0 + $0xd58] sm:$0xff] }
 0x502   :  { %4158 = vst [vmem:[%s16340_s5 + $0xe68] sm:$0xff] %v3134_v4  ;;  %4159 = vst [vmem:[%s16340_s5 + $0xe70] sm:$0xff] %v3135_v28  ;;  %v3099_v23 = vmul.f32 %v5252_v22, %v12187_v53  ;;  %v3100_v25 = vmul.f32 %v5253_v24, %v12187_v53  ;;  %v5254_v26 = vld [vmem:[%s16335_s0 + $0xd60] sm:$0xff]  ;;  %v5255_v4 = vld [vmem:[%s16335_s0 + $0xd68] sm:$0xff] }
 0x503   :  { %4160 = vst [vmem:[%s16340_s5 + $0xe78] sm:$0xff] %v3136_v30  ;;  %4161 = vst [vmem:[%s16340_s5 + $0xe80] sm:$0xff] %v3137_v32  ;;  %v3101_v2 = vmul.f32 %v5254_v26, %v12187_v53  ;;  %v3102_v27 = vmul.f32 %v5255_v4, %v12187_v53  ;;  %v5256_v28 = vld [vmem:[%s16335_s0 + $0xd70] sm:$0xff]  ;;  %v5257_v30 = vld [vmem:[%s16335_s0 + $0xd78] sm:$0xff] }
 0x504   :  { %4162 = vst [vmem:[%s16340_s5 + $0xe88] sm:$0xff] %v3138_v35  ;;  %4163 = vst [vmem:[%s16340_s5 + $0xe90] sm:$0xff] %v3139_v41  ;;  %v3103_v29 = vmul.f32 %v5256_v28, %v12187_v53  ;;  %v3104_v31 = vmul.f32 %v5257_v30, %v12187_v53  ;;  %v5258_v32 = vld [vmem:[%s16335_s0 + $0xd80] sm:$0xff]  ;;  %v5259_v35 = vld [vmem:[%s16335_s0 + $0xd88] sm:$0xff] }
 0x505   :  { %4164 = vst [vmem:[%s16340_s5 + $0xe98] sm:$0xff] %v3140_v45  ;;  %4165 = vst [vmem:[%s16340_s5 + $0xea0] sm:$0xff] %v3141_v5  ;;  %v3105_v33 = vmul.f32 %v5258_v32, %v12187_v53  ;;  %v3106_v39 = vmul.f32 %v5259_v35, %v12187_v53  ;;  %v5260_v41 = vld [vmem:[%s16335_s0 + $0xd90] sm:$0xff]  ;;  %v5261_v45 = vld [vmem:[%s16335_s0 + $0xd98] sm:$0xff] }
 0x506   :  { %4166 = vst [vmem:[%s16340_s5 + $0xea8] sm:$0xff] %v3142_v12  ;;  %4167 = vst [vmem:[%s16340_s5 + $0xeb0] sm:$0xff] %v3143_v36  ;;  %v3107_v38 = vmul.f32 %v5260_v41, %v12187_v53  ;;  %v3108_v6 = vmul.f32 %v5261_v45, %v12187_v53  ;;  %v5262_v5 = vld [vmem:[%s16335_s0 + $0xda0] sm:$0xff]  ;;  %v5263_v12 = vld [vmem:[%s16335_s0 + $0xda8] sm:$0xff] }
 0x507   :  { %4168 = vst [vmem:[%s16340_s5 + $0xeb8] sm:$0xff] %v3144_v42  ;;  %4169 = vst [vmem:[%s16340_s5 + $0xec0] sm:$0xff] %v3145_v54  ;;  %v3109_v8 = vmul.f32 %v5262_v5, %v12187_v53  ;;  %v3110_v34 = vmul.f32 %v5263_v12, %v12187_v53  ;;  %v5264_v36 = vld [vmem:[%s16335_s0 + $0xdb0] sm:$0xff]  ;;  %v5265_v42 = vld [vmem:[%s16335_s0 + $0xdb8] sm:$0xff]  ;;  %v12413_v54 = vpop.permute.xlu0 %2611 }
 0x508   :  { %4170 = vst [vmem:[%s16340_s5 + $0xec8] sm:$0xff] %v3146_v55  ;;  %4171 = vst [vmem:[%s16340_s5 + $0xed0] sm:$0xff] %v3147_v56  ;;  %v3111_v40 = vmul.f32 %v5264_v36, %v12187_v53  ;;  %v3112_v44 = vmul.f32 %v5265_v42, %v12187_v53  ;;  %v5266_v46 = vld [vmem:[%s16335_s0 + $0xdc0] sm:$0xff]  ;;  %v5267_v47 = vld [vmem:[%s16335_s0 + $0xdc8] sm:$0xff] }
 0x509   :  { %4172 = vst [vmem:[%s16340_s5 + $0xed8] sm:$0xff] %v3148_v10  ;;  %4173 = vst [vmem:[%s16340_s5 + $0xee0] sm:$0xff] %v3149_v15  ;;  %v3113_v55 = vmul.f32 %v5266_v46, %v12187_v53  ;;  %v3114_v56 = vmul.f32 %v5267_v47, %v12187_v53  ;;  %v5268_v48 = vld [vmem:[%s16335_s0 + $0xdd0] sm:$0xff]  ;;  %v5269_v49 = vld [vmem:[%s16335_s0 + $0xdd8] sm:$0xff] }
 0x50a   :  { %4174 = vst [vmem:[%s16340_s5 + $0xee8] sm:$0xff] %v3150_v57  ;;  %4175 = vst [vmem:[%s16340_s5 + $0xef0] sm:$0xff] %v3151_v58  ;;  %v3115_v10 = vmul.f32 %v5268_v48, %v12187_v53  ;;  %v3116_v15 = vmul.f32 %v5269_v49, %v12187_v53  ;;  %v5270_v50 = vld [vmem:[%s16335_s0 + $0xde0] sm:$0xff]  ;;  %v5271_v51 = vld [vmem:[%s16335_s0 + $0xde8] sm:$0xff] }
 0x50b   :  { %4176 = vst [vmem:[%s16340_s5 + $0xef8] sm:$0xff] %v3152_v19  ;;  %4113 = vst [vmem:[%s16340_s5 + $0xd00] sm:$0xff] %v3089_v37  ;;  %v3117_v57 = vmul.f32 %v5270_v50, %v12187_v53  ;;  %v3118_v58 = vmul.f32 %v5271_v51, %v12187_v53  ;;  %v5272_v9 = vld [vmem:[%s16335_s0 + $0xdf0] sm:$0xff]  ;;  %v5273_v52 = vld [vmem:[%s16335_s0 + $0xdf8] sm:$0xff] }
 0x50c   :  { %4114 = vst [vmem:[%s16340_s5 + $0xd08] sm:$0xff] %v3090_v61  ;;  %4115 = vst [vmem:[%s16340_s5 + $0xd10] sm:$0xff] %v3091_v63  ;;  %v3119_v19 = vmul.f32 %v5272_v9, %v12187_v53  ;;  %v3120_v37 = vmul.f32 %v5273_v52, %v12187_v53  ;;  %v5274_v53 = vld [vmem:[%s16335_s0 + $0x1000] sm:$0xff]  ;;  %v5275_v61 = vld [vmem:[%s16335_s0 + $0x1008] sm:$0xff] }
 0x50d   :  { %4116 = vst [vmem:[%s16340_s5 + $0xd18] sm:$0xff] %v3092_v60  ;;  %4117 = vst [vmem:[%s16340_s5 + $0xd20] sm:$0xff] %v3093_v7  ;;  %v3185_v59 = vmul.f32 %v5274_v53, %v12413_v54  ;;  %v3186_v62 = vmul.f32 %v5275_v61, %v12413_v54  ;;  %v5276_v63 = vld [vmem:[%s16335_s0 + $0x1010] sm:$0xff]  ;;  %v5277_v60 = vld [vmem:[%s16335_s0 + $0x1018] sm:$0xff] }
 0x50e   :  { %4118 = vst [vmem:[%s16340_s5 + $0xd28] sm:$0xff] %v3094_v13  ;;  %4119 = vst [vmem:[%s16340_s5 + $0xd30] sm:$0xff] %v3095_v16  ;;  %v3187_v43 = vmul.f32 %v5276_v63, %v12413_v54  ;;  %v3188_v1 = vmul.f32 %v5277_v60, %v12413_v54  ;;  %v5278_v7 = vld [vmem:[%s16335_s0 + $0x1020] sm:$0xff]  ;;  %v5279_v13 = vld [vmem:[%s16335_s0 + $0x1028] sm:$0xff] }
 0x50f   :  { %4120 = vst [vmem:[%s16340_s5 + $0xd38] sm:$0xff] %v3096_v0  ;;  %4121 = vst [vmem:[%s16340_s5 + $0xd40] sm:$0xff] %v3097_v20  ;;  %v3189_v11 = vmul.f32 %v5278_v7, %v12413_v54  ;;  %v3190_v14 = vmul.f32 %v5279_v13, %v12413_v54  ;;  %v5280_v16 = vld [vmem:[%s16335_s0 + $0x1030] sm:$0xff]  ;;  %v5281_v0 = vld [vmem:[%s16335_s0 + $0x1038] sm:$0xff] }
 0x510   :  { %4122 = vst [vmem:[%s16340_s5 + $0xd48] sm:$0xff] %v3098_v21  ;;  %4123 = vst [vmem:[%s16340_s5 + $0xd50] sm:$0xff] %v3099_v23  ;;  %v3191_v17 = vmul.f32 %v5280_v16, %v12413_v54  ;;  %v3192_v18 = vmul.f32 %v5281_v0, %v12413_v54  ;;  %v5282_v20 = vld [vmem:[%s16335_s0 + $0x1040] sm:$0xff]  ;;  %v5283_v21 = vld [vmem:[%s16335_s0 + $0x1048] sm:$0xff] }
 0x511   :  { %4124 = vst [vmem:[%s16340_s5 + $0xd58] sm:$0xff] %v3100_v25  ;;  %4125 = vst [vmem:[%s16340_s5 + $0xd60] sm:$0xff] %v3101_v2  ;;  %v3193_v3 = vmul.f32 %v5282_v20, %v12413_v54  ;;  %v3194_v22 = vmul.f32 %v5283_v21, %v12413_v54  ;;  %v5284_v23 = vld [vmem:[%s16335_s0 + $0x1050] sm:$0xff]  ;;  %v5285_v25 = vld [vmem:[%s16335_s0 + $0x1058] sm:$0xff] }
 0x512   :  { %4126 = vst [vmem:[%s16340_s5 + $0xd68] sm:$0xff] %v3102_v27  ;;  %4127 = vst [vmem:[%s16340_s5 + $0xd70] sm:$0xff] %v3103_v29  ;;  %v3195_v24 = vmul.f32 %v5284_v23, %v12413_v54  ;;  %v3196_v26 = vmul.f32 %v5285_v25, %v12413_v54  ;;  %v5286_v2 = vld [vmem:[%s16335_s0 + $0x1060] sm:$0xff]  ;;  %v5287_v27 = vld [vmem:[%s16335_s0 + $0x1068] sm:$0xff] }
 0x513   :  { %4128 = vst [vmem:[%s16340_s5 + $0xd78] sm:$0xff] %v3104_v31  ;;  %4129 = vst [vmem:[%s16340_s5 + $0xd80] sm:$0xff] %v3105_v33  ;;  %v3197_v4 = vmul.f32 %v5286_v2, %v12413_v54  ;;  %v3198_v28 = vmul.f32 %v5287_v27, %v12413_v54  ;;  %v5288_v29 = vld [vmem:[%s16335_s0 + $0x1070] sm:$0xff]  ;;  %v5289_v31 = vld [vmem:[%s16335_s0 + $0x1078] sm:$0xff] }
 0x514   :  { %4130 = vst [vmem:[%s16340_s5 + $0xd88] sm:$0xff] %v3106_v39  ;;  %4131 = vst [vmem:[%s16340_s5 + $0xd90] sm:$0xff] %v3107_v38  ;;  %v3199_v30 = vmul.f32 %v5288_v29, %v12413_v54  ;;  %v3200_v32 = vmul.f32 %v5289_v31, %v12413_v54  ;;  %v5290_v33 = vld [vmem:[%s16335_s0 + $0x1080] sm:$0xff]  ;;  %v5291_v39 = vld [vmem:[%s16335_s0 + $0x1088] sm:$0xff] }
 0x515   :  { %4132 = vst [vmem:[%s16340_s5 + $0xd98] sm:$0xff] %v3108_v6  ;;  %4133 = vst [vmem:[%s16340_s5 + $0xda0] sm:$0xff] %v3109_v8  ;;  %v3201_v35 = vmul.f32 %v5290_v33, %v12413_v54  ;;  %v3202_v41 = vmul.f32 %v5291_v39, %v12413_v54  ;;  %v5292_v38 = vld [vmem:[%s16335_s0 + $0x1090] sm:$0xff]  ;;  %v5293_v6 = vld [vmem:[%s16335_s0 + $0x1098] sm:$0xff] }
 0x516   :  { %4134 = vst [vmem:[%s16340_s5 + $0xda8] sm:$0xff] %v3110_v34  ;;  %4135 = vst [vmem:[%s16340_s5 + $0xdb0] sm:$0xff] %v3111_v40  ;;  %v3203_v45 = vmul.f32 %v5292_v38, %v12413_v54  ;;  %v3204_v5 = vmul.f32 %v5293_v6, %v12413_v54  ;;  %v5294_v8 = vld [vmem:[%s16335_s0 + $0x10a0] sm:$0xff]  ;;  %v5295_v34 = vld [vmem:[%s16335_s0 + $0x10a8] sm:$0xff] }
 0x517   :  { %4136 = vst [vmem:[%s16340_s5 + $0xdb8] sm:$0xff] %v3112_v44  ;;  %4137 = vst [vmem:[%s16340_s5 + $0xdc0] sm:$0xff] %v3113_v55  ;;  %v3205_v12 = vmul.f32 %v5294_v8, %v12413_v54  ;;  %v3206_v36 = vmul.f32 %v5295_v34, %v12413_v54  ;;  %v5296_v40 = vld [vmem:[%s16335_s0 + $0x10b0] sm:$0xff]  ;;  %v5297_v44 = vld [vmem:[%s16335_s0 + $0x10b8] sm:$0xff]  ;;  %v12639_v55 = vpop.permute.xlu1 %2604 }
 0x518   :  { %4138 = vst [vmem:[%s16340_s5 + $0xdc8] sm:$0xff] %v3114_v56  ;;  %4139 = vst [vmem:[%s16340_s5 + $0xdd0] sm:$0xff] %v3115_v10  ;;  %v3207_v42 = vmul.f32 %v5296_v40, %v12413_v54  ;;  %v3208_v46 = vmul.f32 %v5297_v44, %v12413_v54  ;;  %v5298_v47 = vld [vmem:[%s16335_s0 + $0x10c0] sm:$0xff]  ;;  %v5299_v48 = vld [vmem:[%s16335_s0 + $0x10c8] sm:$0xff] }
 0x519   :  { %4140 = vst [vmem:[%s16340_s5 + $0xdd8] sm:$0xff] %v3116_v15  ;;  %4141 = vst [vmem:[%s16340_s5 + $0xde0] sm:$0xff] %v3117_v57  ;;  %v3209_v56 = vmul.f32 %v5298_v47, %v12413_v54  ;;  %v3210_v10 = vmul.f32 %v5299_v48, %v12413_v54  ;;  %v5300_v49 = vld [vmem:[%s16335_s0 + $0x10d0] sm:$0xff]  ;;  %v5301_v50 = vld [vmem:[%s16335_s0 + $0x10d8] sm:$0xff] }
 0x51a   :  { %4142 = vst [vmem:[%s16340_s5 + $0xde8] sm:$0xff] %v3118_v58  ;;  %4143 = vst [vmem:[%s16340_s5 + $0xdf0] sm:$0xff] %v3119_v19  ;;  %v3211_v15 = vmul.f32 %v5300_v49, %v12413_v54  ;;  %v3212_v57 = vmul.f32 %v5301_v50, %v12413_v54  ;;  %v5302_v51 = vld [vmem:[%s16335_s0 + $0x10e0] sm:$0xff]  ;;  %v5303_v9 = vld [vmem:[%s16335_s0 + $0x10e8] sm:$0xff] }
 0x51b   :  { %4144 = vst [vmem:[%s16340_s5 + $0xdf8] sm:$0xff] %v3120_v37  ;;  %4209 = vst [vmem:[%s16340_s5 + $0x1000] sm:$0xff] %v3185_v59  ;;  %v3213_v58 = vmul.f32 %v5302_v51, %v12413_v54  ;;  %v3214_v19 = vmul.f32 %v5303_v9, %v12413_v54  ;;  %v5304_v52 = vld [vmem:[%s16335_s0 + $0x10f0] sm:$0xff]  ;;  %v5305_v53 = vld [vmem:[%s16335_s0 + $0x10f8] sm:$0xff] }
 0x51c   :  { %4210 = vst [vmem:[%s16340_s5 + $0x1008] sm:$0xff] %v3186_v62  ;;  %4211 = vst [vmem:[%s16340_s5 + $0x1010] sm:$0xff] %v3187_v43  ;;  %v3215_v37 = vmul.f32 %v5304_v52, %v12413_v54  ;;  %v3216_v59 = vmul.f32 %v5305_v53, %v12413_v54  ;;  %v5306_v54 = vld [vmem:[%s16335_s0 + $0xf00] sm:$0xff]  ;;  %v5307_v62 = vld [vmem:[%s16335_s0 + $0xf08] sm:$0xff] }
 0x51d   :  { %4212 = vst [vmem:[%s16340_s5 + $0x1018] sm:$0xff] %v3188_v1  ;;  %4213 = vst [vmem:[%s16340_s5 + $0x1020] sm:$0xff] %v3189_v11  ;;  %v3153_v61 = vmul.f32 %v5306_v54, %v12639_v55  ;;  %v3154_v63 = vmul.f32 %v5307_v62, %v12639_v55  ;;  %v5308_v43 = vld [vmem:[%s16335_s0 + $0xf10] sm:$0xff]  ;;  %v5309_v1 = vld [vmem:[%s16335_s0 + $0xf18] sm:$0xff] }
 0x51e   :  { %4214 = vst [vmem:[%s16340_s5 + $0x1028] sm:$0xff] %v3190_v14  ;;  %4215 = vst [vmem:[%s16340_s5 + $0x1030] sm:$0xff] %v3191_v17  ;;  %v3155_v60 = vmul.f32 %v5308_v43, %v12639_v55  ;;  %v3156_v7 = vmul.f32 %v5309_v1, %v12639_v55  ;;  %v5310_v11 = vld [vmem:[%s16335_s0 + $0xf20] sm:$0xff]  ;;  %v5311_v14 = vld [vmem:[%s16335_s0 + $0xf28] sm:$0xff] }
 0x51f   :  { %4216 = vst [vmem:[%s16340_s5 + $0x1038] sm:$0xff] %v3192_v18  ;;  %4217 = vst [vmem:[%s16340_s5 + $0x1040] sm:$0xff] %v3193_v3  ;;  %v3157_v13 = vmul.f32 %v5310_v11, %v12639_v55  ;;  %v3158_v16 = vmul.f32 %v5311_v14, %v12639_v55  ;;  %v5312_v17 = vld [vmem:[%s16335_s0 + $0xf30] sm:$0xff]  ;;  %v5313_v18 = vld [vmem:[%s16335_s0 + $0xf38] sm:$0xff] }
 0x520   :  { %4218 = vst [vmem:[%s16340_s5 + $0x1048] sm:$0xff] %v3194_v22  ;;  %4219 = vst [vmem:[%s16340_s5 + $0x1050] sm:$0xff] %v3195_v24  ;;  %v3159_v0 = vmul.f32 %v5312_v17, %v12639_v55  ;;  %v3160_v20 = vmul.f32 %v5313_v18, %v12639_v55  ;;  %v5314_v3 = vld [vmem:[%s16335_s0 + $0xf40] sm:$0xff]  ;;  %v5315_v22 = vld [vmem:[%s16335_s0 + $0xf48] sm:$0xff] }
 0x521   :  { %4220 = vst [vmem:[%s16340_s5 + $0x1058] sm:$0xff] %v3196_v26  ;;  %4221 = vst [vmem:[%s16340_s5 + $0x1060] sm:$0xff] %v3197_v4  ;;  %v3161_v21 = vmul.f32 %v5314_v3, %v12639_v55  ;;  %v3162_v23 = vmul.f32 %v5315_v22, %v12639_v55  ;;  %v5316_v24 = vld [vmem:[%s16335_s0 + $0xf50] sm:$0xff]  ;;  %v5317_v26 = vld [vmem:[%s16335_s0 + $0xf58] sm:$0xff] }
 0x522   :  { %4222 = vst [vmem:[%s16340_s5 + $0x1068] sm:$0xff] %v3198_v28  ;;  %4223 = vst [vmem:[%s16340_s5 + $0x1070] sm:$0xff] %v3199_v30  ;;  %v3163_v25 = vmul.f32 %v5316_v24, %v12639_v55  ;;  %v3164_v2 = vmul.f32 %v5317_v26, %v12639_v55  ;;  %v5318_v4 = vld [vmem:[%s16335_s0 + $0xf60] sm:$0xff]  ;;  %v5319_v28 = vld [vmem:[%s16335_s0 + $0xf68] sm:$0xff] }
 0x523   :  { %4224 = vst [vmem:[%s16340_s5 + $0x1078] sm:$0xff] %v3200_v32  ;;  %4225 = vst [vmem:[%s16340_s5 + $0x1080] sm:$0xff] %v3201_v35  ;;  %v3165_v27 = vmul.f32 %v5318_v4, %v12639_v55  ;;  %v3166_v29 = vmul.f32 %v5319_v28, %v12639_v55  ;;  %v5320_v30 = vld [vmem:[%s16335_s0 + $0xf70] sm:$0xff]  ;;  %v5321_v32 = vld [vmem:[%s16335_s0 + $0xf78] sm:$0xff] }
 0x524   :  { %4226 = vst [vmem:[%s16340_s5 + $0x1088] sm:$0xff] %v3202_v41  ;;  %4227 = vst [vmem:[%s16340_s5 + $0x1090] sm:$0xff] %v3203_v45  ;;  %v3167_v31 = vmul.f32 %v5320_v30, %v12639_v55  ;;  %v3168_v33 = vmul.f32 %v5321_v32, %v12639_v55  ;;  %v5322_v35 = vld [vmem:[%s16335_s0 + $0xf80] sm:$0xff]  ;;  %v5323_v41 = vld [vmem:[%s16335_s0 + $0xf88] sm:$0xff] }
 0x525   :  { %4228 = vst [vmem:[%s16340_s5 + $0x1098] sm:$0xff] %v3204_v5  ;;  %4229 = vst [vmem:[%s16340_s5 + $0x10a0] sm:$0xff] %v3205_v12  ;;  %v3169_v39 = vmul.f32 %v5322_v35, %v12639_v55  ;;  %v3170_v38 = vmul.f32 %v5323_v41, %v12639_v55  ;;  %v5324_v45 = vld [vmem:[%s16335_s0 + $0xf90] sm:$0xff]  ;;  %v5325_v5 = vld [vmem:[%s16335_s0 + $0xf98] sm:$0xff] }
 0x526   :  { %4230 = vst [vmem:[%s16340_s5 + $0x10a8] sm:$0xff] %v3206_v36  ;;  %4231 = vst [vmem:[%s16340_s5 + $0x10b0] sm:$0xff] %v3207_v42  ;;  %v3171_v6 = vmul.f32 %v5324_v45, %v12639_v55  ;;  %v3172_v8 = vmul.f32 %v5325_v5, %v12639_v55  ;;  %v5326_v12 = vld [vmem:[%s16335_s0 + $0xfa0] sm:$0xff]  ;;  %v5327_v36 = vld [vmem:[%s16335_s0 + $0xfa8] sm:$0xff] }
 0x527   :  { %4232 = vst [vmem:[%s16340_s5 + $0x10b8] sm:$0xff] %v3208_v46  ;;  %4233 = vst [vmem:[%s16340_s5 + $0x10c0] sm:$0xff] %v3209_v56  ;;  %v3173_v34 = vmul.f32 %v5326_v12, %v12639_v55  ;;  %v3174_v40 = vmul.f32 %v5327_v36, %v12639_v55  ;;  %v5328_v42 = vld [vmem:[%s16335_s0 + $0xfb0] sm:$0xff]  ;;  %v5329_v46 = vld [vmem:[%s16335_s0 + $0xfb8] sm:$0xff]  ;;  %v12865_v56 = vpop.permute.xlu0 %2619 }
 0x528   :  { %4234 = vst [vmem:[%s16340_s5 + $0x10c8] sm:$0xff] %v3210_v10  ;;  %4235 = vst [vmem:[%s16340_s5 + $0x10d0] sm:$0xff] %v3211_v15  ;;  %v3175_v44 = vmul.f32 %v5328_v42, %v12639_v55  ;;  %v3176_v47 = vmul.f32 %v5329_v46, %v12639_v55  ;;  %v5330_v48 = vld [vmem:[%s16335_s0 + $0xfc0] sm:$0xff]  ;;  %v5331_v49 = vld [vmem:[%s16335_s0 + $0xfc8] sm:$0xff] }
 0x529   :  { %4236 = vst [vmem:[%s16340_s5 + $0x10d8] sm:$0xff] %v3212_v57  ;;  %4237 = vst [vmem:[%s16340_s5 + $0x10e0] sm:$0xff] %v3213_v58  ;;  %v3177_v10 = vmul.f32 %v5330_v48, %v12639_v55  ;;  %v3178_v15 = vmul.f32 %v5331_v49, %v12639_v55  ;;  %v5332_v50 = vld [vmem:[%s16335_s0 + $0xfd0] sm:$0xff]  ;;  %v5333_v51 = vld [vmem:[%s16335_s0 + $0xfd8] sm:$0xff] }
 0x52a   :  { %4238 = vst [vmem:[%s16340_s5 + $0x10e8] sm:$0xff] %v3214_v19  ;;  %4239 = vst [vmem:[%s16340_s5 + $0x10f0] sm:$0xff] %v3215_v37  ;;  %v3179_v57 = vmul.f32 %v5332_v50, %v12639_v55  ;;  %v3180_v58 = vmul.f32 %v5333_v51, %v12639_v55  ;;  %v5334_v9 = vld [vmem:[%s16335_s0 + $0xfe0] sm:$0xff]  ;;  %v5335_v52 = vld [vmem:[%s16335_s0 + $0xfe8] sm:$0xff] }
 0x52b   :  { %4240 = vst [vmem:[%s16340_s5 + $0x10f8] sm:$0xff] %v3216_v59  ;;  %4177 = vst [vmem:[%s16340_s5 + $0xf00] sm:$0xff] %v3153_v61  ;;  %v3181_v19 = vmul.f32 %v5334_v9, %v12639_v55  ;;  %v3182_v37 = vmul.f32 %v5335_v52, %v12639_v55  ;;  %v5336_v53 = vld [vmem:[%s16335_s0 + $0xff0] sm:$0xff]  ;;  %v5337_v54 = vld [vmem:[%s16335_s0 + $0xff8] sm:$0xff] }
 0x52c   :  { %4178 = vst [vmem:[%s16340_s5 + $0xf08] sm:$0xff] %v3154_v63  ;;  %4179 = vst [vmem:[%s16340_s5 + $0xf10] sm:$0xff] %v3155_v60  ;;  %v3183_v59 = vmul.f32 %v5336_v53, %v12639_v55  ;;  %v3184_v61 = vmul.f32 %v5337_v54, %v12639_v55  ;;  %v5338_v55 = vld [vmem:[%s16335_s0 + $0x1200] sm:$0xff]  ;;  %v5339_v63 = vld [vmem:[%s16335_s0 + $0x1208] sm:$0xff] }
 0x52d   :  { %4180 = vst [vmem:[%s16340_s5 + $0xf18] sm:$0xff] %v3156_v7  ;;  %4181 = vst [vmem:[%s16340_s5 + $0xf20] sm:$0xff] %v3157_v13  ;;  %v3249_v62 = vmul.f32 %v5338_v55, %v12865_v56  ;;  %v3250_v43 = vmul.f32 %v5339_v63, %v12865_v56  ;;  %v5340_v60 = vld [vmem:[%s16335_s0 + $0x1210] sm:$0xff]  ;;  %v5341_v7 = vld [vmem:[%s16335_s0 + $0x1218] sm:$0xff] }
 0x52e   :  { %4182 = vst [vmem:[%s16340_s5 + $0xf28] sm:$0xff] %v3158_v16  ;;  %4183 = vst [vmem:[%s16340_s5 + $0xf30] sm:$0xff] %v3159_v0  ;;  %v3251_v1 = vmul.f32 %v5340_v60, %v12865_v56  ;;  %v3252_v11 = vmul.f32 %v5341_v7, %v12865_v56  ;;  %v5342_v13 = vld [vmem:[%s16335_s0 + $0x1220] sm:$0xff]  ;;  %v5343_v16 = vld [vmem:[%s16335_s0 + $0x1228] sm:$0xff] }
 0x52f   :  { %4184 = vst [vmem:[%s16340_s5 + $0xf38] sm:$0xff] %v3160_v20  ;;  %4185 = vst [vmem:[%s16340_s5 + $0xf40] sm:$0xff] %v3161_v21  ;;  %v3253_v14 = vmul.f32 %v5342_v13, %v12865_v56  ;;  %v3254_v17 = vmul.f32 %v5343_v16, %v12865_v56  ;;  %v5344_v0 = vld [vmem:[%s16335_s0 + $0x1230] sm:$0xff]  ;;  %v5345_v20 = vld [vmem:[%s16335_s0 + $0x1238] sm:$0xff] }
 0x530   :  { %4186 = vst [vmem:[%s16340_s5 + $0xf48] sm:$0xff] %v3162_v23  ;;  %4187 = vst [vmem:[%s16340_s5 + $0xf50] sm:$0xff] %v3163_v25  ;;  %v3255_v18 = vmul.f32 %v5344_v0, %v12865_v56  ;;  %v3256_v3 = vmul.f32 %v5345_v20, %v12865_v56  ;;  %v5346_v21 = vld [vmem:[%s16335_s0 + $0x1240] sm:$0xff]  ;;  %v5347_v23 = vld [vmem:[%s16335_s0 + $0x1248] sm:$0xff] }
 0x531   :  { %4188 = vst [vmem:[%s16340_s5 + $0xf58] sm:$0xff] %v3164_v2  ;;  %4189 = vst [vmem:[%s16340_s5 + $0xf60] sm:$0xff] %v3165_v27  ;;  %v3257_v22 = vmul.f32 %v5346_v21, %v12865_v56  ;;  %v3258_v24 = vmul.f32 %v5347_v23, %v12865_v56  ;;  %v5348_v25 = vld [vmem:[%s16335_s0 + $0x1250] sm:$0xff]  ;;  %v5349_v2 = vld [vmem:[%s16335_s0 + $0x1258] sm:$0xff] }
 0x532   :  { %4190 = vst [vmem:[%s16340_s5 + $0xf68] sm:$0xff] %v3166_v29  ;;  %4191 = vst [vmem:[%s16340_s5 + $0xf70] sm:$0xff] %v3167_v31  ;;  %v3259_v26 = vmul.f32 %v5348_v25, %v12865_v56  ;;  %v3260_v4 = vmul.f32 %v5349_v2, %v12865_v56  ;;  %v5350_v27 = vld [vmem:[%s16335_s0 + $0x1260] sm:$0xff]  ;;  %v5351_v29 = vld [vmem:[%s16335_s0 + $0x1268] sm:$0xff] }
 0x533   :  { %4192 = vst [vmem:[%s16340_s5 + $0xf78] sm:$0xff] %v3168_v33  ;;  %4193 = vst [vmem:[%s16340_s5 + $0xf80] sm:$0xff] %v3169_v39  ;;  %v3261_v28 = vmul.f32 %v5350_v27, %v12865_v56  ;;  %v3262_v30 = vmul.f32 %v5351_v29, %v12865_v56  ;;  %v5352_v31 = vld [vmem:[%s16335_s0 + $0x1270] sm:$0xff]  ;;  %v5353_v33 = vld [vmem:[%s16335_s0 + $0x1278] sm:$0xff] }
 0x534   :  { %4194 = vst [vmem:[%s16340_s5 + $0xf88] sm:$0xff] %v3170_v38  ;;  %4195 = vst [vmem:[%s16340_s5 + $0xf90] sm:$0xff] %v3171_v6  ;;  %v3263_v32 = vmul.f32 %v5352_v31, %v12865_v56  ;;  %v3264_v35 = vmul.f32 %v5353_v33, %v12865_v56  ;;  %v5354_v39 = vld [vmem:[%s16335_s0 + $0x1280] sm:$0xff]  ;;  %v5355_v38 = vld [vmem:[%s16335_s0 + $0x1288] sm:$0xff] }
 0x535   :  { %4196 = vst [vmem:[%s16340_s5 + $0xf98] sm:$0xff] %v3172_v8  ;;  %4197 = vst [vmem:[%s16340_s5 + $0xfa0] sm:$0xff] %v3173_v34  ;;  %v3265_v41 = vmul.f32 %v5354_v39, %v12865_v56  ;;  %v3266_v45 = vmul.f32 %v5355_v38, %v12865_v56  ;;  %v5356_v6 = vld [vmem:[%s16335_s0 + $0x1290] sm:$0xff]  ;;  %v5357_v8 = vld [vmem:[%s16335_s0 + $0x1298] sm:$0xff] }
 0x536   :  { %4198 = vst [vmem:[%s16340_s5 + $0xfa8] sm:$0xff] %v3174_v40  ;;  %4199 = vst [vmem:[%s16340_s5 + $0xfb0] sm:$0xff] %v3175_v44  ;;  %v3267_v5 = vmul.f32 %v5356_v6, %v12865_v56  ;;  %v3268_v12 = vmul.f32 %v5357_v8, %v12865_v56  ;;  %v5358_v34 = vld [vmem:[%s16335_s0 + $0x12a0] sm:$0xff]  ;;  %v5359_v40 = vld [vmem:[%s16335_s0 + $0x12a8] sm:$0xff] }
 0x537   :  { %4200 = vst [vmem:[%s16340_s5 + $0xfb8] sm:$0xff] %v3176_v47  ;;  %4201 = vst [vmem:[%s16340_s5 + $0xfc0] sm:$0xff] %v3177_v10  ;;  %v3269_v36 = vmul.f32 %v5358_v34, %v12865_v56  ;;  %v3270_v42 = vmul.f32 %v5359_v40, %v12865_v56  ;;  %v5360_v44 = vld [vmem:[%s16335_s0 + $0x12b0] sm:$0xff]  ;;  %v5361_v47 = vld [vmem:[%s16335_s0 + $0x12b8] sm:$0xff]  ;;  %v13091_v10 = vpop.permute.xlu1 %2615 }
 0x538   :  { %4202 = vst [vmem:[%s16340_s5 + $0xfc8] sm:$0xff] %v3178_v15  ;;  %4203 = vst [vmem:[%s16340_s5 + $0xfd0] sm:$0xff] %v3179_v57  ;;  %v3271_v46 = vmul.f32 %v5360_v44, %v12865_v56  ;;  %v3272_v48 = vmul.f32 %v5361_v47, %v12865_v56  ;;  %v5362_v49 = vld [vmem:[%s16335_s0 + $0x12c0] sm:$0xff]  ;;  %v5363_v50 = vld [vmem:[%s16335_s0 + $0x12c8] sm:$0xff] }
 0x539   :  { %4204 = vst [vmem:[%s16340_s5 + $0xfd8] sm:$0xff] %v3180_v58  ;;  %4205 = vst [vmem:[%s16340_s5 + $0xfe0] sm:$0xff] %v3181_v19  ;;  %v3273_v15 = vmul.f32 %v5362_v49, %v12865_v56  ;;  %v3274_v57 = vmul.f32 %v5363_v50, %v12865_v56  ;;  %v5364_v51 = vld [vmem:[%s16335_s0 + $0x12d0] sm:$0xff]  ;;  %v5365_v9 = vld [vmem:[%s16335_s0 + $0x12d8] sm:$0xff] }
 0x53a   :  { %4206 = vst [vmem:[%s16340_s5 + $0xfe8] sm:$0xff] %v3182_v37  ;;  %4207 = vst [vmem:[%s16340_s5 + $0xff0] sm:$0xff] %v3183_v59  ;;  %v3275_v58 = vmul.f32 %v5364_v51, %v12865_v56  ;;  %v3276_v19 = vmul.f32 %v5365_v9, %v12865_v56  ;;  %v5366_v52 = vld [vmem:[%s16335_s0 + $0x12e0] sm:$0xff]  ;;  %v5367_v53 = vld [vmem:[%s16335_s0 + $0x12e8] sm:$0xff] }
 0x53b   :  { %4208 = vst [vmem:[%s16340_s5 + $0xff8] sm:$0xff] %v3184_v61  ;;  %4273 = vst [vmem:[%s16340_s5 + $0x1200] sm:$0xff] %v3249_v62  ;;  %v3277_v37 = vmul.f32 %v5366_v52, %v12865_v56  ;;  %v3278_v59 = vmul.f32 %v5367_v53, %v12865_v56  ;;  %v5368_v54 = vld [vmem:[%s16335_s0 + $0x12f0] sm:$0xff]  ;;  %v5369_v55 = vld [vmem:[%s16335_s0 + $0x12f8] sm:$0xff] }
 0x53c   :  { %4274 = vst [vmem:[%s16340_s5 + $0x1208] sm:$0xff] %v3250_v43  ;;  %4275 = vst [vmem:[%s16340_s5 + $0x1210] sm:$0xff] %v3251_v1  ;;  %v3279_v61 = vmul.f32 %v5368_v54, %v12865_v56  ;;  %v3280_v62 = vmul.f32 %v5369_v55, %v12865_v56  ;;  %v5370_v56 = vld [vmem:[%s16335_s0 + $0x1100] sm:$0xff]  ;;  %v5371_v43 = vld [vmem:[%s16335_s0 + $0x1108] sm:$0xff] }
 0x53d   :  { %4276 = vst [vmem:[%s16340_s5 + $0x1218] sm:$0xff] %v3252_v11  ;;  %4277 = vst [vmem:[%s16340_s5 + $0x1220] sm:$0xff] %v3253_v14  ;;  %v3217_v63 = vmul.f32 %v5370_v56, %v13091_v10  ;;  %v3218_v60 = vmul.f32 %v5371_v43, %v13091_v10  ;;  %v5372_v1 = vld [vmem:[%s16335_s0 + $0x1110] sm:$0xff]  ;;  %v5373_v11 = vld [vmem:[%s16335_s0 + $0x1118] sm:$0xff] }
 0x53e   :  { %4278 = vst [vmem:[%s16340_s5 + $0x1228] sm:$0xff] %v3254_v17  ;;  %4279 = vst [vmem:[%s16340_s5 + $0x1230] sm:$0xff] %v3255_v18  ;;  %v3219_v7 = vmul.f32 %v5372_v1, %v13091_v10  ;;  %v3220_v13 = vmul.f32 %v5373_v11, %v13091_v10  ;;  %v5374_v14 = vld [vmem:[%s16335_s0 + $0x1120] sm:$0xff]  ;;  %v5375_v17 = vld [vmem:[%s16335_s0 + $0x1128] sm:$0xff] }
 0x53f   :  { %4280 = vst [vmem:[%s16340_s5 + $0x1238] sm:$0xff] %v3256_v3  ;;  %4281 = vst [vmem:[%s16340_s5 + $0x1240] sm:$0xff] %v3257_v22  ;;  %v3221_v16 = vmul.f32 %v5374_v14, %v13091_v10  ;;  %v3222_v0 = vmul.f32 %v5375_v17, %v13091_v10  ;;  %v5376_v18 = vld [vmem:[%s16335_s0 + $0x1130] sm:$0xff]  ;;  %v5377_v3 = vld [vmem:[%s16335_s0 + $0x1138] sm:$0xff] }
 0x540   :  { %4282 = vst [vmem:[%s16340_s5 + $0x1248] sm:$0xff] %v3258_v24  ;;  %4283 = vst [vmem:[%s16340_s5 + $0x1250] sm:$0xff] %v3259_v26  ;;  %v3223_v20 = vmul.f32 %v5376_v18, %v13091_v10  ;;  %v3224_v21 = vmul.f32 %v5377_v3, %v13091_v10  ;;  %v5378_v22 = vld [vmem:[%s16335_s0 + $0x1140] sm:$0xff]  ;;  %v5379_v24 = vld [vmem:[%s16335_s0 + $0x1148] sm:$0xff] }
 0x541   :  { %4284 = vst [vmem:[%s16340_s5 + $0x1258] sm:$0xff] %v3260_v4  ;;  %4285 = vst [vmem:[%s16340_s5 + $0x1260] sm:$0xff] %v3261_v28  ;;  %v3225_v23 = vmul.f32 %v5378_v22, %v13091_v10  ;;  %v3226_v25 = vmul.f32 %v5379_v24, %v13091_v10  ;;  %v5380_v26 = vld [vmem:[%s16335_s0 + $0x1150] sm:$0xff]  ;;  %v5381_v4 = vld [vmem:[%s16335_s0 + $0x1158] sm:$0xff] }
 0x542   :  { %4286 = vst [vmem:[%s16340_s5 + $0x1268] sm:$0xff] %v3262_v30  ;;  %4287 = vst [vmem:[%s16340_s5 + $0x1270] sm:$0xff] %v3263_v32  ;;  %v3227_v2 = vmul.f32 %v5380_v26, %v13091_v10  ;;  %v3228_v27 = vmul.f32 %v5381_v4, %v13091_v10  ;;  %v5382_v28 = vld [vmem:[%s16335_s0 + $0x1160] sm:$0xff]  ;;  %v5383_v30 = vld [vmem:[%s16335_s0 + $0x1168] sm:$0xff] }
 0x543   :  { %4288 = vst [vmem:[%s16340_s5 + $0x1278] sm:$0xff] %v3264_v35  ;;  %4289 = vst [vmem:[%s16340_s5 + $0x1280] sm:$0xff] %v3265_v41  ;;  %v3229_v29 = vmul.f32 %v5382_v28, %v13091_v10  ;;  %v3230_v31 = vmul.f32 %v5383_v30, %v13091_v10  ;;  %v5384_v32 = vld [vmem:[%s16335_s0 + $0x1170] sm:$0xff]  ;;  %v5385_v35 = vld [vmem:[%s16335_s0 + $0x1178] sm:$0xff] }
 0x544   :  { %4290 = vst [vmem:[%s16340_s5 + $0x1288] sm:$0xff] %v3266_v45  ;;  %4291 = vst [vmem:[%s16340_s5 + $0x1290] sm:$0xff] %v3267_v5  ;;  %v3231_v33 = vmul.f32 %v5384_v32, %v13091_v10  ;;  %v3232_v39 = vmul.f32 %v5385_v35, %v13091_v10  ;;  %v5386_v41 = vld [vmem:[%s16335_s0 + $0x1180] sm:$0xff]  ;;  %v5387_v45 = vld [vmem:[%s16335_s0 + $0x1188] sm:$0xff] }
 0x545   :  { %4292 = vst [vmem:[%s16340_s5 + $0x1298] sm:$0xff] %v3268_v12  ;;  %4293 = vst [vmem:[%s16340_s5 + $0x12a0] sm:$0xff] %v3269_v36  ;;  %v3233_v38 = vmul.f32 %v5386_v41, %v13091_v10  ;;  %v3234_v6 = vmul.f32 %v5387_v45, %v13091_v10  ;;  %v5388_v5 = vld [vmem:[%s16335_s0 + $0x1190] sm:$0xff]  ;;  %v5389_v12 = vld [vmem:[%s16335_s0 + $0x1198] sm:$0xff] }
 0x546   :  { %4294 = vst [vmem:[%s16340_s5 + $0x12a8] sm:$0xff] %v3270_v42  ;;  %4295 = vst [vmem:[%s16340_s5 + $0x12b0] sm:$0xff] %v3271_v46  ;;  %v3235_v8 = vmul.f32 %v5388_v5, %v13091_v10  ;;  %v3236_v34 = vmul.f32 %v5389_v12, %v13091_v10  ;;  %v5390_v36 = vld [vmem:[%s16335_s0 + $0x11a0] sm:$0xff]  ;;  %v5391_v42 = vld [vmem:[%s16335_s0 + $0x11a8] sm:$0xff] }
 0x547   :  { %4296 = vst [vmem:[%s16340_s5 + $0x12b8] sm:$0xff] %v3272_v48  ;;  %4297 = vst [vmem:[%s16340_s5 + $0x12c0] sm:$0xff] %v3273_v15  ;;  %v3237_v40 = vmul.f32 %v5390_v36, %v13091_v10  ;;  %v3238_v44 = vmul.f32 %v5391_v42, %v13091_v10  ;;  %v5392_v46 = vld [vmem:[%s16335_s0 + $0x11b0] sm:$0xff]  ;;  %v5393_v48 = vld [vmem:[%s16335_s0 + $0x11b8] sm:$0xff]  ;;  %v13317_v15 = vpop.permute.xlu0 %2627 }
 0x548   :  { %4298 = vst [vmem:[%s16340_s5 + $0x12c8] sm:$0xff] %v3274_v57  ;;  %4299 = vst [vmem:[%s16340_s5 + $0x12d0] sm:$0xff] %v3275_v58  ;;  %v3239_v47 = vmul.f32 %v5392_v46, %v13091_v10  ;;  %v3240_v49 = vmul.f32 %v5393_v48, %v13091_v10  ;;  %v5394_v50 = vld [vmem:[%s16335_s0 + $0x11c0] sm:$0xff]  ;;  %v5395_v51 = vld [vmem:[%s16335_s0 + $0x11c8] sm:$0xff] }
 0x549   :  { %4300 = vst [vmem:[%s16340_s5 + $0x12d8] sm:$0xff] %v3276_v19  ;;  %4301 = vst [vmem:[%s16340_s5 + $0x12e0] sm:$0xff] %v3277_v37  ;;  %v3241_v57 = vmul.f32 %v5394_v50, %v13091_v10  ;;  %v3242_v58 = vmul.f32 %v5395_v51, %v13091_v10  ;;  %v5396_v9 = vld [vmem:[%s16335_s0 + $0x11d0] sm:$0xff]  ;;  %v5397_v52 = vld [vmem:[%s16335_s0 + $0x11d8] sm:$0xff] }
 0x54a   :  { %4302 = vst [vmem:[%s16340_s5 + $0x12e8] sm:$0xff] %v3278_v59  ;;  %4303 = vst [vmem:[%s16340_s5 + $0x12f0] sm:$0xff] %v3279_v61  ;;  %v3243_v19 = vmul.f32 %v5396_v9, %v13091_v10  ;;  %v3244_v37 = vmul.f32 %v5397_v52, %v13091_v10  ;;  %v5398_v53 = vld [vmem:[%s16335_s0 + $0x11e0] sm:$0xff]  ;;  %v5399_v54 = vld [vmem:[%s16335_s0 + $0x11e8] sm:$0xff] }
 0x54b   :  { %4304 = vst [vmem:[%s16340_s5 + $0x12f8] sm:$0xff] %v3280_v62  ;;  %4241 = vst [vmem:[%s16340_s5 + $0x1100] sm:$0xff] %v3217_v63  ;;  %v3245_v59 = vmul.f32 %v5398_v53, %v13091_v10  ;;  %v3246_v61 = vmul.f32 %v5399_v54, %v13091_v10  ;;  %v5400_v55 = vld [vmem:[%s16335_s0 + $0x11f0] sm:$0xff]  ;;  %v5401_v56 = vld [vmem:[%s16335_s0 + $0x11f8] sm:$0xff] }
 0x54c   :  { %4242 = vst [vmem:[%s16340_s5 + $0x1108] sm:$0xff] %v3218_v60  ;;  %4243 = vst [vmem:[%s16340_s5 + $0x1110] sm:$0xff] %v3219_v7  ;;  %v3247_v62 = vmul.f32 %v5400_v55, %v13091_v10  ;;  %v3248_v63 = vmul.f32 %v5401_v56, %v13091_v10  ;;  %v5402_v10 = vld [vmem:[%s16335_s0 + $0x1400] sm:$0xff]  ;;  %v5403_v60 = vld [vmem:[%s16335_s0 + $0x1408] sm:$0xff] }
 0x54d   :  { %4244 = vst [vmem:[%s16340_s5 + $0x1118] sm:$0xff] %v3220_v13  ;;  %4245 = vst [vmem:[%s16340_s5 + $0x1120] sm:$0xff] %v3221_v16  ;;  %v3313_v43 = vmul.f32 %v5402_v10, %v13317_v15  ;;  %v3314_v1 = vmul.f32 %v5403_v60, %v13317_v15  ;;  %v5404_v7 = vld [vmem:[%s16335_s0 + $0x1410] sm:$0xff]  ;;  %v5405_v13 = vld [vmem:[%s16335_s0 + $0x1418] sm:$0xff] }
 0x54e   :  { %4246 = vst [vmem:[%s16340_s5 + $0x1128] sm:$0xff] %v3222_v0  ;;  %4247 = vst [vmem:[%s16340_s5 + $0x1130] sm:$0xff] %v3223_v20  ;;  %v3315_v11 = vmul.f32 %v5404_v7, %v13317_v15  ;;  %v3316_v14 = vmul.f32 %v5405_v13, %v13317_v15  ;;  %v5406_v16 = vld [vmem:[%s16335_s0 + $0x1420] sm:$0xff]  ;;  %v5407_v0 = vld [vmem:[%s16335_s0 + $0x1428] sm:$0xff] }
 0x54f   :  { %4248 = vst [vmem:[%s16340_s5 + $0x1138] sm:$0xff] %v3224_v21  ;;  %4249 = vst [vmem:[%s16340_s5 + $0x1140] sm:$0xff] %v3225_v23  ;;  %v3317_v17 = vmul.f32 %v5406_v16, %v13317_v15  ;;  %v3318_v18 = vmul.f32 %v5407_v0, %v13317_v15  ;;  %v5408_v20 = vld [vmem:[%s16335_s0 + $0x1430] sm:$0xff]  ;;  %v5409_v21 = vld [vmem:[%s16335_s0 + $0x1438] sm:$0xff] }
 0x550   :  { %4250 = vst [vmem:[%s16340_s5 + $0x1148] sm:$0xff] %v3226_v25  ;;  %4251 = vst [vmem:[%s16340_s5 + $0x1150] sm:$0xff] %v3227_v2  ;;  %v3319_v3 = vmul.f32 %v5408_v20, %v13317_v15  ;;  %v3320_v22 = vmul.f32 %v5409_v21, %v13317_v15  ;;  %v5410_v23 = vld [vmem:[%s16335_s0 + $0x1440] sm:$0xff]  ;;  %v5411_v25 = vld [vmem:[%s16335_s0 + $0x1448] sm:$0xff] }
 0x551   :  { %4252 = vst [vmem:[%s16340_s5 + $0x1158] sm:$0xff] %v3228_v27  ;;  %4253 = vst [vmem:[%s16340_s5 + $0x1160] sm:$0xff] %v3229_v29  ;;  %v3321_v24 = vmul.f32 %v5410_v23, %v13317_v15  ;;  %v3322_v26 = vmul.f32 %v5411_v25, %v13317_v15  ;;  %v5412_v2 = vld [vmem:[%s16335_s0 + $0x1450] sm:$0xff]  ;;  %v5413_v27 = vld [vmem:[%s16335_s0 + $0x1458] sm:$0xff] }
 0x552   :  { %4254 = vst [vmem:[%s16340_s5 + $0x1168] sm:$0xff] %v3230_v31  ;;  %4255 = vst [vmem:[%s16340_s5 + $0x1170] sm:$0xff] %v3231_v33  ;;  %v3323_v4 = vmul.f32 %v5412_v2, %v13317_v15  ;;  %v3324_v28 = vmul.f32 %v5413_v27, %v13317_v15  ;;  %v5414_v29 = vld [vmem:[%s16335_s0 + $0x1460] sm:$0xff]  ;;  %v5415_v31 = vld [vmem:[%s16335_s0 + $0x1468] sm:$0xff] }
 0x553   :  { %4256 = vst [vmem:[%s16340_s5 + $0x1178] sm:$0xff] %v3232_v39  ;;  %4257 = vst [vmem:[%s16340_s5 + $0x1180] sm:$0xff] %v3233_v38  ;;  %v3325_v30 = vmul.f32 %v5414_v29, %v13317_v15  ;;  %v3326_v32 = vmul.f32 %v5415_v31, %v13317_v15  ;;  %v5416_v33 = vld [vmem:[%s16335_s0 + $0x1470] sm:$0xff]  ;;  %v5417_v39 = vld [vmem:[%s16335_s0 + $0x1478] sm:$0xff] }
 0x554   :  { %4258 = vst [vmem:[%s16340_s5 + $0x1188] sm:$0xff] %v3234_v6  ;;  %4259 = vst [vmem:[%s16340_s5 + $0x1190] sm:$0xff] %v3235_v8  ;;  %v3327_v35 = vmul.f32 %v5416_v33, %v13317_v15  ;;  %v3328_v41 = vmul.f32 %v5417_v39, %v13317_v15  ;;  %v5418_v38 = vld [vmem:[%s16335_s0 + $0x1480] sm:$0xff]  ;;  %v5419_v6 = vld [vmem:[%s16335_s0 + $0x1488] sm:$0xff] }
 0x555   :  { %4260 = vst [vmem:[%s16340_s5 + $0x1198] sm:$0xff] %v3236_v34  ;;  %4261 = vst [vmem:[%s16340_s5 + $0x11a0] sm:$0xff] %v3237_v40  ;;  %v3329_v45 = vmul.f32 %v5418_v38, %v13317_v15  ;;  %v3330_v5 = vmul.f32 %v5419_v6, %v13317_v15  ;;  %v5420_v8 = vld [vmem:[%s16335_s0 + $0x1490] sm:$0xff]  ;;  %v5421_v34 = vld [vmem:[%s16335_s0 + $0x1498] sm:$0xff] }
 0x556   :  { %4262 = vst [vmem:[%s16340_s5 + $0x11a8] sm:$0xff] %v3238_v44  ;;  %4263 = vst [vmem:[%s16340_s5 + $0x11b0] sm:$0xff] %v3239_v47  ;;  %v3331_v12 = vmul.f32 %v5420_v8, %v13317_v15  ;;  %v3332_v36 = vmul.f32 %v5421_v34, %v13317_v15  ;;  %v5422_v40 = vld [vmem:[%s16335_s0 + $0x14a0] sm:$0xff]  ;;  %v5423_v44 = vld [vmem:[%s16335_s0 + $0x14a8] sm:$0xff] }
 0x557   :  { %4264 = vst [vmem:[%s16340_s5 + $0x11b8] sm:$0xff] %v3240_v49  ;;  %4265 = vst [vmem:[%s16340_s5 + $0x11c0] sm:$0xff] %v3241_v57  ;;  %v3333_v42 = vmul.f32 %v5422_v40, %v13317_v15  ;;  %v3334_v46 = vmul.f32 %v5423_v44, %v13317_v15  ;;  %v5424_v47 = vld [vmem:[%s16335_s0 + $0x14b0] sm:$0xff]  ;;  %v5425_v49 = vld [vmem:[%s16335_s0 + $0x14b8] sm:$0xff]  ;;  %v13543_v57 = vpop.permute.xlu1 %2623 }
 0x558   :  { %4266 = vst [vmem:[%s16340_s5 + $0x11c8] sm:$0xff] %v3242_v58  ;;  %4267 = vst [vmem:[%s16340_s5 + $0x11d0] sm:$0xff] %v3243_v19  ;;  %v3335_v48 = vmul.f32 %v5424_v47, %v13317_v15  ;;  %v3336_v50 = vmul.f32 %v5425_v49, %v13317_v15  ;;  %v5426_v51 = vld [vmem:[%s16335_s0 + $0x14c0] sm:$0xff]  ;;  %v5427_v9 = vld [vmem:[%s16335_s0 + $0x14c8] sm:$0xff] }
 0x559   :  { %4268 = vst [vmem:[%s16340_s5 + $0x11d8] sm:$0xff] %v3244_v37  ;;  %4269 = vst [vmem:[%s16340_s5 + $0x11e0] sm:$0xff] %v3245_v59  ;;  %v3337_v58 = vmul.f32 %v5426_v51, %v13317_v15  ;;  %v3338_v19 = vmul.f32 %v5427_v9, %v13317_v15  ;;  %v5428_v52 = vld [vmem:[%s16335_s0 + $0x14d0] sm:$0xff]  ;;  %v5429_v53 = vld [vmem:[%s16335_s0 + $0x14d8] sm:$0xff] }
 0x55a   :  { %4270 = vst [vmem:[%s16340_s5 + $0x11e8] sm:$0xff] %v3246_v61  ;;  %4271 = vst [vmem:[%s16340_s5 + $0x11f0] sm:$0xff] %v3247_v62  ;;  %v3339_v37 = vmul.f32 %v5428_v52, %v13317_v15  ;;  %v3340_v59 = vmul.f32 %v5429_v53, %v13317_v15  ;;  %v5430_v54 = vld [vmem:[%s16335_s0 + $0x14e0] sm:$0xff]  ;;  %v5431_v55 = vld [vmem:[%s16335_s0 + $0x14e8] sm:$0xff] }
 0x55b   :  { %4272 = vst [vmem:[%s16340_s5 + $0x11f8] sm:$0xff] %v3248_v63  ;;  %4337 = vst [vmem:[%s16340_s5 + $0x1400] sm:$0xff] %v3313_v43  ;;  %v3341_v61 = vmul.f32 %v5430_v54, %v13317_v15  ;;  %v3342_v62 = vmul.f32 %v5431_v55, %v13317_v15  ;;  %v5432_v56 = vld [vmem:[%s16335_s0 + $0x14f0] sm:$0xff]  ;;  %v5433_v10 = vld [vmem:[%s16335_s0 + $0x14f8] sm:$0xff] }
 0x55c   :  { %4338 = vst [vmem:[%s16340_s5 + $0x1408] sm:$0xff] %v3314_v1  ;;  %4339 = vst [vmem:[%s16340_s5 + $0x1410] sm:$0xff] %v3315_v11  ;;  %v3343_v63 = vmul.f32 %v5432_v56, %v13317_v15  ;;  %v3344_v43 = vmul.f32 %v5433_v10, %v13317_v15  ;;  %v5434_v15 = vld [vmem:[%s16335_s0 + $0x1300] sm:$0xff]  ;;  %v5435_v1 = vld [vmem:[%s16335_s0 + $0x1308] sm:$0xff] }
 0x55d   :  { %4340 = vst [vmem:[%s16340_s5 + $0x1418] sm:$0xff] %v3316_v14  ;;  %4341 = vst [vmem:[%s16340_s5 + $0x1420] sm:$0xff] %v3317_v17  ;;  %v3281_v60 = vmul.f32 %v5434_v15, %v13543_v57  ;;  %v3282_v7 = vmul.f32 %v5435_v1, %v13543_v57  ;;  %v5436_v11 = vld [vmem:[%s16335_s0 + $0x1310] sm:$0xff]  ;;  %v5437_v14 = vld [vmem:[%s16335_s0 + $0x1318] sm:$0xff] }
 0x55e   :  { %4342 = vst [vmem:[%s16340_s5 + $0x1428] sm:$0xff] %v3318_v18  ;;  %4343 = vst [vmem:[%s16340_s5 + $0x1430] sm:$0xff] %v3319_v3  ;;  %v3283_v13 = vmul.f32 %v5436_v11, %v13543_v57  ;;  %v3284_v16 = vmul.f32 %v5437_v14, %v13543_v57  ;;  %v5438_v17 = vld [vmem:[%s16335_s0 + $0x1320] sm:$0xff]  ;;  %v5439_v18 = vld [vmem:[%s16335_s0 + $0x1328] sm:$0xff] }
 0x55f   :  { %4344 = vst [vmem:[%s16340_s5 + $0x1438] sm:$0xff] %v3320_v22  ;;  %4345 = vst [vmem:[%s16340_s5 + $0x1440] sm:$0xff] %v3321_v24  ;;  %v3285_v0 = vmul.f32 %v5438_v17, %v13543_v57  ;;  %v3286_v20 = vmul.f32 %v5439_v18, %v13543_v57  ;;  %v5440_v3 = vld [vmem:[%s16335_s0 + $0x1330] sm:$0xff]  ;;  %v5441_v22 = vld [vmem:[%s16335_s0 + $0x1338] sm:$0xff] }
 0x560   :  { %4346 = vst [vmem:[%s16340_s5 + $0x1448] sm:$0xff] %v3322_v26  ;;  %4347 = vst [vmem:[%s16340_s5 + $0x1450] sm:$0xff] %v3323_v4  ;;  %v3287_v21 = vmul.f32 %v5440_v3, %v13543_v57  ;;  %v3288_v23 = vmul.f32 %v5441_v22, %v13543_v57  ;;  %v5442_v24 = vld [vmem:[%s16335_s0 + $0x1340] sm:$0xff]  ;;  %v5443_v26 = vld [vmem:[%s16335_s0 + $0x1348] sm:$0xff] }
 0x561   :  { %4348 = vst [vmem:[%s16340_s5 + $0x1458] sm:$0xff] %v3324_v28  ;;  %4349 = vst [vmem:[%s16340_s5 + $0x1460] sm:$0xff] %v3325_v30  ;;  %v3289_v25 = vmul.f32 %v5442_v24, %v13543_v57  ;;  %v3290_v2 = vmul.f32 %v5443_v26, %v13543_v57  ;;  %v5444_v4 = vld [vmem:[%s16335_s0 + $0x1350] sm:$0xff]  ;;  %v5445_v28 = vld [vmem:[%s16335_s0 + $0x1358] sm:$0xff] }
 0x562   :  { %4350 = vst [vmem:[%s16340_s5 + $0x1468] sm:$0xff] %v3326_v32  ;;  %4351 = vst [vmem:[%s16340_s5 + $0x1470] sm:$0xff] %v3327_v35  ;;  %v3291_v27 = vmul.f32 %v5444_v4, %v13543_v57  ;;  %v3292_v29 = vmul.f32 %v5445_v28, %v13543_v57  ;;  %v5446_v30 = vld [vmem:[%s16335_s0 + $0x1360] sm:$0xff]  ;;  %v5447_v32 = vld [vmem:[%s16335_s0 + $0x1368] sm:$0xff] }
 0x563   :  { %4352 = vst [vmem:[%s16340_s5 + $0x1478] sm:$0xff] %v3328_v41  ;;  %4353 = vst [vmem:[%s16340_s5 + $0x1480] sm:$0xff] %v3329_v45  ;;  %v3293_v31 = vmul.f32 %v5446_v30, %v13543_v57  ;;  %v3294_v33 = vmul.f32 %v5447_v32, %v13543_v57  ;;  %v5448_v35 = vld [vmem:[%s16335_s0 + $0x1370] sm:$0xff]  ;;  %v5449_v41 = vld [vmem:[%s16335_s0 + $0x1378] sm:$0xff] }
 0x564   :  { %4354 = vst [vmem:[%s16340_s5 + $0x1488] sm:$0xff] %v3330_v5  ;;  %4355 = vst [vmem:[%s16340_s5 + $0x1490] sm:$0xff] %v3331_v12  ;;  %v3295_v39 = vmul.f32 %v5448_v35, %v13543_v57  ;;  %v3296_v38 = vmul.f32 %v5449_v41, %v13543_v57  ;;  %v5450_v45 = vld [vmem:[%s16335_s0 + $0x1380] sm:$0xff]  ;;  %v5451_v5 = vld [vmem:[%s16335_s0 + $0x1388] sm:$0xff] }
 0x565   :  { %4356 = vst [vmem:[%s16340_s5 + $0x1498] sm:$0xff] %v3332_v36  ;;  %4357 = vst [vmem:[%s16340_s5 + $0x14a0] sm:$0xff] %v3333_v42  ;;  %v3297_v6 = vmul.f32 %v5450_v45, %v13543_v57  ;;  %v3298_v8 = vmul.f32 %v5451_v5, %v13543_v57  ;;  %v5452_v12 = vld [vmem:[%s16335_s0 + $0x1390] sm:$0xff]  ;;  %v5453_v36 = vld [vmem:[%s16335_s0 + $0x1398] sm:$0xff] }
 0x566   :  { %4358 = vst [vmem:[%s16340_s5 + $0x14a8] sm:$0xff] %v3334_v46  ;;  %4359 = vst [vmem:[%s16340_s5 + $0x14b0] sm:$0xff] %v3335_v48  ;;  %v3299_v34 = vmul.f32 %v5452_v12, %v13543_v57  ;;  %v3300_v40 = vmul.f32 %v5453_v36, %v13543_v57  ;;  %v5454_v42 = vld [vmem:[%s16335_s0 + $0x13a0] sm:$0xff]  ;;  %v5455_v46 = vld [vmem:[%s16335_s0 + $0x13a8] sm:$0xff] }
 0x567   :  { %4360 = vst [vmem:[%s16340_s5 + $0x14b8] sm:$0xff] %v3336_v50  ;;  %4361 = vst [vmem:[%s16340_s5 + $0x14c0] sm:$0xff] %v3337_v58  ;;  %v3301_v44 = vmul.f32 %v5454_v42, %v13543_v57  ;;  %v3302_v47 = vmul.f32 %v5455_v46, %v13543_v57  ;;  %v5456_v48 = vld [vmem:[%s16335_s0 + $0x13b0] sm:$0xff]  ;;  %v5457_v50 = vld [vmem:[%s16335_s0 + $0x13b8] sm:$0xff]  ;;  %v13769_v58 = vpop.permute.xlu0 %2635 }
 0x568   :  { %4362 = vst [vmem:[%s16340_s5 + $0x14c8] sm:$0xff] %v3338_v19  ;;  %4363 = vst [vmem:[%s16340_s5 + $0x14d0] sm:$0xff] %v3339_v37  ;;  %v3303_v49 = vmul.f32 %v5456_v48, %v13543_v57  ;;  %v3304_v51 = vmul.f32 %v5457_v50, %v13543_v57  ;;  %v5458_v9 = vld [vmem:[%s16335_s0 + $0x13c0] sm:$0xff]  ;;  %v5459_v52 = vld [vmem:[%s16335_s0 + $0x13c8] sm:$0xff] }
 0x569   :  { %4364 = vst [vmem:[%s16340_s5 + $0x14d8] sm:$0xff] %v3340_v59  ;;  %4365 = vst [vmem:[%s16340_s5 + $0x14e0] sm:$0xff] %v3341_v61  ;;  %v3305_v19 = vmul.f32 %v5458_v9, %v13543_v57  ;;  %v3306_v37 = vmul.f32 %v5459_v52, %v13543_v57  ;;  %v5460_v53 = vld [vmem:[%s16335_s0 + $0x13d0] sm:$0xff]  ;;  %v5461_v54 = vld [vmem:[%s16335_s0 + $0x13d8] sm:$0xff] }
 0x56a   :  { %4366 = vst [vmem:[%s16340_s5 + $0x14e8] sm:$0xff] %v3342_v62  ;;  %4367 = vst [vmem:[%s16340_s5 + $0x14f0] sm:$0xff] %v3343_v63  ;;  %v3307_v59 = vmul.f32 %v5460_v53, %v13543_v57  ;;  %v3308_v61 = vmul.f32 %v5461_v54, %v13543_v57  ;;  %v5462_v55 = vld [vmem:[%s16335_s0 + $0x13e0] sm:$0xff]  ;;  %v5463_v56 = vld [vmem:[%s16335_s0 + $0x13e8] sm:$0xff] }
 0x56b   :  { %4368 = vst [vmem:[%s16340_s5 + $0x14f8] sm:$0xff] %v3344_v43  ;;  %4305 = vst [vmem:[%s16340_s5 + $0x1300] sm:$0xff] %v3281_v60  ;;  %v3309_v62 = vmul.f32 %v5462_v55, %v13543_v57  ;;  %v3310_v63 = vmul.f32 %v5463_v56, %v13543_v57  ;;  %v5464_v10 = vld [vmem:[%s16335_s0 + $0x13f0] sm:$0xff]  ;;  %v5465_v15 = vld [vmem:[%s16335_s0 + $0x13f8] sm:$0xff] }
 0x56c   :  { %4306 = vst [vmem:[%s16340_s5 + $0x1308] sm:$0xff] %v3282_v7  ;;  %4307 = vst [vmem:[%s16340_s5 + $0x1310] sm:$0xff] %v3283_v13  ;;  %v3311_v43 = vmul.f32 %v5464_v10, %v13543_v57  ;;  %v3312_v60 = vmul.f32 %v5465_v15, %v13543_v57  ;;  %v5466_v57 = vld [vmem:[%s16335_s0 + $0x1600] sm:$0xff]  ;;  %v5467_v7 = vld [vmem:[%s16335_s0 + $0x1608] sm:$0xff] }
 0x56d   :  { %4308 = vst [vmem:[%s16340_s5 + $0x1318] sm:$0xff] %v3284_v16  ;;  %4309 = vst [vmem:[%s16340_s5 + $0x1320] sm:$0xff] %v3285_v0  ;;  %v3377_v1 = vmul.f32 %v5466_v57, %v13769_v58  ;;  %v3378_v11 = vmul.f32 %v5467_v7, %v13769_v58  ;;  %v5468_v13 = vld [vmem:[%s16335_s0 + $0x1610] sm:$0xff]  ;;  %v5469_v16 = vld [vmem:[%s16335_s0 + $0x1618] sm:$0xff] }
 0x56e   :  { %4310 = vst [vmem:[%s16340_s5 + $0x1328] sm:$0xff] %v3286_v20  ;;  %4311 = vst [vmem:[%s16340_s5 + $0x1330] sm:$0xff] %v3287_v21  ;;  %v3379_v14 = vmul.f32 %v5468_v13, %v13769_v58  ;;  %v3380_v17 = vmul.f32 %v5469_v16, %v13769_v58  ;;  %v5470_v0 = vld [vmem:[%s16335_s0 + $0x1620] sm:$0xff]  ;;  %v5471_v20 = vld [vmem:[%s16335_s0 + $0x1628] sm:$0xff] }
 0x56f   :  { %4312 = vst [vmem:[%s16340_s5 + $0x1338] sm:$0xff] %v3288_v23  ;;  %4313 = vst [vmem:[%s16340_s5 + $0x1340] sm:$0xff] %v3289_v25  ;;  %v3381_v18 = vmul.f32 %v5470_v0, %v13769_v58  ;;  %v3382_v3 = vmul.f32 %v5471_v20, %v13769_v58  ;;  %v5472_v21 = vld [vmem:[%s16335_s0 + $0x1630] sm:$0xff]  ;;  %v5473_v23 = vld [vmem:[%s16335_s0 + $0x1638] sm:$0xff] }
 0x570   :  { %4314 = vst [vmem:[%s16340_s5 + $0x1348] sm:$0xff] %v3290_v2  ;;  %4315 = vst [vmem:[%s16340_s5 + $0x1350] sm:$0xff] %v3291_v27  ;;  %v3383_v22 = vmul.f32 %v5472_v21, %v13769_v58  ;;  %v3384_v24 = vmul.f32 %v5473_v23, %v13769_v58  ;;  %v5474_v25 = vld [vmem:[%s16335_s0 + $0x1640] sm:$0xff]  ;;  %v5475_v2 = vld [vmem:[%s16335_s0 + $0x1648] sm:$0xff] }
 0x571   :  { %4316 = vst [vmem:[%s16340_s5 + $0x1358] sm:$0xff] %v3292_v29  ;;  %4317 = vst [vmem:[%s16340_s5 + $0x1360] sm:$0xff] %v3293_v31  ;;  %v3385_v26 = vmul.f32 %v5474_v25, %v13769_v58  ;;  %v3386_v4 = vmul.f32 %v5475_v2, %v13769_v58  ;;  %v5476_v27 = vld [vmem:[%s16335_s0 + $0x1650] sm:$0xff]  ;;  %v5477_v29 = vld [vmem:[%s16335_s0 + $0x1658] sm:$0xff] }
 0x572   :  { %4318 = vst [vmem:[%s16340_s5 + $0x1368] sm:$0xff] %v3294_v33  ;;  %4319 = vst [vmem:[%s16340_s5 + $0x1370] sm:$0xff] %v3295_v39  ;;  %v3387_v28 = vmul.f32 %v5476_v27, %v13769_v58  ;;  %v3388_v30 = vmul.f32 %v5477_v29, %v13769_v58  ;;  %v5478_v31 = vld [vmem:[%s16335_s0 + $0x1660] sm:$0xff]  ;;  %v5479_v33 = vld [vmem:[%s16335_s0 + $0x1668] sm:$0xff] }
 0x573   :  { %4320 = vst [vmem:[%s16340_s5 + $0x1378] sm:$0xff] %v3296_v38  ;;  %4321 = vst [vmem:[%s16340_s5 + $0x1380] sm:$0xff] %v3297_v6  ;;  %v3389_v32 = vmul.f32 %v5478_v31, %v13769_v58  ;;  %v3390_v35 = vmul.f32 %v5479_v33, %v13769_v58  ;;  %v5480_v39 = vld [vmem:[%s16335_s0 + $0x1670] sm:$0xff]  ;;  %v5481_v38 = vld [vmem:[%s16335_s0 + $0x1678] sm:$0xff] }
 0x574   :  { %4322 = vst [vmem:[%s16340_s5 + $0x1388] sm:$0xff] %v3298_v8  ;;  %4323 = vst [vmem:[%s16340_s5 + $0x1390] sm:$0xff] %v3299_v34  ;;  %v3391_v41 = vmul.f32 %v5480_v39, %v13769_v58  ;;  %v3392_v45 = vmul.f32 %v5481_v38, %v13769_v58  ;;  %v5482_v6 = vld [vmem:[%s16335_s0 + $0x1680] sm:$0xff]  ;;  %v5483_v8 = vld [vmem:[%s16335_s0 + $0x1688] sm:$0xff] }
 0x575   :  { %4324 = vst [vmem:[%s16340_s5 + $0x1398] sm:$0xff] %v3300_v40  ;;  %4325 = vst [vmem:[%s16340_s5 + $0x13a0] sm:$0xff] %v3301_v44  ;;  %v3393_v5 = vmul.f32 %v5482_v6, %v13769_v58  ;;  %v3394_v12 = vmul.f32 %v5483_v8, %v13769_v58  ;;  %v5484_v34 = vld [vmem:[%s16335_s0 + $0x1690] sm:$0xff]  ;;  %v5485_v40 = vld [vmem:[%s16335_s0 + $0x1698] sm:$0xff] }
 0x576   :  { %4326 = vst [vmem:[%s16340_s5 + $0x13a8] sm:$0xff] %v3302_v47  ;;  %4327 = vst [vmem:[%s16340_s5 + $0x13b0] sm:$0xff] %v3303_v49  ;;  %v3395_v36 = vmul.f32 %v5484_v34, %v13769_v58  ;;  %v3396_v42 = vmul.f32 %v5485_v40, %v13769_v58  ;;  %v5486_v44 = vld [vmem:[%s16335_s0 + $0x16a0] sm:$0xff]  ;;  %v5487_v47 = vld [vmem:[%s16335_s0 + $0x16a8] sm:$0xff] }
 0x577   :  { %4328 = vst [vmem:[%s16340_s5 + $0x13b8] sm:$0xff] %v3304_v51  ;;  %4329 = vst [vmem:[%s16340_s5 + $0x13c0] sm:$0xff] %v3305_v19  ;;  %v3397_v46 = vmul.f32 %v5486_v44, %v13769_v58  ;;  %v3398_v48 = vmul.f32 %v5487_v47, %v13769_v58  ;;  %v5488_v49 = vld [vmem:[%s16335_s0 + $0x16b0] sm:$0xff]  ;;  %v5489_v51 = vld [vmem:[%s16335_s0 + $0x16b8] sm:$0xff]  ;;  %v13995_v19 = vpop.permute.xlu1 %2631 }
 0x578   :  { %4330 = vst [vmem:[%s16340_s5 + $0x13c8] sm:$0xff] %v3306_v37  ;;  %4331 = vst [vmem:[%s16340_s5 + $0x13d0] sm:$0xff] %v3307_v59  ;;  %v3399_v50 = vmul.f32 %v5488_v49, %v13769_v58  ;;  %v3400_v9 = vmul.f32 %v5489_v51, %v13769_v58  ;;  %v5490_v52 = vld [vmem:[%s16335_s0 + $0x16c0] sm:$0xff]  ;;  %v5491_v53 = vld [vmem:[%s16335_s0 + $0x16c8] sm:$0xff] }
 0x579   :  { %4332 = vst [vmem:[%s16340_s5 + $0x13d8] sm:$0xff] %v3308_v61  ;;  %4333 = vst [vmem:[%s16340_s5 + $0x13e0] sm:$0xff] %v3309_v62  ;;  %v3401_v37 = vmul.f32 %v5490_v52, %v13769_v58  ;;  %v3402_v59 = vmul.f32 %v5491_v53, %v13769_v58  ;;  %v5492_v54 = vld [vmem:[%s16335_s0 + $0x16d0] sm:$0xff]  ;;  %v5493_v55 = vld [vmem:[%s16335_s0 + $0x16d8] sm:$0xff] }
 0x57a   :  { %4334 = vst [vmem:[%s16340_s5 + $0x13e8] sm:$0xff] %v3310_v63  ;;  %4335 = vst [vmem:[%s16340_s5 + $0x13f0] sm:$0xff] %v3311_v43  ;;  %v3403_v61 = vmul.f32 %v5492_v54, %v13769_v58  ;;  %v3404_v62 = vmul.f32 %v5493_v55, %v13769_v58  ;;  %v5494_v56 = vld [vmem:[%s16335_s0 + $0x16e0] sm:$0xff]  ;;  %v5495_v10 = vld [vmem:[%s16335_s0 + $0x16e8] sm:$0xff] }
 0x57b   :  { %4336 = vst [vmem:[%s16340_s5 + $0x13f8] sm:$0xff] %v3312_v60  ;;  %4401 = vst [vmem:[%s16340_s5 + $0x1600] sm:$0xff] %v3377_v1  ;;  %v3405_v63 = vmul.f32 %v5494_v56, %v13769_v58  ;;  %v3406_v43 = vmul.f32 %v5495_v10, %v13769_v58  ;;  %v5496_v15 = vld [vmem:[%s16335_s0 + $0x16f0] sm:$0xff]  ;;  %v5497_v57 = vld [vmem:[%s16335_s0 + $0x16f8] sm:$0xff] }
 0x57c   :  { %4402 = vst [vmem:[%s16340_s5 + $0x1608] sm:$0xff] %v3378_v11  ;;  %4403 = vst [vmem:[%s16340_s5 + $0x1610] sm:$0xff] %v3379_v14  ;;  %v3407_v60 = vmul.f32 %v5496_v15, %v13769_v58  ;;  %v3408_v1 = vmul.f32 %v5497_v57, %v13769_v58  ;;  %v5498_v58 = vld [vmem:[%s16335_s0 + $0x1500] sm:$0xff]  ;;  %v5499_v11 = vld [vmem:[%s16335_s0 + $0x1508] sm:$0xff] }
 0x57d   :  { %4404 = vst [vmem:[%s16340_s5 + $0x1618] sm:$0xff] %v3380_v17  ;;  %4405 = vst [vmem:[%s16340_s5 + $0x1620] sm:$0xff] %v3381_v18  ;;  %v3345_v7 = vmul.f32 %v5498_v58, %v13995_v19  ;;  %v3346_v13 = vmul.f32 %v5499_v11, %v13995_v19  ;;  %v5500_v14 = vld [vmem:[%s16335_s0 + $0x1510] sm:$0xff]  ;;  %v5501_v17 = vld [vmem:[%s16335_s0 + $0x1518] sm:$0xff] }
 0x57e   :  { %4406 = vst [vmem:[%s16340_s5 + $0x1628] sm:$0xff] %v3382_v3  ;;  %4407 = vst [vmem:[%s16340_s5 + $0x1630] sm:$0xff] %v3383_v22  ;;  %v3347_v16 = vmul.f32 %v5500_v14, %v13995_v19  ;;  %v3348_v0 = vmul.f32 %v5501_v17, %v13995_v19  ;;  %v5502_v18 = vld [vmem:[%s16335_s0 + $0x1520] sm:$0xff]  ;;  %v5503_v3 = vld [vmem:[%s16335_s0 + $0x1528] sm:$0xff] }
 0x57f   :  { %4408 = vst [vmem:[%s16340_s5 + $0x1638] sm:$0xff] %v3384_v24  ;;  %4409 = vst [vmem:[%s16340_s5 + $0x1640] sm:$0xff] %v3385_v26  ;;  %v3349_v20 = vmul.f32 %v5502_v18, %v13995_v19  ;;  %v3350_v21 = vmul.f32 %v5503_v3, %v13995_v19  ;;  %v5504_v22 = vld [vmem:[%s16335_s0 + $0x1530] sm:$0xff]  ;;  %v5505_v24 = vld [vmem:[%s16335_s0 + $0x1538] sm:$0xff] }
 0x580   :  { %4410 = vst [vmem:[%s16340_s5 + $0x1648] sm:$0xff] %v3386_v4  ;;  %4411 = vst [vmem:[%s16340_s5 + $0x1650] sm:$0xff] %v3387_v28  ;;  %v3351_v23 = vmul.f32 %v5504_v22, %v13995_v19  ;;  %v3352_v25 = vmul.f32 %v5505_v24, %v13995_v19  ;;  %v5506_v26 = vld [vmem:[%s16335_s0 + $0x1540] sm:$0xff]  ;;  %v5507_v4 = vld [vmem:[%s16335_s0 + $0x1548] sm:$0xff] }
 0x581   :  { %4412 = vst [vmem:[%s16340_s5 + $0x1658] sm:$0xff] %v3388_v30  ;;  %4413 = vst [vmem:[%s16340_s5 + $0x1660] sm:$0xff] %v3389_v32  ;;  %v3353_v2 = vmul.f32 %v5506_v26, %v13995_v19  ;;  %v3354_v27 = vmul.f32 %v5507_v4, %v13995_v19  ;;  %v5508_v28 = vld [vmem:[%s16335_s0 + $0x1550] sm:$0xff]  ;;  %v5509_v30 = vld [vmem:[%s16335_s0 + $0x1558] sm:$0xff] }
 0x582   :  { %4414 = vst [vmem:[%s16340_s5 + $0x1668] sm:$0xff] %v3390_v35  ;;  %4415 = vst [vmem:[%s16340_s5 + $0x1670] sm:$0xff] %v3391_v41  ;;  %v3355_v29 = vmul.f32 %v5508_v28, %v13995_v19  ;;  %v3356_v31 = vmul.f32 %v5509_v30, %v13995_v19  ;;  %v5510_v32 = vld [vmem:[%s16335_s0 + $0x1560] sm:$0xff]  ;;  %v5511_v35 = vld [vmem:[%s16335_s0 + $0x1568] sm:$0xff] }
 0x583   :  { %4416 = vst [vmem:[%s16340_s5 + $0x1678] sm:$0xff] %v3392_v45  ;;  %4417 = vst [vmem:[%s16340_s5 + $0x1680] sm:$0xff] %v3393_v5  ;;  %v3357_v33 = vmul.f32 %v5510_v32, %v13995_v19  ;;  %v3358_v39 = vmul.f32 %v5511_v35, %v13995_v19  ;;  %v5512_v41 = vld [vmem:[%s16335_s0 + $0x1570] sm:$0xff]  ;;  %v5513_v45 = vld [vmem:[%s16335_s0 + $0x1578] sm:$0xff] }
 0x584   :  { %4418 = vst [vmem:[%s16340_s5 + $0x1688] sm:$0xff] %v3394_v12  ;;  %4419 = vst [vmem:[%s16340_s5 + $0x1690] sm:$0xff] %v3395_v36  ;;  %v3359_v38 = vmul.f32 %v5512_v41, %v13995_v19  ;;  %v3360_v6 = vmul.f32 %v5513_v45, %v13995_v19  ;;  %v5514_v5 = vld [vmem:[%s16335_s0 + $0x1580] sm:$0xff]  ;;  %v5515_v12 = vld [vmem:[%s16335_s0 + $0x1588] sm:$0xff] }
 0x585   :  { %4420 = vst [vmem:[%s16340_s5 + $0x1698] sm:$0xff] %v3396_v42  ;;  %4421 = vst [vmem:[%s16340_s5 + $0x16a0] sm:$0xff] %v3397_v46  ;;  %v3361_v8 = vmul.f32 %v5514_v5, %v13995_v19  ;;  %v3362_v34 = vmul.f32 %v5515_v12, %v13995_v19  ;;  %v5516_v36 = vld [vmem:[%s16335_s0 + $0x1590] sm:$0xff]  ;;  %v5517_v42 = vld [vmem:[%s16335_s0 + $0x1598] sm:$0xff] }
 0x586   :  { %4422 = vst [vmem:[%s16340_s5 + $0x16a8] sm:$0xff] %v3398_v48  ;;  %4423 = vst [vmem:[%s16340_s5 + $0x16b0] sm:$0xff] %v3399_v50  ;;  %v3363_v40 = vmul.f32 %v5516_v36, %v13995_v19  ;;  %v3364_v44 = vmul.f32 %v5517_v42, %v13995_v19  ;;  %v5518_v46 = vld [vmem:[%s16335_s0 + $0x15a0] sm:$0xff]  ;;  %v5519_v48 = vld [vmem:[%s16335_s0 + $0x15a8] sm:$0xff] }
 0x587   :  { %4424 = vst [vmem:[%s16340_s5 + $0x16b8] sm:$0xff] %v3400_v9  ;;  %4425 = vst [vmem:[%s16340_s5 + $0x16c0] sm:$0xff] %v3401_v37  ;;  %v3365_v47 = vmul.f32 %v5518_v46, %v13995_v19  ;;  %v3366_v49 = vmul.f32 %v5519_v48, %v13995_v19  ;;  %v5520_v50 = vld [vmem:[%s16335_s0 + $0x15b0] sm:$0xff]  ;;  %v5521_v9 = vld [vmem:[%s16335_s0 + $0x15b8] sm:$0xff]  ;;  %v14221_v37 = vpop.permute.xlu0 %2643 }
 0x588   :  { %4426 = vst [vmem:[%s16340_s5 + $0x16c8] sm:$0xff] %v3402_v59  ;;  %4427 = vst [vmem:[%s16340_s5 + $0x16d0] sm:$0xff] %v3403_v61  ;;  %v3367_v51 = vmul.f32 %v5520_v50, %v13995_v19  ;;  %v3368_v52 = vmul.f32 %v5521_v9, %v13995_v19  ;;  %v5522_v53 = vld [vmem:[%s16335_s0 + $0x15c0] sm:$0xff]  ;;  %v5523_v54 = vld [vmem:[%s16335_s0 + $0x15c8] sm:$0xff] }
 0x589   :  { %4428 = vst [vmem:[%s16340_s5 + $0x16d8] sm:$0xff] %v3404_v62  ;;  %4429 = vst [vmem:[%s16340_s5 + $0x16e0] sm:$0xff] %v3405_v63  ;;  %v3369_v59 = vmul.f32 %v5522_v53, %v13995_v19  ;;  %v3370_v61 = vmul.f32 %v5523_v54, %v13995_v19  ;;  %v5524_v55 = vld [vmem:[%s16335_s0 + $0x15d0] sm:$0xff]  ;;  %v5525_v56 = vld [vmem:[%s16335_s0 + $0x15d8] sm:$0xff] }
 0x58a   :  { %4430 = vst [vmem:[%s16340_s5 + $0x16e8] sm:$0xff] %v3406_v43  ;;  %4431 = vst [vmem:[%s16340_s5 + $0x16f0] sm:$0xff] %v3407_v60  ;;  %v3371_v62 = vmul.f32 %v5524_v55, %v13995_v19  ;;  %v3372_v63 = vmul.f32 %v5525_v56, %v13995_v19  ;;  %v5526_v10 = vld [vmem:[%s16335_s0 + $0x15e0] sm:$0xff]  ;;  %v5527_v15 = vld [vmem:[%s16335_s0 + $0x15e8] sm:$0xff] }
 0x58b   :  { %4432 = vst [vmem:[%s16340_s5 + $0x16f8] sm:$0xff] %v3408_v1  ;;  %4369 = vst [vmem:[%s16340_s5 + $0x1500] sm:$0xff] %v3345_v7  ;;  %v3373_v43 = vmul.f32 %v5526_v10, %v13995_v19  ;;  %v3374_v60 = vmul.f32 %v5527_v15, %v13995_v19  ;;  %v5528_v57 = vld [vmem:[%s16335_s0 + $0x15f0] sm:$0xff]  ;;  %v5529_v58 = vld [vmem:[%s16335_s0 + $0x15f8] sm:$0xff] }
 0x58c   :  { %4370 = vst [vmem:[%s16340_s5 + $0x1508] sm:$0xff] %v3346_v13  ;;  %4371 = vst [vmem:[%s16340_s5 + $0x1510] sm:$0xff] %v3347_v16  ;;  %v3375_v1 = vmul.f32 %v5528_v57, %v13995_v19  ;;  %v3376_v7 = vmul.f32 %v5529_v58, %v13995_v19  ;;  %v5530_v19 = vld [vmem:[%s16335_s0 + $0x1800] sm:$0xff]  ;;  %v5531_v13 = vld [vmem:[%s16335_s0 + $0x1808] sm:$0xff] }
 0x58d   :  { %4372 = vst [vmem:[%s16340_s5 + $0x1518] sm:$0xff] %v3348_v0  ;;  %4373 = vst [vmem:[%s16340_s5 + $0x1520] sm:$0xff] %v3349_v20  ;;  %v3441_v11 = vmul.f32 %v5530_v19, %v14221_v37  ;;  %v3442_v14 = vmul.f32 %v5531_v13, %v14221_v37  ;;  %v5532_v16 = vld [vmem:[%s16335_s0 + $0x1810] sm:$0xff]  ;;  %v5533_v0 = vld [vmem:[%s16335_s0 + $0x1818] sm:$0xff] }
 0x58e   :  { %4374 = vst [vmem:[%s16340_s5 + $0x1528] sm:$0xff] %v3350_v21  ;;  %4375 = vst [vmem:[%s16340_s5 + $0x1530] sm:$0xff] %v3351_v23  ;;  %v3443_v17 = vmul.f32 %v5532_v16, %v14221_v37  ;;  %v3444_v18 = vmul.f32 %v5533_v0, %v14221_v37  ;;  %v5534_v20 = vld [vmem:[%s16335_s0 + $0x1820] sm:$0xff]  ;;  %v5535_v21 = vld [vmem:[%s16335_s0 + $0x1828] sm:$0xff] }
 0x58f   :  { %4376 = vst [vmem:[%s16340_s5 + $0x1538] sm:$0xff] %v3352_v25  ;;  %4377 = vst [vmem:[%s16340_s5 + $0x1540] sm:$0xff] %v3353_v2  ;;  %v3445_v3 = vmul.f32 %v5534_v20, %v14221_v37  ;;  %v3446_v22 = vmul.f32 %v5535_v21, %v14221_v37  ;;  %v5536_v23 = vld [vmem:[%s16335_s0 + $0x1830] sm:$0xff]  ;;  %v5537_v25 = vld [vmem:[%s16335_s0 + $0x1838] sm:$0xff] }
 0x590   :  { %4378 = vst [vmem:[%s16340_s5 + $0x1548] sm:$0xff] %v3354_v27  ;;  %4379 = vst [vmem:[%s16340_s5 + $0x1550] sm:$0xff] %v3355_v29  ;;  %v3447_v24 = vmul.f32 %v5536_v23, %v14221_v37  ;;  %v3448_v26 = vmul.f32 %v5537_v25, %v14221_v37  ;;  %v5538_v2 = vld [vmem:[%s16335_s0 + $0x1840] sm:$0xff]  ;;  %v5539_v27 = vld [vmem:[%s16335_s0 + $0x1848] sm:$0xff] }
 0x591   :  { %4380 = vst [vmem:[%s16340_s5 + $0x1558] sm:$0xff] %v3356_v31  ;;  %4381 = vst [vmem:[%s16340_s5 + $0x1560] sm:$0xff] %v3357_v33  ;;  %v3449_v4 = vmul.f32 %v5538_v2, %v14221_v37  ;;  %v3450_v28 = vmul.f32 %v5539_v27, %v14221_v37  ;;  %v5540_v29 = vld [vmem:[%s16335_s0 + $0x1850] sm:$0xff]  ;;  %v5541_v31 = vld [vmem:[%s16335_s0 + $0x1858] sm:$0xff] }
 0x592   :  { %4382 = vst [vmem:[%s16340_s5 + $0x1568] sm:$0xff] %v3358_v39  ;;  %4383 = vst [vmem:[%s16340_s5 + $0x1570] sm:$0xff] %v3359_v38  ;;  %v3451_v30 = vmul.f32 %v5540_v29, %v14221_v37  ;;  %v3452_v32 = vmul.f32 %v5541_v31, %v14221_v37  ;;  %v5542_v33 = vld [vmem:[%s16335_s0 + $0x1860] sm:$0xff]  ;;  %v5543_v39 = vld [vmem:[%s16335_s0 + $0x1868] sm:$0xff] }
 0x593   :  { %4384 = vst [vmem:[%s16340_s5 + $0x1578] sm:$0xff] %v3360_v6  ;;  %4385 = vst [vmem:[%s16340_s5 + $0x1580] sm:$0xff] %v3361_v8  ;;  %v3453_v35 = vmul.f32 %v5542_v33, %v14221_v37  ;;  %v3454_v41 = vmul.f32 %v5543_v39, %v14221_v37  ;;  %v5544_v38 = vld [vmem:[%s16335_s0 + $0x1870] sm:$0xff]  ;;  %v5545_v6 = vld [vmem:[%s16335_s0 + $0x1878] sm:$0xff] }
 0x594   :  { %4386 = vst [vmem:[%s16340_s5 + $0x1588] sm:$0xff] %v3362_v34  ;;  %4387 = vst [vmem:[%s16340_s5 + $0x1590] sm:$0xff] %v3363_v40  ;;  %v3455_v45 = vmul.f32 %v5544_v38, %v14221_v37  ;;  %v3456_v5 = vmul.f32 %v5545_v6, %v14221_v37  ;;  %v5546_v8 = vld [vmem:[%s16335_s0 + $0x1880] sm:$0xff]  ;;  %v5547_v34 = vld [vmem:[%s16335_s0 + $0x1888] sm:$0xff] }
 0x595   :  { %4388 = vst [vmem:[%s16340_s5 + $0x1598] sm:$0xff] %v3364_v44  ;;  %4389 = vst [vmem:[%s16340_s5 + $0x15a0] sm:$0xff] %v3365_v47  ;;  %v3457_v12 = vmul.f32 %v5546_v8, %v14221_v37  ;;  %v3458_v36 = vmul.f32 %v5547_v34, %v14221_v37  ;;  %v5548_v40 = vld [vmem:[%s16335_s0 + $0x1890] sm:$0xff]  ;;  %v5549_v44 = vld [vmem:[%s16335_s0 + $0x1898] sm:$0xff] }
 0x596   :  { %4390 = vst [vmem:[%s16340_s5 + $0x15a8] sm:$0xff] %v3366_v49  ;;  %4391 = vst [vmem:[%s16340_s5 + $0x15b0] sm:$0xff] %v3367_v51  ;;  %v3459_v42 = vmul.f32 %v5548_v40, %v14221_v37  ;;  %v3460_v46 = vmul.f32 %v5549_v44, %v14221_v37  ;;  %v5550_v47 = vld [vmem:[%s16335_s0 + $0x18a0] sm:$0xff]  ;;  %v5551_v49 = vld [vmem:[%s16335_s0 + $0x18a8] sm:$0xff] }
 0x597   :  { %4392 = vst [vmem:[%s16340_s5 + $0x15b8] sm:$0xff] %v3368_v52  ;;  %4393 = vst [vmem:[%s16340_s5 + $0x15c0] sm:$0xff] %v3369_v59  ;;  %v3461_v48 = vmul.f32 %v5550_v47, %v14221_v37  ;;  %v3462_v50 = vmul.f32 %v5551_v49, %v14221_v37  ;;  %v5552_v51 = vld [vmem:[%s16335_s0 + $0x18b0] sm:$0xff]  ;;  %v5553_v52 = vld [vmem:[%s16335_s0 + $0x18b8] sm:$0xff]  ;;  %v14447_v59 = vpop.permute.xlu1 %2639 }
 0x598   :  { %4394 = vst [vmem:[%s16340_s5 + $0x15c8] sm:$0xff] %v3370_v61  ;;  %4395 = vst [vmem:[%s16340_s5 + $0x15d0] sm:$0xff] %v3371_v62  ;;  %v3463_v9 = vmul.f32 %v5552_v51, %v14221_v37  ;;  %v3464_v53 = vmul.f32 %v5553_v52, %v14221_v37  ;;  %v5554_v54 = vld [vmem:[%s16335_s0 + $0x18c0] sm:$0xff]  ;;  %v5555_v55 = vld [vmem:[%s16335_s0 + $0x18c8] sm:$0xff] }
 0x599   :  { %4396 = vst [vmem:[%s16340_s5 + $0x15d8] sm:$0xff] %v3372_v63  ;;  %4397 = vst [vmem:[%s16340_s5 + $0x15e0] sm:$0xff] %v3373_v43  ;;  %v3465_v61 = vmul.f32 %v5554_v54, %v14221_v37  ;;  %v3466_v62 = vmul.f32 %v5555_v55, %v14221_v37  ;;  %v5556_v56 = vld [vmem:[%s16335_s0 + $0x18d0] sm:$0xff]  ;;  %v5557_v10 = vld [vmem:[%s16335_s0 + $0x18d8] sm:$0xff] }
 0x59a   :  { %4398 = vst [vmem:[%s16340_s5 + $0x15e8] sm:$0xff] %v3374_v60  ;;  %4399 = vst [vmem:[%s16340_s5 + $0x15f0] sm:$0xff] %v3375_v1  ;;  %v3467_v63 = vmul.f32 %v5556_v56, %v14221_v37  ;;  %v3468_v43 = vmul.f32 %v5557_v10, %v14221_v37  ;;  %v5558_v15 = vld [vmem:[%s16335_s0 + $0x18e0] sm:$0xff]  ;;  %v5559_v57 = vld [vmem:[%s16335_s0 + $0x18e8] sm:$0xff] }
 0x59b   :  { %4400 = vst [vmem:[%s16340_s5 + $0x15f8] sm:$0xff] %v3376_v7  ;;  %4465 = vst [vmem:[%s16340_s5 + $0x1800] sm:$0xff] %v3441_v11  ;;  %v3469_v60 = vmul.f32 %v5558_v15, %v14221_v37  ;;  %v3470_v1 = vmul.f32 %v5559_v57, %v14221_v37  ;;  %v5560_v58 = vld [vmem:[%s16335_s0 + $0x18f0] sm:$0xff]  ;;  %v5561_v19 = vld [vmem:[%s16335_s0 + $0x18f8] sm:$0xff] }
 0x59c   :  { %4466 = vst [vmem:[%s16340_s5 + $0x1808] sm:$0xff] %v3442_v14  ;;  %4467 = vst [vmem:[%s16340_s5 + $0x1810] sm:$0xff] %v3443_v17  ;;  %v3471_v7 = vmul.f32 %v5560_v58, %v14221_v37  ;;  %v3472_v11 = vmul.f32 %v5561_v19, %v14221_v37  ;;  %v5562_v37 = vld [vmem:[%s16335_s0 + $0x1700] sm:$0xff]  ;;  %v5563_v14 = vld [vmem:[%s16335_s0 + $0x1708] sm:$0xff] }
 0x59d   :  { %4468 = vst [vmem:[%s16340_s5 + $0x1818] sm:$0xff] %v3444_v18  ;;  %4469 = vst [vmem:[%s16340_s5 + $0x1820] sm:$0xff] %v3445_v3  ;;  %v3409_v13 = vmul.f32 %v5562_v37, %v14447_v59  ;;  %v3410_v16 = vmul.f32 %v5563_v14, %v14447_v59  ;;  %v5564_v17 = vld [vmem:[%s16335_s0 + $0x1710] sm:$0xff]  ;;  %v5565_v18 = vld [vmem:[%s16335_s0 + $0x1718] sm:$0xff] }
 0x59e   :  { %4470 = vst [vmem:[%s16340_s5 + $0x1828] sm:$0xff] %v3446_v22  ;;  %4471 = vst [vmem:[%s16340_s5 + $0x1830] sm:$0xff] %v3447_v24  ;;  %v3411_v0 = vmul.f32 %v5564_v17, %v14447_v59  ;;  %v3412_v20 = vmul.f32 %v5565_v18, %v14447_v59  ;;  %v5566_v3 = vld [vmem:[%s16335_s0 + $0x1720] sm:$0xff]  ;;  %v5567_v22 = vld [vmem:[%s16335_s0 + $0x1728] sm:$0xff] }
 0x59f   :  { %4472 = vst [vmem:[%s16340_s5 + $0x1838] sm:$0xff] %v3448_v26  ;;  %4473 = vst [vmem:[%s16340_s5 + $0x1840] sm:$0xff] %v3449_v4  ;;  %v3413_v21 = vmul.f32 %v5566_v3, %v14447_v59  ;;  %v3414_v23 = vmul.f32 %v5567_v22, %v14447_v59  ;;  %v5568_v24 = vld [vmem:[%s16335_s0 + $0x1730] sm:$0xff]  ;;  %v5569_v26 = vld [vmem:[%s16335_s0 + $0x1738] sm:$0xff] }
 0x5a0   :  { %4474 = vst [vmem:[%s16340_s5 + $0x1848] sm:$0xff] %v3450_v28  ;;  %4475 = vst [vmem:[%s16340_s5 + $0x1850] sm:$0xff] %v3451_v30  ;;  %v3415_v25 = vmul.f32 %v5568_v24, %v14447_v59  ;;  %v3416_v2 = vmul.f32 %v5569_v26, %v14447_v59  ;;  %v5570_v4 = vld [vmem:[%s16335_s0 + $0x1740] sm:$0xff]  ;;  %v5571_v28 = vld [vmem:[%s16335_s0 + $0x1748] sm:$0xff] }
 0x5a1   :  { %4476 = vst [vmem:[%s16340_s5 + $0x1858] sm:$0xff] %v3452_v32  ;;  %4477 = vst [vmem:[%s16340_s5 + $0x1860] sm:$0xff] %v3453_v35  ;;  %v3417_v27 = vmul.f32 %v5570_v4, %v14447_v59  ;;  %v3418_v29 = vmul.f32 %v5571_v28, %v14447_v59  ;;  %v5572_v30 = vld [vmem:[%s16335_s0 + $0x1750] sm:$0xff]  ;;  %v5573_v32 = vld [vmem:[%s16335_s0 + $0x1758] sm:$0xff] }
 0x5a2   :  { %4478 = vst [vmem:[%s16340_s5 + $0x1868] sm:$0xff] %v3454_v41  ;;  %4479 = vst [vmem:[%s16340_s5 + $0x1870] sm:$0xff] %v3455_v45  ;;  %v3419_v31 = vmul.f32 %v5572_v30, %v14447_v59  ;;  %v3420_v33 = vmul.f32 %v5573_v32, %v14447_v59  ;;  %v5574_v35 = vld [vmem:[%s16335_s0 + $0x1760] sm:$0xff]  ;;  %v5575_v41 = vld [vmem:[%s16335_s0 + $0x1768] sm:$0xff] }
 0x5a3   :  { %4480 = vst [vmem:[%s16340_s5 + $0x1878] sm:$0xff] %v3456_v5  ;;  %4481 = vst [vmem:[%s16340_s5 + $0x1880] sm:$0xff] %v3457_v12  ;;  %v3421_v39 = vmul.f32 %v5574_v35, %v14447_v59  ;;  %v3422_v38 = vmul.f32 %v5575_v41, %v14447_v59  ;;  %v5576_v45 = vld [vmem:[%s16335_s0 + $0x1770] sm:$0xff]  ;;  %v5577_v5 = vld [vmem:[%s16335_s0 + $0x1778] sm:$0xff] }
 0x5a4   :  { %4482 = vst [vmem:[%s16340_s5 + $0x1888] sm:$0xff] %v3458_v36  ;;  %4483 = vst [vmem:[%s16340_s5 + $0x1890] sm:$0xff] %v3459_v42  ;;  %v3423_v6 = vmul.f32 %v5576_v45, %v14447_v59  ;;  %v3424_v8 = vmul.f32 %v5577_v5, %v14447_v59  ;;  %v5578_v12 = vld [vmem:[%s16335_s0 + $0x1780] sm:$0xff]  ;;  %v5579_v36 = vld [vmem:[%s16335_s0 + $0x1788] sm:$0xff] }
 0x5a5   :  { %4484 = vst [vmem:[%s16340_s5 + $0x1898] sm:$0xff] %v3460_v46  ;;  %4485 = vst [vmem:[%s16340_s5 + $0x18a0] sm:$0xff] %v3461_v48  ;;  %v3425_v34 = vmul.f32 %v5578_v12, %v14447_v59  ;;  %v3426_v40 = vmul.f32 %v5579_v36, %v14447_v59  ;;  %v5580_v42 = vld [vmem:[%s16335_s0 + $0x1790] sm:$0xff]  ;;  %v5581_v46 = vld [vmem:[%s16335_s0 + $0x1798] sm:$0xff] }
 0x5a6   :  { %4486 = vst [vmem:[%s16340_s5 + $0x18a8] sm:$0xff] %v3462_v50  ;;  %4487 = vst [vmem:[%s16340_s5 + $0x18b0] sm:$0xff] %v3463_v9  ;;  %v3427_v44 = vmul.f32 %v5580_v42, %v14447_v59  ;;  %v3428_v47 = vmul.f32 %v5581_v46, %v14447_v59  ;;  %v5582_v48 = vld [vmem:[%s16335_s0 + $0x17a0] sm:$0xff]  ;;  %v5583_v50 = vld [vmem:[%s16335_s0 + $0x17a8] sm:$0xff] }
 0x5a7   :  { %4488 = vst [vmem:[%s16340_s5 + $0x18b8] sm:$0xff] %v3464_v53  ;;  %4489 = vst [vmem:[%s16340_s5 + $0x18c0] sm:$0xff] %v3465_v61  ;;  %v3429_v49 = vmul.f32 %v5582_v48, %v14447_v59  ;;  %v3430_v51 = vmul.f32 %v5583_v50, %v14447_v59  ;;  %v5584_v9 = vld [vmem:[%s16335_s0 + $0x17b0] sm:$0xff]  ;;  %v5585_v53 = vld [vmem:[%s16335_s0 + $0x17b8] sm:$0xff]  ;;  %v14673_v61 = vpop.permute.xlu0 %2651 }
 0x5a8   :  { %4490 = vst [vmem:[%s16340_s5 + $0x18c8] sm:$0xff] %v3466_v62  ;;  %4491 = vst [vmem:[%s16340_s5 + $0x18d0] sm:$0xff] %v3467_v63  ;;  %v3431_v52 = vmul.f32 %v5584_v9, %v14447_v59  ;;  %v3432_v54 = vmul.f32 %v5585_v53, %v14447_v59  ;;  %v5586_v55 = vld [vmem:[%s16335_s0 + $0x17c0] sm:$0xff]  ;;  %v5587_v56 = vld [vmem:[%s16335_s0 + $0x17c8] sm:$0xff] }
 0x5a9   :  { %4492 = vst [vmem:[%s16340_s5 + $0x18d8] sm:$0xff] %v3468_v43  ;;  %4493 = vst [vmem:[%s16340_s5 + $0x18e0] sm:$0xff] %v3469_v60  ;;  %v3433_v62 = vmul.f32 %v5586_v55, %v14447_v59  ;;  %v3434_v63 = vmul.f32 %v5587_v56, %v14447_v59  ;;  %v5588_v10 = vld [vmem:[%s16335_s0 + $0x17d0] sm:$0xff]  ;;  %v5589_v15 = vld [vmem:[%s16335_s0 + $0x17d8] sm:$0xff] }
 0x5aa   :  { %4494 = vst [vmem:[%s16340_s5 + $0x18e8] sm:$0xff] %v3470_v1  ;;  %4495 = vst [vmem:[%s16340_s5 + $0x18f0] sm:$0xff] %v3471_v7  ;;  %v3435_v43 = vmul.f32 %v5588_v10, %v14447_v59  ;;  %v3436_v60 = vmul.f32 %v5589_v15, %v14447_v59  ;;  %v5590_v57 = vld [vmem:[%s16335_s0 + $0x17e0] sm:$0xff]  ;;  %v5591_v58 = vld [vmem:[%s16335_s0 + $0x17e8] sm:$0xff] }
 0x5ab   :  { %4496 = vst [vmem:[%s16340_s5 + $0x18f8] sm:$0xff] %v3472_v11  ;;  %4433 = vst [vmem:[%s16340_s5 + $0x1700] sm:$0xff] %v3409_v13  ;;  %v3437_v1 = vmul.f32 %v5590_v57, %v14447_v59  ;;  %v3438_v7 = vmul.f32 %v5591_v58, %v14447_v59  ;;  %v5592_v19 = vld [vmem:[%s16335_s0 + $0x17f0] sm:$0xff]  ;;  %v5593_v37 = vld [vmem:[%s16335_s0 + $0x17f8] sm:$0xff] }
 0x5ac   :  { %4434 = vst [vmem:[%s16340_s5 + $0x1708] sm:$0xff] %v3410_v16  ;;  %4435 = vst [vmem:[%s16340_s5 + $0x1710] sm:$0xff] %v3411_v0  ;;  %v3439_v11 = vmul.f32 %v5592_v19, %v14447_v59  ;;  %v3440_v13 = vmul.f32 %v5593_v37, %v14447_v59  ;;  %v5594_v59 = vld [vmem:[%s16335_s0 + $0x1a00] sm:$0xff]  ;;  %v5595_v16 = vld [vmem:[%s16335_s0 + $0x1a08] sm:$0xff] }
 0x5ad   :  { %4436 = vst [vmem:[%s16340_s5 + $0x1718] sm:$0xff] %v3412_v20  ;;  %4437 = vst [vmem:[%s16340_s5 + $0x1720] sm:$0xff] %v3413_v21  ;;  %v3505_v14 = vmul.f32 %v5594_v59, %v14673_v61  ;;  %v3506_v17 = vmul.f32 %v5595_v16, %v14673_v61  ;;  %v5596_v0 = vld [vmem:[%s16335_s0 + $0x1a10] sm:$0xff]  ;;  %v5597_v20 = vld [vmem:[%s16335_s0 + $0x1a18] sm:$0xff] }
 0x5ae   :  { %4438 = vst [vmem:[%s16340_s5 + $0x1728] sm:$0xff] %v3414_v23  ;;  %4439 = vst [vmem:[%s16340_s5 + $0x1730] sm:$0xff] %v3415_v25  ;;  %v3507_v18 = vmul.f32 %v5596_v0, %v14673_v61  ;;  %v3508_v3 = vmul.f32 %v5597_v20, %v14673_v61  ;;  %v5598_v21 = vld [vmem:[%s16335_s0 + $0x1a20] sm:$0xff]  ;;  %v5599_v23 = vld [vmem:[%s16335_s0 + $0x1a28] sm:$0xff] }
 0x5af   :  { %4440 = vst [vmem:[%s16340_s5 + $0x1738] sm:$0xff] %v3416_v2  ;;  %4441 = vst [vmem:[%s16340_s5 + $0x1740] sm:$0xff] %v3417_v27  ;;  %v3509_v22 = vmul.f32 %v5598_v21, %v14673_v61  ;;  %v3510_v24 = vmul.f32 %v5599_v23, %v14673_v61  ;;  %v5600_v25 = vld [vmem:[%s16335_s0 + $0x1a30] sm:$0xff]  ;;  %v5601_v2 = vld [vmem:[%s16335_s0 + $0x1a38] sm:$0xff] }
 0x5b0   :  { %4442 = vst [vmem:[%s16340_s5 + $0x1748] sm:$0xff] %v3418_v29  ;;  %4443 = vst [vmem:[%s16340_s5 + $0x1750] sm:$0xff] %v3419_v31  ;;  %v3511_v26 = vmul.f32 %v5600_v25, %v14673_v61  ;;  %v3512_v4 = vmul.f32 %v5601_v2, %v14673_v61  ;;  %v5602_v27 = vld [vmem:[%s16335_s0 + $0x1a40] sm:$0xff]  ;;  %v5603_v29 = vld [vmem:[%s16335_s0 + $0x1a48] sm:$0xff] }
 0x5b1   :  { %4444 = vst [vmem:[%s16340_s5 + $0x1758] sm:$0xff] %v3420_v33  ;;  %4445 = vst [vmem:[%s16340_s5 + $0x1760] sm:$0xff] %v3421_v39  ;;  %v3513_v28 = vmul.f32 %v5602_v27, %v14673_v61  ;;  %v3514_v30 = vmul.f32 %v5603_v29, %v14673_v61  ;;  %v5604_v31 = vld [vmem:[%s16335_s0 + $0x1a50] sm:$0xff]  ;;  %v5605_v33 = vld [vmem:[%s16335_s0 + $0x1a58] sm:$0xff] }
 0x5b2   :  { %4446 = vst [vmem:[%s16340_s5 + $0x1768] sm:$0xff] %v3422_v38  ;;  %4447 = vst [vmem:[%s16340_s5 + $0x1770] sm:$0xff] %v3423_v6  ;;  %v3515_v32 = vmul.f32 %v5604_v31, %v14673_v61  ;;  %v3516_v35 = vmul.f32 %v5605_v33, %v14673_v61  ;;  %v5606_v39 = vld [vmem:[%s16335_s0 + $0x1a60] sm:$0xff]  ;;  %v5607_v38 = vld [vmem:[%s16335_s0 + $0x1a68] sm:$0xff] }
 0x5b3   :  { %4448 = vst [vmem:[%s16340_s5 + $0x1778] sm:$0xff] %v3424_v8  ;;  %4449 = vst [vmem:[%s16340_s5 + $0x1780] sm:$0xff] %v3425_v34  ;;  %v3517_v41 = vmul.f32 %v5606_v39, %v14673_v61  ;;  %v3518_v45 = vmul.f32 %v5607_v38, %v14673_v61  ;;  %v5608_v6 = vld [vmem:[%s16335_s0 + $0x1a70] sm:$0xff]  ;;  %v5609_v8 = vld [vmem:[%s16335_s0 + $0x1a78] sm:$0xff] }
 0x5b4   :  { %4450 = vst [vmem:[%s16340_s5 + $0x1788] sm:$0xff] %v3426_v40  ;;  %4451 = vst [vmem:[%s16340_s5 + $0x1790] sm:$0xff] %v3427_v44  ;;  %v3519_v5 = vmul.f32 %v5608_v6, %v14673_v61  ;;  %v3520_v12 = vmul.f32 %v5609_v8, %v14673_v61  ;;  %v5610_v34 = vld [vmem:[%s16335_s0 + $0x1a80] sm:$0xff]  ;;  %v5611_v40 = vld [vmem:[%s16335_s0 + $0x1a88] sm:$0xff] }
 0x5b5   :  { %4452 = vst [vmem:[%s16340_s5 + $0x1798] sm:$0xff] %v3428_v47  ;;  %4453 = vst [vmem:[%s16340_s5 + $0x17a0] sm:$0xff] %v3429_v49  ;;  %v3521_v36 = vmul.f32 %v5610_v34, %v14673_v61  ;;  %v3522_v42 = vmul.f32 %v5611_v40, %v14673_v61  ;;  %v5612_v44 = vld [vmem:[%s16335_s0 + $0x1a90] sm:$0xff]  ;;  %v5613_v47 = vld [vmem:[%s16335_s0 + $0x1a98] sm:$0xff] }
 0x5b6   :  { %4454 = vst [vmem:[%s16340_s5 + $0x17a8] sm:$0xff] %v3430_v51  ;;  %4455 = vst [vmem:[%s16340_s5 + $0x17b0] sm:$0xff] %v3431_v52  ;;  %v3523_v46 = vmul.f32 %v5612_v44, %v14673_v61  ;;  %v3524_v48 = vmul.f32 %v5613_v47, %v14673_v61  ;;  %v5614_v49 = vld [vmem:[%s16335_s0 + $0x1aa0] sm:$0xff]  ;;  %v5615_v51 = vld [vmem:[%s16335_s0 + $0x1aa8] sm:$0xff] }
 0x5b7   :  { %4456 = vst [vmem:[%s16340_s5 + $0x17b8] sm:$0xff] %v3432_v54  ;;  %4457 = vst [vmem:[%s16340_s5 + $0x17c0] sm:$0xff] %v3433_v62  ;;  %v3525_v50 = vmul.f32 %v5614_v49, %v14673_v61  ;;  %v3526_v9 = vmul.f32 %v5615_v51, %v14673_v61  ;;  %v5616_v52 = vld [vmem:[%s16335_s0 + $0x1ab0] sm:$0xff]  ;;  %v5617_v54 = vld [vmem:[%s16335_s0 + $0x1ab8] sm:$0xff]  ;;  %v14899_v62 = vpop.permute.xlu1 %2647 }
 0x5b8   :  { %4458 = vst [vmem:[%s16340_s5 + $0x17c8] sm:$0xff] %v3434_v63  ;;  %4459 = vst [vmem:[%s16340_s5 + $0x17d0] sm:$0xff] %v3435_v43  ;;  %v3527_v53 = vmul.f32 %v5616_v52, %v14673_v61  ;;  %v3528_v55 = vmul.f32 %v5617_v54, %v14673_v61  ;;  %v5618_v56 = vld [vmem:[%s16335_s0 + $0x1ac0] sm:$0xff]  ;;  %v5619_v10 = vld [vmem:[%s16335_s0 + $0x1ac8] sm:$0xff] }
 0x5b9   :  { %4460 = vst [vmem:[%s16340_s5 + $0x17d8] sm:$0xff] %v3436_v60  ;;  %4461 = vst [vmem:[%s16340_s5 + $0x17e0] sm:$0xff] %v3437_v1  ;;  %v3529_v63 = vmul.f32 %v5618_v56, %v14673_v61  ;;  %v3530_v43 = vmul.f32 %v5619_v10, %v14673_v61  ;;  %v5620_v15 = vld [vmem:[%s16335_s0 + $0x1ad0] sm:$0xff]  ;;  %v5621_v57 = vld [vmem:[%s16335_s0 + $0x1ad8] sm:$0xff] }
 0x5ba   :  { %4462 = vst [vmem:[%s16340_s5 + $0x17e8] sm:$0xff] %v3438_v7  ;;  %4463 = vst [vmem:[%s16340_s5 + $0x17f0] sm:$0xff] %v3439_v11  ;;  %v3531_v60 = vmul.f32 %v5620_v15, %v14673_v61  ;;  %v3532_v1 = vmul.f32 %v5621_v57, %v14673_v61  ;;  %v5622_v58 = vld [vmem:[%s16335_s0 + $0x1ae0] sm:$0xff]  ;;  %v5623_v19 = vld [vmem:[%s16335_s0 + $0x1ae8] sm:$0xff] }
 0x5bb   :  { %4464 = vst [vmem:[%s16340_s5 + $0x17f8] sm:$0xff] %v3440_v13  ;;  %4529 = vst [vmem:[%s16340_s5 + $0x1a00] sm:$0xff] %v3505_v14  ;;  %v3533_v7 = vmul.f32 %v5622_v58, %v14673_v61  ;;  %v3534_v11 = vmul.f32 %v5623_v19, %v14673_v61  ;;  %v5624_v37 = vld [vmem:[%s16335_s0 + $0x1af0] sm:$0xff]  ;;  %v5625_v59 = vld [vmem:[%s16335_s0 + $0x1af8] sm:$0xff] }
 0x5bc   :  { %4530 = vst [vmem:[%s16340_s5 + $0x1a08] sm:$0xff] %v3506_v17  ;;  %4531 = vst [vmem:[%s16340_s5 + $0x1a10] sm:$0xff] %v3507_v18  ;;  %v3535_v13 = vmul.f32 %v5624_v37, %v14673_v61  ;;  %v3536_v14 = vmul.f32 %v5625_v59, %v14673_v61  ;;  %v5626_v61 = vld [vmem:[%s16335_s0 + $0x1900] sm:$0xff]  ;;  %v5627_v17 = vld [vmem:[%s16335_s0 + $0x1908] sm:$0xff] }
 0x5bd   :  { %4532 = vst [vmem:[%s16340_s5 + $0x1a18] sm:$0xff] %v3508_v3  ;;  %4533 = vst [vmem:[%s16340_s5 + $0x1a20] sm:$0xff] %v3509_v22  ;;  %v3473_v16 = vmul.f32 %v5626_v61, %v14899_v62  ;;  %v3474_v0 = vmul.f32 %v5627_v17, %v14899_v62  ;;  %v5628_v18 = vld [vmem:[%s16335_s0 + $0x1910] sm:$0xff]  ;;  %v5629_v3 = vld [vmem:[%s16335_s0 + $0x1918] sm:$0xff] }
 0x5be   :  { %4534 = vst [vmem:[%s16340_s5 + $0x1a28] sm:$0xff] %v3510_v24  ;;  %4535 = vst [vmem:[%s16340_s5 + $0x1a30] sm:$0xff] %v3511_v26  ;;  %v3475_v20 = vmul.f32 %v5628_v18, %v14899_v62  ;;  %v3476_v21 = vmul.f32 %v5629_v3, %v14899_v62  ;;  %v5630_v22 = vld [vmem:[%s16335_s0 + $0x1920] sm:$0xff]  ;;  %v5631_v24 = vld [vmem:[%s16335_s0 + $0x1928] sm:$0xff] }
 0x5bf   :  { %4536 = vst [vmem:[%s16340_s5 + $0x1a38] sm:$0xff] %v3512_v4  ;;  %4537 = vst [vmem:[%s16340_s5 + $0x1a40] sm:$0xff] %v3513_v28  ;;  %v3477_v23 = vmul.f32 %v5630_v22, %v14899_v62  ;;  %v3478_v25 = vmul.f32 %v5631_v24, %v14899_v62  ;;  %v5632_v26 = vld [vmem:[%s16335_s0 + $0x1930] sm:$0xff]  ;;  %v5633_v4 = vld [vmem:[%s16335_s0 + $0x1938] sm:$0xff] }
 0x5c0   :  { %4538 = vst [vmem:[%s16340_s5 + $0x1a48] sm:$0xff] %v3514_v30  ;;  %4539 = vst [vmem:[%s16340_s5 + $0x1a50] sm:$0xff] %v3515_v32  ;;  %v3479_v2 = vmul.f32 %v5632_v26, %v14899_v62  ;;  %v3480_v27 = vmul.f32 %v5633_v4, %v14899_v62  ;;  %v5634_v28 = vld [vmem:[%s16335_s0 + $0x1940] sm:$0xff]  ;;  %v5635_v30 = vld [vmem:[%s16335_s0 + $0x1948] sm:$0xff] }
 0x5c1   :  { %4540 = vst [vmem:[%s16340_s5 + $0x1a58] sm:$0xff] %v3516_v35  ;;  %4541 = vst [vmem:[%s16340_s5 + $0x1a60] sm:$0xff] %v3517_v41  ;;  %v3481_v29 = vmul.f32 %v5634_v28, %v14899_v62  ;;  %v3482_v31 = vmul.f32 %v5635_v30, %v14899_v62  ;;  %v5636_v32 = vld [vmem:[%s16335_s0 + $0x1950] sm:$0xff]  ;;  %v5637_v35 = vld [vmem:[%s16335_s0 + $0x1958] sm:$0xff] }
 0x5c2   :  { %4542 = vst [vmem:[%s16340_s5 + $0x1a68] sm:$0xff] %v3518_v45  ;;  %4543 = vst [vmem:[%s16340_s5 + $0x1a70] sm:$0xff] %v3519_v5  ;;  %v3483_v33 = vmul.f32 %v5636_v32, %v14899_v62  ;;  %v3484_v39 = vmul.f32 %v5637_v35, %v14899_v62  ;;  %v5638_v41 = vld [vmem:[%s16335_s0 + $0x1960] sm:$0xff]  ;;  %v5639_v45 = vld [vmem:[%s16335_s0 + $0x1968] sm:$0xff] }
 0x5c3   :  { %4544 = vst [vmem:[%s16340_s5 + $0x1a78] sm:$0xff] %v3520_v12  ;;  %4545 = vst [vmem:[%s16340_s5 + $0x1a80] sm:$0xff] %v3521_v36  ;;  %v3485_v38 = vmul.f32 %v5638_v41, %v14899_v62  ;;  %v3486_v6 = vmul.f32 %v5639_v45, %v14899_v62  ;;  %v5640_v5 = vld [vmem:[%s16335_s0 + $0x1970] sm:$0xff]  ;;  %v5641_v12 = vld [vmem:[%s16335_s0 + $0x1978] sm:$0xff] }
 0x5c4   :  { %4546 = vst [vmem:[%s16340_s5 + $0x1a88] sm:$0xff] %v3522_v42  ;;  %4547 = vst [vmem:[%s16340_s5 + $0x1a90] sm:$0xff] %v3523_v46  ;;  %v3487_v8 = vmul.f32 %v5640_v5, %v14899_v62  ;;  %v3488_v34 = vmul.f32 %v5641_v12, %v14899_v62  ;;  %v5642_v36 = vld [vmem:[%s16335_s0 + $0x1980] sm:$0xff]  ;;  %v5643_v42 = vld [vmem:[%s16335_s0 + $0x1988] sm:$0xff] }
 0x5c5   :  { %4548 = vst [vmem:[%s16340_s5 + $0x1a98] sm:$0xff] %v3524_v48  ;;  %4549 = vst [vmem:[%s16340_s5 + $0x1aa0] sm:$0xff] %v3525_v50  ;;  %v3489_v40 = vmul.f32 %v5642_v36, %v14899_v62  ;;  %v3490_v44 = vmul.f32 %v5643_v42, %v14899_v62  ;;  %v5644_v46 = vld [vmem:[%s16335_s0 + $0x1990] sm:$0xff]  ;;  %v5645_v48 = vld [vmem:[%s16335_s0 + $0x1998] sm:$0xff] }
 0x5c6   :  { %4550 = vst [vmem:[%s16340_s5 + $0x1aa8] sm:$0xff] %v3526_v9  ;;  %4551 = vst [vmem:[%s16340_s5 + $0x1ab0] sm:$0xff] %v3527_v53  ;;  %v3491_v47 = vmul.f32 %v5644_v46, %v14899_v62  ;;  %v3492_v49 = vmul.f32 %v5645_v48, %v14899_v62  ;;  %v5646_v50 = vld [vmem:[%s16335_s0 + $0x19a0] sm:$0xff]  ;;  %v5647_v9 = vld [vmem:[%s16335_s0 + $0x19a8] sm:$0xff] }
 0x5c7   :  { %4552 = vst [vmem:[%s16340_s5 + $0x1ab8] sm:$0xff] %v3528_v55  ;;  %4553 = vst [vmem:[%s16340_s5 + $0x1ac0] sm:$0xff] %v3529_v63  ;;  %v3493_v51 = vmul.f32 %v5646_v50, %v14899_v62  ;;  %v3494_v52 = vmul.f32 %v5647_v9, %v14899_v62  ;;  %v5648_v53 = vld [vmem:[%s16335_s0 + $0x19b0] sm:$0xff]  ;;  %v5649_v55 = vld [vmem:[%s16335_s0 + $0x19b8] sm:$0xff]  ;;  %v15125_v63 = vpop.permute.xlu0 %2659 }
 0x5c8   :  { %4554 = vst [vmem:[%s16340_s5 + $0x1ac8] sm:$0xff] %v3530_v43  ;;  %4555 = vst [vmem:[%s16340_s5 + $0x1ad0] sm:$0xff] %v3531_v60  ;;  %v3495_v54 = vmul.f32 %v5648_v53, %v14899_v62  ;;  %v3496_v56 = vmul.f32 %v5649_v55, %v14899_v62  ;;  %v5650_v10 = vld [vmem:[%s16335_s0 + $0x19c0] sm:$0xff]  ;;  %v5651_v15 = vld [vmem:[%s16335_s0 + $0x19c8] sm:$0xff] }
 0x5c9   :  { %4556 = vst [vmem:[%s16340_s5 + $0x1ad8] sm:$0xff] %v3532_v1  ;;  %4557 = vst [vmem:[%s16340_s5 + $0x1ae0] sm:$0xff] %v3533_v7  ;;  %v3497_v43 = vmul.f32 %v5650_v10, %v14899_v62  ;;  %v3498_v60 = vmul.f32 %v5651_v15, %v14899_v62  ;;  %v5652_v57 = vld [vmem:[%s16335_s0 + $0x19d0] sm:$0xff]  ;;  %v5653_v58 = vld [vmem:[%s16335_s0 + $0x19d8] sm:$0xff] }
 0x5ca   :  { %4558 = vst [vmem:[%s16340_s5 + $0x1ae8] sm:$0xff] %v3534_v11  ;;  %4559 = vst [vmem:[%s16340_s5 + $0x1af0] sm:$0xff] %v3535_v13  ;;  %v3499_v1 = vmul.f32 %v5652_v57, %v14899_v62  ;;  %v3500_v7 = vmul.f32 %v5653_v58, %v14899_v62  ;;  %v5654_v19 = vld [vmem:[%s16335_s0 + $0x19e0] sm:$0xff]  ;;  %v5655_v37 = vld [vmem:[%s16335_s0 + $0x19e8] sm:$0xff] }
 0x5cb   :  { %4560 = vst [vmem:[%s16340_s5 + $0x1af8] sm:$0xff] %v3536_v14  ;;  %4497 = vst [vmem:[%s16340_s5 + $0x1900] sm:$0xff] %v3473_v16  ;;  %v3501_v11 = vmul.f32 %v5654_v19, %v14899_v62  ;;  %v3502_v13 = vmul.f32 %v5655_v37, %v14899_v62  ;;  %v5656_v59 = vld [vmem:[%s16335_s0 + $0x19f0] sm:$0xff]  ;;  %v5657_v61 = vld [vmem:[%s16335_s0 + $0x19f8] sm:$0xff] }
 0x5cc   :  { %4498 = vst [vmem:[%s16340_s5 + $0x1908] sm:$0xff] %v3474_v0  ;;  %4499 = vst [vmem:[%s16340_s5 + $0x1910] sm:$0xff] %v3475_v20  ;;  %v3503_v14 = vmul.f32 %v5656_v59, %v14899_v62  ;;  %v3504_v16 = vmul.f32 %v5657_v61, %v14899_v62  ;;  %v5658_v62 = vld [vmem:[%s16335_s0 + $0x1c00] sm:$0xff]  ;;  %v5659_v0 = vld [vmem:[%s16335_s0 + $0x1c08] sm:$0xff] }
 0x5cd   :  { %4500 = vst [vmem:[%s16340_s5 + $0x1918] sm:$0xff] %v3476_v21  ;;  %4501 = vst [vmem:[%s16340_s5 + $0x1920] sm:$0xff] %v3477_v23  ;;  %v3569_v17 = vmul.f32 %v5658_v62, %v15125_v63  ;;  %v3570_v18 = vmul.f32 %v5659_v0, %v15125_v63  ;;  %v5660_v20 = vld [vmem:[%s16335_s0 + $0x1c10] sm:$0xff]  ;;  %v5661_v21 = vld [vmem:[%s16335_s0 + $0x1c18] sm:$0xff] }
 0x5ce   :  { %4502 = vst [vmem:[%s16340_s5 + $0x1928] sm:$0xff] %v3478_v25  ;;  %4503 = vst [vmem:[%s16340_s5 + $0x1930] sm:$0xff] %v3479_v2  ;;  %v3571_v3 = vmul.f32 %v5660_v20, %v15125_v63  ;;  %v3572_v22 = vmul.f32 %v5661_v21, %v15125_v63  ;;  %v5662_v23 = vld [vmem:[%s16335_s0 + $0x1c20] sm:$0xff]  ;;  %v5663_v25 = vld [vmem:[%s16335_s0 + $0x1c28] sm:$0xff] }
 0x5cf   :  { %4504 = vst [vmem:[%s16340_s5 + $0x1938] sm:$0xff] %v3480_v27  ;;  %4505 = vst [vmem:[%s16340_s5 + $0x1940] sm:$0xff] %v3481_v29  ;;  %v3573_v24 = vmul.f32 %v5662_v23, %v15125_v63  ;;  %v3574_v26 = vmul.f32 %v5663_v25, %v15125_v63  ;;  %v5664_v2 = vld [vmem:[%s16335_s0 + $0x1c30] sm:$0xff]  ;;  %v5665_v27 = vld [vmem:[%s16335_s0 + $0x1c38] sm:$0xff] }
 0x5d0   :  { %4506 = vst [vmem:[%s16340_s5 + $0x1948] sm:$0xff] %v3482_v31  ;;  %4507 = vst [vmem:[%s16340_s5 + $0x1950] sm:$0xff] %v3483_v33  ;;  %v3575_v4 = vmul.f32 %v5664_v2, %v15125_v63  ;;  %v3576_v28 = vmul.f32 %v5665_v27, %v15125_v63  ;;  %v5666_v29 = vld [vmem:[%s16335_s0 + $0x1c40] sm:$0xff]  ;;  %v5667_v31 = vld [vmem:[%s16335_s0 + $0x1c48] sm:$0xff] }
 0x5d1   :  { %4508 = vst [vmem:[%s16340_s5 + $0x1958] sm:$0xff] %v3484_v39  ;;  %4509 = vst [vmem:[%s16340_s5 + $0x1960] sm:$0xff] %v3485_v38  ;;  %v3577_v30 = vmul.f32 %v5666_v29, %v15125_v63  ;;  %v3578_v32 = vmul.f32 %v5667_v31, %v15125_v63  ;;  %v5668_v33 = vld [vmem:[%s16335_s0 + $0x1c50] sm:$0xff]  ;;  %v5669_v39 = vld [vmem:[%s16335_s0 + $0x1c58] sm:$0xff] }
 0x5d2   :  { %4510 = vst [vmem:[%s16340_s5 + $0x1968] sm:$0xff] %v3486_v6  ;;  %4511 = vst [vmem:[%s16340_s5 + $0x1970] sm:$0xff] %v3487_v8  ;;  %v3579_v35 = vmul.f32 %v5668_v33, %v15125_v63  ;;  %v3580_v41 = vmul.f32 %v5669_v39, %v15125_v63  ;;  %v5670_v38 = vld [vmem:[%s16335_s0 + $0x1c60] sm:$0xff]  ;;  %v5671_v6 = vld [vmem:[%s16335_s0 + $0x1c68] sm:$0xff] }
 0x5d3   :  { %4512 = vst [vmem:[%s16340_s5 + $0x1978] sm:$0xff] %v3488_v34  ;;  %4513 = vst [vmem:[%s16340_s5 + $0x1980] sm:$0xff] %v3489_v40  ;;  %v3581_v45 = vmul.f32 %v5670_v38, %v15125_v63  ;;  %v3582_v5 = vmul.f32 %v5671_v6, %v15125_v63  ;;  %v5672_v8 = vld [vmem:[%s16335_s0 + $0x1c70] sm:$0xff]  ;;  %v5673_v34 = vld [vmem:[%s16335_s0 + $0x1c78] sm:$0xff] }
 0x5d4   :  { %4514 = vst [vmem:[%s16340_s5 + $0x1988] sm:$0xff] %v3490_v44  ;;  %4515 = vst [vmem:[%s16340_s5 + $0x1990] sm:$0xff] %v3491_v47  ;;  %v3583_v12 = vmul.f32 %v5672_v8, %v15125_v63  ;;  %v3584_v36 = vmul.f32 %v5673_v34, %v15125_v63  ;;  %v5674_v40 = vld [vmem:[%s16335_s0 + $0x1c80] sm:$0xff]  ;;  %v5675_v44 = vld [vmem:[%s16335_s0 + $0x1c88] sm:$0xff] }
 0x5d5   :  { %4516 = vst [vmem:[%s16340_s5 + $0x1998] sm:$0xff] %v3492_v49  ;;  %4517 = vst [vmem:[%s16340_s5 + $0x19a0] sm:$0xff] %v3493_v51  ;;  %v3585_v42 = vmul.f32 %v5674_v40, %v15125_v63  ;;  %v3586_v46 = vmul.f32 %v5675_v44, %v15125_v63  ;;  %v5676_v47 = vld [vmem:[%s16335_s0 + $0x1c90] sm:$0xff]  ;;  %v5677_v49 = vld [vmem:[%s16335_s0 + $0x1c98] sm:$0xff] }
 0x5d6   :  { %4518 = vst [vmem:[%s16340_s5 + $0x19a8] sm:$0xff] %v3494_v52  ;;  %4519 = vst [vmem:[%s16340_s5 + $0x19b0] sm:$0xff] %v3495_v54  ;;  %v3587_v48 = vmul.f32 %v5676_v47, %v15125_v63  ;;  %v3588_v50 = vmul.f32 %v5677_v49, %v15125_v63  ;;  %v5678_v51 = vld [vmem:[%s16335_s0 + $0x1ca0] sm:$0xff]  ;;  %v5679_v52 = vld [vmem:[%s16335_s0 + $0x1ca8] sm:$0xff] }
 0x5d7   :  { %4520 = vst [vmem:[%s16340_s5 + $0x19b8] sm:$0xff] %v3496_v56  ;;  %4521 = vst [vmem:[%s16340_s5 + $0x19c0] sm:$0xff] %v3497_v43  ;;  %v3589_v9 = vmul.f32 %v5678_v51, %v15125_v63  ;;  %v3590_v53 = vmul.f32 %v5679_v52, %v15125_v63  ;;  %v5680_v54 = vld [vmem:[%s16335_s0 + $0x1cb0] sm:$0xff]  ;;  %v5681_v56 = vld [vmem:[%s16335_s0 + $0x1cb8] sm:$0xff]  ;;  %v15351_v43 = vpop.permute.xlu1 %2655 }
 0x5d8   :  { %4522 = vst [vmem:[%s16340_s5 + $0x19c8] sm:$0xff] %v3498_v60  ;;  %4523 = vst [vmem:[%s16340_s5 + $0x19d0] sm:$0xff] %v3499_v1  ;;  %v3591_v55 = vmul.f32 %v5680_v54, %v15125_v63  ;;  %v3592_v10 = vmul.f32 %v5681_v56, %v15125_v63  ;;  %v5682_v15 = vld [vmem:[%s16335_s0 + $0x1cc0] sm:$0xff]  ;;  %v5683_v57 = vld [vmem:[%s16335_s0 + $0x1cc8] sm:$0xff] }
 0x5d9   :  { %4524 = vst [vmem:[%s16340_s5 + $0x19d8] sm:$0xff] %v3500_v7  ;;  %4525 = vst [vmem:[%s16340_s5 + $0x19e0] sm:$0xff] %v3501_v11  ;;  %v3593_v60 = vmul.f32 %v5682_v15, %v15125_v63  ;;  %v3594_v1 = vmul.f32 %v5683_v57, %v15125_v63  ;;  %v5684_v58 = vld [vmem:[%s16335_s0 + $0x1cd0] sm:$0xff]  ;;  %v5685_v19 = vld [vmem:[%s16335_s0 + $0x1cd8] sm:$0xff] }
 0x5da   :  { %4526 = vst [vmem:[%s16340_s5 + $0x19e8] sm:$0xff] %v3502_v13  ;;  %4527 = vst [vmem:[%s16340_s5 + $0x19f0] sm:$0xff] %v3503_v14  ;;  %v3595_v7 = vmul.f32 %v5684_v58, %v15125_v63  ;;  %v3596_v11 = vmul.f32 %v5685_v19, %v15125_v63  ;;  %v5686_v37 = vld [vmem:[%s16335_s0 + $0x1ce0] sm:$0xff]  ;;  %v5687_v59 = vld [vmem:[%s16335_s0 + $0x1ce8] sm:$0xff] }
 0x5db   :  { %4528 = vst [vmem:[%s16340_s5 + $0x19f8] sm:$0xff] %v3504_v16  ;;  %4593 = vst [vmem:[%s16340_s5 + $0x1c00] sm:$0xff] %v3569_v17  ;;  %v3597_v13 = vmul.f32 %v5686_v37, %v15125_v63  ;;  %v3598_v14 = vmul.f32 %v5687_v59, %v15125_v63  ;;  %v5688_v61 = vld [vmem:[%s16335_s0 + $0x1cf0] sm:$0xff]  ;;  %v5689_v62 = vld [vmem:[%s16335_s0 + $0x1cf8] sm:$0xff] }
 0x5dc   :  { %4594 = vst [vmem:[%s16340_s5 + $0x1c08] sm:$0xff] %v3570_v18  ;;  %4595 = vst [vmem:[%s16340_s5 + $0x1c10] sm:$0xff] %v3571_v3  ;;  %v3599_v16 = vmul.f32 %v5688_v61, %v15125_v63  ;;  %v3600_v17 = vmul.f32 %v5689_v62, %v15125_v63  ;;  %v5690_v63 = vld [vmem:[%s16335_s0 + $0x1b00] sm:$0xff]  ;;  %v5691_v18 = vld [vmem:[%s16335_s0 + $0x1b08] sm:$0xff] }
 0x5dd   :  { %4596 = vst [vmem:[%s16340_s5 + $0x1c18] sm:$0xff] %v3572_v22  ;;  %4597 = vst [vmem:[%s16340_s5 + $0x1c20] sm:$0xff] %v3573_v24  ;;  %v3537_v0 = vmul.f32 %v5690_v63, %v15351_v43  ;;  %v3538_v20 = vmul.f32 %v5691_v18, %v15351_v43  ;;  %v5692_v3 = vld [vmem:[%s16335_s0 + $0x1b10] sm:$0xff]  ;;  %v5693_v22 = vld [vmem:[%s16335_s0 + $0x1b18] sm:$0xff] }
 0x5de   :  { %4598 = vst [vmem:[%s16340_s5 + $0x1c28] sm:$0xff] %v3574_v26  ;;  %4599 = vst [vmem:[%s16340_s5 + $0x1c30] sm:$0xff] %v3575_v4  ;;  %v3539_v21 = vmul.f32 %v5692_v3, %v15351_v43  ;;  %v3540_v23 = vmul.f32 %v5693_v22, %v15351_v43  ;;  %v5694_v24 = vld [vmem:[%s16335_s0 + $0x1b20] sm:$0xff]  ;;  %v5695_v26 = vld [vmem:[%s16335_s0 + $0x1b28] sm:$0xff] }
 0x5df   :  { %4600 = vst [vmem:[%s16340_s5 + $0x1c38] sm:$0xff] %v3576_v28  ;;  %4601 = vst [vmem:[%s16340_s5 + $0x1c40] sm:$0xff] %v3577_v30  ;;  %v3541_v25 = vmul.f32 %v5694_v24, %v15351_v43  ;;  %v3542_v2 = vmul.f32 %v5695_v26, %v15351_v43  ;;  %v5696_v4 = vld [vmem:[%s16335_s0 + $0x1b30] sm:$0xff]  ;;  %v5697_v28 = vld [vmem:[%s16335_s0 + $0x1b38] sm:$0xff] }
 0x5e0   :  { %4602 = vst [vmem:[%s16340_s5 + $0x1c48] sm:$0xff] %v3578_v32  ;;  %4603 = vst [vmem:[%s16340_s5 + $0x1c50] sm:$0xff] %v3579_v35  ;;  %v3543_v27 = vmul.f32 %v5696_v4, %v15351_v43  ;;  %v3544_v29 = vmul.f32 %v5697_v28, %v15351_v43  ;;  %v5698_v30 = vld [vmem:[%s16335_s0 + $0x1b40] sm:$0xff]  ;;  %v5699_v32 = vld [vmem:[%s16335_s0 + $0x1b48] sm:$0xff] }
 0x5e1   :  { %4604 = vst [vmem:[%s16340_s5 + $0x1c58] sm:$0xff] %v3580_v41  ;;  %4605 = vst [vmem:[%s16340_s5 + $0x1c60] sm:$0xff] %v3581_v45  ;;  %v3545_v31 = vmul.f32 %v5698_v30, %v15351_v43  ;;  %v3546_v33 = vmul.f32 %v5699_v32, %v15351_v43  ;;  %v5700_v35 = vld [vmem:[%s16335_s0 + $0x1b50] sm:$0xff]  ;;  %v5701_v41 = vld [vmem:[%s16335_s0 + $0x1b58] sm:$0xff] }
 0x5e2   :  { %4606 = vst [vmem:[%s16340_s5 + $0x1c68] sm:$0xff] %v3582_v5  ;;  %4607 = vst [vmem:[%s16340_s5 + $0x1c70] sm:$0xff] %v3583_v12  ;;  %v3547_v39 = vmul.f32 %v5700_v35, %v15351_v43  ;;  %v3548_v38 = vmul.f32 %v5701_v41, %v15351_v43  ;;  %v5702_v45 = vld [vmem:[%s16335_s0 + $0x1b60] sm:$0xff]  ;;  %v5703_v5 = vld [vmem:[%s16335_s0 + $0x1b68] sm:$0xff] }
 0x5e3   :  { %4608 = vst [vmem:[%s16340_s5 + $0x1c78] sm:$0xff] %v3584_v36  ;;  %4609 = vst [vmem:[%s16340_s5 + $0x1c80] sm:$0xff] %v3585_v42  ;;  %v3549_v6 = vmul.f32 %v5702_v45, %v15351_v43  ;;  %v3550_v8 = vmul.f32 %v5703_v5, %v15351_v43  ;;  %v5704_v12 = vld [vmem:[%s16335_s0 + $0x1b70] sm:$0xff]  ;;  %v5705_v36 = vld [vmem:[%s16335_s0 + $0x1b78] sm:$0xff] }
 0x5e4   :  { %4610 = vst [vmem:[%s16340_s5 + $0x1c88] sm:$0xff] %v3586_v46  ;;  %4611 = vst [vmem:[%s16340_s5 + $0x1c90] sm:$0xff] %v3587_v48  ;;  %v3551_v34 = vmul.f32 %v5704_v12, %v15351_v43  ;;  %v3552_v40 = vmul.f32 %v5705_v36, %v15351_v43  ;;  %v5706_v42 = vld [vmem:[%s16335_s0 + $0x1b80] sm:$0xff]  ;;  %v5707_v46 = vld [vmem:[%s16335_s0 + $0x1b88] sm:$0xff] }
 0x5e5   :  { %4612 = vst [vmem:[%s16340_s5 + $0x1c98] sm:$0xff] %v3588_v50  ;;  %4613 = vst [vmem:[%s16340_s5 + $0x1ca0] sm:$0xff] %v3589_v9  ;;  %v3553_v44 = vmul.f32 %v5706_v42, %v15351_v43  ;;  %v3554_v47 = vmul.f32 %v5707_v46, %v15351_v43  ;;  %v5708_v48 = vld [vmem:[%s16335_s0 + $0x1b90] sm:$0xff]  ;;  %v5709_v50 = vld [vmem:[%s16335_s0 + $0x1b98] sm:$0xff] }
 0x5e6   :  { %4614 = vst [vmem:[%s16340_s5 + $0x1ca8] sm:$0xff] %v3590_v53  ;;  %4615 = vst [vmem:[%s16340_s5 + $0x1cb0] sm:$0xff] %v3591_v55  ;;  %v3555_v49 = vmul.f32 %v5708_v48, %v15351_v43  ;;  %v3556_v51 = vmul.f32 %v5709_v50, %v15351_v43  ;;  %v5710_v9 = vld [vmem:[%s16335_s0 + $0x1ba0] sm:$0xff]  ;;  %v5711_v53 = vld [vmem:[%s16335_s0 + $0x1ba8] sm:$0xff] }
 0x5e7   :  { %4616 = vst [vmem:[%s16340_s5 + $0x1cb8] sm:$0xff] %v3592_v10  ;;  %4617 = vst [vmem:[%s16340_s5 + $0x1cc0] sm:$0xff] %v3593_v60  ;;  %v3557_v52 = vmul.f32 %v5710_v9, %v15351_v43  ;;  %v3558_v54 = vmul.f32 %v5711_v53, %v15351_v43  ;;  %v5712_v55 = vld [vmem:[%s16335_s0 + $0x1bb0] sm:$0xff]  ;;  %v5713_v10 = vld [vmem:[%s16335_s0 + $0x1bb8] sm:$0xff]  ;;  %v15577_v60 = vpop.permute.xlu0 %2667 }
 0x5e8   :  { %4618 = vst [vmem:[%s16340_s5 + $0x1cc8] sm:$0xff] %v3594_v1  ;;  %4619 = vst [vmem:[%s16340_s5 + $0x1cd0] sm:$0xff] %v3595_v7  ;;  %v3559_v56 = vmul.f32 %v5712_v55, %v15351_v43  ;;  %v3560_v15 = vmul.f32 %v5713_v10, %v15351_v43  ;;  %v5714_v57 = vld [vmem:[%s16335_s0 + $0x1bc0] sm:$0xff]  ;;  %v5715_v58 = vld [vmem:[%s16335_s0 + $0x1bc8] sm:$0xff] }
 0x5e9   :  { %4620 = vst [vmem:[%s16340_s5 + $0x1cd8] sm:$0xff] %v3596_v11  ;;  %4621 = vst [vmem:[%s16340_s5 + $0x1ce0] sm:$0xff] %v3597_v13  ;;  %v3561_v1 = vmul.f32 %v5714_v57, %v15351_v43  ;;  %v3562_v7 = vmul.f32 %v5715_v58, %v15351_v43  ;;  %v5716_v19 = vld [vmem:[%s16335_s0 + $0x1bd0] sm:$0xff]  ;;  %v5717_v37 = vld [vmem:[%s16335_s0 + $0x1bd8] sm:$0xff] }
 0x5ea   :  { %4622 = vst [vmem:[%s16340_s5 + $0x1ce8] sm:$0xff] %v3598_v14  ;;  %4623 = vst [vmem:[%s16340_s5 + $0x1cf0] sm:$0xff] %v3599_v16  ;;  %v3563_v11 = vmul.f32 %v5716_v19, %v15351_v43  ;;  %v3564_v13 = vmul.f32 %v5717_v37, %v15351_v43  ;;  %v5718_v59 = vld [vmem:[%s16335_s0 + $0x1be0] sm:$0xff]  ;;  %v5719_v61 = vld [vmem:[%s16335_s0 + $0x1be8] sm:$0xff] }
 0x5eb   :  { %4624 = vst [vmem:[%s16340_s5 + $0x1cf8] sm:$0xff] %v3600_v17  ;;  %4561 = vst [vmem:[%s16340_s5 + $0x1b00] sm:$0xff] %v3537_v0  ;;  %v3565_v14 = vmul.f32 %v5718_v59, %v15351_v43  ;;  %v3566_v16 = vmul.f32 %v5719_v61, %v15351_v43  ;;  %v5720_v62 = vld [vmem:[%s16335_s0 + $0x1bf0] sm:$0xff]  ;;  %v5721_v63 = vld [vmem:[%s16335_s0 + $0x1bf8] sm:$0xff] }
 0x5ec   :  { %4562 = vst [vmem:[%s16340_s5 + $0x1b08] sm:$0xff] %v3538_v20  ;;  %4563 = vst [vmem:[%s16340_s5 + $0x1b10] sm:$0xff] %v3539_v21  ;;  %v3567_v17 = vmul.f32 %v5720_v62, %v15351_v43  ;;  %v3568_v0 = vmul.f32 %v5721_v63, %v15351_v43  ;;  %v5722_v43 = vld [vmem:[%s16335_s0 + $0x1e00] sm:$0xff]  ;;  %v5723_v20 = vld [vmem:[%s16335_s0 + $0x1e08] sm:$0xff] }
 0x5ed   :  { %4564 = vst [vmem:[%s16340_s5 + $0x1b18] sm:$0xff] %v3540_v23  ;;  %4565 = vst [vmem:[%s16340_s5 + $0x1b20] sm:$0xff] %v3541_v25  ;;  %v3633_v18 = vmul.f32 %v5722_v43, %v15577_v60  ;;  %v3634_v3 = vmul.f32 %v5723_v20, %v15577_v60  ;;  %v5724_v21 = vld [vmem:[%s16335_s0 + $0x1e10] sm:$0xff]  ;;  %v5725_v23 = vld [vmem:[%s16335_s0 + $0x1e18] sm:$0xff] }
 0x5ee   :  { %4566 = vst [vmem:[%s16340_s5 + $0x1b28] sm:$0xff] %v3542_v2  ;;  %4567 = vst [vmem:[%s16340_s5 + $0x1b30] sm:$0xff] %v3543_v27  ;;  %v3635_v22 = vmul.f32 %v5724_v21, %v15577_v60  ;;  %v3636_v24 = vmul.f32 %v5725_v23, %v15577_v60  ;;  %v5726_v25 = vld [vmem:[%s16335_s0 + $0x1e20] sm:$0xff]  ;;  %v5727_v2 = vld [vmem:[%s16335_s0 + $0x1e28] sm:$0xff] }
 0x5ef   :  { %4568 = vst [vmem:[%s16340_s5 + $0x1b38] sm:$0xff] %v3544_v29  ;;  %4569 = vst [vmem:[%s16340_s5 + $0x1b40] sm:$0xff] %v3545_v31  ;;  %v3637_v26 = vmul.f32 %v5726_v25, %v15577_v60  ;;  %v3638_v4 = vmul.f32 %v5727_v2, %v15577_v60  ;;  %v5728_v27 = vld [vmem:[%s16335_s0 + $0x1e30] sm:$0xff]  ;;  %v5729_v29 = vld [vmem:[%s16335_s0 + $0x1e38] sm:$0xff] }
 0x5f0   :  { %4570 = vst [vmem:[%s16340_s5 + $0x1b48] sm:$0xff] %v3546_v33  ;;  %4571 = vst [vmem:[%s16340_s5 + $0x1b50] sm:$0xff] %v3547_v39  ;;  %v3639_v28 = vmul.f32 %v5728_v27, %v15577_v60  ;;  %v3640_v30 = vmul.f32 %v5729_v29, %v15577_v60  ;;  %v5730_v31 = vld [vmem:[%s16335_s0 + $0x1e40] sm:$0xff]  ;;  %v5731_v33 = vld [vmem:[%s16335_s0 + $0x1e48] sm:$0xff] }
 0x5f1   :  { %4572 = vst [vmem:[%s16340_s5 + $0x1b58] sm:$0xff] %v3548_v38  ;;  %4573 = vst [vmem:[%s16340_s5 + $0x1b60] sm:$0xff] %v3549_v6  ;;  %v3641_v32 = vmul.f32 %v5730_v31, %v15577_v60  ;;  %v3642_v35 = vmul.f32 %v5731_v33, %v15577_v60  ;;  %v5732_v39 = vld [vmem:[%s16335_s0 + $0x1e50] sm:$0xff]  ;;  %v5733_v38 = vld [vmem:[%s16335_s0 + $0x1e58] sm:$0xff] }
 0x5f2   :  { %4574 = vst [vmem:[%s16340_s5 + $0x1b68] sm:$0xff] %v3550_v8  ;;  %4575 = vst [vmem:[%s16340_s5 + $0x1b70] sm:$0xff] %v3551_v34  ;;  %v3643_v41 = vmul.f32 %v5732_v39, %v15577_v60  ;;  %v3644_v45 = vmul.f32 %v5733_v38, %v15577_v60  ;;  %v5734_v6 = vld [vmem:[%s16335_s0 + $0x1e60] sm:$0xff]  ;;  %v5735_v8 = vld [vmem:[%s16335_s0 + $0x1e68] sm:$0xff] }
 0x5f3   :  { %4576 = vst [vmem:[%s16340_s5 + $0x1b78] sm:$0xff] %v3552_v40  ;;  %4577 = vst [vmem:[%s16340_s5 + $0x1b80] sm:$0xff] %v3553_v44  ;;  %v3645_v5 = vmul.f32 %v5734_v6, %v15577_v60  ;;  %v3646_v12 = vmul.f32 %v5735_v8, %v15577_v60  ;;  %v5736_v34 = vld [vmem:[%s16335_s0 + $0x1e70] sm:$0xff]  ;;  %v5737_v40 = vld [vmem:[%s16335_s0 + $0x1e78] sm:$0xff] }
 0x5f4   :  { %4578 = vst [vmem:[%s16340_s5 + $0x1b88] sm:$0xff] %v3554_v47  ;;  %4579 = vst [vmem:[%s16340_s5 + $0x1b90] sm:$0xff] %v3555_v49  ;;  %v3647_v36 = vmul.f32 %v5736_v34, %v15577_v60  ;;  %v3648_v42 = vmul.f32 %v5737_v40, %v15577_v60  ;;  %v5738_v44 = vld [vmem:[%s16335_s0 + $0x1e80] sm:$0xff]  ;;  %v5739_v47 = vld [vmem:[%s16335_s0 + $0x1e88] sm:$0xff] }
 0x5f5   :  { %4580 = vst [vmem:[%s16340_s5 + $0x1b98] sm:$0xff] %v3556_v51  ;;  %4581 = vst [vmem:[%s16340_s5 + $0x1ba0] sm:$0xff] %v3557_v52  ;;  %v3649_v46 = vmul.f32 %v5738_v44, %v15577_v60  ;;  %v3650_v48 = vmul.f32 %v5739_v47, %v15577_v60  ;;  %v5740_v49 = vld [vmem:[%s16335_s0 + $0x1e90] sm:$0xff]  ;;  %v5741_v51 = vld [vmem:[%s16335_s0 + $0x1e98] sm:$0xff] }
 0x5f6   :  { %4582 = vst [vmem:[%s16340_s5 + $0x1ba8] sm:$0xff] %v3558_v54  ;;  %4583 = vst [vmem:[%s16340_s5 + $0x1bb0] sm:$0xff] %v3559_v56  ;;  %v3651_v50 = vmul.f32 %v5740_v49, %v15577_v60  ;;  %v3652_v9 = vmul.f32 %v5741_v51, %v15577_v60  ;;  %v5742_v52 = vld [vmem:[%s16335_s0 + $0x1ea0] sm:$0xff]  ;;  %v5743_v54 = vld [vmem:[%s16335_s0 + $0x1ea8] sm:$0xff] }
 0x5f7   :  { %4584 = vst [vmem:[%s16340_s5 + $0x1bb8] sm:$0xff] %v3560_v15  ;;  %4585 = vst [vmem:[%s16340_s5 + $0x1bc0] sm:$0xff] %v3561_v1  ;;  %v3653_v53 = vmul.f32 %v5742_v52, %v15577_v60  ;;  %v3654_v55 = vmul.f32 %v5743_v54, %v15577_v60  ;;  %v5744_v56 = vld [vmem:[%s16335_s0 + $0x1eb0] sm:$0xff]  ;;  %v5745_v15 = vld [vmem:[%s16335_s0 + $0x1eb8] sm:$0xff]  ;;  %v15803_v1 = vpop.permute.xlu1 %2663 }
 0x5f8   :  { %4586 = vst [vmem:[%s16340_s5 + $0x1bc8] sm:$0xff] %v3562_v7  ;;  %4587 = vst [vmem:[%s16340_s5 + $0x1bd0] sm:$0xff] %v3563_v11  ;;  %v3655_v10 = vmul.f32 %v5744_v56, %v15577_v60  ;;  %v3656_v57 = vmul.f32 %v5745_v15, %v15577_v60  ;;  %v5746_v58 = vld [vmem:[%s16335_s0 + $0x1ec0] sm:$0xff]  ;;  %v5747_v19 = vld [vmem:[%s16335_s0 + $0x1ec8] sm:$0xff] }
 0x5f9   :  { %4588 = vst [vmem:[%s16340_s5 + $0x1bd8] sm:$0xff] %v3564_v13  ;;  %4589 = vst [vmem:[%s16340_s5 + $0x1be0] sm:$0xff] %v3565_v14  ;;  %v3657_v7 = vmul.f32 %v5746_v58, %v15577_v60  ;;  %v3658_v11 = vmul.f32 %v5747_v19, %v15577_v60  ;;  %v5748_v37 = vld [vmem:[%s16335_s0 + $0x1ed0] sm:$0xff]  ;;  %v5749_v59 = vld [vmem:[%s16335_s0 + $0x1ed8] sm:$0xff] }
 0x5fa   :  { %4590 = vst [vmem:[%s16340_s5 + $0x1be8] sm:$0xff] %v3566_v16  ;;  %4591 = vst [vmem:[%s16340_s5 + $0x1bf0] sm:$0xff] %v3567_v17  ;;  %v3659_v13 = vmul.f32 %v5748_v37, %v15577_v60  ;;  %v3660_v14 = vmul.f32 %v5749_v59, %v15577_v60  ;;  %v5750_v61 = vld [vmem:[%s16335_s0 + $0x1ee0] sm:$0xff]  ;;  %v5751_v62 = vld [vmem:[%s16335_s0 + $0x1ee8] sm:$0xff] }
 0x5fb   :  { %4592 = vst [vmem:[%s16340_s5 + $0x1bf8] sm:$0xff] %v3568_v0  ;;  %4657 = vst [vmem:[%s16340_s5 + $0x1e00] sm:$0xff] %v3633_v18  ;;  %v3661_v16 = vmul.f32 %v5750_v61, %v15577_v60  ;;  %v3662_v17 = vmul.f32 %v5751_v62, %v15577_v60  ;;  %v5752_v63 = vld [vmem:[%s16335_s0 + $0x1ef0] sm:$0xff]  ;;  %v5753_v43 = vld [vmem:[%s16335_s0 + $0x1ef8] sm:$0xff] }
 0x5fc   :  { %4658 = vst [vmem:[%s16340_s5 + $0x1e08] sm:$0xff] %v3634_v3  ;;  %4659 = vst [vmem:[%s16340_s5 + $0x1e10] sm:$0xff] %v3635_v22  ;;  %v3663_v0 = vmul.f32 %v5752_v63, %v15577_v60  ;;  %v3664_v18 = vmul.f32 %v5753_v43, %v15577_v60  ;;  %v5754_v60 = vld [vmem:[%s16335_s0 + $0x1d00] sm:$0xff]  ;;  %v5755_v3 = vld [vmem:[%s16335_s0 + $0x1d08] sm:$0xff] }
 0x5fd   :  { %4660 = vst [vmem:[%s16340_s5 + $0x1e18] sm:$0xff] %v3636_v24  ;;  %4661 = vst [vmem:[%s16340_s5 + $0x1e20] sm:$0xff] %v3637_v26  ;;  %v3601_v20 = vmul.f32 %v5754_v60, %v15803_v1  ;;  %v3602_v21 = vmul.f32 %v5755_v3, %v15803_v1  ;;  %v5756_v22 = vld [vmem:[%s16335_s0 + $0x1d10] sm:$0xff]  ;;  %v5757_v24 = vld [vmem:[%s16335_s0 + $0x1d18] sm:$0xff] }
 0x5fe   :  { %4662 = vst [vmem:[%s16340_s5 + $0x1e28] sm:$0xff] %v3638_v4  ;;  %4663 = vst [vmem:[%s16340_s5 + $0x1e30] sm:$0xff] %v3639_v28  ;;  %v3603_v23 = vmul.f32 %v5756_v22, %v15803_v1  ;;  %v3604_v25 = vmul.f32 %v5757_v24, %v15803_v1  ;;  %v5758_v26 = vld [vmem:[%s16335_s0 + $0x1d20] sm:$0xff]  ;;  %v5759_v4 = vld [vmem:[%s16335_s0 + $0x1d28] sm:$0xff] }
 0x5ff   :  { %4664 = vst [vmem:[%s16340_s5 + $0x1e38] sm:$0xff] %v3640_v30  ;;  %4665 = vst [vmem:[%s16340_s5 + $0x1e40] sm:$0xff] %v3641_v32  ;;  %v3605_v2 = vmul.f32 %v5758_v26, %v15803_v1  ;;  %v3606_v27 = vmul.f32 %v5759_v4, %v15803_v1  ;;  %v5760_v28 = vld [vmem:[%s16335_s0 + $0x1d30] sm:$0xff]  ;;  %v5761_v30 = vld [vmem:[%s16335_s0 + $0x1d38] sm:$0xff] }
 0x600   :  { %4666 = vst [vmem:[%s16340_s5 + $0x1e48] sm:$0xff] %v3642_v35  ;;  %4667 = vst [vmem:[%s16340_s5 + $0x1e50] sm:$0xff] %v3643_v41  ;;  %v3607_v29 = vmul.f32 %v5760_v28, %v15803_v1  ;;  %v3608_v31 = vmul.f32 %v5761_v30, %v15803_v1  ;;  %v5762_v32 = vld [vmem:[%s16335_s0 + $0x1d40] sm:$0xff]  ;;  %v5763_v35 = vld [vmem:[%s16335_s0 + $0x1d48] sm:$0xff] }
 0x601   :  { %4668 = vst [vmem:[%s16340_s5 + $0x1e58] sm:$0xff] %v3644_v45  ;;  %4669 = vst [vmem:[%s16340_s5 + $0x1e60] sm:$0xff] %v3645_v5  ;;  %v3609_v33 = vmul.f32 %v5762_v32, %v15803_v1  ;;  %v3610_v39 = vmul.f32 %v5763_v35, %v15803_v1  ;;  %v5764_v41 = vld [vmem:[%s16335_s0 + $0x1d50] sm:$0xff]  ;;  %v5765_v45 = vld [vmem:[%s16335_s0 + $0x1d58] sm:$0xff] }
 0x602   :  { %4670 = vst [vmem:[%s16340_s5 + $0x1e68] sm:$0xff] %v3646_v12  ;;  %4671 = vst [vmem:[%s16340_s5 + $0x1e70] sm:$0xff] %v3647_v36  ;;  %v3611_v38 = vmul.f32 %v5764_v41, %v15803_v1  ;;  %v3612_v6 = vmul.f32 %v5765_v45, %v15803_v1  ;;  %v5766_v5 = vld [vmem:[%s16335_s0 + $0x1d60] sm:$0xff]  ;;  %v5767_v12 = vld [vmem:[%s16335_s0 + $0x1d68] sm:$0xff] }
 0x603   :  { %4672 = vst [vmem:[%s16340_s5 + $0x1e78] sm:$0xff] %v3648_v42  ;;  %4673 = vst [vmem:[%s16340_s5 + $0x1e80] sm:$0xff] %v3649_v46  ;;  %v3613_v8 = vmul.f32 %v5766_v5, %v15803_v1  ;;  %v3614_v34 = vmul.f32 %v5767_v12, %v15803_v1  ;;  %v5768_v36 = vld [vmem:[%s16335_s0 + $0x1d70] sm:$0xff]  ;;  %v5769_v42 = vld [vmem:[%s16335_s0 + $0x1d78] sm:$0xff] }
 0x604   :  { %4674 = vst [vmem:[%s16340_s5 + $0x1e88] sm:$0xff] %v3650_v48  ;;  %4675 = vst [vmem:[%s16340_s5 + $0x1e90] sm:$0xff] %v3651_v50  ;;  %v3615_v40 = vmul.f32 %v5768_v36, %v15803_v1  ;;  %v3616_v44 = vmul.f32 %v5769_v42, %v15803_v1  ;;  %v5770_v46 = vld [vmem:[%s16335_s0 + $0x1d80] sm:$0xff]  ;;  %v5771_v48 = vld [vmem:[%s16335_s0 + $0x1d88] sm:$0xff] }
 0x605   :  { %4676 = vst [vmem:[%s16340_s5 + $0x1e98] sm:$0xff] %v3652_v9  ;;  %4677 = vst [vmem:[%s16340_s5 + $0x1ea0] sm:$0xff] %v3653_v53  ;;  %v3617_v47 = vmul.f32 %v5770_v46, %v15803_v1  ;;  %v3618_v49 = vmul.f32 %v5771_v48, %v15803_v1  ;;  %v5772_v50 = vld [vmem:[%s16335_s0 + $0x1d90] sm:$0xff]  ;;  %v5773_v9 = vld [vmem:[%s16335_s0 + $0x1d98] sm:$0xff] }
 0x606   :  { %4678 = vst [vmem:[%s16340_s5 + $0x1ea8] sm:$0xff] %v3654_v55  ;;  %4679 = vst [vmem:[%s16340_s5 + $0x1eb0] sm:$0xff] %v3655_v10  ;;  %v3619_v51 = vmul.f32 %v5772_v50, %v15803_v1  ;;  %v3620_v52 = vmul.f32 %v5773_v9, %v15803_v1  ;;  %v5774_v53 = vld [vmem:[%s16335_s0 + $0x1da0] sm:$0xff]  ;;  %v5775_v55 = vld [vmem:[%s16335_s0 + $0x1da8] sm:$0xff] }
 0x607   :  { %4680 = vst [vmem:[%s16340_s5 + $0x1eb8] sm:$0xff] %v3656_v57  ;;  %4681 = vst [vmem:[%s16340_s5 + $0x1ec0] sm:$0xff] %v3657_v7  ;;  %v3621_v54 = vmul.f32 %v5774_v53, %v15803_v1  ;;  %v3622_v56 = vmul.f32 %v5775_v55, %v15803_v1  ;;  %v5776_v10 = vld [vmem:[%s16335_s0 + $0x1db0] sm:$0xff]  ;;  %v5777_v57 = vld [vmem:[%s16335_s0 + $0x1db8] sm:$0xff]  ;;  %v16029_v7 = vpop.permute.xlu1 %2671 }
 0x608   :  { %4682 = vst [vmem:[%s16340_s5 + $0x1ec8] sm:$0xff] %v3658_v11  ;;  %4683 = vst [vmem:[%s16340_s5 + $0x1ed0] sm:$0xff] %v3659_v13  ;;  %v3623_v15 = vmul.f32 %v5776_v10, %v15803_v1  ;;  %v3624_v58 = vmul.f32 %v5777_v57, %v15803_v1  ;;  %v5778_v19 = vld [vmem:[%s16335_s0 + $0x1dc0] sm:$0xff]  ;;  %v5779_v37 = vld [vmem:[%s16335_s0 + $0x1dc8] sm:$0xff] }
 0x609   :  { %4684 = vst [vmem:[%s16340_s5 + $0x1ed8] sm:$0xff] %v3660_v14  ;;  %4685 = vst [vmem:[%s16340_s5 + $0x1ee0] sm:$0xff] %v3661_v16  ;;  %v3625_v11 = vmul.f32 %v5778_v19, %v15803_v1  ;;  %v3626_v13 = vmul.f32 %v5779_v37, %v15803_v1  ;;  %v5780_v59 = vld [vmem:[%s16335_s0 + $0x1dd0] sm:$0xff]  ;;  %v5781_v61 = vld [vmem:[%s16335_s0 + $0x1dd8] sm:$0xff] }
 0x60a   :  { %4686 = vst [vmem:[%s16340_s5 + $0x1ee8] sm:$0xff] %v3662_v17  ;;  %4687 = vst [vmem:[%s16340_s5 + $0x1ef0] sm:$0xff] %v3663_v0  ;;  %v3627_v14 = vmul.f32 %v5780_v59, %v15803_v1  ;;  %v3628_v16 = vmul.f32 %v5781_v61, %v15803_v1  ;;  %v5782_v62 = vld [vmem:[%s16335_s0 + $0x1de0] sm:$0xff]  ;;  %v5783_v63 = vld [vmem:[%s16335_s0 + $0x1de8] sm:$0xff] }
 0x60b   :  { %4688 = vst [vmem:[%s16340_s5 + $0x1ef8] sm:$0xff] %v3664_v18  ;;  %4625 = vst [vmem:[%s16340_s5 + $0x1d00] sm:$0xff] %v3601_v20  ;;  %v3629_v17 = vmul.f32 %v5782_v62, %v15803_v1  ;;  %v3630_v0 = vmul.f32 %v5783_v63, %v15803_v1  ;;  %v5784_v43 = vld [vmem:[%s16335_s0 + $0x1df0] sm:$0xff]  ;;  %v5785_v60 = vld [vmem:[%s16335_s0 + $0x1df8] sm:$0xff] }
 0x60c   :  { %4626 = vst [vmem:[%s16340_s5 + $0x1d08] sm:$0xff] %v3602_v21  ;;  %4627 = vst [vmem:[%s16340_s5 + $0x1d10] sm:$0xff] %v3603_v23  ;;  %v3631_v18 = vmul.f32 %v5784_v43, %v15803_v1  ;;  %v3632_v20 = vmul.f32 %v5785_v60, %v15803_v1  ;;  %v5786_v1 = vld [vmem:[%s16335_s0 + $0x1f00] sm:$0xff]  ;;  %v5787_v21 = vld [vmem:[%s16335_s0 + $0x1f08] sm:$0xff] }
 0x60d   :  { %4628 = vst [vmem:[%s16340_s5 + $0x1d18] sm:$0xff] %v3604_v25  ;;  %4629 = vst [vmem:[%s16340_s5 + $0x1d20] sm:$0xff] %v3605_v2  ;;  %v3665_v3 = vmul.f32 %v5786_v1, %v16029_v7  ;;  %v3666_v22 = vmul.f32 %v5787_v21, %v16029_v7  ;;  %v5788_v23 = vld [vmem:[%s16335_s0 + $0x1f10] sm:$0xff]  ;;  %v5789_v25 = vld [vmem:[%s16335_s0 + $0x1f18] sm:$0xff] }
 0x60e   :  { %4630 = vst [vmem:[%s16340_s5 + $0x1d28] sm:$0xff] %v3606_v27  ;;  %4631 = vst [vmem:[%s16340_s5 + $0x1d30] sm:$0xff] %v3607_v29  ;;  %v3667_v24 = vmul.f32 %v5788_v23, %v16029_v7  ;;  %v3668_v26 = vmul.f32 %v5789_v25, %v16029_v7  ;;  %v5790_v2 = vld [vmem:[%s16335_s0 + $0x1f20] sm:$0xff]  ;;  %v5791_v27 = vld [vmem:[%s16335_s0 + $0x1f28] sm:$0xff] }
 0x60f   :  { %4632 = vst [vmem:[%s16340_s5 + $0x1d38] sm:$0xff] %v3608_v31  ;;  %4633 = vst [vmem:[%s16340_s5 + $0x1d40] sm:$0xff] %v3609_v33  ;;  %v3669_v4 = vmul.f32 %v5790_v2, %v16029_v7  ;;  %v3670_v28 = vmul.f32 %v5791_v27, %v16029_v7  ;;  %v5792_v29 = vld [vmem:[%s16335_s0 + $0x1f30] sm:$0xff]  ;;  %v5793_v31 = vld [vmem:[%s16335_s0 + $0x1f38] sm:$0xff] }
 0x610   :  { %4634 = vst [vmem:[%s16340_s5 + $0x1d48] sm:$0xff] %v3610_v39  ;;  %4635 = vst [vmem:[%s16340_s5 + $0x1d50] sm:$0xff] %v3611_v38  ;;  %v3671_v30 = vmul.f32 %v5792_v29, %v16029_v7  ;;  %v3672_v32 = vmul.f32 %v5793_v31, %v16029_v7  ;;  %v5794_v33 = vld [vmem:[%s16335_s0 + $0x1f40] sm:$0xff]  ;;  %v5795_v39 = vld [vmem:[%s16335_s0 + $0x1f48] sm:$0xff] }
 0x611   :  { %4636 = vst [vmem:[%s16340_s5 + $0x1d58] sm:$0xff] %v3612_v6  ;;  %4637 = vst [vmem:[%s16340_s5 + $0x1d60] sm:$0xff] %v3613_v8  ;;  %v3673_v35 = vmul.f32 %v5794_v33, %v16029_v7  ;;  %v3674_v41 = vmul.f32 %v5795_v39, %v16029_v7  ;;  %v5796_v38 = vld [vmem:[%s16335_s0 + $0x1f50] sm:$0xff]  ;;  %v5797_v6 = vld [vmem:[%s16335_s0 + $0x1f58] sm:$0xff] }
 0x612   :  { %4638 = vst [vmem:[%s16340_s5 + $0x1d68] sm:$0xff] %v3614_v34  ;;  %4639 = vst [vmem:[%s16340_s5 + $0x1d70] sm:$0xff] %v3615_v40  ;;  %v3675_v45 = vmul.f32 %v5796_v38, %v16029_v7  ;;  %v3676_v5 = vmul.f32 %v5797_v6, %v16029_v7  ;;  %v5798_v8 = vld [vmem:[%s16335_s0 + $0x1f60] sm:$0xff]  ;;  %v5799_v34 = vld [vmem:[%s16335_s0 + $0x1f68] sm:$0xff] }
 0x613   :  { %4640 = vst [vmem:[%s16340_s5 + $0x1d78] sm:$0xff] %v3616_v44  ;;  %4641 = vst [vmem:[%s16340_s5 + $0x1d80] sm:$0xff] %v3617_v47  ;;  %v3677_v12 = vmul.f32 %v5798_v8, %v16029_v7  ;;  %v3678_v36 = vmul.f32 %v5799_v34, %v16029_v7  ;;  %v5800_v40 = vld [vmem:[%s16335_s0 + $0x1f70] sm:$0xff]  ;;  %v5801_v44 = vld [vmem:[%s16335_s0 + $0x1f78] sm:$0xff] }
 0x614   :  { %4642 = vst [vmem:[%s16340_s5 + $0x1d88] sm:$0xff] %v3618_v49  ;;  %4643 = vst [vmem:[%s16340_s5 + $0x1d90] sm:$0xff] %v3619_v51  ;;  %v3679_v42 = vmul.f32 %v5800_v40, %v16029_v7  ;;  %v3680_v46 = vmul.f32 %v5801_v44, %v16029_v7  ;;  %v5802_v47 = vld [vmem:[%s16335_s0 + $0x1f80] sm:$0xff]  ;;  %v5803_v49 = vld [vmem:[%s16335_s0 + $0x1f88] sm:$0xff] }
 0x615   :  { %4644 = vst [vmem:[%s16340_s5 + $0x1d98] sm:$0xff] %v3620_v52  ;;  %4645 = vst [vmem:[%s16340_s5 + $0x1da0] sm:$0xff] %v3621_v54  ;;  %v3681_v48 = vmul.f32 %v5802_v47, %v16029_v7  ;;  %v3682_v50 = vmul.f32 %v5803_v49, %v16029_v7  ;;  %v5804_v51 = vld [vmem:[%s16335_s0 + $0x1f90] sm:$0xff]  ;;  %v5805_v52 = vld [vmem:[%s16335_s0 + $0x1f98] sm:$0xff] }
 0x616   :  { %4646 = vst [vmem:[%s16340_s5 + $0x1da8] sm:$0xff] %v3622_v56  ;;  %4647 = vst [vmem:[%s16340_s5 + $0x1db0] sm:$0xff] %v3623_v15  ;;  %v3683_v9 = vmul.f32 %v5804_v51, %v16029_v7  ;;  %v3684_v53 = vmul.f32 %v5805_v52, %v16029_v7  ;;  %v5806_v54 = vld [vmem:[%s16335_s0 + $0x1fa0] sm:$0xff]  ;;  %v5807_v56 = vld [vmem:[%s16335_s0 + $0x1fa8] sm:$0xff] }
 0x617   :  { %4648 = vst [vmem:[%s16340_s5 + $0x1db8] sm:$0xff] %v3624_v58  ;;  %4649 = vst [vmem:[%s16340_s5 + $0x1dc0] sm:$0xff] %v3625_v11  ;;  %v3685_v55 = vmul.f32 %v5806_v54, %v16029_v7  ;;  %v3686_v10 = vmul.f32 %v5807_v56, %v16029_v7  ;;  %v5808_v15 = vld [vmem:[%s16335_s0 + $0x1fb0] sm:$0xff]  ;;  %v5809_v58 = vld [vmem:[%s16335_s0 + $0x1fb8] sm:$0xff] }
 0x618   :  { %4650 = vst [vmem:[%s16340_s5 + $0x1dc8] sm:$0xff] %v3626_v13  ;;  %4651 = vst [vmem:[%s16340_s5 + $0x1dd0] sm:$0xff] %v3627_v14  ;;  %v3687_v57 = vmul.f32 %v5808_v15, %v16029_v7  ;;  %v3688_v19 = vmul.f32 %v5809_v58, %v16029_v7  ;;  %v5810_v11 = vld [vmem:[%s16335_s0 + $0x1fc0] sm:$0xff]  ;;  %v5811_v13 = vld [vmem:[%s16335_s0 + $0x1fc8] sm:$0xff] }
 0x619   :  { %4652 = vst [vmem:[%s16340_s5 + $0x1dd8] sm:$0xff] %v3628_v16  ;;  %4653 = vst [vmem:[%s16340_s5 + $0x1de0] sm:$0xff] %v3629_v17  ;;  %v3689_v37 = vmul.f32 %v5810_v11, %v16029_v7  ;;  %v3690_v59 = vmul.f32 %v5811_v13, %v16029_v7  ;;  %v5812_v14 = vld [vmem:[%s16335_s0 + $0x1fd0] sm:$0xff]  ;;  %v5813_v16 = vld [vmem:[%s16335_s0 + $0x1fd8] sm:$0xff] }
 0x61a   :  { %4654 = vst [vmem:[%s16340_s5 + $0x1de8] sm:$0xff] %v3630_v0  ;;  %4655 = vst [vmem:[%s16340_s5 + $0x1df0] sm:$0xff] %v3631_v18  ;;  %v3691_v61 = vmul.f32 %v5812_v14, %v16029_v7  ;;  %v3692_v62 = vmul.f32 %v5813_v16, %v16029_v7  ;;  %v5814_v17 = vld [vmem:[%s16335_s0 + $0x1fe0] sm:$0xff]  ;;  %v5815_v0 = vld [vmem:[%s16335_s0 + $0x1fe8] sm:$0xff] }
 0x61b   :  { %4656 = vst [vmem:[%s16340_s5 + $0x1df8] sm:$0xff] %v3632_v20  ;;  %4689 = vst [vmem:[%s16340_s5 + $0x1f00] sm:$0xff] %v3665_v3  ;;  %v3693_v63 = vmul.f32 %v5814_v17, %v16029_v7  ;;  %v3694_v43 = vmul.f32 %v5815_v0, %v16029_v7  ;;  %v5816_v18 = vld [vmem:[%s16335_s0 + $0x1ff0] sm:$0xff]  ;;  %v5817_v20 = vld [vmem:[%s16335_s0 + $0x1ff8] sm:$0xff] }
 0x61c   :  { %4690 = vst [vmem:[%s16340_s5 + $0x1f08] sm:$0xff] %v3666_v22  ;;  %4691 = vst [vmem:[%s16340_s5 + $0x1f10] sm:$0xff] %v3667_v24  ;;  %v3695_v60 = vmul.f32 %v5816_v18, %v16029_v7  ;;  %v3696_v1 = vmul.f32 %v5817_v20, %v16029_v7 }
 0x61d   :  { %4692 = vst [vmem:[%s16340_s5 + $0x1f18] sm:$0xff] %v3668_v26  ;;  %4693 = vst [vmem:[%s16340_s5 + $0x1f20] sm:$0xff] %v3669_v4 }
 0x61e   :  { %4694 = vst [vmem:[%s16340_s5 + $0x1f28] sm:$0xff] %v3670_v28  ;;  %4695 = vst [vmem:[%s16340_s5 + $0x1f30] sm:$0xff] %v3671_v30 }
 0x61f   :  { %4696 = vst [vmem:[%s16340_s5 + $0x1f38] sm:$0xff] %v3672_v32  ;;  %4697 = vst [vmem:[%s16340_s5 + $0x1f40] sm:$0xff] %v3673_v35 }
 0x620   :  { %4698 = vst [vmem:[%s16340_s5 + $0x1f48] sm:$0xff] %v3674_v41  ;;  %4699 = vst [vmem:[%s16340_s5 + $0x1f50] sm:$0xff] %v3675_v45 }
 0x621   :  { %4700 = vst [vmem:[%s16340_s5 + $0x1f58] sm:$0xff] %v3676_v5  ;;  %4701 = vst [vmem:[%s16340_s5 + $0x1f60] sm:$0xff] %v3677_v12 }
 0x622   :  { %4702 = vst [vmem:[%s16340_s5 + $0x1f68] sm:$0xff] %v3678_v36  ;;  %4703 = vst [vmem:[%s16340_s5 + $0x1f70] sm:$0xff] %v3679_v42 }
 0x623   :  { %4704 = vst [vmem:[%s16340_s5 + $0x1f78] sm:$0xff] %v3680_v46  ;;  %4705 = vst [vmem:[%s16340_s5 + $0x1f80] sm:$0xff] %v3681_v48 }
 0x624   :  { %4706 = vst [vmem:[%s16340_s5 + $0x1f88] sm:$0xff] %v3682_v50  ;;  %4707 = vst [vmem:[%s16340_s5 + $0x1f90] sm:$0xff] %v3683_v9 }
 0x625   :  { %4708 = vst [vmem:[%s16340_s5 + $0x1f98] sm:$0xff] %v3684_v53  ;;  %4709 = vst [vmem:[%s16340_s5 + $0x1fa0] sm:$0xff] %v3685_v55 }
 0x626   :  { %4710 = vst [vmem:[%s16340_s5 + $0x1fa8] sm:$0xff] %v3686_v10  ;;  %4711 = vst [vmem:[%s16340_s5 + $0x1fb0] sm:$0xff] %v3687_v57 }
 0x627   :  { %4712 = vst [vmem:[%s16340_s5 + $0x1fb8] sm:$0xff] %v3688_v19  ;;  %4713 = vst [vmem:[%s16340_s5 + $0x1fc0] sm:$0xff] %v3689_v37 }
 0x628   :  { %4714 = vst [vmem:[%s16340_s5 + $0x1fc8] sm:$0xff] %v3690_v59  ;;  %4715 = vst [vmem:[%s16340_s5 + $0x1fd0] sm:$0xff] %v3691_v61 }
 0x629   :  { %4716 = vst [vmem:[%s16340_s5 + $0x1fd8] sm:$0xff] %v3692_v62  ;;  %4717 = vst [vmem:[%s16340_s5 + $0x1fe0] sm:$0xff] %v3693_v63 }
 0x62a   :  { %4718 = vst [vmem:[%s16340_s5 + $0x1fe8] sm:$0xff] %v3694_v43  ;;  %4719 = vst [vmem:[%s16340_s5 + $0x1ff0] sm:$0xff] %v3695_v60 }
 0x62b   :  { %4720 = vst [vmem:[%s16340_s5 + $0x1ff8] sm:$0xff] %v3696_v1 }

</bundles_post_ra>
